<compile_context>
chip_gen: v5e
topology: v5e:2x2
jax: 0.10.0
libtpu: 0.0.40
codegen_flags: <defaults>
</compile_context>

<pallas_src>
import numpy as np
import jax
import jax.numpy as jnp
from jax import lax
from jax.experimental import pallas as pl
from jax.experimental.pallas import tpu as pltpu

EPS = 1e-5    # nn.BatchNorm2d default eps
COUT = 24     # all four conv layers output 24 channels
CPAD = 128    # lane-padded channel width used inside the kernel


def _out_hw(h, w):
    # Conv2d(kernel=3, stride=2, padding=1) output spatial size.
    return (h + 2 - 3) // 2 + 1, (w + 2 - 3) // 2 + 1


def _layer_dims(h, w):
    dims = []
    for _ in range(4):
        ho, wo = _out_hw(h, w)
        dims.append((h, w, ho, wo))
        h, w = ho, wo
    return dims


# ----------------------------------------------------------------------------
# The single fused kernel: conv1(+bias)+ReLU+BN -> ... -> conv4, all in VMEM.
# ----------------------------------------------------------------------------
def fused_convnet_kernel(x0_ref,
                         m1_ref, w1_ref, m2_ref, w2_ref,
                         m3_ref, w3_ref, m4_ref, w4_ref,
                         b_ref, g_ref, bt_ref, o_ref):
    """Entire ConvInputModel forward on VMEM-resident data.

    x0_ref : [N*H*W, CPAD]  bf16 flattened input image, channels padded to 128
    mN_ref : [9, P_N, P_{N-1}] bf16 one-hot patch-gather matrices (zero rows = padding)
    wN_ref : [9*CPAD, CPAD] bf16 tap-concatenated (along K) conv weights
    b/g/bt : [4, 1, CPAD]   f32 conv bias / BN gamma / BN beta (zero in pad lanes)
    o_ref  : [P4, CPAD]     f32 final activations (lane-dense slab)
    """

    def relu_bn(y, layer):
        # PyTorch order: (conv + bias) -> ReLU -> BatchNorm (training-mode stats).
        # All statistics / normalization math in f32.
        y = jnp.maximum(y + b_ref[layer], 0.0)
        mean = jnp.mean(y, axis=0, keepdims=True)                    # over (N, H, W)
        var = jnp.mean(jnp.square(y - mean), axis=0, keepdims=True)  # biased variance
        y = (y - mean) * lax.rsqrt(var + EPS)
        return y * g_ref[layer] + bt_ref[layer]

    x_bf = x0_ref[...]                       # bf16 MXU operand for layer 1
    y = None
    for layer, (m_ref, w_ref) in enumerate(
            ((m1_ref, w1_ref), (m2_ref, w2_ref),
             (m3_ref, w3_ref), (m4_ref, w4_ref))):
        if layer:
            x_bf = y.astype(jnp.bfloat16)    # bf16 operand, f32 math kept above

        # 9 gather dots -> lane-aligned [P, CPAD] pieces (offsets multiples of 128).
        pieces = [jnp.dot(m_ref[t], x_bf, preferred_element_type=jnp.float32)
                  for t in range(9)]
        patches = jnp.concatenate(pieces, axis=-1).astype(jnp.bfloat16)  # [P, 9*CPAD]

        # ONE matmul per layer: K = 9*CPAD contraction performs the tap sum on
        # the MXU (f32 accumulation), no serial VPU add chain.
        y = jnp.dot(patches, w_ref[...], preferred_element_type=jnp.float32)
        y = relu_bn(y, layer)

    o_ref[...] = y                           # lane-dense f32 store


# ----------------------------------------------------------------------------
# One-time preparation (hoisted off the per-forward path).
# ----------------------------------------------------------------------------
def _tap_gather_matrices(n, h, w):
    """One-hot row-gather matrices for a 3x3 / stride-2 / pad-1 conv.

    Returns [9, n*ho*wo, n*h*w] with M[t, p, q] = 1 iff output row p
    (flattened (n, oh, ow)) reads input row q (flattened (n, ih, iw)) for tap t.
    Taps that land in the zero padding have all-zero rows.
    """
    ho, wo = _out_hw(h, w)
    m = np.zeros((9, n * ho * wo, n * h * w), dtype=np.float32)
    for kh in range(3):
        for kw in range(3):
            t = kh * 3 + kw
            for b in range(n):
                for oh in range(ho):
                    ih = 2 * oh + kh - 1
                    if ih < 0 or ih >= h:
                        continue
                    for ow in range(wo):
                        iw = 2 * ow + kw - 1
                        if iw < 0 or iw >= w:
                            continue
                        m[t, (b * ho + oh) * wo + ow, (b * h + ih) * w + iw] = 1.0
    return m


def init_params(key):
    """Raw parameters mimicking PyTorch defaults (uniform +-1/sqrt(fan_in))."""
    layer_dims = [(3, COUT), (COUT, COUT), (COUT, COUT), (COUT, COUT)]
    params = []
    for cin, cout in layer_dims:
        key, kw_, kb_ = jax.random.split(key, 3)
        bound = 1.0 / np.sqrt(cin * 9)
        w = jax.random.uniform(kw_, (cout, cin, 3, 3), jnp.float32, -bound, bound)
        b = jax.random.uniform(kb_, (cout,), jnp.float32, -bound, bound)
        gamma = jnp.ones((cout,), jnp.float32)   # BatchNorm2d affine defaults
        beta = jnp.zeros((cout,), jnp.float32)
        params.append((w, b, gamma, beta))
    return params


def _wcat(w):
    """[Cout, Cin, 3, 3] -> tap-concatenated-along-K, lane-padded [9*CPAD, CPAD] bf16."""
    cout, cin, _, _ = w.shape
    wt = jnp.transpose(w, (2, 3, 1, 0)).reshape(9, cin, cout)         # [tap, cin, cout]
    wt = jnp.pad(wt, ((0, 0), (0, CPAD - cin), (0, CPAD - cout)))     # zero pad lanes
    return wt.reshape(9 * CPAD, CPAD).astype(jnp.bfloat16)


def prepare(params, img_shape):
    """Kernel-ready layouts: bf16 weight/gather constants, padded BN params."""
    n, cin, h, w = img_shape
    dims = _layer_dims(h, w)

    # Tap-concatenated weights for every layer (K = 9*CPAD).
    wcats = [_wcat(p[0]) for p in params]

    # Bias / gamma / beta padded to CPAD lanes with zeros (pad lanes stay exactly 0).
    def _pad_vec(vs):
        stk = jnp.stack(vs)                                            # [4, 24]
        return jnp.pad(stk, ((0, 0), (0, CPAD - COUT))).reshape(4, 1, CPAD).astype(jnp.float32)

    b_all = _pad_vec([p[1] for p in params])
    g_all = _pad_vec([p[2] for p in params])
    bt_all = _pad_vec([p[3] for p in params])

    # One-hot gather constants for all 4 layers (layer l gathers from layer
    # l-1's output rows; layer 0 gathers from the flattened input image).
    # bf16 is lossless for exact 0/1 values and halves their DMA bytes.
    gathers = [jnp.asarray(_tap_gather_matrices(n, dims[l][0], dims[l][1]),
                           dtype=jnp.bfloat16) for l in range(4)]

    return {"wcats": wcats, "gathers": gathers,
            "b": b_all, "gamma": g_all, "beta": bt_all}


# ----------------------------------------------------------------------------
# Forward wrapper.
# ----------------------------------------------------------------------------
def _full_spec(shape):
    return pl.BlockSpec(shape, lambda i, _z=(0,) * len(shape): _z)


def conv_input_model(img_nchw, prep):
    """Forward pass of ConvInputModel. NCHW in / NCHW out (PyTorch convention)."""
    n, cin, h, w = img_nchw.shape
    dims = _layer_dims(h, w)
    h4o, w4o = dims[3][2], dims[3][3]
    p4 = n * h4o * w4o

    # Wrapper glue is now only: NCHW -> flattened rows, lane-pad channels, bf16.
    x = jnp.transpose(img_nchw, (0, 2, 3, 1)).reshape(n * h * w, cin).astype(jnp.float32)
    x0 = jnp.pad(x, ((0, 0), (0, CPAD - cin))).astype(jnp.bfloat16)   # [N*H*W, CPAD]

    m1, m2, m3, m4 = prep["gathers"]
    w1, w2, w3, w4 = prep["wcats"]

    inputs = (x0, m1, w1, m2, w2, m3, w3, m4, w4,
              prep["b"], prep["gamma"], prep["beta"])

    # Advisory cost estimate.
    row_counts = [n * h * w] + [n * d[2] * d[3] for d in dims]
    flops = 0
    for l in range(4):
        prev_rows, rows = row_counts[l], row_counts[l + 1]
        flops += 9 * 2 * rows * prev_rows * CPAD          # gather dots
        flops += 2 * rows * (9 * CPAD) * CPAD             # single K=9*CPAD matmul
    bytes_acc = sum(int(np.prod(a.shape)) * a.dtype.itemsize for a in inputs) \
        + p4 * CPAD * 4

    out = pl.pallas_call(
        fused_convnet_kernel,
        out_shape=jax.ShapeDtypeStruct((p4, CPAD), jnp.float32),
        grid=(1,),
        in_specs=[_full_spec(a.shape) for a in inputs],
        out_specs=_full_spec((p4, CPAD)),
        compiler_params=pltpu.CompilerParams(dimension_semantics=("arbitrary",)),
        cost_estimate=pl.CostEstimate(flops=int(flops),
                                      transcendentals=4 * CPAD,
                                      bytes_accessed=int(bytes_acc)),
    )(*inputs)

    out = out[:, :COUT].reshape(n, h4o, w4o, COUT)
    return jnp.transpose(out, (0, 3, 1, 2))                           # NHWC -> NCHW


if __name__ == "__main__":
    key = jax.random.PRNGKey(0)
    k_img, k_par = jax.random.split(key)
    img = jax.random.normal(k_img, (2, 3, 16, 16), jnp.float32)       # NCHW like PyTorch

    params = init_params(k_par)
    prep = prepare(params, img.shape)   # one-time, hoisted off the forward path

    fwd = jax.jit(conv_input_model)
    out = jax.block_until_ready(fwd(img, prep))

    # 16 -> 8 -> 4 -> 2 -> 1 spatial, 24 channels out.
    assert out.shape == (2, 24, 1, 1), out.shape
    assert bool(jnp.all(jnp.isfinite(out)))
    print("KERNEL_OK")
</pallas_src>

<mosaic_0001>
module attributes {stable_mosaic.version = 11 : i64} {
  func.func @fused_convnet_kernel(%arg0: i32, %arg1: memref<512x128xbf16, #tpu.memory_space<vmem>>, %arg2: memref<9x128x512xbf16, #tpu.memory_space<vmem>>, %arg3: memref<1152x128xbf16, #tpu.memory_space<vmem>>, %arg4: memref<9x32x128xbf16, #tpu.memory_space<vmem>>, %arg5: memref<1152x128xbf16, #tpu.memory_space<vmem>>, %arg6: memref<9x8x32xbf16, #tpu.memory_space<vmem>>, %arg7: memref<1152x128xbf16, #tpu.memory_space<vmem>>, %arg8: memref<9x2x8xbf16, #tpu.memory_space<vmem>>, %arg9: memref<1152x128xbf16, #tpu.memory_space<vmem>>, %arg10: memref<4x1x128xf32, #tpu.memory_space<vmem>>, %arg11: memref<4x1x128xf32, #tpu.memory_space<vmem>>, %arg12: memref<4x1x128xf32, #tpu.memory_space<vmem>>, %arg13: memref<2x128xf32, #tpu.memory_space<vmem>>) attributes {dimension_semantics = [#tpu.dimension_semantics<arbitrary>], iteration_bounds = array<i64: 1>, scalar_prefetch = 0 : i64, scratch_operands = 0 : i64, tpu.core_type = #tpu.core_type<tc>, window_params = [{pipeline_mode = #tpu.pipeline_mode<synchronous>, transform_indices = @transform_0, window_bounds = array<i64: 512, 128>}, {pipeline_mode = #tpu.pipeline_mode<synchronous>, transform_indices = @transform_1, window_bounds = array<i64: 9, 128, 512>}, {pipeline_mode = #tpu.pipeline_mode<synchronous>, transform_indices = @transform_2, window_bounds = array<i64: 1152, 128>}, {pipeline_mode = #tpu.pipeline_mode<synchronous>, transform_indices = @transform_3, window_bounds = array<i64: 9, 32, 128>}, {pipeline_mode = #tpu.pipeline_mode<synchronous>, transform_indices = @transform_4, window_bounds = array<i64: 1152, 128>}, {pipeline_mode = #tpu.pipeline_mode<synchronous>, transform_indices = @transform_5, window_bounds = array<i64: 9, 8, 32>}, {pipeline_mode = #tpu.pipeline_mode<synchronous>, transform_indices = @transform_6, window_bounds = array<i64: 1152, 128>}, {pipeline_mode = #tpu.pipeline_mode<synchronous>, transform_indices = @transform_7, window_bounds = array<i64: 9, 2, 8>}, {pipeline_mode = #tpu.pipeline_mode<synchronous>, transform_indices = @transform_8, window_bounds = array<i64: 1152, 128>}, {pipeline_mode = #tpu.pipeline_mode<synchronous>, transform_indices = @transform_9, window_bounds = array<i64: 4, 1, 128>}, {pipeline_mode = #tpu.pipeline_mode<synchronous>, transform_indices = @transform_10, window_bounds = array<i64: 4, 1, 128>}, {pipeline_mode = #tpu.pipeline_mode<synchronous>, transform_indices = @transform_11, window_bounds = array<i64: 4, 1, 128>}, {pipeline_mode = #tpu.pipeline_mode<synchronous>, transform_indices = @transform_12, window_bounds = array<i64: 2, 128>}]} {
    %c0 = arith.constant 0 : index
    %c0_0 = arith.constant 0 : index
    %0 = vector.load %arg1[%c0, %c0_0] : memref<512x128xbf16, #tpu.memory_space<vmem>>, vector<512x128xbf16>
    %c0_1 = arith.constant 0 : index
    %c0_2 = arith.constant 0 : index
    %c0_3 = arith.constant 0 : index
    %1 = vector.load %arg2[%c0_1, %c0_2, %c0_3] : memref<9x128x512xbf16, #tpu.memory_space<vmem>>, vector<1x128x512xbf16>
    %2 = vector.shape_cast %1 : vector<1x128x512xbf16> to vector<128x512xbf16>
    %cst = arith.constant dense<0.000000e+00> : vector<128x128xf32>
    %3 = tpu.matmul %2, %0, %cst {dimension_numbers = #tpu.dot_dimension_numbers<[1], [0], [0], [1], [0, 0, 1, 1], [], []>} : vector<128x512xbf16>, vector<512x128xbf16>, vector<128x128xf32> -> vector<128x128xf32>
    %c1 = arith.constant 1 : index
    %c0_4 = arith.constant 0 : index
    %c0_5 = arith.constant 0 : index
    %4 = vector.load %arg2[%c1, %c0_4, %c0_5] : memref<9x128x512xbf16, #tpu.memory_space<vmem>>, vector<1x128x512xbf16>
    %5 = vector.shape_cast %4 : vector<1x128x512xbf16> to vector<128x512xbf16>
    %cst_6 = arith.constant dense<0.000000e+00> : vector<128x128xf32>
    %6 = tpu.matmul %5, %0, %cst_6 {dimension_numbers = #tpu.dot_dimension_numbers<[1], [0], [0], [1], [0, 0, 1, 1], [], []>} : vector<128x512xbf16>, vector<512x128xbf16>, vector<128x128xf32> -> vector<128x128xf32>
    %c2 = arith.constant 2 : index
    %c0_7 = arith.constant 0 : index
    %c0_8 = arith.constant 0 : index
    %7 = vector.load %arg2[%c2, %c0_7, %c0_8] : memref<9x128x512xbf16, #tpu.memory_space<vmem>>, vector<1x128x512xbf16>
    %8 = vector.shape_cast %7 : vector<1x128x512xbf16> to vector<128x512xbf16>
    %cst_9 = arith.constant dense<0.000000e+00> : vector<128x128xf32>
    %9 = tpu.matmul %8, %0, %cst_9 {dimension_numbers = #tpu.dot_dimension_numbers<[1], [0], [0], [1], [0, 0, 1, 1], [], []>} : vector<128x512xbf16>, vector<512x128xbf16>, vector<128x128xf32> -> vector<128x128xf32>
    %c3 = arith.constant 3 : index
    %c0_10 = arith.constant 0 : index
    %c0_11 = arith.constant 0 : index
    %10 = vector.load %arg2[%c3, %c0_10, %c0_11] : memref<9x128x512xbf16, #tpu.memory_space<vmem>>, vector<1x128x512xbf16>
    %11 = vector.shape_cast %10 : vector<1x128x512xbf16> to vector<128x512xbf16>
    %cst_12 = arith.constant dense<0.000000e+00> : vector<128x128xf32>
    %12 = tpu.matmul %11, %0, %cst_12 {dimension_numbers = #tpu.dot_dimension_numbers<[1], [0], [0], [1], [0, 0, 1, 1], [], []>} : vector<128x512xbf16>, vector<512x128xbf16>, vector<128x128xf32> -> vector<128x128xf32>
    %c4 = arith.constant 4 : index
    %c0_13 = arith.constant 0 : index
    %c0_14 = arith.constant 0 : index
    %13 = vector.load %arg2[%c4, %c0_13, %c0_14] : memref<9x128x512xbf16, #tpu.memory_space<vmem>>, vector<1x128x512xbf16>
    %14 = vector.shape_cast %13 : vector<1x128x512xbf16> to vector<128x512xbf16>
    %cst_15 = arith.constant dense<0.000000e+00> : vector<128x128xf32>
    %15 = tpu.matmul %14, %0, %cst_15 {dimension_numbers = #tpu.dot_dimension_numbers<[1], [0], [0], [1], [0, 0, 1, 1], [], []>} : vector<128x512xbf16>, vector<512x128xbf16>, vector<128x128xf32> -> vector<128x128xf32>
    %c5 = arith.constant 5 : index
    %c0_16 = arith.constant 0 : index
    %c0_17 = arith.constant 0 : index
    %16 = vector.load %arg2[%c5, %c0_16, %c0_17] : memref<9x128x512xbf16, #tpu.memory_space<vmem>>, vector<1x128x512xbf16>
    %17 = vector.shape_cast %16 : vector<1x128x512xbf16> to vector<128x512xbf16>
    %cst_18 = arith.constant dense<0.000000e+00> : vector<128x128xf32>
    %18 = tpu.matmul %17, %0, %cst_18 {dimension_numbers = #tpu.dot_dimension_numbers<[1], [0], [0], [1], [0, 0, 1, 1], [], []>} : vector<128x512xbf16>, vector<512x128xbf16>, vector<128x128xf32> -> vector<128x128xf32>
    %c6 = arith.constant 6 : index
    %c0_19 = arith.constant 0 : index
    %c0_20 = arith.constant 0 : index
    %19 = vector.load %arg2[%c6, %c0_19, %c0_20] : memref<9x128x512xbf16, #tpu.memory_space<vmem>>, vector<1x128x512xbf16>
    %20 = vector.shape_cast %19 : vector<1x128x512xbf16> to vector<128x512xbf16>
    %cst_21 = arith.constant dense<0.000000e+00> : vector<128x128xf32>
    %21 = tpu.matmul %20, %0, %cst_21 {dimension_numbers = #tpu.dot_dimension_numbers<[1], [0], [0], [1], [0, 0, 1, 1], [], []>} : vector<128x512xbf16>, vector<512x128xbf16>, vector<128x128xf32> -> vector<128x128xf32>
    %c7 = arith.constant 7 : index
    %c0_22 = arith.constant 0 : index
    %c0_23 = arith.constant 0 : index
    %22 = vector.load %arg2[%c7, %c0_22, %c0_23] : memref<9x128x512xbf16, #tpu.memory_space<vmem>>, vector<1x128x512xbf16>
    %23 = vector.shape_cast %22 : vector<1x128x512xbf16> to vector<128x512xbf16>
    %cst_24 = arith.constant dense<0.000000e+00> : vector<128x128xf32>
    %24 = tpu.matmul %23, %0, %cst_24 {dimension_numbers = #tpu.dot_dimension_numbers<[1], [0], [0], [1], [0, 0, 1, 1], [], []>} : vector<128x512xbf16>, vector<512x128xbf16>, vector<128x128xf32> -> vector<128x128xf32>
    %c8 = arith.constant 8 : index
    %c0_25 = arith.constant 0 : index
    %c0_26 = arith.constant 0 : index
    %25 = vector.load %arg2[%c8, %c0_25, %c0_26] : memref<9x128x512xbf16, #tpu.memory_space<vmem>>, vector<1x128x512xbf16>
    %26 = vector.shape_cast %25 : vector<1x128x512xbf16> to vector<128x512xbf16>
    %cst_27 = arith.constant dense<0.000000e+00> : vector<128x128xf32>
    %27 = tpu.matmul %26, %0, %cst_27 {dimension_numbers = #tpu.dot_dimension_numbers<[1], [0], [0], [1], [0, 0, 1, 1], [], []>} : vector<128x512xbf16>, vector<512x128xbf16>, vector<128x128xf32> -> vector<128x128xf32>
    %28 = tpu.concatenate %3, %6, %9, %12, %15, %18, %21, %24, %27 in 1 : vector<128x128xf32>, vector<128x128xf32>, vector<128x128xf32>, vector<128x128xf32>, vector<128x128xf32>, vector<128x128xf32>, vector<128x128xf32>, vector<128x128xf32>, vector<128x128xf32> -> vector<128x1152xf32>
    %29 = arith.truncf %28 : vector<128x1152xf32> to vector<128x1152xbf16>
    %c0_28 = arith.constant 0 : index
    %c0_29 = arith.constant 0 : index
    %30 = vector.load %arg3[%c0_28, %c0_29] : memref<1152x128xbf16, #tpu.memory_space<vmem>>, vector<1152x128xbf16>
    %cst_30 = arith.constant dense<0.000000e+00> : vector<128x128xf32>
    %31 = tpu.matmul %29, %30, %cst_30 {dimension_numbers = #tpu.dot_dimension_numbers<[1], [0], [0], [1], [0, 0, 1, 1], [], []>} : vector<128x1152xbf16>, vector<1152x128xbf16>, vector<128x128xf32> -> vector<128x128xf32>
    %c0_31 = arith.constant 0 : index
    %c0_32 = arith.constant 0 : index
    %c0_33 = arith.constant 0 : index
    %32 = vector.load %arg10[%c0_31, %c0_32, %c0_33] : memref<4x1x128xf32, #tpu.memory_space<vmem>>, vector<1x1x128xf32>
    %33 = vector.shape_cast %32 : vector<1x1x128xf32> to vector<1x128xf32>
    %34 = vector.broadcast %33 : vector<1x128xf32> to vector<128x128xf32>
    %35 = arith.addf %31, %34 : vector<128x128xf32>
    %cst_34 = arith.constant 0.000000e+00 : f32
    %36 = vector.broadcast %cst_34 : f32 to vector<128x128xf32>
    %37 = arith.maximumf %35, %36 : vector<128x128xf32>
    %cst_35 = arith.constant dense<0.000000e+00> : vector<128xf32>
    %38 = vector.multi_reduction <add>, %37, %cst_35 [0] : vector<128x128xf32> to vector<128xf32>
    %39 = vector.shape_cast %38 : vector<128xf32> to vector<1x128xf32>
    %cst_36 = arith.constant 1.280000e+02 : f32
    %40 = vector.broadcast %cst_36 : f32 to vector<1x128xf32>
    %41 = arith.divf %39, %40 : vector<1x128xf32>
    %42 = vector.broadcast %41 : vector<1x128xf32> to vector<128x128xf32>
    %43 = arith.subf %37, %42 : vector<128x128xf32>
    %44 = arith.mulf %43, %43 : vector<128x128xf32>
    %cst_37 = arith.constant dense<0.000000e+00> : vector<128xf32>
    %45 = vector.multi_reduction <add>, %44, %cst_37 [0] : vector<128x128xf32> to vector<128xf32>
    %46 = vector.shape_cast %45 : vector<128xf32> to vector<1x128xf32>
    %cst_38 = arith.constant 1.280000e+02 : f32
    %47 = vector.broadcast %cst_38 : f32 to vector<1x128xf32>
    %48 = arith.divf %46, %47 : vector<1x128xf32>
    %49 = vector.broadcast %41 : vector<1x128xf32> to vector<128x128xf32>
    %50 = arith.subf %37, %49 : vector<128x128xf32>
    %cst_39 = arith.constant 9.99999974E-6 : f32
    %51 = vector.broadcast %cst_39 : f32 to vector<1x128xf32>
    %52 = arith.addf %48, %51 : vector<1x128xf32>
    %53 = math.rsqrt %52 : vector<1x128xf32>
    %54 = vector.broadcast %53 : vector<1x128xf32> to vector<128x128xf32>
    %55 = arith.mulf %50, %54 : vector<128x128xf32>
    %c0_40 = arith.constant 0 : index
    %c0_41 = arith.constant 0 : index
    %c0_42 = arith.constant 0 : index
    %56 = vector.load %arg11[%c0_40, %c0_41, %c0_42] : memref<4x1x128xf32, #tpu.memory_space<vmem>>, vector<1x1x128xf32>
    %57 = vector.shape_cast %56 : vector<1x1x128xf32> to vector<1x128xf32>
    %58 = vector.broadcast %57 : vector<1x128xf32> to vector<128x128xf32>
    %59 = arith.mulf %55, %58 : vector<128x128xf32>
    %c0_43 = arith.constant 0 : index
    %c0_44 = arith.constant 0 : index
    %c0_45 = arith.constant 0 : index
    %60 = vector.load %arg12[%c0_43, %c0_44, %c0_45] : memref<4x1x128xf32, #tpu.memory_space<vmem>>, vector<1x1x128xf32>
    %61 = vector.shape_cast %60 : vector<1x1x128xf32> to vector<1x128xf32>
    %62 = vector.broadcast %61 : vector<1x128xf32> to vector<128x128xf32>
    %63 = arith.addf %59, %62 : vector<128x128xf32>
    %64 = arith.truncf %63 : vector<128x128xf32> to vector<128x128xbf16>
    %c0_46 = arith.constant 0 : index
    %c0_47 = arith.constant 0 : index
    %c0_48 = arith.constant 0 : index
    %65 = vector.load %arg4[%c0_46, %c0_47, %c0_48] : memref<9x32x128xbf16, #tpu.memory_space<vmem>>, vector<1x32x128xbf16>
    %66 = vector.shape_cast %65 : vector<1x32x128xbf16> to vector<32x128xbf16>
    %cst_49 = arith.constant dense<0.000000e+00> : vector<32x128xf32>
    %67 = tpu.matmul %66, %64, %cst_49 {dimension_numbers = #tpu.dot_dimension_numbers<[1], [0], [0], [1], [0, 0, 1, 1], [], []>} : vector<32x128xbf16>, vector<128x128xbf16>, vector<32x128xf32> -> vector<32x128xf32>
    %c1_50 = arith.constant 1 : index
    %c0_51 = arith.constant 0 : index
    %c0_52 = arith.constant 0 : index
    %68 = vector.load %arg4[%c1_50, %c0_51, %c0_52] : memref<9x32x128xbf16, #tpu.memory_space<vmem>>, vector<1x32x128xbf16>
    %69 = vector.shape_cast %68 : vector<1x32x128xbf16> to vector<32x128xbf16>
    %cst_53 = arith.constant dense<0.000000e+00> : vector<32x128xf32>
    %70 = tpu.matmul %69, %64, %cst_53 {dimension_numbers = #tpu.dot_dimension_numbers<[1], [0], [0], [1], [0, 0, 1, 1], [], []>} : vector<32x128xbf16>, vector<128x128xbf16>, vector<32x128xf32> -> vector<32x128xf32>
    %c2_54 = arith.constant 2 : index
    %c0_55 = arith.constant 0 : index
    %c0_56 = arith.constant 0 : index
    %71 = vector.load %arg4[%c2_54, %c0_55, %c0_56] : memref<9x32x128xbf16, #tpu.memory_space<vmem>>, vector<1x32x128xbf16>
    %72 = vector.shape_cast %71 : vector<1x32x128xbf16> to vector<32x128xbf16>
    %cst_57 = arith.constant dense<0.000000e+00> : vector<32x128xf32>
    %73 = tpu.matmul %72, %64, %cst_57 {dimension_numbers = #tpu.dot_dimension_numbers<[1], [0], [0], [1], [0, 0, 1, 1], [], []>} : vector<32x128xbf16>, vector<128x128xbf16>, vector<32x128xf32> -> vector<32x128xf32>
    %c3_58 = arith.constant 3 : index
    %c0_59 = arith.constant 0 : index
    %c0_60 = arith.constant 0 : index
    %74 = vector.load %arg4[%c3_58, %c0_59, %c0_60] : memref<9x32x128xbf16, #tpu.memory_space<vmem>>, vector<1x32x128xbf16>
    %75 = vector.shape_cast %74 : vector<1x32x128xbf16> to vector<32x128xbf16>
    %cst_61 = arith.constant dense<0.000000e+00> : vector<32x128xf32>
    %76 = tpu.matmul %75, %64, %cst_61 {dimension_numbers = #tpu.dot_dimension_numbers<[1], [0], [0], [1], [0, 0, 1, 1], [], []>} : vector<32x128xbf16>, vector<128x128xbf16>, vector<32x128xf32> -> vector<32x128xf32>
    %c4_62 = arith.constant 4 : index
    %c0_63 = arith.constant 0 : index
    %c0_64 = arith.constant 0 : index
    %77 = vector.load %arg4[%c4_62, %c0_63, %c0_64] : memref<9x32x128xbf16, #tpu.memory_space<vmem>>, vector<1x32x128xbf16>
    %78 = vector.shape_cast %77 : vector<1x32x128xbf16> to vector<32x128xbf16>
    %cst_65 = arith.constant dense<0.000000e+00> : vector<32x128xf32>
    %79 = tpu.matmul %78, %64, %cst_65 {dimension_numbers = #tpu.dot_dimension_numbers<[1], [0], [0], [1], [0, 0, 1, 1], [], []>} : vector<32x128xbf16>, vector<128x128xbf16>, vector<32x128xf32> -> vector<32x128xf32>
    %c5_66 = arith.constant 5 : index
    %c0_67 = arith.constant 0 : index
    %c0_68 = arith.constant 0 : index
    %80 = vector.load %arg4[%c5_66, %c0_67, %c0_68] : memref<9x32x128xbf16, #tpu.memory_space<vmem>>, vector<1x32x128xbf16>
    %81 = vector.shape_cast %80 : vector<1x32x128xbf16> to vector<32x128xbf16>
    %cst_69 = arith.constant dense<0.000000e+00> : vector<32x128xf32>
    %82 = tpu.matmul %81, %64, %cst_69 {dimension_numbers = #tpu.dot_dimension_numbers<[1], [0], [0], [1], [0, 0, 1, 1], [], []>} : vector<32x128xbf16>, vector<128x128xbf16>, vector<32x128xf32> -> vector<32x128xf32>
    %c6_70 = arith.constant 6 : index
    %c0_71 = arith.constant 0 : index
    %c0_72 = arith.constant 0 : index
    %83 = vector.load %arg4[%c6_70, %c0_71, %c0_72] : memref<9x32x128xbf16, #tpu.memory_space<vmem>>, vector<1x32x128xbf16>
    %84 = vector.shape_cast %83 : vector<1x32x128xbf16> to vector<32x128xbf16>
    %cst_73 = arith.constant dense<0.000000e+00> : vector<32x128xf32>
    %85 = tpu.matmul %84, %64, %cst_73 {dimension_numbers = #tpu.dot_dimension_numbers<[1], [0], [0], [1], [0, 0, 1, 1], [], []>} : vector<32x128xbf16>, vector<128x128xbf16>, vector<32x128xf32> -> vector<32x128xf32>
    %c7_74 = arith.constant 7 : index
    %c0_75 = arith.constant 0 : index
    %c0_76 = arith.constant 0 : index
    %86 = vector.load %arg4[%c7_74, %c0_75, %c0_76] : memref<9x32x128xbf16, #tpu.memory_space<vmem>>, vector<1x32x128xbf16>
    %87 = vector.shape_cast %86 : vector<1x32x128xbf16> to vector<32x128xbf16>
    %cst_77 = arith.constant dense<0.000000e+00> : vector<32x128xf32>
    %88 = tpu.matmul %87, %64, %cst_77 {dimension_numbers = #tpu.dot_dimension_numbers<[1], [0], [0], [1], [0, 0, 1, 1], [], []>} : vector<32x128xbf16>, vector<128x128xbf16>, vector<32x128xf32> -> vector<32x128xf32>
    %c8_78 = arith.constant 8 : index
    %c0_79 = arith.constant 0 : index
    %c0_80 = arith.constant 0 : index
    %89 = vector.load %arg4[%c8_78, %c0_79, %c0_80] : memref<9x32x128xbf16, #tpu.memory_space<vmem>>, vector<1x32x128xbf16>
    %90 = vector.shape_cast %89 : vector<1x32x128xbf16> to vector<32x128xbf16>
    %cst_81 = arith.constant dense<0.000000e+00> : vector<32x128xf32>
    %91 = tpu.matmul %90, %64, %cst_81 {dimension_numbers = #tpu.dot_dimension_numbers<[1], [0], [0], [1], [0, 0, 1, 1], [], []>} : vector<32x128xbf16>, vector<128x128xbf16>, vector<32x128xf32> -> vector<32x128xf32>
    %92 = tpu.concatenate %67, %70, %73, %76, %79, %82, %85, %88, %91 in 1 : vector<32x128xf32>, vector<32x128xf32>, vector<32x128xf32>, vector<32x128xf32>, vector<32x128xf32>, vector<32x128xf32>, vector<32x128xf32>, vector<32x128xf32>, vector<32x128xf32> -> vector<32x1152xf32>
    %93 = arith.truncf %92 : vector<32x1152xf32> to vector<32x1152xbf16>
    %c0_82 = arith.constant 0 : index
    %c0_83 = arith.constant 0 : index
    %94 = vector.load %arg5[%c0_82, %c0_83] : memref<1152x128xbf16, #tpu.memory_space<vmem>>, vector<1152x128xbf16>
    %cst_84 = arith.constant dense<0.000000e+00> : vector<32x128xf32>
    %95 = tpu.matmul %93, %94, %cst_84 {dimension_numbers = #tpu.dot_dimension_numbers<[1], [0], [0], [1], [0, 0, 1, 1], [], []>} : vector<32x1152xbf16>, vector<1152x128xbf16>, vector<32x128xf32> -> vector<32x128xf32>
    %c1_85 = arith.constant 1 : index
    %c0_86 = arith.constant 0 : index
    %c0_87 = arith.constant 0 : index
    %96 = vector.load %arg10[%c1_85, %c0_86, %c0_87] : memref<4x1x128xf32, #tpu.memory_space<vmem>>, vector<1x1x128xf32>
    %97 = vector.shape_cast %96 : vector<1x1x128xf32> to vector<1x128xf32>
    %98 = vector.broadcast %97 : vector<1x128xf32> to vector<32x128xf32>
    %99 = arith.addf %95, %98 : vector<32x128xf32>
    %cst_88 = arith.constant 0.000000e+00 : f32
    %100 = vector.broadcast %cst_88 : f32 to vector<32x128xf32>
    %101 = arith.maximumf %99, %100 : vector<32x128xf32>
    %cst_89 = arith.constant dense<0.000000e+00> : vector<128xf32>
    %102 = vector.multi_reduction <add>, %101, %cst_89 [0] : vector<32x128xf32> to vector<128xf32>
    %103 = vector.shape_cast %102 : vector<128xf32> to vector<1x128xf32>
    %cst_90 = arith.constant 3.200000e+01 : f32
    %104 = vector.broadcast %cst_90 : f32 to vector<1x128xf32>
    %105 = arith.divf %103, %104 : vector<1x128xf32>
    %106 = vector.broadcast %105 : vector<1x128xf32> to vector<32x128xf32>
    %107 = arith.subf %101, %106 : vector<32x128xf32>
    %108 = arith.mulf %107, %107 : vector<32x128xf32>
    %cst_91 = arith.constant dense<0.000000e+00> : vector<128xf32>
    %109 = vector.multi_reduction <add>, %108, %cst_91 [0] : vector<32x128xf32> to vector<128xf32>
    %110 = vector.shape_cast %109 : vector<128xf32> to vector<1x128xf32>
    %cst_92 = arith.constant 3.200000e+01 : f32
    %111 = vector.broadcast %cst_92 : f32 to vector<1x128xf32>
    %112 = arith.divf %110, %111 : vector<1x128xf32>
    %113 = vector.broadcast %105 : vector<1x128xf32> to vector<32x128xf32>
    %114 = arith.subf %101, %113 : vector<32x128xf32>
    %cst_93 = arith.constant 9.99999974E-6 : f32
    %115 = vector.broadcast %cst_93 : f32 to vector<1x128xf32>
    %116 = arith.addf %112, %115 : vector<1x128xf32>
    %117 = math.rsqrt %116 : vector<1x128xf32>
    %118 = vector.broadcast %117 : vector<1x128xf32> to vector<32x128xf32>
    %119 = arith.mulf %114, %118 : vector<32x128xf32>
    %c1_94 = arith.constant 1 : index
    %c0_95 = arith.constant 0 : index
    %c0_96 = arith.constant 0 : index
    %120 = vector.load %arg11[%c1_94, %c0_95, %c0_96] : memref<4x1x128xf32, #tpu.memory_space<vmem>>, vector<1x1x128xf32>
    %121 = vector.shape_cast %120 : vector<1x1x128xf32> to vector<1x128xf32>
    %122 = vector.broadcast %121 : vector<1x128xf32> to vector<32x128xf32>
    %123 = arith.mulf %119, %122 : vector<32x128xf32>
    %c1_97 = arith.constant 1 : index
    %c0_98 = arith.constant 0 : index
    %c0_99 = arith.constant 0 : index
    %124 = vector.load %arg12[%c1_97, %c0_98, %c0_99] : memref<4x1x128xf32, #tpu.memory_space<vmem>>, vector<1x1x128xf32>
    %125 = vector.shape_cast %124 : vector<1x1x128xf32> to vector<1x128xf32>
    %126 = vector.broadcast %125 : vector<1x128xf32> to vector<32x128xf32>
    %127 = arith.addf %123, %126 : vector<32x128xf32>
    %128 = arith.truncf %127 : vector<32x128xf32> to vector<32x128xbf16>
    %c0_100 = arith.constant 0 : index
    %c0_101 = arith.constant 0 : index
    %c0_102 = arith.constant 0 : index
    %129 = vector.load %arg6[%c0_100, %c0_101, %c0_102] : memref<9x8x32xbf16, #tpu.memory_space<vmem>>, vector<1x8x32xbf16>
    %130 = vector.shape_cast %129 : vector<1x8x32xbf16> to vector<8x32xbf16>
    %cst_103 = arith.constant dense<0.000000e+00> : vector<8x128xf32>
    %131 = tpu.matmul %130, %128, %cst_103 {dimension_numbers = #tpu.dot_dimension_numbers<[1], [0], [0], [1], [0, 0, 1, 1], [], []>} : vector<8x32xbf16>, vector<32x128xbf16>, vector<8x128xf32> -> vector<8x128xf32>
    %c1_104 = arith.constant 1 : index
    %c0_105 = arith.constant 0 : index
    %c0_106 = arith.constant 0 : index
    %132 = vector.load %arg6[%c1_104, %c0_105, %c0_106] : memref<9x8x32xbf16, #tpu.memory_space<vmem>>, vector<1x8x32xbf16>
    %133 = vector.shape_cast %132 : vector<1x8x32xbf16> to vector<8x32xbf16>
    %cst_107 = arith.constant dense<0.000000e+00> : vector<8x128xf32>
    %134 = tpu.matmul %133, %128, %cst_107 {dimension_numbers = #tpu.dot_dimension_numbers<[1], [0], [0], [1], [0, 0, 1, 1], [], []>} : vector<8x32xbf16>, vector<32x128xbf16>, vector<8x128xf32> -> vector<8x128xf32>
    %c2_108 = arith.constant 2 : index
    %c0_109 = arith.constant 0 : index
    %c0_110 = arith.constant 0 : index
    %135 = vector.load %arg6[%c2_108, %c0_109, %c0_110] : memref<9x8x32xbf16, #tpu.memory_space<vmem>>, vector<1x8x32xbf16>
    %136 = vector.shape_cast %135 : vector<1x8x32xbf16> to vector<8x32xbf16>
    %cst_111 = arith.constant dense<0.000000e+00> : vector<8x128xf32>
    %137 = tpu.matmul %136, %128, %cst_111 {dimension_numbers = #tpu.dot_dimension_numbers<[1], [0], [0], [1], [0, 0, 1, 1], [], []>} : vector<8x32xbf16>, vector<32x128xbf16>, vector<8x128xf32> -> vector<8x128xf32>
    %c3_112 = arith.constant 3 : index
    %c0_113 = arith.constant 0 : index
    %c0_114 = arith.constant 0 : index
    %138 = vector.load %arg6[%c3_112, %c0_113, %c0_114] : memref<9x8x32xbf16, #tpu.memory_space<vmem>>, vector<1x8x32xbf16>
    %139 = vector.shape_cast %138 : vector<1x8x32xbf16> to vector<8x32xbf16>
    %cst_115 = arith.constant dense<0.000000e+00> : vector<8x128xf32>
    %140 = tpu.matmul %139, %128, %cst_115 {dimension_numbers = #tpu.dot_dimension_numbers<[1], [0], [0], [1], [0, 0, 1, 1], [], []>} : vector<8x32xbf16>, vector<32x128xbf16>, vector<8x128xf32> -> vector<8x128xf32>
    %c4_116 = arith.constant 4 : index
    %c0_117 = arith.constant 0 : index
    %c0_118 = arith.constant 0 : index
    %141 = vector.load %arg6[%c4_116, %c0_117, %c0_118] : memref<9x8x32xbf16, #tpu.memory_space<vmem>>, vector<1x8x32xbf16>
    %142 = vector.shape_cast %141 : vector<1x8x32xbf16> to vector<8x32xbf16>
    %cst_119 = arith.constant dense<0.000000e+00> : vector<8x128xf32>
    %143 = tpu.matmul %142, %128, %cst_119 {dimension_numbers = #tpu.dot_dimension_numbers<[1], [0], [0], [1], [0, 0, 1, 1], [], []>} : vector<8x32xbf16>, vector<32x128xbf16>, vector<8x128xf32> -> vector<8x128xf32>
    %c5_120 = arith.constant 5 : index
    %c0_121 = arith.constant 0 : index
    %c0_122 = arith.constant 0 : index
    %144 = vector.load %arg6[%c5_120, %c0_121, %c0_122] : memref<9x8x32xbf16, #tpu.memory_space<vmem>>, vector<1x8x32xbf16>
    %145 = vector.shape_cast %144 : vector<1x8x32xbf16> to vector<8x32xbf16>
    %cst_123 = arith.constant dense<0.000000e+00> : vector<8x128xf32>
    %146 = tpu.matmul %145, %128, %cst_123 {dimension_numbers = #tpu.dot_dimension_numbers<[1], [0], [0], [1], [0, 0, 1, 1], [], []>} : vector<8x32xbf16>, vector<32x128xbf16>, vector<8x128xf32> -> vector<8x128xf32>
    %c6_124 = arith.constant 6 : index
    %c0_125 = arith.constant 0 : index
    %c0_126 = arith.constant 0 : index
    %147 = vector.load %arg6[%c6_124, %c0_125, %c0_126] : memref<9x8x32xbf16, #tpu.memory_space<vmem>>, vector<1x8x32xbf16>
    %148 = vector.shape_cast %147 : vector<1x8x32xbf16> to vector<8x32xbf16>
    %cst_127 = arith.constant dense<0.000000e+00> : vector<8x128xf32>
    %149 = tpu.matmul %148, %128, %cst_127 {dimension_numbers = #tpu.dot_dimension_numbers<[1], [0], [0], [1], [0, 0, 1, 1], [], []>} : vector<8x32xbf16>, vector<32x128xbf16>, vector<8x128xf32> -> vector<8x128xf32>
    %c7_128 = arith.constant 7 : index
    %c0_129 = arith.constant 0 : index
    %c0_130 = arith.constant 0 : index
    %150 = vector.load %arg6[%c7_128, %c0_129, %c0_130] : memref<9x8x32xbf16, #tpu.memory_space<vmem>>, vector<1x8x32xbf16>
    %151 = vector.shape_cast %150 : vector<1x8x32xbf16> to vector<8x32xbf16>
    %cst_131 = arith.constant dense<0.000000e+00> : vector<8x128xf32>
    %152 = tpu.matmul %151, %128, %cst_131 {dimension_numbers = #tpu.dot_dimension_numbers<[1], [0], [0], [1], [0, 0, 1, 1], [], []>} : vector<8x32xbf16>, vector<32x128xbf16>, vector<8x128xf32> -> vector<8x128xf32>
    %c8_132 = arith.constant 8 : index
    %c0_133 = arith.constant 0 : index
    %c0_134 = arith.constant 0 : index
    %153 = vector.load %arg6[%c8_132, %c0_133, %c0_134] : memref<9x8x32xbf16, #tpu.memory_space<vmem>>, vector<1x8x32xbf16>
    %154 = vector.shape_cast %153 : vector<1x8x32xbf16> to vector<8x32xbf16>
    %cst_135 = arith.constant dense<0.000000e+00> : vector<8x128xf32>
    %155 = tpu.matmul %154, %128, %cst_135 {dimension_numbers = #tpu.dot_dimension_numbers<[1], [0], [0], [1], [0, 0, 1, 1], [], []>} : vector<8x32xbf16>, vector<32x128xbf16>, vector<8x128xf32> -> vector<8x128xf32>
    %156 = tpu.concatenate %131, %134, %137, %140, %143, %146, %149, %152, %155 in 1 : vector<8x128xf32>, vector<8x128xf32>, vector<8x128xf32>, vector<8x128xf32>, vector<8x128xf32>, vector<8x128xf32>, vector<8x128xf32>, vector<8x128xf32>, vector<8x128xf32> -> vector<8x1152xf32>
    %157 = arith.truncf %156 : vector<8x1152xf32> to vector<8x1152xbf16>
    %c0_136 = arith.constant 0 : index
    %c0_137 = arith.constant 0 : index
    %158 = vector.load %arg7[%c0_136, %c0_137] : memref<1152x128xbf16, #tpu.memory_space<vmem>>, vector<1152x128xbf16>
    %cst_138 = arith.constant dense<0.000000e+00> : vector<8x128xf32>
    %159 = tpu.matmul %157, %158, %cst_138 {dimension_numbers = #tpu.dot_dimension_numbers<[1], [0], [0], [1], [0, 0, 1, 1], [], []>} : vector<8x1152xbf16>, vector<1152x128xbf16>, vector<8x128xf32> -> vector<8x128xf32>
    %c2_139 = arith.constant 2 : index
    %c0_140 = arith.constant 0 : index
    %c0_141 = arith.constant 0 : index
    %160 = vector.load %arg10[%c2_139, %c0_140, %c0_141] : memref<4x1x128xf32, #tpu.memory_space<vmem>>, vector<1x1x128xf32>
    %161 = vector.shape_cast %160 : vector<1x1x128xf32> to vector<1x128xf32>
    %162 = vector.broadcast %161 : vector<1x128xf32> to vector<8x128xf32>
    %163 = arith.addf %159, %162 : vector<8x128xf32>
    %cst_142 = arith.constant 0.000000e+00 : f32
    %164 = vector.broadcast %cst_142 : f32 to vector<8x128xf32>
    %165 = arith.maximumf %163, %164 : vector<8x128xf32>
    %cst_143 = arith.constant dense<0.000000e+00> : vector<128xf32>
    %166 = vector.multi_reduction <add>, %165, %cst_143 [0] : vector<8x128xf32> to vector<128xf32>
    %167 = vector.shape_cast %166 : vector<128xf32> to vector<1x128xf32>
    %cst_144 = arith.constant 8.000000e+00 : f32
    %168 = vector.broadcast %cst_144 : f32 to vector<1x128xf32>
    %169 = arith.divf %167, %168 : vector<1x128xf32>
    %170 = vector.broadcast %169 : vector<1x128xf32> to vector<8x128xf32>
    %171 = arith.subf %165, %170 : vector<8x128xf32>
    %172 = arith.mulf %171, %171 : vector<8x128xf32>
    %cst_145 = arith.constant dense<0.000000e+00> : vector<128xf32>
    %173 = vector.multi_reduction <add>, %172, %cst_145 [0] : vector<8x128xf32> to vector<128xf32>
    %174 = vector.shape_cast %173 : vector<128xf32> to vector<1x128xf32>
    %cst_146 = arith.constant 8.000000e+00 : f32
    %175 = vector.broadcast %cst_146 : f32 to vector<1x128xf32>
    %176 = arith.divf %174, %175 : vector<1x128xf32>
    %177 = vector.broadcast %169 : vector<1x128xf32> to vector<8x128xf32>
    %178 = arith.subf %165, %177 : vector<8x128xf32>
    %cst_147 = arith.constant 9.99999974E-6 : f32
    %179 = vector.broadcast %cst_147 : f32 to vector<1x128xf32>
    %180 = arith.addf %176, %179 : vector<1x128xf32>
    %181 = math.rsqrt %180 : vector<1x128xf32>
    %182 = vector.broadcast %181 : vector<1x128xf32> to vector<8x128xf32>
    %183 = arith.mulf %178, %182 : vector<8x128xf32>
    %c2_148 = arith.constant 2 : index
    %c0_149 = arith.constant 0 : index
    %c0_150 = arith.constant 0 : index
    %184 = vector.load %arg11[%c2_148, %c0_149, %c0_150] : memref<4x1x128xf32, #tpu.memory_space<vmem>>, vector<1x1x128xf32>
    %185 = vector.shape_cast %184 : vector<1x1x128xf32> to vector<1x128xf32>
    %186 = vector.broadcast %185 : vector<1x128xf32> to vector<8x128xf32>
    %187 = arith.mulf %183, %186 : vector<8x128xf32>
    %c2_151 = arith.constant 2 : index
    %c0_152 = arith.constant 0 : index
    %c0_153 = arith.constant 0 : index
    %188 = vector.load %arg12[%c2_151, %c0_152, %c0_153] : memref<4x1x128xf32, #tpu.memory_space<vmem>>, vector<1x1x128xf32>
    %189 = vector.shape_cast %188 : vector<1x1x128xf32> to vector<1x128xf32>
    %190 = vector.broadcast %189 : vector<1x128xf32> to vector<8x128xf32>
    %191 = arith.addf %187, %190 : vector<8x128xf32>
    %192 = arith.truncf %191 : vector<8x128xf32> to vector<8x128xbf16>
    %c0_154 = arith.constant 0 : index
    %c0_155 = arith.constant 0 : index
    %c0_156 = arith.constant 0 : index
    %193 = vector.load %arg8[%c0_154, %c0_155, %c0_156] : memref<9x2x8xbf16, #tpu.memory_space<vmem>>, vector<1x2x8xbf16>
    %194 = vector.shape_cast %193 : vector<1x2x8xbf16> to vector<2x8xbf16>
    %cst_157 = arith.constant dense<0.000000e+00> : vector<2x128xf32>
    %195 = tpu.matmul %194, %192, %cst_157 {dimension_numbers = #tpu.dot_dimension_numbers<[1], [0], [0], [1], [0, 0, 1, 1], [], []>} : vector<2x8xbf16>, vector<8x128xbf16>, vector<2x128xf32> -> vector<2x128xf32>
    %c1_158 = arith.constant 1 : index
    %c0_159 = arith.constant 0 : index
    %c0_160 = arith.constant 0 : index
    %196 = vector.load %arg8[%c1_158, %c0_159, %c0_160] : memref<9x2x8xbf16, #tpu.memory_space<vmem>>, vector<1x2x8xbf16>
    %197 = vector.shape_cast %196 : vector<1x2x8xbf16> to vector<2x8xbf16>
    %cst_161 = arith.constant dense<0.000000e+00> : vector<2x128xf32>
    %198 = tpu.matmul %197, %192, %cst_161 {dimension_numbers = #tpu.dot_dimension_numbers<[1], [0], [0], [1], [0, 0, 1, 1], [], []>} : vector<2x8xbf16>, vector<8x128xbf16>, vector<2x128xf32> -> vector<2x128xf32>
    %c2_162 = arith.constant 2 : index
    %c0_163 = arith.constant 0 : index
    %c0_164 = arith.constant 0 : index
    %199 = vector.load %arg8[%c2_162, %c0_163, %c0_164] : memref<9x2x8xbf16, #tpu.memory_space<vmem>>, vector<1x2x8xbf16>
    %200 = vector.shape_cast %199 : vector<1x2x8xbf16> to vector<2x8xbf16>
    %cst_165 = arith.constant dense<0.000000e+00> : vector<2x128xf32>
    %201 = tpu.matmul %200, %192, %cst_165 {dimension_numbers = #tpu.dot_dimension_numbers<[1], [0], [0], [1], [0, 0, 1, 1], [], []>} : vector<2x8xbf16>, vector<8x128xbf16>, vector<2x128xf32> -> vector<2x128xf32>
    %c3_166 = arith.constant 3 : index
    %c0_167 = arith.constant 0 : index
    %c0_168 = arith.constant 0 : index
    %202 = vector.load %arg8[%c3_166, %c0_167, %c0_168] : memref<9x2x8xbf16, #tpu.memory_space<vmem>>, vector<1x2x8xbf16>
    %203 = vector.shape_cast %202 : vector<1x2x8xbf16> to vector<2x8xbf16>
    %cst_169 = arith.constant dense<0.000000e+00> : vector<2x128xf32>
    %204 = tpu.matmul %203, %192, %cst_169 {dimension_numbers = #tpu.dot_dimension_numbers<[1], [0], [0], [1], [0, 0, 1, 1], [], []>} : vector<2x8xbf16>, vector<8x128xbf16>, vector<2x128xf32> -> vector<2x128xf32>
    %c4_170 = arith.constant 4 : index
    %c0_171 = arith.constant 0 : index
    %c0_172 = arith.constant 0 : index
    %205 = vector.load %arg8[%c4_170, %c0_171, %c0_172] : memref<9x2x8xbf16, #tpu.memory_space<vmem>>, vector<1x2x8xbf16>
    %206 = vector.shape_cast %205 : vector<1x2x8xbf16> to vector<2x8xbf16>
    %cst_173 = arith.constant dense<0.000000e+00> : vector<2x128xf32>
    %207 = tpu.matmul %206, %192, %cst_173 {dimension_numbers = #tpu.dot_dimension_numbers<[1], [0], [0], [1], [0, 0, 1, 1], [], []>} : vector<2x8xbf16>, vector<8x128xbf16>, vector<2x128xf32> -> vector<2x128xf32>
    %c5_174 = arith.constant 5 : index
    %c0_175 = arith.constant 0 : index
    %c0_176 = arith.constant 0 : index
    %208 = vector.load %arg8[%c5_174, %c0_175, %c0_176] : memref<9x2x8xbf16, #tpu.memory_space<vmem>>, vector<1x2x8xbf16>
    %209 = vector.shape_cast %208 : vector<1x2x8xbf16> to vector<2x8xbf16>
    %cst_177 = arith.constant dense<0.000000e+00> : vector<2x128xf32>
    %210 = tpu.matmul %209, %192, %cst_177 {dimension_numbers = #tpu.dot_dimension_numbers<[1], [0], [0], [1], [0, 0, 1, 1], [], []>} : vector<2x8xbf16>, vector<8x128xbf16>, vector<2x128xf32> -> vector<2x128xf32>
    %c6_178 = arith.constant 6 : index
    %c0_179 = arith.constant 0 : index
    %c0_180 = arith.constant 0 : index
    %211 = vector.load %arg8[%c6_178, %c0_179, %c0_180] : memref<9x2x8xbf16, #tpu.memory_space<vmem>>, vector<1x2x8xbf16>
    %212 = vector.shape_cast %211 : vector<1x2x8xbf16> to vector<2x8xbf16>
    %cst_181 = arith.constant dense<0.000000e+00> : vector<2x128xf32>
    %213 = tpu.matmul %212, %192, %cst_181 {dimension_numbers = #tpu.dot_dimension_numbers<[1], [0], [0], [1], [0, 0, 1, 1], [], []>} : vector<2x8xbf16>, vector<8x128xbf16>, vector<2x128xf32> -> vector<2x128xf32>
    %c7_182 = arith.constant 7 : index
    %c0_183 = arith.constant 0 : index
    %c0_184 = arith.constant 0 : index
    %214 = vector.load %arg8[%c7_182, %c0_183, %c0_184] : memref<9x2x8xbf16, #tpu.memory_space<vmem>>, vector<1x2x8xbf16>
    %215 = vector.shape_cast %214 : vector<1x2x8xbf16> to vector<2x8xbf16>
    %cst_185 = arith.constant dense<0.000000e+00> : vector<2x128xf32>
    %216 = tpu.matmul %215, %192, %cst_185 {dimension_numbers = #tpu.dot_dimension_numbers<[1], [0], [0], [1], [0, 0, 1, 1], [], []>} : vector<2x8xbf16>, vector<8x128xbf16>, vector<2x128xf32> -> vector<2x128xf32>
    %c8_186 = arith.constant 8 : index
    %c0_187 = arith.constant 0 : index
    %c0_188 = arith.constant 0 : index
    %217 = vector.load %arg8[%c8_186, %c0_187, %c0_188] : memref<9x2x8xbf16, #tpu.memory_space<vmem>>, vector<1x2x8xbf16>
    %218 = vector.shape_cast %217 : vector<1x2x8xbf16> to vector<2x8xbf16>
    %cst_189 = arith.constant dense<0.000000e+00> : vector<2x128xf32>
    %219 = tpu.matmul %218, %192, %cst_189 {dimension_numbers = #tpu.dot_dimension_numbers<[1], [0], [0], [1], [0, 0, 1, 1], [], []>} : vector<2x8xbf16>, vector<8x128xbf16>, vector<2x128xf32> -> vector<2x128xf32>
    %220 = tpu.concatenate %195, %198, %201, %204, %207, %210, %213, %216, %219 in 1 : vector<2x128xf32>, vector<2x128xf32>, vector<2x128xf32>, vector<2x128xf32>, vector<2x128xf32>, vector<2x128xf32>, vector<2x128xf32>, vector<2x128xf32>, vector<2x128xf32> -> vector<2x1152xf32>
    %221 = arith.truncf %220 : vector<2x1152xf32> to vector<2x1152xbf16>
    %c0_190 = arith.constant 0 : index
    %c0_191 = arith.constant 0 : index
    %222 = vector.load %arg9[%c0_190, %c0_191] : memref<1152x128xbf16, #tpu.memory_space<vmem>>, vector<1152x128xbf16>
    %cst_192 = arith.constant dense<0.000000e+00> : vector<2x128xf32>
    %223 = tpu.matmul %221, %222, %cst_192 {dimension_numbers = #tpu.dot_dimension_numbers<[1], [0], [0], [1], [0, 0, 1, 1], [], []>} : vector<2x1152xbf16>, vector<1152x128xbf16>, vector<2x128xf32> -> vector<2x128xf32>
    %c3_193 = arith.constant 3 : index
    %c0_194 = arith.constant 0 : index
    %c0_195 = arith.constant 0 : index
    %224 = vector.load %arg10[%c3_193, %c0_194, %c0_195] : memref<4x1x128xf32, #tpu.memory_space<vmem>>, vector<1x1x128xf32>
    %225 = vector.shape_cast %224 : vector<1x1x128xf32> to vector<1x128xf32>
    %226 = vector.broadcast %225 : vector<1x128xf32> to vector<2x128xf32>
    %227 = arith.addf %223, %226 : vector<2x128xf32>
    %cst_196 = arith.constant 0.000000e+00 : f32
    %228 = vector.broadcast %cst_196 : f32 to vector<2x128xf32>
    %229 = arith.maximumf %227, %228 : vector<2x128xf32>
    %cst_197 = arith.constant dense<0.000000e+00> : vector<128xf32>
    %230 = vector.multi_reduction <add>, %229, %cst_197 [0] : vector<2x128xf32> to vector<128xf32>
    %231 = vector.shape_cast %230 : vector<128xf32> to vector<1x128xf32>
    %cst_198 = arith.constant 2.000000e+00 : f32
    %232 = vector.broadcast %cst_198 : f32 to vector<1x128xf32>
    %233 = arith.divf %231, %232 : vector<1x128xf32>
    %234 = vector.broadcast %233 : vector<1x128xf32> to vector<2x128xf32>
    %235 = arith.subf %229, %234 : vector<2x128xf32>
    %236 = arith.mulf %235, %235 : vector<2x128xf32>
    %cst_199 = arith.constant dense<0.000000e+00> : vector<128xf32>
    %237 = vector.multi_reduction <add>, %236, %cst_199 [0] : vector<2x128xf32> to vector<128xf32>
    %238 = vector.shape_cast %237 : vector<128xf32> to vector<1x128xf32>
    %cst_200 = arith.constant 2.000000e+00 : f32
    %239 = vector.broadcast %cst_200 : f32 to vector<1x128xf32>
    %240 = arith.divf %238, %239 : vector<1x128xf32>
    %241 = vector.broadcast %233 : vector<1x128xf32> to vector<2x128xf32>
    %242 = arith.subf %229, %241 : vector<2x128xf32>
    %cst_201 = arith.constant 9.99999974E-6 : f32
    %243 = vector.broadcast %cst_201 : f32 to vector<1x128xf32>
    %244 = arith.addf %240, %243 : vector<1x128xf32>
    %245 = math.rsqrt %244 : vector<1x128xf32>
    %246 = vector.broadcast %245 : vector<1x128xf32> to vector<2x128xf32>
    %247 = arith.mulf %242, %246 : vector<2x128xf32>
    %c3_202 = arith.constant 3 : index
    %c0_203 = arith.constant 0 : index
    %c0_204 = arith.constant 0 : index
    %248 = vector.load %arg11[%c3_202, %c0_203, %c0_204] : memref<4x1x128xf32, #tpu.memory_space<vmem>>, vector<1x1x128xf32>
    %249 = vector.shape_cast %248 : vector<1x1x128xf32> to vector<1x128xf32>
    %250 = vector.broadcast %249 : vector<1x128xf32> to vector<2x128xf32>
    %251 = arith.mulf %247, %250 : vector<2x128xf32>
    %c3_205 = arith.constant 3 : index
    %c0_206 = arith.constant 0 : index
    %c0_207 = arith.constant 0 : index
    %252 = vector.load %arg12[%c3_205, %c0_206, %c0_207] : memref<4x1x128xf32, #tpu.memory_space<vmem>>, vector<1x1x128xf32>
    %253 = vector.shape_cast %252 : vector<1x1x128xf32> to vector<1x128xf32>
    %254 = vector.broadcast %253 : vector<1x128xf32> to vector<2x128xf32>
    %255 = arith.addf %251, %254 : vector<2x128xf32>
    %c0_208 = arith.constant 0 : index
    %c0_209 = arith.constant 0 : index
    %256 = vector.load %arg13[%c0_208, %c0_209] : memref<2x128xf32, #tpu.memory_space<vmem>>, vector<2x128xf32>
    tpu.vector_store %arg13[%c0_208, %c0_209], %255 {strides = array<i32>} : memref<2x128xf32, #tpu.memory_space<vmem>>, vector<2x128xf32>,
    return
  }
  func.func @transform_0(%arg0: i32) -> (i32, i32) {
    %c0_i32 = arith.constant 0 : i32
    %c0_i32_0 = arith.constant 0 : i32
    %c0_i32_1 = arith.constant 0 : i32
    return %c0_i32, %c0_i32_0 : i32, i32
  }
  func.func @transform_1(%arg0: i32) -> (i32, i32, i32) {
    %c0_i32 = arith.constant 0 : i32
    %c0_i32_0 = arith.constant 0 : i32
    %c0_i32_1 = arith.constant 0 : i32
    %c0_i32_2 = arith.constant 0 : i32
    return %c0_i32, %c0_i32_0, %c0_i32_1 : i32, i32, i32
  }
  func.func @transform_2(%arg0: i32) -> (i32, i32) {
    %c0_i32 = arith.constant 0 : i32
    %c0_i32_0 = arith.constant 0 : i32
    %c0_i32_1 = arith.constant 0 : i32
    return %c0_i32, %c0_i32_0 : i32, i32
  }
  func.func @transform_3(%arg0: i32) -> (i32, i32, i32) {
    %c0_i32 = arith.constant 0 : i32
    %c0_i32_0 = arith.constant 0 : i32
    %c0_i32_1 = arith.constant 0 : i32
    %c0_i32_2 = arith.constant 0 : i32
    return %c0_i32, %c0_i32_0, %c0_i32_1 : i32, i32, i32
  }
  func.func @transform_4(%arg0: i32) -> (i32, i32) {
    %c0_i32 = arith.constant 0 : i32
    %c0_i32_0 = arith.constant 0 : i32
    %c0_i32_1 = arith.constant 0 : i32
    return %c0_i32, %c0_i32_0 : i32, i32
  }
  func.func @transform_5(%arg0: i32) -> (i32, i32, i32) {
    %c0_i32 = arith.constant 0 : i32
    %c0_i32_0 = arith.constant 0 : i32
    %c0_i32_1 = arith.constant 0 : i32
    %c0_i32_2 = arith.constant 0 : i32
    return %c0_i32, %c0_i32_0, %c0_i32_1 : i32, i32, i32
  }
  func.func @transform_6(%arg0: i32) -> (i32, i32) {
    %c0_i32 = arith.constant 0 : i32
    %c0_i32_0 = arith.constant 0 : i32
    %c0_i32_1 = arith.constant 0 : i32
    return %c0_i32, %c0_i32_0 : i32, i32
  }
  func.func @transform_7(%arg0: i32) -> (i32, i32, i32) {
    %c0_i32 = arith.constant 0 : i32
    %c0_i32_0 = arith.constant 0 : i32
    %c0_i32_1 = arith.constant 0 : i32
    %c0_i32_2 = arith.constant 0 : i32
    return %c0_i32, %c0_i32_0, %c0_i32_1 : i32, i32, i32
  }
  func.func @transform_8(%arg0: i32) -> (i32, i32) {
    %c0_i32 = arith.constant 0 : i32
    %c0_i32_0 = arith.constant 0 : i32
    %c0_i32_1 = arith.constant 0 : i32
    return %c0_i32, %c0_i32_0 : i32, i32
  }
  func.func @transform_9(%arg0: i32) -> (i32, i32, i32) {
    %c0_i32 = arith.constant 0 : i32
    %c0_i32_0 = arith.constant 0 : i32
    %c0_i32_1 = arith.constant 0 : i32
    %c0_i32_2 = arith.constant 0 : i32
    return %c0_i32, %c0_i32_0, %c0_i32_1 : i32, i32, i32
  }
  func.func @transform_10(%arg0: i32) -> (i32, i32, i32) {
    %c0_i32 = arith.constant 0 : i32
    %c0_i32_0 = arith.constant 0 : i32
    %c0_i32_1 = arith.constant 0 : i32
    %c0_i32_2 = arith.constant 0 : i32
    return %c0_i32, %c0_i32_0, %c0_i32_1 : i32, i32, i32
  }
  func.func @transform_11(%arg0: i32) -> (i32, i32, i32) {
    %c0_i32 = arith.constant 0 : i32
    %c0_i32_0 = arith.constant 0 : i32
    %c0_i32_1 = arith.constant 0 : i32
    %c0_i32_2 = arith.constant 0 : i32
    return %c0_i32, %c0_i32_0, %c0_i32_1 : i32, i32, i32
  }
  func.func @transform_12(%arg0: i32) -> (i32, i32) {
    %c0_i32 = arith.constant 0 : i32
    %c0_i32_0 = arith.constant 0 : i32
    %c0_i32_1 = arith.constant 0 : i32
    return %c0_i32, %c0_i32_0 : i32, i32
  }
}

</mosaic_0001>

<bundles_post_ra>
// kernel: conv_input_model.1
= control target key start
LH: loop header
LB: loop body
LE: loop exit
PB: predicated region body
PF: predicated region fallthrough
CT: control target
= control target key end

     0   :  { %17 = vsyncpa [#allocation3], 0  ;;  %s13882_s0 = inlined_call_operand.vmem [shape: bf16[512,128], index: 0, kind: input, shape index: {}]   ;;  %s13883_s1 = inlined_call_operand.hbm [shape: bf16[9,128,512], index: 1, kind: input, shape index: {}]   ;;  %s13884_s2 = inlined_call_operand.hbm [shape: bf16[1152,128], index: 2, kind: input, shape index: {}]   ;;  %s13885_s3 = inlined_call_operand.hbm [shape: bf16[9,32,128], index: 3, kind: input, shape index: {}]   ;;  %s13886_s4 = inlined_call_operand.hbm [shape: bf16[1152,128], index: 4, kind: input, shape index: {}]   ;;  %s13887_s5 = inlined_call_operand.hbm [shape: bf16[9,8,32], index: 5, kind: input, shape index: {}]   ;;  %s13888_s6 = inlined_call_operand.hbm [shape: bf16[1152,128], index: 6, kind: input, shape index: {}]   ;;  %s13889_s7 = inlined_call_operand.vmem [shape: bf16[9,2,8], index: 7, kind: input, shape index: {}]   ;;  %s13890_s8 = inlined_call_operand.hbm [shape: bf16[1152,128], index: 8, kind: input, shape index: {}]   ;;  %s13891_s9 = inlined_call_operand.hbm [shape: f32[4,1,128], index: 9, kind: input, shape index: {}]   ;;  %s13892_s10 = inlined_call_operand.hbm [shape: f32[4,1,128], index: 10, kind: input, shape index: {}]   ;;  %s13893_s11 = inlined_call_operand.hbm [shape: f32[4,1,128], index: 11, kind: input, shape index: {}]   ;;  %s13894_s12 = inlined_call_operand.hbm [shape: f32[2,128], index: 12, kind: output, shape index: {}]  }
   0x1   :  { %18 = vsyncpa [#allocation6], 0 }
   0x2   :  { %19 = vsyncpa [#allocation9], 0 }
   0x3   :  { %20 = vsyncpa [#allocation12], 0 }
   0x4   :  { %21 = vsyncpa [#allocation15], 0 }
   0x5   :  { %22 = vsyncpa [#allocation18], 0  ;;  %s43_s23 = sshll.u32 %s13884_s2, 4  ;;  %s44_s23 = int_to_ptr.hbm [resolvable:$true] %s43_s23 }
   0x6   :  { %23 = vsyncpa [#allocation4], 0  ;;  %s11832_s24 = smov [#allocation5]   ;;  %s69_s28 = sshll.u32 %s13886_s4, 4  ;;  %s70_s28 = int_to_ptr.hbm [resolvable:$true] %s69_s28 }
   0x7   :  { %s45_s25 = sshll.u32 %s11832_s24, 4  ;;  %s11833_s29 = smov 64   ;;  %s46_s25 = int_to_ptr.vmem [resolvable:$true] %s45_s25 }
   0x8   :  { %s11834_s30 = smov 4   ;;  %s11835_s13 = smov [#allocation8]  }
   0x9   :  { %51 = dma.hbm_to_vmem [thread:$0]  %s44_s23, 9216, %s46_s25, [#allocation6], %s11833_s29, %s11833_s29, %s11834_s30  }
   0xa   :  { %s71_s14 = sshll.u32 %s11835_s13, 4  ;;  %s95_s16 = sshll.u32 %s13888_s6, 4  ;;  %s72_s14 = int_to_ptr.vmem [resolvable:$true] %s71_s14  ;;  %s96_s16 = int_to_ptr.hbm [resolvable:$true] %s95_s16 }
   0xb   :  { %77 = dma.hbm_to_vmem [thread:$0]  %s70_s28, 9216, %s72_s14, [#allocation9], %s11833_s29, %s11833_s29, %s11834_s30  }
   0xc   :  { %s11836_s4 = smov [#allocation11]   ;;  %s123_s20 = sshll.u32 %s13891_s9, 4  ;;  %s124_s20 = int_to_ptr.hbm [resolvable:$true] %s123_s20 }
   0xd   :  { %s97_s17 = sshll.u32 %s11836_s4, 4  ;;  %s11837_s21 = smov [#allocation14]   ;;  %s98_s17 = int_to_ptr.vmem [resolvable:$true] %s97_s17 }
   0xe   :  { %103 = dma.hbm_to_vmem [thread:$0]  %s96_s16, 9216, %s98_s17, [#allocation12], %s11833_s29, %s11833_s29, %s11834_s30  }
   0xf   :  { %s125_s6 = sshll.u32 %s11837_s21, 4  ;;  %s30_s24 = sshll.u32 %s13883_s1, 4  ;;  %s126_s6 = int_to_ptr.vmem [resolvable:$true] %s125_s6  ;;  %s31_s24 = int_to_ptr.hbm [resolvable:$true] %s30_s24 }
  0x10   :  { %s11838_s25 = smov 16   ;;  %s11839_s26 = smov 1  }
  0x11   :  { %131 = dma.hbm_to_vmem [thread:$0]  %s124_s20, 64, %s126_s6, [#allocation15], %s11838_s25, %s11838_s25, %s11839_s26  }
  0x12   :  { %s11840_s9 = smov [#allocation2]   ;;  %s56_s14 = sshll.u32 %s13885_s3, 4  ;;  %s57_s14 = int_to_ptr.hbm [resolvable:$true] %s56_s14 }
  0x13   :  { %s32_s27 = sshll.u32 %s11840_s9, 4  ;;  %s11841_s15 = smov 256   ;;  %s33_s27 = int_to_ptr.vmem [resolvable:$true] %s32_s27 }
  0x14   :  { %38 = dma.hbm_to_vmem [thread:$0]  %s31_s24, 36864, %s33_s27, [#allocation3], %s11841_s15, %s11841_s15, %s11838_s25  }
  0x15   :  { %s82_s16 = sshll.u32 %s13887_s5, 4  ;;  %s11842_s4 = smov [#allocation7]   ;;  %s83_s16 = int_to_ptr.hbm [resolvable:$true] %s82_s16 }
  0x16   :  { %s58_s17 = sshll.u32 %s11842_s4, 4  ;;  %s11843_s18 = smov [#allocation10]   ;;  %s59_s17 = int_to_ptr.vmem [resolvable:$true] %s58_s17 }
  0x17   :  { %64 = dma.hbm_to_vmem [thread:$0]  %s57_s14, 2304, %s59_s17, [#allocation6], %s11833_s29, %s11833_s29, %s11834_s30  }
  0x18   :  { %s84_s19 = sshll.u32 %s11843_s18, 4  ;;  %s110_s21 = sshll.u32 %s13890_s8, 4  ;;  %s85_s19 = int_to_ptr.vmem [resolvable:$true] %s84_s19  ;;  %s111_s21 = int_to_ptr.hbm [resolvable:$true] %s110_s21 }
  0x19   :  { %90 = dma.hbm_to_vmem [thread:$0]  %s83_s16, 576, %s85_s19, [#allocation9], %s11833_s29, %s11833_s29, %s11834_s30  }
  0x1a   :  { %s136_s22 = sshll.u32 %s13892_s10, 4  ;;  %s11844_s23 = smov [#allocation13]   ;;  %s137_s22 = int_to_ptr.hbm [resolvable:$true] %s136_s22 }
  0x1b   :  { %s112_s24 = sshll.u32 %s11844_s23, 4  ;;  %s11845_s9 = smov [#allocation16]   ;;  %s113_s24 = int_to_ptr.vmem [resolvable:$true] %s112_s24 }
  0x1c   :  { %118 = dma.hbm_to_vmem [thread:$0]  %s111_s21, 9216, %s113_s24, [#allocation12], %s11833_s29, %s11833_s29, %s11834_s30  }
  0x1d   :  { %s138_s8 = sshll.u32 %s11845_s9, 4  ;;  %s149_s13 = sshll.u32 %s13893_s11, 4  ;;  %s139_s8 = int_to_ptr.vmem [resolvable:$true] %s138_s8  ;;  %s150_s13 = int_to_ptr.hbm [resolvable:$true] %s149_s13 }
  0x1e   :  { %144 = dma.hbm_to_vmem [thread:$0]  %s137_s22, 64, %s139_s8, [#allocation15], %s11838_s25, %s11838_s25, %s11839_s26  }
  0x1f   :  { %s11846_s10 = smov [#allocation17]  }
  0x20   :  { %s151_s14 = sshll.u32 %s11846_s10, 4  ;;  %s152_s14 = int_to_ptr.vmem [resolvable:$true] %s151_s14 }
  0x21   :  { %157 = dma.hbm_to_vmem [thread:$0]  %s150_s13, 64, %s152_s14, [#allocation18], %s11838_s25, %s11838_s25, %s11839_s26  }
  0x22   :  { %11818 = dma.done.wait [#allocation3], 36864  }
  0x23   :  { %11819 = vsyncadd [#allocation3], 4294930432 }
  0x24   :  { %11820 = dma.done.wait [#allocation6], 11520  }
  0x25   :  { %11821 = vsyncadd [#allocation6], 4294955776 }
  0x26   :  { %11822 = dma.done.wait [#allocation9], 9792  }
  0x27   :  { %11823 = vsyncadd [#allocation9], 4294957504 }
  0x28   :  { %11824 = dma.done.wait [#allocation12], 18432  }
  0x29   :  { %11825 = vsyncadd [#allocation12], 4294948864 }
  0x2a   :  { %11826 = dma.done.wait [#allocation15], 128  }
  0x2b   :  { %11827 = vsyncadd [#allocation15], 4294967168 }
  0x2c   :  { %11828 = dma.done.wait [#allocation18], 64  }
  0x2d   :  { %11829 = vsyncadd [#allocation18], 4294967232  ;;  %v11978_v0 = vld [vmem:[%s13882_s0 + $0x38] sm:$0xff]  ;;  %v12000_v4 = vld [vmem:[%s13882_s0 + $0x30] sm:$0xff]  ;;  %vm6390_vm8 = vcmask 261120   ;;  %vm7312_vm13 = vcmask 1043456  }
  0x2e   :  { %v11983_v1 = vld [vmem:[%s13882_s0 + $0x78] sm:$0xff]  ;;  %647 = vmatpush.bf16.msra.mxu0 %v11978_v0  ;;  %v12005_v5 = vld [vmem:[%s13882_s0 + $0x70] sm:$0xff]  ;;  %v12024_v8 = vld [vmem:[%s13882_s0 + $0x28] sm:$0xff]  ;;  %vm7308_vm14 = vcmask 64512   ;;  %vm8181_vm15 = vcmask 1041408   ;;  %s8239_s28 = sshll.u32 %s13894_s12, 4  ;;  %s8240_s28 = int_to_ptr.hbm [resolvable:$true] %s8239_s28 }
  0x2f   :  { %v11988_v2 = vld [vmem:[%s13882_s0 + $0xb8] sm:$0xff]  ;;  %696 = vmatpush.bf16.msra.mxu1 %v11983_v1  ;;  %v12012_v6 = vld [vmem:[%s13882_s0 + $0xb0] sm:$0xff]  ;;  %v12029_v9 = vld [vmem:[%s13882_s0 + $0x68] sm:$0xff] }
  0x30   :  { %v11993_v3 = vld [vmem:[%s13882_s0 + $0xf8] sm:$0xff]  ;;  %745 = vmatpush.bf16.msra.mxu2 %v11988_v2  ;;  %v12017_v7 = vld [vmem:[%s13882_s0 + $0xf0] sm:$0xff]  ;;  %v12036_v10 = vld [vmem:[%s13882_s0 + $0xa8] sm:$0xff] }
  0x31   :  { %794 = vmatpush.bf16.msra.mxu3 %v11993_v3  ;;  %v12041_v11 = vld [vmem:[%s13882_s0 + $0xe8] sm:$0xff]  ;;  %v12048_v12 = vld [vmem:[%s13882_s0 + $0x20] sm:$0xff]  ;;  %v12070_v16 = vld [vmem:[%s13882_s0 + $0x18] sm:$0xff] }
  0x32   :  { %648 = vmatpush.bf16.msra.mxu0 %v12000_v4  ;;  %v12053_v13 = vld [vmem:[%s13882_s0 + $0x60] sm:$0xff]  ;;  %v12075_v17 = vld [vmem:[%s13882_s0 + $0x58] sm:$0xff]  ;;  %v12094_v20 = vld [vmem:[%s13882_s0 + $0x10] sm:$0xff] }
  0x33   :  { %697 = vmatpush.bf16.msra.mxu1 %v12005_v5  ;;  %v12060_v14 = vld [vmem:[%s13882_s0 + $0xa0] sm:$0xff]  ;;  %v12084_v18 = vld [vmem:[%s13882_s0 + $0x98] sm:$0xff]  ;;  %v12099_v21 = vld [vmem:[%s13882_s0 + $0x50] sm:$0xff] }
  0x34   :  { %746 = vmatpush.bf16.msra.mxu2 %v12012_v6  ;;  %v12065_v15 = vld [vmem:[%s13882_s0 + $0xe0] sm:$0xff]  ;;  %v12089_v19 = vld [vmem:[%s13882_s0 + $0xd8] sm:$0xff]  ;;  %v12106_v22 = vld [vmem:[%s13882_s0 + $0x90] sm:$0xff] }
  0x35   :  { %795 = vmatpush.bf16.msra.mxu3 %v12017_v7  ;;  %v12111_v23 = vld [vmem:[%s13882_s0 + $0xd0] sm:$0xff]  ;;  %v12120_v24 = vld [vmem:[%s13882_s0 + $0x8] sm:$0xff]  ;;  %v12142_v28 = vld [vmem:[%s13882_s0] sm:$0xff] }
  0x36   :  { %649 = vmatpush.bf16.msra.mxu0 %v12024_v8  ;;  %v12125_v25 = vld [vmem:[%s13882_s0 + $0x48] sm:$0xff]  ;;  %v12147_v29 = vld [vmem:[%s13882_s0 + $0x40] sm:$0xff]  ;;  %v10818_v33 = vld [vmem:[#allocation2 + $0xc] sm:$0xf0] }
  0x37   :  { %698 = vmatpush.bf16.msra.mxu1 %v12029_v9  ;;  %v12132_v26 = vld [vmem:[%s13882_s0 + $0x88] sm:$0xff]  ;;  %v12152_v30 = vld [vmem:[%s13882_s0 + $0x80] sm:$0xff]  ;;  %v8258_v35 = vld [vmem:[#allocation2 + $0x10] sm:$0xf0] }
  0x38   :  { %747 = vmatpush.bf16.msra.mxu2 %v12036_v10  ;;  %v12137_v27 = vld [vmem:[%s13882_s0 + $0xc8] sm:$0xff]  ;;  %v12157_v31 = vld [vmem:[%s13882_s0 + $0xc0] sm:$0xff]  ;;  %v10819_v37 = vld [vmem:[#allocation2 + $0x14] sm:$0xf0] }
  0x39   :  { %796 = vmatpush.bf16.msra.mxu3 %v12041_v11  ;;  %v8256_v32 = vld [vmem:[#allocation2] sm:$0xf]  ;;  %v10816_v34 = vld [vmem:[#allocation2 + $0x4] sm:$0xf]  ;;  %v8264_v36 = vld [vmem:[#allocation2 + $0x8] sm:$0xf] }
  0x3a   :  { %650 = vmatpush.bf16.msra.mxu0 %v12048_v12  ;;  %v10817_v38 = vld [vmem:[#allocation2 + $0xc] sm:$0xf]  ;;  %v8266_v39 = vld [vmem:[#allocation2 + $0x18] sm:$0xf0]  ;;  %v8257_v40 = vor.u32 %v10818_v33, %v8256_v32  ;;  %v8261_v41 = vor.u32 %v10816_v34, %v8258_v35  ;;  %v8265_v42 = vor.u32 %v10819_v37, %v8264_v36  ;;  %v8272_v44 = vld [vmem:[#allocation2 + $0x20] sm:$0xf] }
  0x3b   :  { %699 = vmatpush.bf16.msra.mxu1 %v12053_v13  ;;  %v8269_v43 = vor.u32 %v10817_v38, %v8266_v39  ;;  %v10822_v45 = vld [vmem:[#allocation2 + $0x2c] sm:$0xf0]  ;;  %v10820_v46 = vld [vmem:[#allocation2 + $0x24] sm:$0xf]  ;;  %v8274_v47 = vld [vmem:[#allocation2 + $0x30] sm:$0xf0] }
  0x3c   :  { %748 = vmatpush.bf16.msra.mxu2 %v12060_v14  ;;  %v8280_v48 = vld [vmem:[#allocation2 + $0x28] sm:$0xf]  ;;  %v10823_v49 = vld [vmem:[#allocation2 + $0x34] sm:$0xf0]  ;;  %v10821_v50 = vld [vmem:[#allocation2 + $0x2c] sm:$0xf]  ;;  %v8273_v52 = vor.u32 %v10822_v45, %v8272_v44  ;;  %v8277_v53 = vor.u32 %v10820_v46, %v8274_v47 }
  0x3d   :  { %797 = vmatpush.bf16.msra.mxu3 %v12065_v15  ;;  %v8282_v51 = vld [vmem:[#allocation2 + $0x38] sm:$0xf0]  ;;  %v8281_v54 = vor.u32 %v10823_v49, %v8280_v48  ;;  %v8288_v56 = vld [vmem:[#allocation2 + $0x40] sm:$0xf]  ;;  %v10826_v57 = vld [vmem:[#allocation2 + $0x4c] sm:$0xf0] }
  0x3e   :  { %651 = vmatpush.bf16.msra.mxu0 %v12070_v16  ;;  %v8285_v55 = vor.u32 %v10821_v50, %v8282_v51  ;;  %v10824_v58 = vld [vmem:[#allocation2 + $0x44] sm:$0xf]  ;;  %v8290_v59 = vld [vmem:[#allocation2 + $0x50] sm:$0xf0]  ;;  %v8296_v60 = vld [vmem:[#allocation2 + $0x48] sm:$0xf]  ;;  %v8289_v32 = vor.u32 %v10826_v57, %v8288_v56 }
  0x3f   :  { %700 = vmatpush.bf16.msra.mxu1 %v12075_v17  ;;  %v10827_v61 = vld [vmem:[#allocation2 + $0x54] sm:$0xf0]  ;;  %v10825_v62 = vld [vmem:[#allocation2 + $0x4c] sm:$0xf]  ;;  %v8298_v63 = vld [vmem:[#allocation2 + $0x58] sm:$0xf0]  ;;  %v8293_v33 = vor.u32 %v10824_v58, %v8290_v59 }
  0x40   :  { %749 = vmatpush.bf16.msra.mxu2 %v12084_v18  ;;  %v8297_v34 = vor.u32 %v10827_v61, %v8296_v60  ;;  %v8301_v35 = vor.u32 %v10825_v62, %v8298_v63  ;;  %v8304_v36 = vld [vmem:[#allocation2 + $0x60] sm:$0xf]  ;;  %v10830_v37 = vld [vmem:[#allocation2 + $0x6c] sm:$0xf0]  ;;  %v10828_v38 = vld [vmem:[#allocation2 + $0x64] sm:$0xf] }
  0x41   :  { %798 = vmatpush.bf16.msra.mxu3 %v12089_v19  ;;  %v8306_v39 = vld [vmem:[#allocation2 + $0x70] sm:$0xf0]  ;;  %v8305_v44 = vor.u32 %v10830_v37, %v8304_v36  ;;  %v8320_v48 = vld [vmem:[#allocation2 + $0x80] sm:$0xf]  ;;  %v10834_v49 = vld [vmem:[#allocation2 + $0x8c] sm:$0xf0] }
  0x42   :  { %652 = vmatpush.bf16.msra.mxu0 %v12094_v20  ;;  %v8309_v45 = vor.u32 %v10828_v38, %v8306_v39  ;;  %v10832_v50 = vld [vmem:[#allocation2 + $0x84] sm:$0xf]  ;;  %v8322_v51 = vld [vmem:[#allocation2 + $0x90] sm:$0xf0]  ;;  %v8321_v56 = vor.u32 %v10834_v49, %v8320_v48  ;;  %v8336_v60 = vld [vmem:[#allocation2 + $0xa0] sm:$0xf] }
  0x43   :  { %701 = vmatpush.bf16.msra.mxu1 %v12099_v21  ;;  %v8325_v57 = vor.u32 %v10832_v50, %v8322_v51  ;;  %v10838_v61 = vld [vmem:[#allocation2 + $0xac] sm:$0xf0]  ;;  %v10836_v62 = vld [vmem:[#allocation2 + $0xa4] sm:$0xf]  ;;  %v8338_v63 = vld [vmem:[#allocation2 + $0xb0] sm:$0xf0] }
  0x44   :  { %750 = vmatpush.bf16.msra.mxu2 %v12106_v22  ;;  %v8337_v36 = vor.u32 %v10838_v61, %v8336_v60  ;;  %v8341_v37 = vor.u32 %v10836_v62, %v8338_v63 }
  0x45   :  { %799 = vmatpush.bf16.msra.mxu3 %v12111_v23 }
  0x46   :  { %653 = vmatpush.bf16.msra.mxu0 %v12120_v24 }
  0x47   :  { %702 = vmatpush.bf16.msra.mxu1 %v12125_v25 }
  0x48   :  { %751 = vmatpush.bf16.msra.mxu2 %v12132_v26 }
  0x49   :  { %800 = vmatpush.bf16.msra.mxu3 %v12137_v27 }
  0x4a   :  { %654 = vmatpush.bf16.msra.mxu0 %v12142_v28 }
  0x4b   :  { %703 = vmatpush.bf16.msra.mxu1 %v12147_v29 }
  0x4c   :  { %752 = vmatpush.bf16.msra.mxu2 %v12152_v30 }
  0x4d   :  { %801 = vmatpush.bf16.msra.mxu3 %v12157_v31  ;;  %655 = vmatmul.bf16.vlgmr.msra.gmra.mxu0 %v8257_v40  ;;  %v8312_v40 = vld [vmem:[#allocation2 + $0x68] sm:$0xf] }
  0x4e   :  { %1036 = vmatpush.bf16.msrb.mxu0 %v11978_v0  ;;  %704 = vmatmul.bf16.vlgmr.msra.gmra.mxu1 %v8261_v41  ;;  %v10831_v41 = vld [vmem:[#allocation2 + $0x74] sm:$0xf0] }
  0x4f   :  { %1085 = vmatpush.bf16.msrb.mxu1 %v11983_v1  ;;  %753 = vmatmul.bf16.vlgmr.msra.gmra.mxu2 %v8265_v42  ;;  %v10829_v42 = vld [vmem:[#allocation2 + $0x6c] sm:$0xf]  ;;  %v8313_v46 = vor.u32 %v10831_v41, %v8312_v40  ;;  %v8352_v40 = vld [vmem:[#allocation2 + $0xc0] sm:$0xf]  ;;  %v10842_v41 = vld [vmem:[#allocation2 + $0xcc] sm:$0xf0] }
  0x50   :  { %802 = vmatmul.bf16.vlgmr.msra.gmra.mxu3 %v8269_v43  ;;  %1134 = vmatpush.bf16.msrb.mxu2 %v11988_v2  ;;  %v8314_v43 = vld [vmem:[#allocation2 + $0x78] sm:$0xf0]  ;;  %v8353_v48 = vor.u32 %v10842_v41, %v8352_v40 }
  0x51   :  { %1183 = vmatpush.bf16.msrb.mxu3 %v11993_v3  ;;  %v8317_v47 = vor.u32 %v10829_v42, %v8314_v43  ;;  %v10840_v42 = vld [vmem:[#allocation2 + $0xc4] sm:$0xf]  ;;  %v8354_v43 = vld [vmem:[#allocation2 + $0xd0] sm:$0xf0] }
  0x52   :  { %1037 = vmatpush.bf16.msrb.mxu0 %v12000_v4  ;;  %v8357_v49 = vor.u32 %v10840_v42, %v8354_v43 }
  0x53   :  { %1086 = vmatpush.bf16.msrb.mxu1 %v12005_v5 }
  0x54   :  { %1135 = vmatpush.bf16.msrb.mxu2 %v12012_v6 }
  0x55   :  { %1184 = vmatpush.bf16.msrb.mxu3 %v12017_v7 }
  0x56   :  { %1038 = vmatpush.bf16.msrb.mxu0 %v12024_v8 }
  0x57   :  { %1087 = vmatpush.bf16.msrb.mxu1 %v12029_v9 }
  0x58   :  { %1136 = vmatpush.bf16.msrb.mxu2 %v12036_v10 }
  0x59   :  { %1185 = vmatpush.bf16.msrb.mxu3 %v12041_v11 }
  0x5a   :  { %1039 = vmatpush.bf16.msrb.mxu0 %v12048_v12 }
  0x5b   :  { %1088 = vmatpush.bf16.msrb.mxu1 %v12053_v13 }
  0x5c   :  { %1137 = vmatpush.bf16.msrb.mxu2 %v12060_v14 }
  0x5d   :  { %1186 = vmatpush.bf16.msrb.mxu3 %v12065_v15  ;;  %660 = vmatmul.bf16.gmra.mxu0 %v8273_v52  ;;  %v8328_v52 = vld [vmem:[#allocation2 + $0x88] sm:$0xf] }
  0x5e   :  { %1040 = vmatpush.bf16.msrb.mxu0 %v12070_v16  ;;  %709 = vmatmul.bf16.gmra.mxu1 %v8277_v53  ;;  %v10835_v53 = vld [vmem:[#allocation2 + $0x94] sm:$0xf0] }
  0x5f   :  { %1089 = vmatpush.bf16.msrb.mxu1 %v12075_v17  ;;  %758 = vmatmul.bf16.gmra.mxu2 %v8281_v54  ;;  %v10833_v54 = vld [vmem:[#allocation2 + $0x8c] sm:$0xf]  ;;  %v8329_v58 = vor.u32 %v10835_v53, %v8328_v52  ;;  %v8368_v52 = vld [vmem:[#allocation2 + $0xe0] sm:$0xf]  ;;  %v10846_v53 = vld [vmem:[#allocation2 + $0xec] sm:$0xf0] }
  0x60   :  { %807 = vmatmul.bf16.gmra.mxu3 %v8285_v55  ;;  %1138 = vmatpush.bf16.msrb.mxu2 %v12084_v18  ;;  %v8330_v55 = vld [vmem:[#allocation2 + $0x98] sm:$0xf0]  ;;  %v8369_v60 = vor.u32 %v10846_v53, %v8368_v52 }
  0x61   :  { %1187 = vmatpush.bf16.msrb.mxu3 %v12089_v19  ;;  %v8333_v59 = vor.u32 %v10833_v54, %v8330_v55  ;;  %v10844_v54 = vld [vmem:[#allocation2 + $0xe4] sm:$0xf]  ;;  %v8370_v55 = vld [vmem:[#allocation2 + $0xf0] sm:$0xf0] }
  0x62   :  { %1041 = vmatpush.bf16.msrb.mxu0 %v12094_v20  ;;  %v8373_v61 = vor.u32 %v10844_v54, %v8370_v55  ;;  %v8536_v54 = vld [vmem:[#allocation2 + $0x128] sm:$0xf]  ;;  %v10855_v55 = vld [vmem:[#allocation2 + $0x134] sm:$0xf0] }
  0x63   :  { %1090 = vmatpush.bf16.msrb.mxu1 %v12099_v21 }
  0x64   :  { %1139 = vmatpush.bf16.msrb.mxu2 %v12106_v22 }
  0x65   :  { %1188 = vmatpush.bf16.msrb.mxu3 %v12111_v23 }
  0x66   :  { %1042 = vmatpush.bf16.msrb.mxu0 %v12120_v24 }
  0x67   :  { %1091 = vmatpush.bf16.msrb.mxu1 %v12125_v25 }
  0x68   :  { %1140 = vmatpush.bf16.msrb.mxu2 %v12132_v26 }
  0x69   :  { %1189 = vmatpush.bf16.msrb.mxu3 %v12137_v27 }
  0x6a   :  { %1043 = vmatpush.bf16.msrb.mxu0 %v12142_v28 }
  0x6b   :  { %1092 = vmatpush.bf16.msrb.mxu1 %v12147_v29 }
  0x6c   :  { %1141 = vmatpush.bf16.msrb.mxu2 %v12152_v30 }
  0x6d   :  { %1190 = vmatpush.bf16.msrb.mxu3 %v12157_v31  ;;  %665 = vmatmul.bf16.gmra.mxu0 %v8289_v32  ;;  %v8344_v32 = vld [vmem:[#allocation2 + $0xa8] sm:$0xf] }
  0x6e   :  { %1425 = vmatpush.bf16.msra.mxu0 %v11978_v0  ;;  %714 = vmatmul.bf16.gmra.mxu1 %v8293_v33  ;;  %v10839_v33 = vld [vmem:[#allocation2 + $0xb4] sm:$0xf0] }
  0x6f   :  { %1474 = vmatpush.bf16.msra.mxu1 %v11983_v1  ;;  %763 = vmatmul.bf16.gmra.mxu2 %v8297_v34  ;;  %v10837_v34 = vld [vmem:[#allocation2 + $0xac] sm:$0xf]  ;;  %v8345_v38 = vor.u32 %v10839_v33, %v8344_v32  ;;  %v8512_v32 = vld [vmem:[#allocation2 + $0x100] sm:$0xf]  ;;  %v10850_v33 = vld [vmem:[#allocation2 + $0x10c] sm:$0xf0] }
  0x70   :  { %1523 = vmatpush.bf16.msra.mxu2 %v11988_v2  ;;  %812 = vmatmul.bf16.gmra.mxu3 %v8301_v35  ;;  %v8346_v35 = vld [vmem:[#allocation2 + $0xb8] sm:$0xf0]  ;;  %v8513_v40 = vor.u32 %v10850_v33, %v8512_v32  ;;  %v8552_v33 = vld [vmem:[#allocation2 + $0x148] sm:$0xf] }
  0x71   :  { %1572 = vmatpush.bf16.msra.mxu3 %v11993_v3  ;;  %v8349_v39 = vor.u32 %v10837_v34, %v8346_v35  ;;  %v10848_v34 = vld [vmem:[#allocation2 + $0x104] sm:$0xf]  ;;  %v8514_v35 = vld [vmem:[#allocation2 + $0x110] sm:$0xf0] }
  0x72   :  { %1426 = vmatpush.bf16.msra.mxu0 %v12000_v4  ;;  %v8517_v41 = vor.u32 %v10848_v34, %v8514_v35  ;;  %v10859_v34 = vld [vmem:[#allocation2 + $0x154] sm:$0xf0]  ;;  %v10857_v35 = vld [vmem:[#allocation2 + $0x14c] sm:$0xf] }
  0x73   :  { %1475 = vmatpush.bf16.msra.mxu1 %v12005_v5 }
  0x74   :  { %1524 = vmatpush.bf16.msra.mxu2 %v12012_v6 }
  0x75   :  { %1573 = vmatpush.bf16.msra.mxu3 %v12017_v7 }
  0x76   :  { %1427 = vmatpush.bf16.msra.mxu0 %v12024_v8 }
  0x77   :  { %1476 = vmatpush.bf16.msra.mxu1 %v12029_v9 }
  0x78   :  { %1525 = vmatpush.bf16.msra.mxu2 %v12036_v10 }
  0x79   :  { %1574 = vmatpush.bf16.msra.mxu3 %v12041_v11 }
  0x7a   :  { %1428 = vmatpush.bf16.msra.mxu0 %v12048_v12 }
  0x7b   :  { %1477 = vmatpush.bf16.msra.mxu1 %v12053_v13 }
  0x7c   :  { %1526 = vmatpush.bf16.msra.mxu2 %v12060_v14 }
  0x7d   :  { %1575 = vmatpush.bf16.msra.mxu3 %v12065_v15  ;;  %670 = vmatmul.bf16.gmra.mxu0 %v8305_v44  ;;  %v8360_v44 = vld [vmem:[#allocation2 + $0xc8] sm:$0xf] }
  0x7e   :  { %1429 = vmatpush.bf16.msra.mxu0 %v12070_v16  ;;  %719 = vmatmul.bf16.gmra.mxu1 %v8309_v45  ;;  %v10843_v45 = vld [vmem:[#allocation2 + $0xd4] sm:$0xf0] }
  0x7f   :  { %1478 = vmatpush.bf16.msra.mxu1 %v12075_v17  ;;  %768 = vmatmul.bf16.gmra.mxu2 %v8313_v46  ;;  %v10841_v46 = vld [vmem:[#allocation2 + $0xcc] sm:$0xf]  ;;  %v8361_v50 = vor.u32 %v10843_v45, %v8360_v44 }
  0x80   :  { %1527 = vmatpush.bf16.msra.mxu2 %v12084_v18  ;;  %817 = vmatmul.bf16.gmra.mxu3 %v8317_v47  ;;  %v8362_v47 = vld [vmem:[#allocation2 + $0xd8] sm:$0xf0] }
  0x81   :  { %1576 = vmatpush.bf16.msra.mxu3 %v12089_v19  ;;  %v8365_v51 = vor.u32 %v10841_v46, %v8362_v47 }
  0x82   :  { %1430 = vmatpush.bf16.msra.mxu0 %v12094_v20 }
  0x83   :  { %1479 = vmatpush.bf16.msra.mxu1 %v12099_v21 }
  0x84   :  { %1528 = vmatpush.bf16.msra.mxu2 %v12106_v22 }
  0x85   :  { %1577 = vmatpush.bf16.msra.mxu3 %v12111_v23 }
  0x86   :  { %1431 = vmatpush.bf16.msra.mxu0 %v12120_v24 }
  0x87   :  { %1480 = vmatpush.bf16.msra.mxu1 %v12125_v25 }
  0x88   :  { %1529 = vmatpush.bf16.msra.mxu2 %v12132_v26 }
  0x89   :  { %1578 = vmatpush.bf16.msra.mxu3 %v12137_v27 }
  0x8a   :  { %1432 = vmatpush.bf16.msra.mxu0 %v12142_v28 }
  0x8b   :  { %1481 = vmatpush.bf16.msra.mxu1 %v12147_v29 }
  0x8c   :  { %1530 = vmatpush.bf16.msra.mxu2 %v12152_v30 }
  0x8d   :  { %1579 = vmatpush.bf16.msra.mxu3 %v12157_v31  ;;  %675 = vmatmul.bf16.gmra.mxu0 %v8321_v56  ;;  %v8376_v56 = vld [vmem:[#allocation2 + $0xe8] sm:$0xf] }
  0x8e   :  { %724 = vmatmul.bf16.gmra.mxu1 %v8325_v57  ;;  %v10847_v57 = vld [vmem:[#allocation2 + $0xf4] sm:$0xf0] }
  0x8f   :  { %773 = vmatmul.bf16.gmra.mxu2 %v8329_v58  ;;  %v10845_v58 = vld [vmem:[#allocation2 + $0xec] sm:$0xf]  ;;  %v8377_v62 = vor.u32 %v10847_v57, %v8376_v56  ;;  %v8538_v57 = vld [vmem:[#allocation2 + $0x138] sm:$0xf0] }
  0x90   :  { %822 = vmatmul.bf16.gmra.mxu3 %v8333_v59  ;;  %v8378_v59 = vld [vmem:[#allocation2 + $0xf8] sm:$0xf0]  ;;  %v10853_v56 = vld [vmem:[#allocation2 + $0x12c] sm:$0xf] }
  0x91   :  { %v8381_v63 = vor.u32 %v10845_v58, %v8378_v59 }
  0x9d   :  { %680 = vmatmul.bf16.gmra.mxu0 %v8337_v36  ;;  %v8520_v36 = vld [vmem:[#allocation2 + $0x108] sm:$0xf] }
  0x9e   :  { %729 = vmatmul.bf16.gmra.mxu1 %v8341_v37  ;;  %v10851_v37 = vld [vmem:[#allocation2 + $0x114] sm:$0xf0] }
  0x9f   :  { %778 = vmatmul.bf16.gmra.mxu2 %v8345_v38  ;;  %v10849_v38 = vld [vmem:[#allocation2 + $0x10c] sm:$0xf]  ;;  %v8521_v44 = vor.u32 %v10851_v37, %v8520_v36  ;;  %v8554_v36 = vld [vmem:[#allocation2 + $0x158] sm:$0xf0] }
  0xa0   :  { %827 = vmatmul.bf16.gmra.mxu3 %v8349_v39  ;;  %v8522_v39 = vld [vmem:[#allocation2 + $0x118] sm:$0xf0] }
  0xa1   :  { %v8525_v45 = vor.u32 %v10849_v38, %v8522_v39 }
  0xad   :  { %685 = vmatmul.bf16.gmra.mxu0 %v8353_v48 }
  0xae   :  { %734 = vmatmul.bf16.gmra.mxu1 %v8357_v49 }
  0xaf   :  { %783 = vmatmul.bf16.gmra.mxu2 %v8361_v50 }
  0xb0   :  { %832 = vmatmul.bf16.gmra.mxu3 %v8365_v51 }
  0xbd   :  { %690 = vmatmul.bf16.gmra.mxu0 %v8369_v60 }
  0xbe   :  { %739 = vmatmul.bf16.gmra.mxu1 %v8373_v61  ;;  %v8537_v61 = vor.u32 %v10855_v55, %v8536_v54 }
  0xbf   :  { %788 = vmatmul.bf16.gmra.mxu2 %v8377_v62  ;;  %v8541_v62 = vor.u32 %v10853_v56, %v8538_v57 }
  0xc0   :  { %837 = vmatmul.bf16.gmra.mxu3 %v8381_v63 }
  0xca   :  { %v656_v42 = vpop.f32.mrf.mxu0 }
  0xcb   :  { %v705_v43 = vpop.f32.mrf.mxu1 }
  0xcc   :  { %v706_v46 = vadd.f32 %v705_v43, %v656_v42 }
  0xcd   :  { %1044 = vmatmul.bf16.vlgmr.msrb.gmra.mxu0 %v8513_v40  ;;  %v8553_v40 = vor.u32 %v10859_v34, %v8552_v33 }
  0xce   :  { %1093 = vmatmul.bf16.vlgmr.msrb.gmra.mxu1 %v8517_v41  ;;  %1814 = vmatpush.bf16.msrb.mxu0 %v11978_v0  ;;  %v8528_v0 = vld [vmem:[#allocation2 + $0x120] sm:$0xf]  ;;  %v8557_v41 = vor.u32 %v10857_v35, %v8554_v36 }
  0xcf   :  { %1142 = vmatmul.bf16.vlgmr.msrb.gmra.mxu2 %v8521_v44  ;;  %1863 = vmatpush.bf16.msrb.mxu1 %v11983_v1  ;;  %v10854_v1 = vld [vmem:[#allocation2 + $0x12c] sm:$0xf0] }
  0xd0   :  { %1191 = vmatmul.bf16.vlgmr.msrb.gmra.mxu3 %v8525_v45  ;;  %1912 = vmatpush.bf16.msrb.mxu2 %v11988_v2  ;;  %v10852_v2 = vld [vmem:[#allocation2 + $0x124] sm:$0xf] }
  0xd1   :  { %1961 = vmatpush.bf16.msrb.mxu3 %v11993_v3  ;;  %v8530_v3 = vld [vmem:[#allocation2 + $0x130] sm:$0xf0] }
  0xd2   :  { %v754_v47 = vpop.f32.mrf.mxu2  ;;  %v658_v50 = vpop.f32.mrf.mxu0  ;;  %1815 = vmatpush.bf16.msrb.mxu0 %v12000_v4 }
  0xd3   :  { %v803_v48 = vpop.f32.mrf.mxu3  ;;  %v755_v49 = vadd.f32 %v754_v47, %v706_v46  ;;  %v707_v51 = vpop.f32.mrf.mxu1  ;;  %1864 = vmatpush.bf16.msrb.mxu1 %v12005_v5  ;;  %v8560_v46 = vld [vmem:[#allocation2 + $0x160] sm:$0xf]  ;;  %v10862_v47 = vld [vmem:[#allocation2 + $0x16c] sm:$0xf0] }
  0xd4   :  { %v708_v52 = vadd.f32 %v707_v51, %v658_v50  ;;  %1913 = vmatpush.bf16.msrb.mxu2 %v12012_v6  ;;  %v8529_v6 = vor.u32 %v10854_v1, %v8528_v0  ;;  %v10861_v50 = vld [vmem:[#allocation2 + $0x16c] sm:$0xf]  ;;  %v8570_v51 = vld [vmem:[#allocation2 + $0x178] sm:$0xf0]  ;;  %v8561_v1 = vor.u32 %v10862_v47, %v8560_v46  ;;  %v8594_v46 = vld [vmem:[#allocation2 + $0x1b0] sm:$0xf0] }
  0xd5   :  { %v12237_v53 = vadd.f32 %v803_v48, %v755_v49  ;;  %1962 = vmatpush.bf16.msrb.mxu3 %v12017_v7  ;;  %v8533_v7 = vor.u32 %v10852_v2, %v8530_v3  ;;  %v8562_v48 = vld [vmem:[#allocation2 + $0x170] sm:$0xf0]  ;;  %v10863_v49 = vld [vmem:[#allocation2 + $0x174] sm:$0xf0]  ;;  %v8573_v57 = vor.u32 %v10861_v50, %v8570_v51  ;;  %v8600_v47 = vld [vmem:[#allocation2 + $0x1a8] sm:$0xf] }
  0xd6   :  { %1816 = vmatpush.bf16.msrb.mxu0 %v12024_v8 }
  0xd7   :  { %1865 = vmatpush.bf16.msrb.mxu1 %v12029_v9 }
  0xd8   :  { %1914 = vmatpush.bf16.msrb.mxu2 %v12036_v10 }
  0xd9   :  { %1963 = vmatpush.bf16.msrb.mxu3 %v12041_v11 }
  0xda   :  { %v756_v4 = vpop.f32.mrf.mxu2  ;;  %v661_v59 = vpop.f32.mrf.mxu0  ;;  %1817 = vmatpush.bf16.msrb.mxu0 %v12048_v12 }
  0xdb   :  { %v805_v5 = vpop.f32.mrf.mxu3  ;;  %v757_v58 = vadd.f32 %v756_v4, %v708_v52  ;;  %v710_v60 = vpop.f32.mrf.mxu1  ;;  %1866 = vmatpush.bf16.msrb.mxu1 %v12053_v13 }
  0xdc   :  { %v711_v63 = vadd.f32 %v710_v60, %v661_v59  ;;  %1915 = vmatpush.bf16.msrb.mxu2 %v12060_v14 }
  0xdd   :  { %v12247_v8 = vadd.f32 %v805_v5, %v757_v58  ;;  %1964 = vmatpush.bf16.msrb.mxu3 %v12065_v15  ;;  %1049 = vmatmul.bf16.gmra.mxu0 %v8529_v6 }
  0xde   :  { %1098 = vmatmul.bf16.gmra.mxu1 %v8533_v7  ;;  %1818 = vmatpush.bf16.msrb.mxu0 %v12070_v16  ;;  %v8544_v16 = vld [vmem:[#allocation2 + $0x140] sm:$0xf] }
  0xdf   :  { %1147 = vmatmul.bf16.gmra.mxu2 %v8537_v61  ;;  %1867 = vmatpush.bf16.msrb.mxu1 %v12075_v17  ;;  %v10858_v17 = vld [vmem:[#allocation2 + $0x14c] sm:$0xf0] }
  0xe0   :  { %1196 = vmatmul.bf16.gmra.mxu3 %v8541_v62  ;;  %1916 = vmatpush.bf16.msrb.mxu2 %v12084_v18  ;;  %v10856_v18 = vld [vmem:[#allocation2 + $0x144] sm:$0xf] }
  0xe1   :  { %1965 = vmatpush.bf16.msrb.mxu3 %v12089_v19  ;;  %v8546_v19 = vld [vmem:[#allocation2 + $0x150] sm:$0xf0] }
  0xe2   :  { %v759_v10 = vpop.f32.mrf.mxu2  ;;  %v663_v13 = vpop.f32.mrf.mxu0  ;;  %1819 = vmatpush.bf16.msrb.mxu0 %v12094_v20 }
  0xe3   :  { %v808_v11 = vpop.f32.mrf.mxu3  ;;  %v760_v12 = vadd.f32 %v759_v10, %v711_v63  ;;  %v712_v14 = vpop.f32.mrf.mxu1  ;;  %1868 = vmatpush.bf16.msrb.mxu1 %v12099_v21  ;;  %v8576_v10 = vld [vmem:[#allocation2 + $0x180] sm:$0xf] }
  0xe4   :  { %v713_v15 = vadd.f32 %v712_v14, %v663_v13  ;;  %1917 = vmatpush.bf16.msrb.mxu2 %v12106_v22  ;;  %v8545_v22 = vor.u32 %v10858_v17, %v8544_v16  ;;  %v8578_v13 = vld [vmem:[#allocation2 + $0x190] sm:$0xf0]  ;;  %v8584_v14 = vld [vmem:[#allocation2 + $0x188] sm:$0xf]  ;;  %v10865_v16 = vld [vmem:[#allocation2 + $0x18c] sm:$0xf] }
  0xe5   :  { %v12259_v32 = vadd.f32 %v808_v11, %v760_v12  ;;  %1966 = vmatpush.bf16.msrb.mxu3 %v12111_v23  ;;  %v8549_v23 = vor.u32 %v10856_v18, %v8546_v19  ;;  %v10866_v11 = vld [vmem:[#allocation2 + $0x18c] sm:$0xf0]  ;;  %v10864_v12 = vld [vmem:[#allocation2 + $0x184] sm:$0xf]  ;;  %v8586_v17 = vld [vmem:[#allocation2 + $0x198] sm:$0xf0] }
  0xe6   :  { %1820 = vmatpush.bf16.msrb.mxu0 %v12120_v24  ;;  %v8577_v33 = vor.u32 %v10866_v11, %v8576_v10  ;;  %v8581_v34 = vor.u32 %v10864_v12, %v8578_v13  ;;  %v8608_v10 = vld [vmem:[#allocation2 + $0x1c0] sm:$0xf]  ;;  %v10874_v11 = vld [vmem:[#allocation2 + $0x1cc] sm:$0xf0]  ;;  %v10872_v12 = vld [vmem:[#allocation2 + $0x1c4] sm:$0xf] }
  0xe7   :  { %13982 = vst [vmem:[#allocation27_spill] sm:$0xff] %v12259_v32  ;;  %1869 = vmatpush.bf16.msrb.mxu1 %v12125_v25  ;;  %v8610_v13 = vld [vmem:[#allocation2 + $0x1d0] sm:$0xf0] }
  0xe8   :  { %1918 = vmatpush.bf16.msrb.mxu2 %v12132_v26 }
  0xe9   :  { %1967 = vmatpush.bf16.msrb.mxu3 %v12137_v27 }
  0xea   :  { %v761_v20 = vpop.f32.mrf.mxu2  ;;  %v666_v38 = vpop.f32.mrf.mxu0  ;;  %1821 = vmatpush.bf16.msrb.mxu0 %v12142_v28 }
  0xeb   :  { %v810_v21 = vpop.f32.mrf.mxu3  ;;  %v762_v37 = vadd.f32 %v761_v20, %v713_v15  ;;  %v715_v39 = vpop.f32.mrf.mxu1  ;;  %1870 = vmatpush.bf16.msrb.mxu1 %v12147_v29  ;;  %v10867_v15 = vld [vmem:[#allocation2 + $0x194] sm:$0xf0] }
  0xec   :  { %v716_v42 = vadd.f32 %v715_v39, %v666_v38  ;;  %1919 = vmatpush.bf16.msrb.mxu2 %v12152_v30  ;;  %v10860_v30 = vld [vmem:[#allocation2 + $0x164] sm:$0xf] }
  0xed   :  { %v12269_v24 = vadd.f32 %v810_v21, %v762_v37  ;;  %1968 = vmatpush.bf16.msrb.mxu3 %v12157_v31  ;;  %1054 = vmatmul.bf16.gmra.mxu0 %v8545_v22  ;;  %v8568_v31 = vld [vmem:[#allocation2 + $0x168] sm:$0xf]  ;;  %v8565_v2 = vor.u32 %v10860_v30, %v8562_v48  ;;  %v8585_v21 = vor.u32 %v10867_v15, %v8584_v14  ;;  %v10871_v30 = vld [vmem:[#allocation2 + $0x1b4] sm:$0xf0]  ;;  %v10869_v48 = vld [vmem:[#allocation2 + $0x1ac] sm:$0xf] }
  0xee   :  { %1103 = vmatmul.bf16.gmra.mxu1 %v8549_v23  ;;  %v8569_v56 = vor.u32 %v10863_v49, %v8568_v31  ;;  %v8589_v22 = vor.u32 %v10865_v16, %v8586_v17  ;;  %v8602_v31 = vld [vmem:[#allocation2 + $0x1b8] sm:$0xf0]  ;;  %v8616_v14 = vld [vmem:[#allocation2 + $0x1c8] sm:$0xf]  ;;  %v10875_v15 = vld [vmem:[#allocation2 + $0x1d4] sm:$0xf0] }
  0xef   :  { %13983 = vst [vmem:[#allocation28_spill] sm:$0xff] %v12269_v24  ;;  %1152 = vmatmul.bf16.gmra.mxu2 %v8553_v40  ;;  %v10873_v16 = vld [vmem:[#allocation2 + $0x1cc] sm:$0xf]  ;;  %v8618_v17 = vld [vmem:[#allocation2 + $0x1d8] sm:$0xf0] }
  0xf0   :  { %1201 = vmatmul.bf16.gmra.mxu3 %v8557_v41 }
  0xf2   :  { %v764_v26 = vpop.f32.mrf.mxu2  ;;  %v668_v44 = vpop.f32.mrf.mxu0 }
  0xf3   :  { %v813_v27 = vpop.f32.mrf.mxu3  ;;  %v765_v43 = vadd.f32 %v764_v26, %v716_v42  ;;  %v717_v28 = vpop.f32.mrf.mxu1 }
  0xf4   :  { %v718_v45 = vadd.f32 %v717_v28, %v668_v44  ;;  %v8592_v44 = vld [vmem:[#allocation2 + $0x1a0] sm:$0xf]  ;;  %v10870_v28 = vld [vmem:[#allocation2 + $0x1ac] sm:$0xf0] }
  0xf5   :  { %v12275_v29 = vadd.f32 %v813_v27, %v765_v43  ;;  %v8593_v51 = vor.u32 %v10870_v28, %v8592_v44 }
  0xf7   :  { %13984 = vst [vmem:[#allocation29_spill] sm:$0xff] %v12275_v29 }
  0xfa   :  { %v766_v52 = vpop.f32.mrf.mxu2  ;;  %v671_v54 = vpop.f32.mrf.mxu0 }
  0xfb   :  { %v815_v0 = vpop.f32.mrf.mxu3  ;;  %v767_v3 = vadd.f32 %v766_v52, %v718_v45  ;;  %v720_v55 = vpop.f32.mrf.mxu1  ;;  %v10868_v45 = vld [vmem:[#allocation2 + $0x1a4] sm:$0xf] }
  0xfc   :  { %v721_v4 = vadd.f32 %v720_v55, %v671_v54  ;;  %v8597_v52 = vor.u32 %v10868_v45, %v8594_v46  ;;  %v8605_v54 = vor.u32 %v10869_v48, %v8602_v31  ;;  %v8624_v46 = vld [vmem:[#allocation2 + $0x1e0] sm:$0xf]  ;;  %v8626_v48 = vld [vmem:[#allocation2 + $0x1f0] sm:$0xf0]  ;;  %v8632_v31 = vld [vmem:[#allocation2 + $0x1e8] sm:$0xf] }
  0xfd   :  { %v12277_v5 = vadd.f32 %v815_v0, %v767_v3  ;;  %1059 = vmatmul.bf16.gmra.mxu0 %v8561_v1  ;;  %v8601_v3 = vor.u32 %v10871_v30, %v8600_v47  ;;  %v10878_v47 = vld [vmem:[#allocation2 + $0x1ec] sm:$0xf0]  ;;  %v10876_v30 = vld [vmem:[#allocation2 + $0x1e4] sm:$0xf] }
  0xfe   :  { %1108 = vmatmul.bf16.gmra.mxu1 %v8565_v2 }
  0xff   :  { %13985 = vst [vmem:[#allocation30_spill] sm:$0xff] %v12277_v5  ;;  %1157 = vmatmul.bf16.gmra.mxu2 %v8569_v56 }
 0x100   :  { %1206 = vmatmul.bf16.gmra.mxu3 %v8573_v57 }
 0x102   :  { %v769_v7 = vpop.f32.mrf.mxu2  ;;  %v673_v60 = vpop.f32.mrf.mxu0 }
 0x103   :  { %v818_v58 = vpop.f32.mrf.mxu3  ;;  %v770_v59 = vadd.f32 %v769_v7, %v721_v4  ;;  %v722_v61 = vpop.f32.mrf.mxu1 }
 0x104   :  { %v723_v62 = vadd.f32 %v722_v61, %v673_v60 }
 0x105   :  { %v12281_v63 = vadd.f32 %v818_v58, %v770_v59 }
 0x107   :  { %13986 = vst [vmem:[#allocation31_spill] sm:$0xff] %v12281_v63 }
 0x10a   :  { %v771_v18 = vpop.f32.mrf.mxu2  ;;  %v676_v36 = vpop.f32.mrf.mxu0 }
 0x10b   :  { %v820_v19 = vpop.f32.mrf.mxu3  ;;  %v772_v35 = vadd.f32 %v771_v18, %v723_v62  ;;  %v725_v20 = vpop.f32.mrf.mxu1 }
 0x10c   :  { %v726_v23 = vadd.f32 %v725_v20, %v676_v36 }
 0x10d   :  { %v12283_v37 = vadd.f32 %v820_v19, %v772_v35  ;;  %1064 = vmatmul.bf16.gmra.mxu0 %v8577_v33  ;;  %v8609_v33 = vor.u32 %v10874_v11, %v8608_v10 }
 0x10e   :  { %1113 = vmatmul.bf16.gmra.mxu1 %v8581_v34  ;;  %v8613_v34 = vor.u32 %v10872_v12, %v8610_v13 }
 0x10f   :  { %13987 = vst [vmem:[#allocation32_spill] sm:$0xff] %v12283_v37  ;;  %1162 = vmatmul.bf16.gmra.mxu2 %v8585_v21  ;;  %v8617_v21 = vor.u32 %v10875_v15, %v8616_v14 }
 0x110   :  { %1211 = vmatmul.bf16.gmra.mxu3 %v8589_v22  ;;  %v8621_v22 = vor.u32 %v10873_v16, %v8618_v17  ;;  %v8640_v16 = vld [vmem:[#allocation2 + $0x200] sm:$0xf]  ;;  %v10882_v17 = vld [vmem:[#allocation2 + $0x20c] sm:$0xf0] }
 0x112   :  { %v774_v39 = vpop.f32.mrf.mxu2  ;;  %v678_v42 = vpop.f32.mrf.mxu0 }
 0x113   :  { %v823_v40 = vpop.f32.mrf.mxu3  ;;  %v775_v41 = vadd.f32 %v774_v39, %v726_v23  ;;  %v727_v26 = vpop.f32.mrf.mxu1 }
 0x114   :  { %v728_v27 = vadd.f32 %v727_v26, %v678_v42 }
 0x115   :  { %v12287_v43 = vadd.f32 %v823_v40, %v775_v41 }
 0x117   :  { %13988 = vst [vmem:[#allocation33_spill] sm:$0xff] %v12287_v43  ;;  %v8698_v43 = vld [vmem:[#allocation2 + $0x278] sm:$0xf0] }
 0x11a   :  { %v776_v49 = vpop.f32.mrf.mxu2  ;;  %v681_v1 = vpop.f32.mrf.mxu0 }
 0x11b   :  { %v825_v50 = vpop.f32.mrf.mxu3  ;;  %v777_v0 = vadd.f32 %v776_v49, %v728_v27  ;;  %v730_v2 = vpop.f32.mrf.mxu1  ;;  %v10879_v49 = vld [vmem:[#allocation2 + $0x1f4] sm:$0xf0] }
 0x11c   :  { %v731_v55 = vadd.f32 %v730_v2, %v681_v1  ;;  %v8625_v1 = vor.u32 %v10878_v47, %v8624_v46  ;;  %v8629_v2 = vor.u32 %v10876_v30, %v8626_v48  ;;  %v12314_v30 = vld [vmem:[%s13882_s0 + $0x38] sm:$0xff]  ;;  %v12484_v47 = vld [vmem:[%s13882_s0 + $0xc8] sm:$0xff] }
 0x11d   :  { %v12289_v56 = vadd.f32 %v825_v50, %v777_v0  ;;  %1069 = vmatmul.bf16.gmra.mxu0 %v8593_v51  ;;  %v10877_v50 = vld [vmem:[#allocation2 + $0x1ec] sm:$0xf]  ;;  %v8634_v51 = vld [vmem:[#allocation2 + $0x1f8] sm:$0xf0] }
 0x11e   :  { %1118 = vmatmul.bf16.gmra.mxu1 %v8597_v52  ;;  %v12320_v48 = vld [vmem:[%s13882_s0 + $0x78] sm:$0xff] }
 0x11f   :  { %13989 = vst [vmem:[#allocation34_spill] sm:$0xff] %v12289_v56  ;;  %1167 = vmatmul.bf16.gmra.mxu2 %v8601_v3 }
 0x120   :  { %1216 = vmatmul.bf16.gmra.mxu3 %v8605_v54 }
 0x122   :  { %v779_v4 = vpop.f32.mrf.mxu2  ;;  %v683_v59 = vpop.f32.mrf.mxu0 }
 0x123   :  { %v828_v7 = vpop.f32.mrf.mxu3  ;;  %v780_v58 = vadd.f32 %v779_v4, %v731_v55  ;;  %v732_v60 = vpop.f32.mrf.mxu1  ;;  %v8633_v4 = vor.u32 %v10879_v49, %v8632_v31  ;;  %v12326_v31 = vld [vmem:[%s13882_s0 + $0xb8] sm:$0xff] }
 0x124   :  { %v733_v61 = vadd.f32 %v732_v60, %v683_v59  ;;  %v12332_v49 = vld [vmem:[%s13882_s0 + $0xf8] sm:$0xff] }
 0x125   :  { %v12293_v62 = vadd.f32 %v828_v7, %v780_v58  ;;  %v8637_v7 = vor.u32 %v10877_v50, %v8634_v51 }
 0x127   :  { %13990 = vst [vmem:[#allocation35_spill] sm:$0xff] %v12293_v62  ;;  %v8690_v62 = vld [vmem:[#allocation2 + $0x270] sm:$0xf0] }
 0x12a   :  { %v781_v18 = vpop.f32.mrf.mxu2  ;;  %v686_v36 = vpop.f32.mrf.mxu0 }
 0x12b   :  { %v830_v19 = vpop.f32.mrf.mxu3  ;;  %v782_v35 = vadd.f32 %v781_v18, %v733_v61  ;;  %v735_v20 = vpop.f32.mrf.mxu1  ;;  %v10880_v18 = vld [vmem:[#allocation2 + $0x204] sm:$0xf] }
 0x12c   :  { %v736_v23 = vadd.f32 %v735_v20, %v686_v36  ;;  %v8650_v36 = vld [vmem:[#allocation2 + $0x218] sm:$0xf0] }
 0x12d   :  { %v12295_v39 = vadd.f32 %v830_v19, %v782_v35  ;;  %1074 = vmatmul.bf16.gmra.mxu0 %v8609_v33  ;;  %v8642_v19 = vld [vmem:[#allocation2 + $0x210] sm:$0xf0]  ;;  %v8648_v33 = vld [vmem:[#allocation2 + $0x208] sm:$0xf]  ;;  %v10881_v35 = vld [vmem:[#allocation2 + $0x20c] sm:$0xf] }
 0x12e   :  { %1123 = vmatmul.bf16.gmra.mxu1 %v8613_v34  ;;  %v10883_v34 = vld [vmem:[#allocation2 + $0x214] sm:$0xf0] }
 0x12f   :  { %13991 = vst [vmem:[#allocation36_spill] sm:$0xff] %v12295_v39  ;;  %1172 = vmatmul.bf16.gmra.mxu2 %v8617_v21  ;;  %v8696_v39 = vld [vmem:[#allocation2 + $0x268] sm:$0xf] }
 0x130   :  { %1221 = vmatmul.bf16.gmra.mxu3 %v8621_v22  ;;  %v8641_v22 = vor.u32 %v10882_v17, %v8640_v16  ;;  %v8666_v16 = vld [vmem:[#allocation2 + $0x238] sm:$0xf0]  ;;  %v12364_v17 = vld [vmem:[%s13882_s0 + $0x28] sm:$0xff] }
 0x132   :  { %v784_v41 = vpop.f32.mrf.mxu2  ;;  %v688_v27 = vpop.f32.mrf.mxu0 }
 0x133   :  { %v833_v42 = vpop.f32.mrf.mxu3  ;;  %v785_v26 = vadd.f32 %v784_v41, %v736_v23  ;;  %v737_v44 = vpop.f32.mrf.mxu1  ;;  %v8645_v23 = vor.u32 %v10880_v18, %v8642_v19  ;;  %v12370_v18 = vld [vmem:[%s13882_s0 + $0x68] sm:$0xff] }
 0x134   :  { %v738_v28 = vadd.f32 %v737_v44, %v688_v27  ;;  %v8649_v27 = vor.u32 %v10883_v34, %v8648_v33  ;;  %v8653_v44 = vor.u32 %v10881_v35, %v8650_v36  ;;  %v12376_v19 = vld [vmem:[%s13882_s0 + $0xa8] sm:$0xff] }
 0x135   :  { %v12299_v45 = vadd.f32 %v833_v42, %v785_v26  ;;  %v12382_v33 = vld [vmem:[%s13882_s0 + $0xe8] sm:$0xff] }
 0x137   :  { %13992 = vst [vmem:[#allocation37_spill] sm:$0xff] %v12299_v45  ;;  %v12490_v45 = vld [vmem:[%s13882_s0] sm:$0xff] }
 0x13a   :  { %v786_v52 = vpop.f32.mrf.mxu2  ;;  %v691_v54 = vpop.f32.mrf.mxu0 }
 0x13b   :  { %v835_v0 = vpop.f32.mrf.mxu3  ;;  %v787_v3 = vadd.f32 %v786_v52, %v738_v28  ;;  %v740_v55 = vpop.f32.mrf.mxu1 }
 0x13c   :  { %v741_v58 = vadd.f32 %v740_v55, %v691_v54  ;;  %v12344_v54 = vld [vmem:[%s13882_s0 + $0x70] sm:$0xff] }
 0x13d   :  { %v12301_v59 = vadd.f32 %v835_v0, %v787_v3  ;;  %1079 = vmatmul.bf16.gmra.mxu0 %v8625_v1  ;;  %v12338_v3 = vld [vmem:[%s13882_s0 + $0x30] sm:$0xff] }
 0x13e   :  { %1128 = vmatmul.bf16.gmra.mxu1 %v8629_v2 }
 0x13f   :  { %13993 = vst [vmem:[#allocation38_spill] sm:$0xff] %v12301_v59  ;;  %1177 = vmatmul.bf16.gmra.mxu2 %v8633_v4  ;;  %v12352_v4 = vld [vmem:[%s13882_s0 + $0xb0] sm:$0xff]  ;;  %v12496_v59 = vld [vmem:[%s13882_s0 + $0x40] sm:$0xff] }
 0x140   :  { %1226 = vmatmul.bf16.gmra.mxu3 %v8637_v7  ;;  %v12358_v7 = vld [vmem:[%s13882_s0 + $0xf0] sm:$0xff] }
 0x142   :  { %v789_v61 = vpop.f32.mrf.mxu2  ;;  %v693_v12 = vpop.f32.mrf.mxu0 }
 0x143   :  { %v838_v10 = vpop.f32.mrf.mxu3  ;;  %v790_v11 = vadd.f32 %v789_v61, %v741_v58  ;;  %v742_v13 = vpop.f32.mrf.mxu1  ;;  %v8656_v58 = vld [vmem:[#allocation2 + $0x220] sm:$0xf]  ;;  %v10886_v61 = vld [vmem:[#allocation2 + $0x22c] sm:$0xf0] }
 0x144   :  { %v743_v14 = vadd.f32 %v742_v13, %v693_v12  ;;  %v8664_v12 = vld [vmem:[#allocation2 + $0x228] sm:$0xf]  ;;  %v10887_v13 = vld [vmem:[#allocation2 + $0x234] sm:$0xf0]  ;;  %v8657_v36 = vor.u32 %v10886_v61, %v8656_v58 }
 0x145   :  { %v12305_v15 = vadd.f32 %v838_v10, %v790_v11  ;;  %v10884_v10 = vld [vmem:[#allocation2 + $0x224] sm:$0xf]  ;;  %v8658_v11 = vld [vmem:[#allocation2 + $0x230] sm:$0xf0]  ;;  %v12434_v58 = vld [vmem:[%s13882_s0 + $0xd8] sm:$0xff] }
 0x147   :  { %13994 = vst [vmem:[#allocation39_spill] sm:$0xff] %v12305_v15 }
 0x14a   :  { %v791_v20 = vpop.f32.mrf.mxu2  ;;  %v1045_v42 = vpop.f32.mrf.mxu0 }
 0x14b   :  { %v840_v21 = vpop.f32.mrf.mxu3  ;;  %v792_v41 = vadd.f32 %v791_v20, %v743_v14  ;;  %v1094_v26 = vpop.f32.mrf.mxu1  ;;  %v10885_v14 = vld [vmem:[#allocation2 + $0x22c] sm:$0xf]  ;;  %v8661_v20 = vor.u32 %v10884_v10, %v8658_v11 }
 0x14c   :  { %v1095_v28 = vadd.f32 %v1094_v26, %v1045_v42  ;;  %v8669_v42 = vor.u32 %v10885_v14, %v8666_v16  ;;  %v12440_v16 = vld [vmem:[%s13882_s0 + $0x10] sm:$0xff] }
 0x14d   :  { %v12307_v46 = vadd.f32 %v840_v21, %v792_v41  ;;  %1433 = vmatmul.bf16.vlgmr.msra.gmra.mxu0 %v8641_v22  ;;  %v8665_v41 = vor.u32 %v10887_v13, %v8664_v12 }
 0x14e   :  { %1482 = vmatmul.bf16.vlgmr.msra.gmra.mxu1 %v8645_v23  ;;  %2203 = vmatpush.bf16.msra.mxu0 %v12314_v30 }
 0x14f   :  { %13995 = vst [vmem:[#allocation40_spill] sm:$0xff] %v12307_v46  ;;  %1531 = vmatmul.bf16.vlgmr.msra.gmra.mxu2 %v8649_v27  ;;  %2252 = vmatpush.bf16.msra.mxu1 %v12320_v48  ;;  %v12388_v27 = vld [vmem:[%s13882_s0 + $0x20] sm:$0xff] }
 0x150   :  { %1580 = vmatmul.bf16.vlgmr.msra.gmra.mxu3 %v8653_v44  ;;  %2301 = vmatpush.bf16.msra.mxu2 %v12326_v31  ;;  %v12394_v44 = vld [vmem:[%s13882_s0 + $0x60] sm:$0xff] }
 0x151   :  { %2350 = vmatpush.bf16.msra.mxu3 %v12332_v49 }
 0x152   :  { %v1143_v50 = vpop.f32.mrf.mxu2  ;;  %v1047_v0 = vpop.f32.mrf.mxu0  ;;  %2204 = vmatpush.bf16.msra.mxu0 %v12338_v3 }
 0x153   :  { %v1192_v51 = vpop.f32.mrf.mxu3  ;;  %v1144_v52 = vadd.f32 %v1143_v50, %v1095_v28  ;;  %v1096_v1 = vpop.f32.mrf.mxu1  ;;  %2253 = vmatpush.bf16.msra.mxu1 %v12344_v54  ;;  %v12402_v50 = vld [vmem:[%s13882_s0 + $0xa0] sm:$0xff] }
 0x154   :  { %v1097_v2 = vadd.f32 %v1096_v1, %v1047_v0  ;;  %2302 = vmatpush.bf16.msra.mxu2 %v12352_v4  ;;  %v12416_v0 = vld [vmem:[%s13882_s0 + $0x18] sm:$0xff] }
 0x155   :  { %v12347_v55 = vadd.f32 %v1192_v51, %v1144_v52  ;;  %2351 = vmatpush.bf16.msra.mxu3 %v12358_v7  ;;  %v12408_v51 = vld [vmem:[%s13882_s0 + $0xe0] sm:$0xff]  ;;  %v12422_v1 = vld [vmem:[%s13882_s0 + $0x58] sm:$0xff] }
 0x156   :  { %2205 = vmatpush.bf16.msra.mxu0 %v12364_v17 }
 0x157   :  { %2254 = vmatpush.bf16.msra.mxu1 %v12370_v18 }
 0x158   :  { %2303 = vmatpush.bf16.msra.mxu2 %v12376_v19 }
 0x159   :  { %2352 = vmatpush.bf16.msra.mxu3 %v12382_v33 }
 0x15a   :  { %v1145_v34 = vpop.f32.mrf.mxu2  ;;  %v1050_v22 = vpop.f32.mrf.mxu0  ;;  %2206 = vmatpush.bf16.msra.mxu0 %v12388_v27 }
 0x15b   :  { %v1194_v35 = vpop.f32.mrf.mxu3  ;;  %v1146_v21 = vadd.f32 %v1145_v34, %v1097_v2  ;;  %v1099_v23 = vpop.f32.mrf.mxu1  ;;  %2255 = vmatpush.bf16.msra.mxu1 %v12394_v44  ;;  %v12428_v2 = vld [vmem:[%s13882_s0 + $0x98] sm:$0xff]  ;;  %v12446_v34 = vld [vmem:[%s13882_s0 + $0x50] sm:$0xff] }
 0x15c   :  { %v1100_v26 = vadd.f32 %v1099_v23, %v1050_v22  ;;  %2304 = vmatpush.bf16.msra.mxu2 %v12402_v50  ;;  %v10890_v22 = vld [vmem:[#allocation2 + $0x24c] sm:$0xf0]  ;;  %v10888_v23 = vld [vmem:[#allocation2 + $0x244] sm:$0xf] }
 0x15d   :  { %v12397_v28 = vadd.f32 %v1194_v35, %v1146_v21  ;;  %2353 = vmatpush.bf16.msra.mxu3 %v12408_v51  ;;  %1438 = vmatmul.bf16.gmra.mxu0 %v8657_v36  ;;  %v12454_v36 = vld [vmem:[%s13882_s0 + $0x90] sm:$0xff]  ;;  %v8672_v21 = vld [vmem:[#allocation2 + $0x240] sm:$0xf] }
 0x15e   :  { %1487 = vmatmul.bf16.gmra.mxu1 %v8661_v20  ;;  %2207 = vmatpush.bf16.msra.mxu0 %v12416_v0  ;;  %v12460_v20 = vld [vmem:[%s13882_s0 + $0xd0] sm:$0xff]  ;;  %v8673_v57 = vor.u32 %v10890_v22, %v8672_v21 }
 0x15f   :  { %1536 = vmatmul.bf16.gmra.mxu2 %v8665_v41  ;;  %2256 = vmatpush.bf16.msra.mxu1 %v12422_v1  ;;  %v8674_v41 = vld [vmem:[#allocation2 + $0x250] sm:$0xf0] }
 0x160   :  { %1585 = vmatmul.bf16.gmra.mxu3 %v8669_v42  ;;  %2305 = vmatpush.bf16.msra.mxu2 %v12428_v2  ;;  %v8680_v42 = vld [vmem:[#allocation2 + $0x248] sm:$0xf]  ;;  %v8677_v38 = vor.u32 %v10888_v23, %v8674_v41 }
 0x161   :  { %2354 = vmatpush.bf16.msra.mxu3 %v12434_v58 }
 0x162   :  { %v1148_v61 = vpop.f32.mrf.mxu2  ;;  %v1052_v12 = vpop.f32.mrf.mxu0  ;;  %2208 = vmatpush.bf16.msra.mxu0 %v12440_v16 }
 0x163   :  { %v1197_v10 = vpop.f32.mrf.mxu3  ;;  %v1149_v11 = vadd.f32 %v1148_v61, %v1100_v26  ;;  %v1101_v13 = vpop.f32.mrf.mxu1  ;;  %2257 = vmatpush.bf16.msra.mxu1 %v12446_v34  ;;  %v10891_v26 = vld [vmem:[#allocation2 + $0x254] sm:$0xf0]  ;;  %v10889_v61 = vld [vmem:[#allocation2 + $0x24c] sm:$0xf] }
 0x164   :  { %v1102_v14 = vadd.f32 %v1101_v13, %v1052_v12  ;;  %2306 = vmatpush.bf16.msra.mxu2 %v12454_v36  ;;  %v12472_v12 = vld [vmem:[%s13882_s0 + $0x48] sm:$0xff]  ;;  %v8681_v9 = vor.u32 %v10891_v26, %v8680_v42  ;;  %v8688_v26 = vld [vmem:[#allocation2 + $0x260] sm:$0xf] }
 0x165   :  { %v12449_v35 = vadd.f32 %v1197_v10, %v1149_v11  ;;  %2355 = vmatpush.bf16.msra.mxu3 %v12460_v20  ;;  %v8682_v10 = vld [vmem:[#allocation2 + $0x258] sm:$0xf0]  ;;  %v12466_v11 = vld [vmem:[%s13882_s0 + $0x8] sm:$0xff] }
 0x166   :  { %2209 = vmatpush.bf16.msra.mxu0 %v12466_v11  ;;  %v12478_v13 = vld [vmem:[%s13882_s0 + $0x88] sm:$0xff]  ;;  %v8685_v15 = vor.u32 %v10889_v61, %v8682_v10  ;;  %v10894_v61 = vld [vmem:[#allocation2 + $0x26c] sm:$0xf0]  ;;  %v10892_v10 = vld [vmem:[#allocation2 + $0x264] sm:$0xf] }
 0x167   :  { %13996 = vst [vmem:[#allocation41_spill] sm:$0xff] %v12449_v35  ;;  %2258 = vmatpush.bf16.msra.mxu1 %v12472_v12 }
 0x168   :  { %2307 = vmatpush.bf16.msra.mxu2 %v12478_v13 }
 0x169   :  { %2356 = vmatpush.bf16.msra.mxu3 %v12484_v47 }
 0x16a   :  { %v1150_v60 = vpop.f32.mrf.mxu2  ;;  %v1055_v25 = vpop.f32.mrf.mxu0  ;;  %2210 = vmatpush.bf16.msra.mxu0 %v12490_v45 }
 0x16b   :  { %v1199_v40 = vpop.f32.mrf.mxu3  ;;  %v1151_v6 = vadd.f32 %v1150_v60, %v1102_v14  ;;  %v1104_v52 = vpop.f32.mrf.mxu1  ;;  %2259 = vmatpush.bf16.msra.mxu1 %v12496_v59 }
 0x16c   :  { %v1105_v46 = vadd.f32 %v1104_v52, %v1055_v25  ;;  %v12504_v25 = vld [vmem:[%s13882_s0 + $0x80] sm:$0xff] }
 0x16d   :  { %v12499_v60 = vadd.f32 %v1199_v40, %v1151_v6  ;;  %2308 = vmatpush.bf16.msra.mxu2 %v12504_v25  ;;  %v12510_v52 = vld [vmem:[%s13882_s0 + $0xc0] sm:$0xff]  ;;  %1443 = vmatmul.bf16.gmra.mxu0 %v8673_v57  ;;  %v10895_v57 = vld [vmem:[#allocation2 + $0x274] sm:$0xf0] }
 0x16e   :  { %2357 = vmatpush.bf16.msra.mxu3 %v12510_v52  ;;  %1492 = vmatmul.bf16.gmra.mxu1 %v8677_v38  ;;  %v10893_v38 = vld [vmem:[#allocation2 + $0x26c] sm:$0xf] }
 0x16f   :  { %13997 = vst [vmem:[#allocation42_spill] sm:$0xff] %v12499_v60  ;;  %1541 = vmatmul.bf16.gmra.mxu2 %v8681_v9  ;;  %v8689_v9 = vor.u32 %v10894_v61, %v8688_v26  ;;  %v8701_v29 = vor.u32 %v10893_v38, %v8698_v43  ;;  %v10898_v43 = vld [vmem:[#allocation2 + $0x28c] sm:$0xf0]  ;;  %v10899_v61 = vld [vmem:[#allocation2 + $0x294] sm:$0xf0] }
 0x170   :  { %1590 = vmatmul.bf16.gmra.mxu3 %v8685_v15  ;;  %v8693_v15 = vor.u32 %v10892_v10, %v8690_v62  ;;  %v10897_v10 = vld [vmem:[#allocation2 + $0x28c] sm:$0xf] }
 0x172   :  { %v1153_v40 = vpop.f32.mrf.mxu2  ;;  %v1057_v22 = vpop.f32.mrf.mxu0 }
 0x173   :  { %v1202_v14 = vpop.f32.mrf.mxu3  ;;  %v1154_v21 = vadd.f32 %v1153_v40, %v1105_v46  ;;  %v1106_v23 = vpop.f32.mrf.mxu1  ;;  %v8697_v40 = vor.u32 %v10895_v57, %v8696_v39  ;;  %v8704_v39 = vld [vmem:[#allocation2 + $0x280] sm:$0xf]  ;;  %v8714_v57 = vld [vmem:[#allocation2 + $0x298] sm:$0xf0] }
 0x174   :  { %v1107_v41 = vadd.f32 %v1106_v23, %v1057_v22 }
 0x175   :  { %v12515_v42 = vadd.f32 %v1202_v14, %v1154_v21  ;;  %v8717_v21 = vor.u32 %v10897_v10, %v8714_v57  ;;  %v8722_v10 = vld [vmem:[#allocation2 + $0x2b0] sm:$0xf0]  ;;  %v8728_v57 = vld [vmem:[#allocation2 + $0x2a8] sm:$0xf] }
 0x177   :  { %13998 = vst [vmem:[#allocation43_spill] sm:$0xff] %v12515_v42 }
 0x17a   :  { %v1155_v56 = vpop.f32.mrf.mxu2  ;;  %v1060_v37 = vpop.f32.mrf.mxu0 }
 0x17b   :  { %v1204_v6 = vpop.f32.mrf.mxu3  ;;  %v1156_v63 = vadd.f32 %v1155_v56, %v1107_v41  ;;  %v1109_v46 = vpop.f32.mrf.mxu1 }
 0x17c   :  { %v1110_v22 = vadd.f32 %v1109_v46, %v1060_v37  ;;  %v10896_v37 = vld [vmem:[#allocation2 + $0x284] sm:$0xf] }
 0x17d   :  { %v12517_v14 = vadd.f32 %v1204_v6, %v1156_v63  ;;  %1448 = vmatmul.bf16.gmra.mxu0 %v8689_v9  ;;  %v8706_v63 = vld [vmem:[#allocation2 + $0x290] sm:$0xf0]  ;;  %v8712_v6 = vld [vmem:[#allocation2 + $0x288] sm:$0xf] }
 0x17e   :  { %1497 = vmatmul.bf16.gmra.mxu1 %v8693_v15  ;;  %v8705_v15 = vor.u32 %v10898_v43, %v8704_v39 }
 0x17f   :  { %13999 = vst [vmem:[#allocation44_spill] sm:$0xff] %v12517_v14  ;;  %1546 = vmatmul.bf16.gmra.mxu2 %v8697_v40 }
 0x180   :  { %1595 = vmatmul.bf16.gmra.mxu3 %v8701_v29  ;;  %v8709_v29 = vor.u32 %v10896_v37, %v8706_v63  ;;  %v8720_v63 = vld [vmem:[#allocation2 + $0x2a0] sm:$0xf] }
 0x182   :  { %v1158_v23 = vpop.f32.mrf.mxu2  ;;  %v1062_v26 = vpop.f32.mrf.mxu0 }
 0x183   :  { %v1207_v5 = vpop.f32.mrf.mxu3  ;;  %v1159_v35 = vadd.f32 %v1158_v23, %v1110_v22  ;;  %v1111_v62 = vpop.f32.mrf.mxu1  ;;  %v8713_v23 = vor.u32 %v10899_v61, %v8712_v6  ;;  %v10902_v6 = vld [vmem:[#allocation2 + $0x2ac] sm:$0xf0]  ;;  %v10900_v61 = vld [vmem:[#allocation2 + $0x2a4] sm:$0xf] }
 0x184   :  { %v1112_v56 = vadd.f32 %v1111_v62, %v1062_v26 }
 0x185   :  { %v12521_v41 = vadd.f32 %v1207_v5, %v1159_v35 }
 0x187   :  { %14000 = vst [vmem:[#allocation45_spill] sm:$0xff] %v12521_v41 }
 0x18a   :  { %v1160_v38 = vpop.f32.mrf.mxu2  ;;  %v1065_v40 = vpop.f32.mrf.mxu0 }
 0x18b   :  { %v1209_v9 = vpop.f32.mrf.mxu3  ;;  %v1161_v46 = vadd.f32 %v1160_v38, %v1112_v56  ;;  %v1114_v22 = vpop.f32.mrf.mxu1  ;;  %v10903_v38 = vld [vmem:[#allocation2 + $0x2b4] sm:$0xf0] }
 0x18c   :  { %v1115_v26 = vadd.f32 %v1114_v22, %v1065_v40  ;;  %v8721_v40 = vor.u32 %v10902_v6, %v8720_v63 }
 0x18d   :  { %v12523_v5 = vadd.f32 %v1209_v9, %v1161_v46  ;;  %1453 = vmatmul.bf16.gmra.mxu0 %v8705_v15  ;;  %v10901_v9 = vld [vmem:[#allocation2 + $0x2ac] sm:$0xf]  ;;  %v8730_v15 = vld [vmem:[#allocation2 + $0x2b8] sm:$0xf0] }
 0x18e   :  { %1502 = vmatmul.bf16.gmra.mxu1 %v8709_v29  ;;  %v8733_v35 = vor.u32 %v10901_v9, %v8730_v15  ;;  %v8738_v9 = vld [vmem:[#allocation2 + $0x2d0] sm:$0xf0]  ;;  %v8744_v15 = vld [vmem:[#allocation2 + $0x2c8] sm:$0xf] }
 0x18f   :  { %14001 = vst [vmem:[#allocation46_spill] sm:$0xff] %v12523_v5  ;;  %1551 = vmatmul.bf16.gmra.mxu2 %v8713_v23 }
 0x190   :  { %1600 = vmatmul.bf16.gmra.mxu3 %v8717_v21  ;;  %v8725_v21 = vor.u32 %v10900_v61, %v8722_v10  ;;  %v8736_v10 = vld [vmem:[#allocation2 + $0x2c0] sm:$0xf] }
 0x192   :  { %v1163_v62 = vpop.f32.mrf.mxu2  ;;  %v1067_v39 = vpop.f32.mrf.mxu0 }
 0x193   :  { %v1212_v42 = vpop.f32.mrf.mxu3  ;;  %v1164_v14 = vadd.f32 %v1163_v62, %v1115_v26  ;;  %v1116_v43 = vpop.f32.mrf.mxu1  ;;  %v8729_v62 = vor.u32 %v10903_v38, %v8728_v57  ;;  %v10906_v57 = vld [vmem:[#allocation2 + $0x2cc] sm:$0xf0]  ;;  %v10904_v38 = vld [vmem:[#allocation2 + $0x2c4] sm:$0xf] }
 0x194   :  { %v1117_v56 = vadd.f32 %v1116_v43, %v1067_v39 }
 0x195   :  { %v12527_v37 = vadd.f32 %v1212_v42, %v1164_v14 }
 0x197   :  { %14002 = vst [vmem:[#allocation47_spill] sm:$0xff] %v12527_v37 }
 0x19a   :  { %v1165_v29 = vpop.f32.mrf.mxu2  ;;  %v1070_v23 = vpop.f32.mrf.mxu0 }
 0x19b   :  { %v1214_v46 = vpop.f32.mrf.mxu3  ;;  %v1166_v22 = vadd.f32 %v1165_v29, %v1117_v56  ;;  %v1119_v26 = vpop.f32.mrf.mxu1  ;;  %v10907_v29 = vld [vmem:[#allocation2 + $0x2d4] sm:$0xf0] }
 0x19c   :  { %v1120_v39 = vadd.f32 %v1119_v26, %v1070_v23  ;;  %v8737_v23 = vor.u32 %v10906_v57, %v8736_v10 }
 0x19d   :  { %v12529_v42 = vadd.f32 %v1214_v46, %v1166_v22  ;;  %1458 = vmatmul.bf16.gmra.mxu0 %v8721_v40  ;;  %v10905_v46 = vld [vmem:[#allocation2 + $0x2cc] sm:$0xf]  ;;  %v8746_v40 = vld [vmem:[#allocation2 + $0x2d8] sm:$0xf0] }
 0x19e   :  { %1507 = vmatmul.bf16.gmra.mxu1 %v8725_v21  ;;  %v8749_v14 = vor.u32 %v10905_v46, %v8746_v40  ;;  %v8754_v46 = vld [vmem:[#allocation2 + $0x2f0] sm:$0xf0]  ;;  %v8760_v40 = vld [vmem:[#allocation2 + $0x2e8] sm:$0xf] }
 0x19f   :  { %14003 = vst [vmem:[#allocation48_spill] sm:$0xff] %v12529_v42  ;;  %1556 = vmatmul.bf16.gmra.mxu2 %v8729_v62 }
 0x1a0   :  { %1605 = vmatmul.bf16.gmra.mxu3 %v8733_v35  ;;  %v8741_v35 = vor.u32 %v10904_v38, %v8738_v9  ;;  %v8752_v9 = vld [vmem:[#allocation2 + $0x2e0] sm:$0xf] }
 0x1a2   :  { %v1168_v43 = vpop.f32.mrf.mxu2  ;;  %v1072_v63 = vpop.f32.mrf.mxu0 }
 0x1a3   :  { %v1217_v41 = vpop.f32.mrf.mxu3  ;;  %v1169_v5 = vadd.f32 %v1168_v43, %v1120_v39  ;;  %v1121_v6 = vpop.f32.mrf.mxu1  ;;  %v8745_v43 = vor.u32 %v10907_v29, %v8744_v15  ;;  %v10910_v15 = vld [vmem:[#allocation2 + $0x2ec] sm:$0xf0]  ;;  %v10908_v29 = vld [vmem:[#allocation2 + $0x2e4] sm:$0xf] }
 0x1a4   :  { %v1122_v56 = vadd.f32 %v1121_v6, %v1072_v63 }
 0x1a5   :  { %v12533_v61 = vadd.f32 %v1217_v41, %v1169_v5 }
 0x1a7   :  { %14004 = vst [vmem:[#allocation49_spill] sm:$0xff] %v12533_v61 }
 0x1aa   :  { %v1170_v21 = vpop.f32.mrf.mxu2  ;;  %v1075_v62 = vpop.f32.mrf.mxu0 }
 0x1ab   :  { %v1219_v22 = vpop.f32.mrf.mxu3  ;;  %v1171_v26 = vadd.f32 %v1170_v21, %v1122_v56  ;;  %v1124_v39 = vpop.f32.mrf.mxu1  ;;  %v10911_v21 = vld [vmem:[#allocation2 + $0x2f4] sm:$0xf0] }
 0x1ac   :  { %v1125_v63 = vadd.f32 %v1124_v39, %v1075_v62  ;;  %v8753_v62 = vor.u32 %v10910_v15, %v8752_v9 }
 0x1ad   :  { %v12535_v41 = vadd.f32 %v1219_v22, %v1171_v26  ;;  %1463 = vmatmul.bf16.gmra.mxu0 %v8737_v23  ;;  %v10909_v22 = vld [vmem:[#allocation2 + $0x2ec] sm:$0xf]  ;;  %v8762_v23 = vld [vmem:[#allocation2 + $0x2f8] sm:$0xf0] }
 0x1ae   :  { %1512 = vmatmul.bf16.gmra.mxu1 %v8741_v35  ;;  %v8765_v5 = vor.u32 %v10909_v22, %v8762_v23  ;;  %v8770_v22 = vld [vmem:[#allocation2 + $0x310] sm:$0xf0]  ;;  %v8776_v23 = vld [vmem:[#allocation2 + $0x308] sm:$0xf] }
 0x1af   :  { %14005 = vst [vmem:[#allocation50_spill] sm:$0xff] %v12535_v41  ;;  %1561 = vmatmul.bf16.gmra.mxu2 %v8745_v43 }
 0x1b0   :  { %1610 = vmatmul.bf16.gmra.mxu3 %v8749_v14  ;;  %v8757_v14 = vor.u32 %v10908_v29, %v8754_v46  ;;  %v8768_v46 = vld [vmem:[#allocation2 + $0x300] sm:$0xf] }
 0x1b2   :  { %v1173_v6 = vpop.f32.mrf.mxu2  ;;  %v1077_v10 = vpop.f32.mrf.mxu0 }
 0x1b3   :  { %v1222_v37 = vpop.f32.mrf.mxu3  ;;  %v1174_v42 = vadd.f32 %v1173_v6, %v1125_v63  ;;  %v1126_v57 = vpop.f32.mrf.mxu1  ;;  %v8761_v6 = vor.u32 %v10911_v21, %v8760_v40  ;;  %v10914_v40 = vld [vmem:[#allocation2 + $0x30c] sm:$0xf0]  ;;  %v10912_v21 = vld [vmem:[#allocation2 + $0x304] sm:$0xf] }
 0x1b4   :  { %v1127_v56 = vadd.f32 %v1126_v57, %v1077_v10 }
 0x1b5   :  { %v12539_v38 = vadd.f32 %v1222_v37, %v1174_v42 }
 0x1b7   :  { %14006 = vst [vmem:[#allocation51_spill] sm:$0xff] %v12539_v38 }
 0x1ba   :  { %v1175_v35 = vpop.f32.mrf.mxu2  ;;  %v1080_v43 = vpop.f32.mrf.mxu0 }
 0x1bb   :  { %v1224_v26 = vpop.f32.mrf.mxu3  ;;  %v1176_v39 = vadd.f32 %v1175_v35, %v1127_v56  ;;  %v1129_v63 = vpop.f32.mrf.mxu1  ;;  %v10915_v35 = vld [vmem:[#allocation2 + $0x314] sm:$0xf0] }
 0x1bc   :  { %v1130_v10 = vadd.f32 %v1129_v63, %v1080_v43  ;;  %v8769_v43 = vor.u32 %v10914_v40, %v8768_v46 }
 0x1bd   :  { %v12541_v37 = vadd.f32 %v1224_v26, %v1176_v39  ;;  %1468 = vmatmul.bf16.gmra.mxu0 %v8753_v62  ;;  %v10913_v26 = vld [vmem:[#allocation2 + $0x30c] sm:$0xf]  ;;  %v8778_v62 = vld [vmem:[#allocation2 + $0x318] sm:$0xf0] }
 0x1be   :  { %1517 = vmatmul.bf16.gmra.mxu1 %v8757_v14  ;;  %v8781_v42 = vor.u32 %v10913_v26, %v8778_v62  ;;  %v10917_v26 = vld [vmem:[#allocation2 + $0x32c] sm:$0xf]  ;;  %v8794_v62 = vld [vmem:[#allocation2 + $0x338] sm:$0xf0] }
 0x1bf   :  { %14007 = vst [vmem:[#allocation52_spill] sm:$0xff] %v12541_v37  ;;  %1566 = vmatmul.bf16.gmra.mxu2 %v8761_v6 }
 0x1c0   :  { %1615 = vmatmul.bf16.gmra.mxu3 %v8765_v5  ;;  %v8773_v5 = vor.u32 %v10912_v21, %v8770_v22 }
 0x1c2   :  { %v1178_v57 = vpop.f32.mrf.mxu2  ;;  %v1082_v9 = vpop.f32.mrf.mxu0 }
 0x1c3   :  { %v1227_v61 = vpop.f32.mrf.mxu3  ;;  %v1179_v41 = vadd.f32 %v1178_v57, %v1130_v10  ;;  %v1131_v15 = vpop.f32.mrf.mxu1  ;;  %v8777_v57 = vor.u32 %v10915_v35, %v8776_v23  ;;  %v10919_v35 = vld [vmem:[#allocation2 + $0x334] sm:$0xf0] }
 0x1c4   :  { %v1132_v56 = vadd.f32 %v1131_v15, %v1082_v9 }
 0x1c5   :  { %v12545_v29 = vadd.f32 %v1227_v61, %v1179_v41 }
 0x1c7   :  { %14008 = vst [vmem:[#allocation53_spill] sm:$0xff] %v12545_v29  ;;  %v12804_v29 = vld [vmem:[%s13882_s0 + $0xc8] sm:$0xff] }
 0x1ca   :  { %v1180_v14 = vpop.f32.mrf.mxu2  ;;  %v1434_v6 = vpop.f32.mrf.mxu0 }
 0x1cb   :  { %v1229_v39 = vpop.f32.mrf.mxu3  ;;  %v1181_v63 = vadd.f32 %v1180_v14, %v1132_v56  ;;  %v1483_v10 = vpop.f32.mrf.mxu1 }
 0x1cc   :  { %v1484_v9 = vadd.f32 %v1483_v10, %v1434_v6 }
 0x1cd   :  { %v12547_v61 = vadd.f32 %v1229_v39, %v1181_v63  ;;  %1822 = vmatmul.bf16.vlgmr.msrb.gmra.mxu0 %v8769_v43  ;;  %v8797_v63 = vor.u32 %v10917_v26, %v8794_v62  ;;  %v10926_v26 = vld [vmem:[#allocation2 + $0x36c] sm:$0xf0]  ;;  %v8818_v62 = vld [vmem:[#allocation2 + $0x370] sm:$0xf0] }
 0x1ce   :  { %1871 = vmatmul.bf16.vlgmr.msrb.gmra.mxu1 %v8773_v5  ;;  %2592 = vmatpush.bf16.msrb.mxu0 %v12314_v30  ;;  %v8784_v30 = vld [vmem:[#allocation2 + $0x320] sm:$0xf] }
 0x1cf   :  { %14009 = vst [vmem:[#allocation54_spill] sm:$0xff] %v12547_v61  ;;  %1920 = vmatmul.bf16.vlgmr.msrb.gmra.mxu2 %v8777_v57  ;;  %2641 = vmatpush.bf16.msrb.mxu1 %v12320_v48  ;;  %v10918_v48 = vld [vmem:[#allocation2 + $0x32c] sm:$0xf0]  ;;  %v8808_v57 = vld [vmem:[#allocation2 + $0x348] sm:$0xf] }
 0x1d0   :  { %1969 = vmatmul.bf16.vlgmr.msrb.gmra.mxu3 %v8781_v42  ;;  %2690 = vmatpush.bf16.msrb.mxu2 %v12326_v31  ;;  %v10916_v31 = vld [vmem:[#allocation2 + $0x324] sm:$0xf]  ;;  %v8792_v42 = vld [vmem:[#allocation2 + $0x328] sm:$0xf] }
 0x1d1   :  { %2739 = vmatpush.bf16.msrb.mxu3 %v12332_v49  ;;  %v8786_v49 = vld [vmem:[#allocation2 + $0x330] sm:$0xf0]  ;;  %v8793_v5 = vor.u32 %v10919_v35, %v8792_v42  ;;  %v8816_v35 = vld [vmem:[#allocation2 + $0x360] sm:$0xf] }
 0x1d2   :  { %v1532_v15 = vpop.f32.mrf.mxu2  ;;  %v1436_v40 = vpop.f32.mrf.mxu0  ;;  %2593 = vmatpush.bf16.msrb.mxu0 %v12338_v3 }
 0x1d3   :  { %v1581_v56 = vpop.f32.mrf.mxu3  ;;  %v1533_v46 = vadd.f32 %v1532_v15, %v1484_v9  ;;  %v1485_v21 = vpop.f32.mrf.mxu1  ;;  %2642 = vmatpush.bf16.msrb.mxu1 %v12344_v54  ;;  %v10923_v9 = vld [vmem:[#allocation2 + $0x354] sm:$0xf0]  ;;  %v10921_v15 = vld [vmem:[#allocation2 + $0x34c] sm:$0xf] }
 0x1d4   :  { %v1486_v22 = vadd.f32 %v1485_v21, %v1436_v40  ;;  %2691 = vmatpush.bf16.msrb.mxu2 %v12352_v4  ;;  %v8785_v4 = vor.u32 %v10918_v48, %v8784_v30 }
 0x1d5   :  { %v12557_v23 = vadd.f32 %v1581_v56, %v1533_v46  ;;  %2740 = vmatpush.bf16.msrb.mxu3 %v12358_v7  ;;  %v8789_v7 = vor.u32 %v10916_v31, %v8786_v49  ;;  %v8810_v56 = vld [vmem:[#allocation2 + $0x358] sm:$0xf0] }
 0x1d6   :  { %2594 = vmatpush.bf16.msrb.mxu0 %v12364_v17  ;;  %v8813_v30 = vor.u32 %v10921_v15, %v8810_v56  ;;  %v8832_v15 = vld [vmem:[#allocation2 + $0x380] sm:$0xf]  ;;  %v10930_v56 = vld [vmem:[#allocation2 + $0x38c] sm:$0xf0] }
 0x1d7   :  { %2643 = vmatpush.bf16.msrb.mxu1 %v12370_v18  ;;  %v12786_v18 = vld [vmem:[%s13882_s0 + $0x8] sm:$0xff] }
 0x1d8   :  { %2692 = vmatpush.bf16.msrb.mxu2 %v12376_v19 }
 0x1d9   :  { %2741 = vmatpush.bf16.msrb.mxu3 %v12382_v33 }
 0x1da   :  { %v1534_v3 = vpop.f32.mrf.mxu2  ;;  %v1439_v39 = vpop.f32.mrf.mxu0  ;;  %2595 = vmatpush.bf16.msrb.mxu0 %v12388_v27 }
 0x1db   :  { %v1583_v54 = vpop.f32.mrf.mxu3  ;;  %v1535_v14 = vadd.f32 %v1534_v3, %v1486_v22  ;;  %v1488_v43 = vpop.f32.mrf.mxu1  ;;  %2644 = vmatpush.bf16.msrb.mxu1 %v12394_v44  ;;  %v8809_v22 = vor.u32 %v10923_v9, %v8808_v57  ;;  %v10927_v3 = vld [vmem:[#allocation2 + $0x374] sm:$0xf0] }
 0x1dc   :  { %v1489_v6 = vadd.f32 %v1488_v43, %v1439_v39  ;;  %2693 = vmatpush.bf16.msrb.mxu2 %v12402_v50  ;;  %v8817_v39 = vor.u32 %v10926_v26, %v8816_v35  ;;  %v12714_v26 = vld [vmem:[%s13882_s0 + $0x60] sm:$0xff] }
 0x1dd   :  { %v12567_v17 = vadd.f32 %v1583_v54, %v1535_v14  ;;  %2742 = vmatpush.bf16.msrb.mxu3 %v12408_v51  ;;  %1827 = vmatmul.bf16.gmra.mxu0 %v8785_v4  ;;  %v10925_v54 = vld [vmem:[#allocation2 + $0x36c] sm:$0xf]  ;;  %v8826_v4 = vld [vmem:[#allocation2 + $0x378] sm:$0xf0] }
 0x1de   :  { %1876 = vmatmul.bf16.gmra.mxu1 %v8789_v7  ;;  %2596 = vmatpush.bf16.msrb.mxu0 %v12416_v0  ;;  %v8800_v0 = vld [vmem:[#allocation2 + $0x340] sm:$0xf] }
 0x1df   :  { %1925 = vmatmul.bf16.gmra.mxu2 %v8793_v5  ;;  %2645 = vmatpush.bf16.msrb.mxu1 %v12422_v1  ;;  %v10922_v1 = vld [vmem:[#allocation2 + $0x34c] sm:$0xf0] }
 0x1e0   :  { %1974 = vmatmul.bf16.gmra.mxu3 %v8797_v63  ;;  %2694 = vmatpush.bf16.msrb.mxu2 %v12428_v2  ;;  %v10920_v2 = vld [vmem:[#allocation2 + $0x344] sm:$0xf] }
 0x1e1   :  { %2743 = vmatpush.bf16.msrb.mxu3 %v12434_v58  ;;  %v8802_v58 = vld [vmem:[#allocation2 + $0x350] sm:$0xf0] }
 0x1e2   :  { %v1537_v19 = vpop.f32.mrf.mxu2  ;;  %v1441_v44 = vpop.f32.mrf.mxu0  ;;  %2597 = vmatpush.bf16.msrb.mxu0 %v12440_v16 }
 0x1e3   :  { %v1586_v33 = vpop.f32.mrf.mxu3  ;;  %v1538_v27 = vadd.f32 %v1537_v19, %v1489_v6  ;;  %v1490_v50 = vpop.f32.mrf.mxu1  ;;  %2646 = vmatpush.bf16.msrb.mxu1 %v12446_v34 }
 0x1e4   :  { %v1491_v51 = vadd.f32 %v1490_v50, %v1441_v44  ;;  %2695 = vmatpush.bf16.msrb.mxu2 %v12454_v36  ;;  %v8801_v36 = vor.u32 %v10922_v1, %v8800_v0  ;;  %v8930_v50 = vld [vmem:[#allocation2 + $0x450] sm:$0xf0] }
 0x1e5   :  { %v12579_v10 = vadd.f32 %v1586_v33, %v1538_v27  ;;  %2744 = vmatpush.bf16.msrb.mxu3 %v12460_v20  ;;  %v8805_v20 = vor.u32 %v10920_v2, %v8802_v58  ;;  %v8829_v33 = vor.u32 %v10925_v54, %v8826_v4 }
 0x1e6   :  { %2598 = vmatpush.bf16.msrb.mxu0 %v12466_v11 }
 0x1e7   :  { %14010 = vst [vmem:[#allocation55_spill] sm:$0xff] %v12579_v10  ;;  %2647 = vmatpush.bf16.msrb.mxu1 %v12472_v12  ;;  %v8952_v10 = vld [vmem:[#allocation2 + $0x468] sm:$0xf] }
 0x1e8   :  { %2696 = vmatpush.bf16.msrb.mxu2 %v12478_v13 }
 0x1e9   :  { %2745 = vmatpush.bf16.msrb.mxu3 %v12484_v47  ;;  %v10953_v47 = vld [vmem:[#allocation2 + $0x44c] sm:$0xf] }
 0x1ea   :  { %v1539_v16 = vpop.f32.mrf.mxu2  ;;  %v1444_v40 = vpop.f32.mrf.mxu0  ;;  %2599 = vmatpush.bf16.msrb.mxu0 %v12490_v45 }
 0x1eb   :  { %v1588_v34 = vpop.f32.mrf.mxu3  ;;  %v1540_v46 = vadd.f32 %v1539_v16, %v1491_v51  ;;  %v1493_v21 = vpop.f32.mrf.mxu1  ;;  %2648 = vmatpush.bf16.msrb.mxu1 %v12496_v59  ;;  %v10928_v16 = vld [vmem:[#allocation2 + $0x384] sm:$0xf] }
 0x1ec   :  { %v1494_v48 = vadd.f32 %v1493_v21, %v1444_v40  ;;  %2697 = vmatpush.bf16.msrb.mxu2 %v12504_v25  ;;  %v10924_v25 = vld [vmem:[#allocation2 + $0x364] sm:$0xf]  ;;  %v8842_v40 = vld [vmem:[#allocation2 + $0x398] sm:$0xf0] }
 0x1ed   :  { %v12589_v11 = vadd.f32 %v1588_v34, %v1540_v46  ;;  %2746 = vmatpush.bf16.msrb.mxu3 %v12510_v52  ;;  %1832 = vmatmul.bf16.gmra.mxu0 %v8801_v36  ;;  %v8824_v52 = vld [vmem:[#allocation2 + $0x368] sm:$0xf]  ;;  %v8821_v43 = vor.u32 %v10924_v25, %v8818_v62  ;;  %v8834_v34 = vld [vmem:[#allocation2 + $0x390] sm:$0xf0]  ;;  %v10929_v46 = vld [vmem:[#allocation2 + $0x38c] sm:$0xf] }
 0x1ee   :  { %1881 = vmatmul.bf16.gmra.mxu1 %v8805_v20  ;;  %v8825_v19 = vor.u32 %v10927_v3, %v8824_v52  ;;  %v8840_v36 = vld [vmem:[#allocation2 + $0x388] sm:$0xf]  ;;  %v10931_v20 = vld [vmem:[#allocation2 + $0x394] sm:$0xf0] }
 0x1ef   :  { %14011 = vst [vmem:[#allocation56_spill] sm:$0xff] %v12589_v11  ;;  %1930 = vmatmul.bf16.gmra.mxu2 %v8809_v22  ;;  %v8954_v11 = vld [vmem:[#allocation2 + $0x478] sm:$0xf0] }
 0x1f0   :  { %1979 = vmatmul.bf16.gmra.mxu3 %v8813_v30  ;;  %v8833_v30 = vor.u32 %v10930_v56, %v8832_v15 }
 0x1f2   :  { %v1542_v12 = vpop.f32.mrf.mxu2  ;;  %v1446_v49 = vpop.f32.mrf.mxu0 }
 0x1f3   :  { %v1591_v13 = vpop.f32.mrf.mxu3  ;;  %v1543_v31 = vadd.f32 %v1542_v12, %v1494_v48  ;;  %v1495_v45 = vpop.f32.mrf.mxu1  ;;  %v8837_v48 = vor.u32 %v10928_v16, %v8834_v34 }
 0x1f4   :  { %v1496_v42 = vadd.f32 %v1495_v45, %v1446_v49  ;;  %v8841_v49 = vor.u32 %v10931_v20, %v8840_v36  ;;  %v8845_v45 = vor.u32 %v10929_v46, %v8842_v40  ;;  %v12708_v36 = vld [vmem:[%s13882_s0 + $0x20] sm:$0xff] }
 0x1f5   :  { %v12595_v59 = vadd.f32 %v1591_v13, %v1543_v31 }
 0x1f7   :  { %14012 = vst [vmem:[#allocation57_spill] sm:$0xff] %v12595_v59  ;;  %v12816_v59 = vld [vmem:[%s13882_s0 + $0x40] sm:$0xff] }
 0x1fa   :  { %v1544_v7 = vpop.f32.mrf.mxu2  ;;  %v1449_v63 = vpop.f32.mrf.mxu0 }
 0x1fb   :  { %v1593_v14 = vpop.f32.mrf.mxu3  ;;  %v1545_v5 = vadd.f32 %v1544_v7, %v1496_v42  ;;  %v1498_v6 = vpop.f32.mrf.mxu1 }
 0x1fc   :  { %v1499_v27 = vadd.f32 %v1498_v6, %v1449_v63  ;;  %v8856_v63 = vld [vmem:[#allocation2 + $0x3a8] sm:$0xf]  ;;  %v10935_v6 = vld [vmem:[#allocation2 + $0x3b4] sm:$0xf0] }
 0x1fd   :  { %v12597_v44 = vadd.f32 %v1593_v14, %v1545_v5  ;;  %1837 = vmatmul.bf16.gmra.mxu0 %v8817_v39  ;;  %v8848_v14 = vld [vmem:[#allocation2 + $0x3a0] sm:$0xf]  ;;  %v10934_v39 = vld [vmem:[#allocation2 + $0x3ac] sm:$0xf0]  ;;  %v8850_v5 = vld [vmem:[#allocation2 + $0x3b0] sm:$0xf0]  ;;  %v8857_v15 = vor.u32 %v10935_v6, %v8856_v63 }
 0x1fe   :  { %1886 = vmatmul.bf16.gmra.mxu1 %v8821_v43  ;;  %v10932_v43 = vld [vmem:[#allocation2 + $0x3a4] sm:$0xf] }
 0x1ff   :  { %14013 = vst [vmem:[#allocation58_spill] sm:$0xff] %v12597_v44  ;;  %1935 = vmatmul.bf16.gmra.mxu2 %v8825_v19  ;;  %v10933_v19 = vld [vmem:[#allocation2 + $0x3ac] sm:$0xf]  ;;  %v8946_v44 = vld [vmem:[#allocation2 + $0x470] sm:$0xf0] }
 0x200   :  { %1984 = vmatmul.bf16.gmra.mxu3 %v8829_v33  ;;  %v8858_v33 = vld [vmem:[#allocation2 + $0x3b8] sm:$0xf0] }
 0x201   :  { %v8861_v56 = vor.u32 %v10933_v19, %v8858_v33 }
 0x202   :  { %v1547_v51 = vpop.f32.mrf.mxu2  ;;  %v1451_v2 = vpop.f32.mrf.mxu0 }
 0x203   :  { %v1596_v0 = vpop.f32.mrf.mxu3  ;;  %v1548_v1 = vadd.f32 %v1547_v51, %v1499_v27  ;;  %v1500_v58 = vpop.f32.mrf.mxu1 }
 0x204   :  { %v1501_v57 = vadd.f32 %v1500_v58, %v1451_v2 }
 0x205   :  { %v12601_v9 = vadd.f32 %v1596_v0, %v1548_v1  ;;  %v8849_v0 = vor.u32 %v10934_v39, %v8848_v14  ;;  %v8853_v1 = vor.u32 %v10932_v43, %v8850_v5 }
 0x207   :  { %14014 = vst [vmem:[#allocation59_spill] sm:$0xff] %v12601_v9 }
 0x20a   :  { %v1549_v21 = vpop.f32.mrf.mxu2  ;;  %v1454_v13 = vpop.f32.mrf.mxu0 }
 0x20b   :  { %v1598_v22 = vpop.f32.mrf.mxu3  ;;  %v1550_v12 = vadd.f32 %v1549_v21, %v1501_v57  ;;  %v1503_v31 = vpop.f32.mrf.mxu1 }
 0x20c   :  { %v1504_v42 = vadd.f32 %v1503_v31, %v1454_v13  ;;  %v10938_v13 = vld [vmem:[#allocation2 + $0x3cc] sm:$0xf0]  ;;  %v10936_v31 = vld [vmem:[#allocation2 + $0x3c4] sm:$0xf] }
 0x20d   :  { %v12603_v35 = vadd.f32 %v1598_v22, %v1550_v12  ;;  %1842 = vmatmul.bf16.gmra.mxu0 %v8833_v30  ;;  %v8864_v12 = vld [vmem:[#allocation2 + $0x3c0] sm:$0xf] }
 0x20e   :  { %1891 = vmatmul.bf16.gmra.mxu1 %v8837_v48 }
 0x20f   :  { %14015 = vst [vmem:[#allocation60_spill] sm:$0xff] %v12603_v35  ;;  %1940 = vmatmul.bf16.gmra.mxu2 %v8841_v49  ;;  %v8866_v49 = vld [vmem:[#allocation2 + $0x3d0] sm:$0xf0]  ;;  %v12810_v35 = vld [vmem:[%s13882_s0] sm:$0xff] }
 0x210   :  { %1989 = vmatmul.bf16.gmra.mxu3 %v8845_v45  ;;  %v8872_v45 = vld [vmem:[#allocation2 + $0x3c8] sm:$0xf] }
 0x212   :  { %v1552_v25 = vpop.f32.mrf.mxu2  ;;  %v1456_v3 = vpop.f32.mrf.mxu0 }
 0x213   :  { %v1601_v62 = vpop.f32.mrf.mxu3  ;;  %v1553_v52 = vadd.f32 %v1552_v25, %v1504_v42  ;;  %v1505_v54 = vpop.f32.mrf.mxu1  ;;  %v10939_v42 = vld [vmem:[#allocation2 + $0x3d4] sm:$0xf0]  ;;  %v10937_v25 = vld [vmem:[#allocation2 + $0x3cc] sm:$0xf] }
 0x214   :  { %v1506_v4 = vadd.f32 %v1505_v54, %v1456_v3  ;;  %v8865_v54 = vor.u32 %v10938_v13, %v8864_v12  ;;  %v8873_v5 = vor.u32 %v10939_v42, %v8872_v45 }
 0x215   :  { %v12607_v7 = vadd.f32 %v1601_v62, %v1553_v52  ;;  %v8874_v62 = vld [vmem:[#allocation2 + $0x3d8] sm:$0xf0] }
 0x216   :  { %v8877_v63 = vor.u32 %v10937_v25, %v8874_v62 }
 0x217   :  { %14016 = vst [vmem:[#allocation61_spill] sm:$0xff] %v12607_v7 }
 0x21a   :  { %v1554_v27 = vpop.f32.mrf.mxu2  ;;  %v1459_v58 = vpop.f32.mrf.mxu0 }
 0x21b   :  { %v1603_v51 = vpop.f32.mrf.mxu3  ;;  %v1555_v2 = vadd.f32 %v1554_v27, %v1506_v4  ;;  %v1508_v57 = vpop.f32.mrf.mxu1  ;;  %v8869_v4 = vor.u32 %v10936_v31, %v8866_v49 }
 0x21c   :  { %v1509_v16 = vadd.f32 %v1508_v57, %v1459_v58 }
 0x21d   :  { %v12609_v34 = vadd.f32 %v1603_v51, %v1555_v2  ;;  %1847 = vmatmul.bf16.gmra.mxu0 %v8849_v0 }
 0x21e   :  { %1896 = vmatmul.bf16.gmra.mxu1 %v8853_v1 }
 0x21f   :  { %14017 = vst [vmem:[#allocation62_spill] sm:$0xff] %v12609_v34  ;;  %1945 = vmatmul.bf16.gmra.mxu2 %v8857_v15  ;;  %v8880_v15 = vld [vmem:[#allocation2 + $0x3e0] sm:$0xf] }
 0x220   :  { %1994 = vmatmul.bf16.gmra.mxu3 %v8861_v56  ;;  %v10942_v56 = vld [vmem:[#allocation2 + $0x3ec] sm:$0xf0] }
 0x221   :  { %v8881_v13 = vor.u32 %v10942_v56, %v8880_v15  ;;  %v10945_v15 = vld [vmem:[#allocation2 + $0x40c] sm:$0xf]  ;;  %v8906_v56 = vld [vmem:[#allocation2 + $0x418] sm:$0xf0] }
 0x222   :  { %v1557_v20 = vpop.f32.mrf.mxu2  ;;  %v1461_v21 = vpop.f32.mrf.mxu0 }
 0x223   :  { %v1606_v46 = vpop.f32.mrf.mxu3  ;;  %v1558_v40 = vadd.f32 %v1557_v20, %v1509_v16  ;;  %v1510_v22 = vpop.f32.mrf.mxu1  ;;  %v10940_v16 = vld [vmem:[#allocation2 + $0x3e4] sm:$0xf]  ;;  %v8882_v20 = vld [vmem:[#allocation2 + $0x3f0] sm:$0xf0] }
 0x224   :  { %v1511_v30 = vadd.f32 %v1510_v22, %v1461_v21  ;;  %v10941_v21 = vld [vmem:[#allocation2 + $0x3ec] sm:$0xf]  ;;  %v8890_v22 = vld [vmem:[#allocation2 + $0x3f8] sm:$0xf0]  ;;  %v8885_v31 = vor.u32 %v10940_v16, %v8882_v20 }
 0x225   :  { %v12613_v48 = vadd.f32 %v1606_v46, %v1558_v40  ;;  %v8888_v46 = vld [vmem:[#allocation2 + $0x3e8] sm:$0xf]  ;;  %v10943_v40 = vld [vmem:[#allocation2 + $0x3f4] sm:$0xf0]  ;;  %v8893_v62 = vor.u32 %v10941_v21, %v8890_v22 }
 0x226   :  { %v8889_v25 = vor.u32 %v10943_v40, %v8888_v46 }
 0x227   :  { %14018 = vst [vmem:[#allocation63_spill] sm:$0xff] %v12613_v48 }
 0x22a   :  { %v1559_v52 = vpop.f32.mrf.mxu2  ;;  %v1464_v39 = vpop.f32.mrf.mxu0 }
 0x22b   :  { %v1608_v3 = vpop.f32.mrf.mxu3  ;;  %v1560_v14 = vadd.f32 %v1559_v52, %v1511_v30  ;;  %v1513_v43 = vpop.f32.mrf.mxu1 }
 0x22c   :  { %v1514_v6 = vadd.f32 %v1513_v43, %v1464_v39 }
 0x22d   :  { %v12615_v19 = vadd.f32 %v1608_v3, %v1560_v14  ;;  %1852 = vmatmul.bf16.gmra.mxu0 %v8865_v54 }
 0x22e   :  { %1901 = vmatmul.bf16.gmra.mxu1 %v8869_v4 }
 0x22f   :  { %14019 = vst [vmem:[#allocation64_spill] sm:$0xff] %v12615_v19  ;;  %1950 = vmatmul.bf16.gmra.mxu2 %v8873_v5 }
 0x230   :  { %1999 = vmatmul.bf16.gmra.mxu3 %v8877_v63 }
 0x232   :  { %v1562_v27 = vpop.f32.mrf.mxu2  ;;  %v1466_v1 = vpop.f32.mrf.mxu0 }
 0x233   :  { %v1611_v51 = vpop.f32.mrf.mxu3  ;;  %v1563_v0 = vadd.f32 %v1562_v27, %v1514_v6  ;;  %v1515_v2 = vpop.f32.mrf.mxu1  ;;  %v8896_v27 = vld [vmem:[#allocation2 + $0x400] sm:$0xf] }
 0x234   :  { %v1516_v58 = vadd.f32 %v1515_v2, %v1466_v1  ;;  %v8898_v1 = vld [vmem:[#allocation2 + $0x410] sm:$0xf0]  ;;  %v8904_v2 = vld [vmem:[#allocation2 + $0x408] sm:$0xf] }
 0x235   :  { %v12619_v57 = vadd.f32 %v1611_v51, %v1563_v0  ;;  %v10946_v51 = vld [vmem:[#allocation2 + $0x40c] sm:$0xf0]  ;;  %v10944_v0 = vld [vmem:[#allocation2 + $0x404] sm:$0xf] }
 0x236   :  { %v8897_v46 = vor.u32 %v10946_v51, %v8896_v27  ;;  %v8901_v40 = vor.u32 %v10944_v0, %v8898_v1  ;;  %v12658_v27 = vld [vmem:[%s13882_s0 + $0x30] sm:$0xff] }
 0x237   :  { %14020 = vst [vmem:[#allocation65_spill] sm:$0xff] %v12619_v57  ;;  %v12664_v51 = vld [vmem:[%s13882_s0 + $0x70] sm:$0xff] }
 0x238   :  { %v12672_v1 = vld [vmem:[%s13882_s0 + $0xb0] sm:$0xff] }
 0x23a   :  { %v1564_v30 = vpop.f32.mrf.mxu2  ;;  %v1469_v45 = vpop.f32.mrf.mxu0 }
 0x23b   :  { %v1613_v12 = vpop.f32.mrf.mxu3  ;;  %v1565_v49 = vadd.f32 %v1564_v30, %v1516_v58  ;;  %v1518_v42 = vpop.f32.mrf.mxu1  ;;  %v10947_v58 = vld [vmem:[#allocation2 + $0x414] sm:$0xf0] }
 0x23c   :  { %v1519_v52 = vadd.f32 %v1518_v42, %v1469_v45  ;;  %v12634_v42 = vld [vmem:[%s13882_s0 + $0x38] sm:$0xff] }
 0x23d   :  { %v12621_v3 = vadd.f32 %v1613_v12, %v1565_v49  ;;  %1857 = vmatmul.bf16.gmra.mxu0 %v8881_v13  ;;  %v8905_v12 = vor.u32 %v10947_v58, %v8904_v2  ;;  %v8909_v13 = vor.u32 %v10945_v15, %v8906_v56  ;;  %v12678_v2 = vld [vmem:[%s13882_s0 + $0xf0] sm:$0xff]  ;;  %v8912_v58 = vld [vmem:[#allocation2 + $0x420] sm:$0xf]  ;;  %v10948_v56 = vld [vmem:[#allocation2 + $0x424] sm:$0xf] }
 0x23e   :  { %1906 = vmatmul.bf16.gmra.mxu1 %v8885_v31  ;;  %v10950_v15 = vld [vmem:[#allocation2 + $0x42c] sm:$0xf0] }
 0x23f   :  { %14021 = vst [vmem:[#allocation66_spill] sm:$0xff] %v12621_v3  ;;  %1955 = vmatmul.bf16.gmra.mxu2 %v8889_v25  ;;  %v12640_v25 = vld [vmem:[%s13882_s0 + $0x78] sm:$0xff] }
 0x240   :  { %2004 = vmatmul.bf16.gmra.mxu3 %v8893_v62  ;;  %v12646_v62 = vld [vmem:[%s13882_s0 + $0xb8] sm:$0xff] }
 0x242   :  { %v1567_v4 = vpop.f32.mrf.mxu2  ;;  %v1471_v43 = vpop.f32.mrf.mxu0 }
 0x243   :  { %v1616_v14 = vpop.f32.mrf.mxu3  ;;  %v1568_v39 = vadd.f32 %v1567_v4, %v1519_v52  ;;  %v1520_v5 = vpop.f32.mrf.mxu1  ;;  %v12652_v52 = vld [vmem:[%s13882_s0 + $0xf8] sm:$0xff] }
 0x244   :  { %v1521_v63 = vadd.f32 %v1520_v5, %v1471_v43 }
 0x245   :  { %v12625_v6 = vadd.f32 %v1616_v14, %v1568_v39 }
 0x247   :  { %14022 = vst [vmem:[#allocation67_spill] sm:$0xff] %v12625_v6  ;;  %v12792_v6 = vld [vmem:[%s13882_s0 + $0x48] sm:$0xff] }
 0x24a   :  { %v1569_v16 = vpop.f32.mrf.mxu2  ;;  %v1823_v22 = vpop.f32.mrf.mxu0 }
 0x24b   :  { %v1618_v20 = vpop.f32.mrf.mxu3  ;;  %v1570_v21 = vadd.f32 %v1569_v16, %v1521_v63  ;;  %v1872_v30 = vpop.f32.mrf.mxu1  ;;  %v8914_v16 = vld [vmem:[#allocation2 + $0x430] sm:$0xf0] }
 0x24c   :  { %v1873_v31 = vadd.f32 %v1872_v30, %v1823_v22  ;;  %v12684_v22 = vld [vmem:[%s13882_s0 + $0x28] sm:$0xff] }
 0x24d   :  { %v12627_v49 = vadd.f32 %v1618_v20, %v1570_v21  ;;  %2211 = vmatmul.bf16.vlgmr.msra.gmra.mxu0 %v8897_v46  ;;  %v8920_v20 = vld [vmem:[#allocation2 + $0x428] sm:$0xf]  ;;  %v10951_v46 = vld [vmem:[#allocation2 + $0x434] sm:$0xf0]  ;;  %v8922_v21 = vld [vmem:[#allocation2 + $0x438] sm:$0xf0] }
 0x24e   :  { %2260 = vmatmul.bf16.vlgmr.msra.gmra.mxu1 %v8901_v40  ;;  %2981 = vmatpush.bf16.msra.mxu0 %v12634_v42  ;;  %v10949_v40 = vld [vmem:[#allocation2 + $0x42c] sm:$0xf]  ;;  %v8921_v41 = vor.u32 %v10951_v46, %v8920_v20  ;;  %v12748_v20 = vld [vmem:[%s13882_s0 + $0x98] sm:$0xff] }
 0x24f   :  { %14023 = vst [vmem:[#allocation68_spill] sm:$0xff] %v12627_v49  ;;  %2309 = vmatmul.bf16.vlgmr.msra.gmra.mxu2 %v8905_v12  ;;  %3030 = vmatpush.bf16.msra.mxu1 %v12640_v25  ;;  %v12690_v30 = vld [vmem:[%s13882_s0 + $0x68] sm:$0xff]  ;;  %v8925_v54 = vor.u32 %v10949_v40, %v8922_v21 }
 0x250   :  { %2358 = vmatmul.bf16.vlgmr.msra.gmra.mxu3 %v8909_v13  ;;  %3079 = vmatpush.bf16.msra.mxu2 %v12646_v62  ;;  %v12696_v12 = vld [vmem:[%s13882_s0 + $0xa8] sm:$0xff] }
 0x251   :  { %3128 = vmatpush.bf16.msra.mxu3 %v12652_v52  ;;  %v12702_v13 = vld [vmem:[%s13882_s0 + $0xe8] sm:$0xff] }
 0x252   :  { %v1921_v4 = vpop.f32.mrf.mxu2  ;;  %v1825_v43 = vpop.f32.mrf.mxu0  ;;  %2982 = vmatpush.bf16.msra.mxu0 %v12658_v27  ;;  %v12798_v49 = vld [vmem:[%s13882_s0 + $0x88] sm:$0xff] }
 0x253   :  { %v1970_v14 = vpop.f32.mrf.mxu3  ;;  %v1922_v39 = vadd.f32 %v1921_v4, %v1873_v31  ;;  %v1874_v5 = vpop.f32.mrf.mxu1  ;;  %3031 = vmatpush.bf16.msra.mxu1 %v12664_v51 }
 0x254   :  { %v1875_v63 = vadd.f32 %v1874_v5, %v1825_v43  ;;  %3080 = vmatpush.bf16.msra.mxu2 %v12672_v1 }
 0x255   :  { %v12667_v0 = vadd.f32 %v1970_v14, %v1922_v39  ;;  %3129 = vmatpush.bf16.msra.mxu3 %v12678_v2  ;;  %v8913_v14 = vor.u32 %v10950_v15, %v8912_v58  ;;  %v8917_v39 = vor.u32 %v10948_v56, %v8914_v16  ;;  %v12728_v58 = vld [vmem:[%s13882_s0 + $0xe0] sm:$0xff]  ;;  %v12736_v56 = vld [vmem:[%s13882_s0 + $0x18] sm:$0xff] }
 0x256   :  { %2983 = vmatpush.bf16.msra.mxu0 %v12684_v22  ;;  %v12742_v16 = vld [vmem:[%s13882_s0 + $0x58] sm:$0xff] }
 0x257   :  { %14024 = vst [vmem:[#allocation69_spill] sm:$0xff] %v12667_v0  ;;  %3032 = vmatpush.bf16.msra.mxu1 %v12690_v30  ;;  %v8938_v15 = vld [vmem:[#allocation2 + $0x458] sm:$0xf0] }
 0x258   :  { %3081 = vmatpush.bf16.msra.mxu2 %v12696_v12  ;;  %v8941_v34 = vor.u32 %v10953_v47, %v8938_v15  ;;  %v12824_v47 = vld [vmem:[%s13882_s0 + $0x80] sm:$0xff] }
 0x259   :  { %3130 = vmatpush.bf16.msra.mxu3 %v12702_v13 }
 0x25a   :  { %v1923_v31 = vpop.f32.mrf.mxu2  ;;  %v1828_v5 = vpop.f32.mrf.mxu0  ;;  %2984 = vmatpush.bf16.msra.mxu0 %v12708_v36 }
 0x25b   :  { %v1972_v4 = vpop.f32.mrf.mxu3  ;;  %v1924_v43 = vadd.f32 %v1923_v31, %v1875_v63  ;;  %v1877_v45 = vpop.f32.mrf.mxu1  ;;  %3033 = vmatpush.bf16.msra.mxu1 %v12714_v26 }
 0x25c   :  { %v1878_v33 = vadd.f32 %v1877_v45, %v1828_v5  ;;  %v12722_v45 = vld [vmem:[%s13882_s0 + $0xa0] sm:$0xff]  ;;  %v12780_v5 = vld [vmem:[%s13882_s0 + $0xd0] sm:$0xff] }
 0x25d   :  { %v12717_v63 = vadd.f32 %v1972_v4, %v1924_v43  ;;  %3082 = vmatpush.bf16.msra.mxu2 %v12722_v45  ;;  %3131 = vmatpush.bf16.msra.mxu3 %v12728_v58 }
 0x25e   :  { %2216 = vmatmul.bf16.gmra.mxu0 %v8913_v14  ;;  %2265 = vmatmul.bf16.gmra.mxu1 %v8917_v39  ;;  %v12760_v14 = vld [vmem:[%s13882_s0 + $0x10] sm:$0xff] }
 0x25f   :  { %2314 = vmatmul.bf16.gmra.mxu2 %v8921_v41  ;;  %2985 = vmatpush.bf16.msra.mxu0 %v12736_v56  ;;  %v12754_v41 = vld [vmem:[%s13882_s0 + $0xd8] sm:$0xff]  ;;  %v12766_v39 = vld [vmem:[%s13882_s0 + $0x50] sm:$0xff] }
 0x260   :  { %2363 = vmatmul.bf16.gmra.mxu3 %v8925_v54  ;;  %3034 = vmatpush.bf16.msra.mxu1 %v12742_v16 }
 0x261   :  { %3083 = vmatpush.bf16.msra.mxu2 %v12748_v20  ;;  %3132 = vmatpush.bf16.msra.mxu3 %v12754_v41 }
 0x262   :  { %v1926_v54 = vpop.f32.mrf.mxu2  ;;  %v1830_v21 = vpop.f32.mrf.mxu0 }
 0x263   :  { %v1975_v46 = vpop.f32.mrf.mxu3  ;;  %v1927_v40 = vadd.f32 %v1926_v54, %v1878_v33  ;;  %v1879_v31 = vpop.f32.mrf.mxu1  ;;  %2986 = vmatpush.bf16.msra.mxu0 %v12760_v14  ;;  %v12774_v33 = vld [vmem:[%s13882_s0 + $0x90] sm:$0xff]  ;;  %v8928_v54 = vld [vmem:[#allocation2 + $0x440] sm:$0xf] }
 0x264   :  { %v1880_v4 = vadd.f32 %v1879_v31, %v1830_v21  ;;  %3035 = vmatpush.bf16.msra.mxu1 %v12766_v39  ;;  %v10954_v21 = vld [vmem:[#allocation2 + $0x44c] sm:$0xf0]  ;;  %v10952_v31 = vld [vmem:[#allocation2 + $0x444] sm:$0xf] }
 0x265   :  { %v12769_v43 = vadd.f32 %v1975_v46, %v1927_v40  ;;  %3084 = vmatpush.bf16.msra.mxu2 %v12774_v33  ;;  %3133 = vmatpush.bf16.msra.mxu3 %v12780_v5  ;;  %v8936_v46 = vld [vmem:[#allocation2 + $0x448] sm:$0xf]  ;;  %v10955_v40 = vld [vmem:[#allocation2 + $0x454] sm:$0xf0]  ;;  %v8929_v3 = vor.u32 %v10954_v21, %v8928_v54  ;;  %v8933_v38 = vor.u32 %v10952_v31, %v8930_v50  ;;  %v12830_v50 = vld [vmem:[%s13882_s0 + $0xc0] sm:$0xff] }
 0x266   :  { %v8937_v7 = vor.u32 %v10955_v40, %v8936_v46  ;;  %v8944_v31 = vld [vmem:[#allocation2 + $0x460] sm:$0xf]  ;;  %v10958_v46 = vld [vmem:[#allocation2 + $0x46c] sm:$0xf0]  ;;  %v10956_v40 = vld [vmem:[#allocation2 + $0x464] sm:$0xf] }
 0x267   :  { %14025 = vst [vmem:[#allocation70_spill] sm:$0xff] %v12769_v43  ;;  %2987 = vmatpush.bf16.msra.mxu0 %v12786_v18 }
 0x268   :  { %3036 = vmatpush.bf16.msra.mxu1 %v12792_v6 }
 0x269   :  { %3085 = vmatpush.bf16.msra.mxu2 %v12798_v49  ;;  %3134 = vmatpush.bf16.msra.mxu3 %v12804_v29 }
 0x26a   :  { %v1928_v61 = vpop.f32.mrf.mxu2  ;;  %v1833_v48 = vpop.f32.mrf.mxu0 }
 0x26b   :  { %v1977_v57 = vpop.f32.mrf.mxu3  ;;  %v1929_v37 = vadd.f32 %v1928_v61, %v1880_v4  ;;  %v1882_v19 = vpop.f32.mrf.mxu1  ;;  %2988 = vmatpush.bf16.msra.mxu0 %v12810_v35 }
 0x26c   :  { %v1883_v9 = vadd.f32 %v1882_v19, %v1833_v48  ;;  %3037 = vmatpush.bf16.msra.mxu1 %v12816_v59 }
 0x26d   :  { %v12819_v61 = vadd.f32 %v1977_v57, %v1929_v37  ;;  %3086 = vmatpush.bf16.msra.mxu2 %v12824_v47  ;;  %3135 = vmatpush.bf16.msra.mxu3 %v12830_v50 }
 0x26e   :  { %2221 = vmatmul.bf16.gmra.mxu0 %v8929_v3  ;;  %2270 = vmatmul.bf16.gmra.mxu1 %v8933_v38  ;;  %v10959_v3 = vld [vmem:[#allocation2 + $0x474] sm:$0xf0]  ;;  %v10957_v38 = vld [vmem:[#allocation2 + $0x46c] sm:$0xf] }
 0x26f   :  { %14026 = vst [vmem:[#allocation71_spill] sm:$0xff] %v12819_v61  ;;  %2319 = vmatmul.bf16.gmra.mxu2 %v8937_v7  ;;  %v8945_v7 = vor.u32 %v10958_v46, %v8944_v31  ;;  %v8957_v32 = vor.u32 %v10957_v38, %v8954_v11  ;;  %v10962_v11 = vld [vmem:[#allocation2 + $0x48c] sm:$0xf0]  ;;  %v10963_v46 = vld [vmem:[#allocation2 + $0x494] sm:$0xf0] }
 0x270   :  { %2368 = vmatmul.bf16.gmra.mxu3 %v8941_v34  ;;  %v8949_v34 = vor.u32 %v10956_v40, %v8946_v44  ;;  %v10961_v40 = vld [vmem:[#allocation2 + $0x48c] sm:$0xf] }
 0x272   :  { %v1931_v48 = vpop.f32.mrf.mxu2  ;;  %v1835_v15 = vpop.f32.mrf.mxu0 }
 0x273   :  { %v1980_v19 = vpop.f32.mrf.mxu3  ;;  %v1932_v57 = vadd.f32 %v1931_v48, %v1883_v9  ;;  %v1884_v4 = vpop.f32.mrf.mxu1  ;;  %v8953_v48 = vor.u32 %v10959_v3, %v8952_v10  ;;  %v8960_v10 = vld [vmem:[#allocation2 + $0x480] sm:$0xf]  ;;  %v8970_v3 = vld [vmem:[#allocation2 + $0x498] sm:$0xf0] }
 0x274   :  { %v1885_v54 = vadd.f32 %v1884_v4, %v1835_v15 }
 0x275   :  { %v12835_v21 = vadd.f32 %v1980_v19, %v1932_v57  ;;  %v8973_v57 = vor.u32 %v10961_v40, %v8970_v3  ;;  %v8978_v40 = vld [vmem:[#allocation2 + $0x4b0] sm:$0xf0]  ;;  %v8984_v3 = vld [vmem:[#allocation2 + $0x4a8] sm:$0xf] }
 0x277   :  { %14027 = vst [vmem:[#allocation72_spill] sm:$0xff] %v12835_v21 }
 0x27a   :  { %v1933_v60 = vpop.f32.mrf.mxu2  ;;  %v1838_v61 = vpop.f32.mrf.mxu0 }
 0x27b   :  { %v1982_v37 = vpop.f32.mrf.mxu3  ;;  %v1934_v43 = vadd.f32 %v1933_v60, %v1885_v54  ;;  %v1887_v9 = vpop.f32.mrf.mxu1 }
 0x27c   :  { %v1888_v15 = vadd.f32 %v1887_v9, %v1838_v61  ;;  %v10960_v61 = vld [vmem:[#allocation2 + $0x484] sm:$0xf] }
 0x27d   :  { %v12837_v19 = vadd.f32 %v1982_v37, %v1934_v43  ;;  %v8962_v43 = vld [vmem:[#allocation2 + $0x490] sm:$0xf0]  ;;  %v8968_v37 = vld [vmem:[#allocation2 + $0x488] sm:$0xf] }
 0x27e   :  { %2226 = vmatmul.bf16.gmra.mxu0 %v8945_v7  ;;  %2275 = vmatmul.bf16.gmra.mxu1 %v8949_v34  ;;  %v8961_v34 = vor.u32 %v10962_v11, %v8960_v10 }
 0x27f   :  { %14028 = vst [vmem:[#allocation73_spill] sm:$0xff] %v12837_v19  ;;  %2324 = vmatmul.bf16.gmra.mxu2 %v8953_v48 }
 0x280   :  { %2373 = vmatmul.bf16.gmra.mxu3 %v8957_v32  ;;  %v8965_v32 = vor.u32 %v10960_v61, %v8962_v43  ;;  %v8976_v43 = vld [vmem:[#allocation2 + $0x4a0] sm:$0xf] }
 0x282   :  { %v1936_v4 = vpop.f32.mrf.mxu2  ;;  %v1840_v31 = vpop.f32.mrf.mxu0 }
 0x283   :  { %v1985_v24 = vpop.f32.mrf.mxu3  ;;  %v1937_v0 = vadd.f32 %v1936_v4, %v1888_v15  ;;  %v1889_v44 = vpop.f32.mrf.mxu1  ;;  %v8969_v4 = vor.u32 %v10963_v46, %v8968_v37  ;;  %v10966_v37 = vld [vmem:[#allocation2 + $0x4ac] sm:$0xf0]  ;;  %v10964_v46 = vld [vmem:[#allocation2 + $0x4a4] sm:$0xf] }
 0x284   :  { %v1890_v60 = vadd.f32 %v1889_v44, %v1840_v31 }
 0x285   :  { %v12841_v54 = vadd.f32 %v1985_v24, %v1937_v0 }
 0x287   :  { %14029 = vst [vmem:[#allocation74_spill] sm:$0xff] %v12841_v54 }
 0x28a   :  { %v1938_v38 = vpop.f32.mrf.mxu2  ;;  %v1843_v48 = vpop.f32.mrf.mxu0 }
 0x28b   :  { %v1987_v7 = vpop.f32.mrf.mxu3  ;;  %v1939_v9 = vadd.f32 %v1938_v38, %v1890_v60  ;;  %v1892_v15 = vpop.f32.mrf.mxu1  ;;  %v10967_v38 = vld [vmem:[#allocation2 + $0x4b4] sm:$0xf0] }
 0x28c   :  { %v1893_v31 = vadd.f32 %v1892_v15, %v1843_v48  ;;  %v8977_v48 = vor.u32 %v10966_v37, %v8976_v43 }
 0x28d   :  { %v12843_v24 = vadd.f32 %v1987_v7, %v1939_v9  ;;  %v10965_v7 = vld [vmem:[#allocation2 + $0x4ac] sm:$0xf] }
 0x28e   :  { %2231 = vmatmul.bf16.gmra.mxu0 %v8961_v34  ;;  %2280 = vmatmul.bf16.gmra.mxu1 %v8965_v32  ;;  %v8986_v34 = vld [vmem:[#allocation2 + $0x4b8] sm:$0xf0] }
 0x28f   :  { %14030 = vst [vmem:[#allocation75_spill] sm:$0xff] %v12843_v24  ;;  %2329 = vmatmul.bf16.gmra.mxu2 %v8969_v4  ;;  %v8989_v0 = vor.u32 %v10965_v7, %v8986_v34  ;;  %v8994_v7 = vld [vmem:[#allocation2 + $0x4d0] sm:$0xf0]  ;;  %v9000_v34 = vld [vmem:[#allocation2 + $0x4c8] sm:$0xf] }
 0x290   :  { %2378 = vmatmul.bf16.gmra.mxu3 %v8973_v57  ;;  %v8981_v57 = vor.u32 %v10964_v46, %v8978_v40  ;;  %v8992_v40 = vld [vmem:[#allocation2 + $0x4c0] sm:$0xf] }
 0x292   :  { %v1941_v44 = vpop.f32.mrf.mxu2  ;;  %v1845_v10 = vpop.f32.mrf.mxu0 }
 0x293   :  { %v1990_v21 = vpop.f32.mrf.mxu3  ;;  %v1942_v19 = vadd.f32 %v1941_v44, %v1893_v31  ;;  %v1894_v11 = vpop.f32.mrf.mxu1  ;;  %v8985_v44 = vor.u32 %v10967_v38, %v8984_v3  ;;  %v10970_v3 = vld [vmem:[#allocation2 + $0x4cc] sm:$0xf0]  ;;  %v10968_v38 = vld [vmem:[#allocation2 + $0x4c4] sm:$0xf] }
 0x294   :  { %v1895_v60 = vadd.f32 %v1894_v11, %v1845_v10 }
 0x295   :  { %v12847_v61 = vadd.f32 %v1990_v21, %v1942_v19 }
 0x297   :  { %14031 = vst [vmem:[#allocation76_spill] sm:$0xff] %v12847_v61 }
 0x29a   :  { %v1943_v32 = vpop.f32.mrf.mxu2  ;;  %v1848_v4 = vpop.f32.mrf.mxu0 }
 0x29b   :  { %v1992_v9 = vpop.f32.mrf.mxu3  ;;  %v1944_v15 = vadd.f32 %v1943_v32, %v1895_v60  ;;  %v1897_v31 = vpop.f32.mrf.mxu1  ;;  %v10971_v32 = vld [vmem:[#allocation2 + $0x4d4] sm:$0xf0] }
 0x29c   :  { %v1898_v10 = vadd.f32 %v1897_v31, %v1848_v4  ;;  %v8993_v4 = vor.u32 %v10970_v3, %v8992_v40 }
 0x29d   :  { %v12849_v21 = vadd.f32 %v1992_v9, %v1944_v15  ;;  %v10969_v9 = vld [vmem:[#allocation2 + $0x4cc] sm:$0xf] }
 0x29e   :  { %2236 = vmatmul.bf16.gmra.mxu0 %v8977_v48  ;;  %2285 = vmatmul.bf16.gmra.mxu1 %v8981_v57  ;;  %v9002_v48 = vld [vmem:[#allocation2 + $0x4d8] sm:$0xf0] }
 0x29f   :  { %14032 = vst [vmem:[#allocation77_spill] sm:$0xff] %v12849_v21  ;;  %2334 = vmatmul.bf16.gmra.mxu2 %v8985_v44  ;;  %v9005_v19 = vor.u32 %v10969_v9, %v9002_v48  ;;  %v9010_v9 = vld [vmem:[#allocation2 + $0x4f0] sm:$0xf0]  ;;  %v9016_v48 = vld [vmem:[#allocation2 + $0x4e8] sm:$0xf] }
 0x2a0   :  { %2383 = vmatmul.bf16.gmra.mxu3 %v8989_v0  ;;  %v8997_v0 = vor.u32 %v10968_v38, %v8994_v7  ;;  %v9008_v7 = vld [vmem:[#allocation2 + $0x4e0] sm:$0xf] }
 0x2a2   :  { %v1946_v11 = vpop.f32.mrf.mxu2  ;;  %v1850_v43 = vpop.f32.mrf.mxu0 }
 0x2a3   :  { %v1995_v54 = vpop.f32.mrf.mxu3  ;;  %v1947_v24 = vadd.f32 %v1946_v11, %v1898_v10  ;;  %v1899_v37 = vpop.f32.mrf.mxu1  ;;  %v9001_v11 = vor.u32 %v10971_v32, %v9000_v34  ;;  %v10974_v34 = vld [vmem:[#allocation2 + $0x4ec] sm:$0xf0]  ;;  %v10972_v32 = vld [vmem:[#allocation2 + $0x4e4] sm:$0xf] }
 0x2a4   :  { %v1900_v60 = vadd.f32 %v1899_v37, %v1850_v43 }
 0x2a5   :  { %v12853_v46 = vadd.f32 %v1995_v54, %v1947_v24 }
 0x2a7   :  { %14033 = vst [vmem:[#allocation78_spill] sm:$0xff] %v12853_v46 }
 0x2aa   :  { %v1948_v57 = vpop.f32.mrf.mxu2  ;;  %v1853_v44 = vpop.f32.mrf.mxu0 }
 0x2ab   :  { %v1997_v15 = vpop.f32.mrf.mxu3  ;;  %v1949_v31 = vadd.f32 %v1948_v57, %v1900_v60  ;;  %v1902_v10 = vpop.f32.mrf.mxu1  ;;  %v10975_v57 = vld [vmem:[#allocation2 + $0x4f4] sm:$0xf0] }
 0x2ac   :  { %v1903_v43 = vadd.f32 %v1902_v10, %v1853_v44  ;;  %v9009_v44 = vor.u32 %v10974_v34, %v9008_v7 }
 0x2ad   :  { %v12855_v54 = vadd.f32 %v1997_v15, %v1949_v31  ;;  %v10973_v15 = vld [vmem:[#allocation2 + $0x4ec] sm:$0xf] }
 0x2ae   :  { %2241 = vmatmul.bf16.gmra.mxu0 %v8993_v4  ;;  %2290 = vmatmul.bf16.gmra.mxu1 %v8997_v0  ;;  %v9018_v4 = vld [vmem:[#allocation2 + $0x4f8] sm:$0xf0] }
 0x2af   :  { %14034 = vst [vmem:[#allocation79_spill] sm:$0xff] %v12855_v54  ;;  %2339 = vmatmul.bf16.gmra.mxu2 %v9001_v11  ;;  %v9021_v24 = vor.u32 %v10973_v15, %v9018_v4  ;;  %v9026_v15 = vld [vmem:[#allocation2 + $0x510] sm:$0xf0]  ;;  %v9032_v4 = vld [vmem:[#allocation2 + $0x508] sm:$0xf] }
 0x2b0   :  { %2388 = vmatmul.bf16.gmra.mxu3 %v9005_v19  ;;  %v9013_v19 = vor.u32 %v10972_v32, %v9010_v9  ;;  %v9024_v9 = vld [vmem:[#allocation2 + $0x500] sm:$0xf] }
 0x2b2   :  { %v1951_v37 = vpop.f32.mrf.mxu2  ;;  %v1855_v40 = vpop.f32.mrf.mxu0 }
 0x2b3   :  { %v2000_v61 = vpop.f32.mrf.mxu3  ;;  %v1952_v21 = vadd.f32 %v1951_v37, %v1903_v43  ;;  %v1904_v3 = vpop.f32.mrf.mxu1  ;;  %v9017_v37 = vor.u32 %v10975_v57, %v9016_v48  ;;  %v10978_v48 = vld [vmem:[#allocation2 + $0x50c] sm:$0xf0]  ;;  %v10976_v57 = vld [vmem:[#allocation2 + $0x504] sm:$0xf] }
 0x2b4   :  { %v1905_v60 = vadd.f32 %v1904_v3, %v1855_v40 }
 0x2b5   :  { %v12859_v38 = vadd.f32 %v2000_v61, %v1952_v21 }
 0x2ba   :  { %v1953_v0 = vpop.f32.mrf.mxu2  ;;  %v1858_v11 = vpop.f32.mrf.mxu0 }
 0x2bb   :  { %v2002_v31 = vpop.f32.mrf.mxu3  ;;  %v1954_v10 = vadd.f32 %v1953_v0, %v1905_v60  ;;  %v1907_v43 = vpop.f32.mrf.mxu1  ;;  %v10979_v0 = vld [vmem:[#allocation2 + $0x514] sm:$0xf0] }
 0x2bc   :  { %v1908_v40 = vadd.f32 %v1907_v43, %v1858_v11  ;;  %v9025_v11 = vor.u32 %v10978_v48, %v9024_v9 }
 0x2bd   :  { %v12861_v61 = vadd.f32 %v2002_v31, %v1954_v10  ;;  %v10977_v31 = vld [vmem:[#allocation2 + $0x50c] sm:$0xf] }
 0x2be   :  { %2246 = vmatmul.bf16.gmra.mxu0 %v9009_v44  ;;  %2295 = vmatmul.bf16.gmra.mxu1 %v9013_v19  ;;  %v9034_v44 = vld [vmem:[#allocation2 + $0x518] sm:$0xf0] }
 0x2bf   :  { %2344 = vmatmul.bf16.gmra.mxu2 %v9017_v37  ;;  %v9037_v21 = vor.u32 %v10977_v31, %v9034_v44  ;;  %v10981_v31 = vld [vmem:[#allocation2 + $0x52c] sm:$0xf]  ;;  %v9050_v44 = vld [vmem:[#allocation2 + $0x538] sm:$0xf0] }
 0x2c0   :  { %2393 = vmatmul.bf16.gmra.mxu3 %v9021_v24  ;;  %v9029_v24 = vor.u32 %v10976_v57, %v9026_v15 }
 0x2c2   :  { %v1956_v3 = vpop.f32.mrf.mxu2  ;;  %v1860_v7 = vpop.f32.mrf.mxu0 }
 0x2c3   :  { %v2005_v46 = vpop.f32.mrf.mxu3  ;;  %v1957_v54 = vadd.f32 %v1956_v3, %v1908_v40  ;;  %v1909_v34 = vpop.f32.mrf.mxu1  ;;  %v9033_v3 = vor.u32 %v10979_v0, %v9032_v4  ;;  %v10983_v0 = vld [vmem:[#allocation2 + $0x534] sm:$0xf0] }
 0x2c4   :  { %v1910_v60 = vadd.f32 %v1909_v34, %v1860_v7 }
 0x2c5   :  { %v12865_v32 = vadd.f32 %v2005_v46, %v1957_v54 }
 0x2ca   :  { %v1958_v19 = vpop.f32.mrf.mxu2  ;;  %v2212_v37 = vpop.f32.mrf.mxu0 }
 0x2cb   :  { %v2007_v10 = vpop.f32.mrf.mxu3  ;;  %v1959_v43 = vadd.f32 %v1958_v19, %v1910_v60  ;;  %v2261_v40 = vpop.f32.mrf.mxu1 }
 0x2cc   :  { %v2262_v7 = vadd.f32 %v2261_v40, %v2212_v37 }
 0x2cd   :  { %v12867_v46 = vadd.f32 %v2007_v10, %v1959_v43  ;;  %v9053_v43 = vor.u32 %v10981_v31, %v9050_v44  ;;  %v10990_v31 = vld [vmem:[#allocation2 + $0x56c] sm:$0xf0]  ;;  %v9074_v44 = vld [vmem:[#allocation2 + $0x570] sm:$0xf0] }
 0x2ce   :  { %2600 = vmatmul.bf16.vlgmr.msrb.gmra.mxu0 %v9025_v11  ;;  %2649 = vmatmul.bf16.vlgmr.msrb.gmra.mxu1 %v9029_v24 }
 0x2cf   :  { %2698 = vmatmul.bf16.vlgmr.msrb.gmra.mxu2 %v9033_v3  ;;  %3370 = vmatpush.bf16.msrb.mxu0 %v12634_v42  ;;  %v9040_v42 = vld [vmem:[#allocation2 + $0x520] sm:$0xf]  ;;  %v9064_v3 = vld [vmem:[#allocation2 + $0x548] sm:$0xf] }
 0x2d0   :  { %2747 = vmatmul.bf16.vlgmr.msrb.gmra.mxu3 %v9037_v21  ;;  %3419 = vmatpush.bf16.msrb.mxu1 %v12640_v25  ;;  %v10982_v25 = vld [vmem:[#allocation2 + $0x52c] sm:$0xf0]  ;;  %v9048_v21 = vld [vmem:[#allocation2 + $0x528] sm:$0xf] }
 0x2d1   :  { %3468 = vmatpush.bf16.msrb.mxu2 %v12646_v62  ;;  %3517 = vmatpush.bf16.msrb.mxu3 %v12652_v52  ;;  %v10980_v62 = vld [vmem:[#allocation2 + $0x524] sm:$0xf]  ;;  %v9042_v52 = vld [vmem:[#allocation2 + $0x530] sm:$0xf0]  ;;  %v9049_v24 = vor.u32 %v10983_v0, %v9048_v21  ;;  %v9072_v0 = vld [vmem:[#allocation2 + $0x560] sm:$0xf] }
 0x2d2   :  { %v2310_v34 = vpop.f32.mrf.mxu2  ;;  %v2214_v48 = vpop.f32.mrf.mxu0 }
 0x2d3   :  { %v2359_v60 = vpop.f32.mrf.mxu3  ;;  %v2311_v9 = vadd.f32 %v2310_v34, %v2262_v7  ;;  %v2263_v57 = vpop.f32.mrf.mxu1  ;;  %3371 = vmatpush.bf16.msrb.mxu0 %v12658_v27  ;;  %v10987_v7 = vld [vmem:[#allocation2 + $0x554] sm:$0xf0]  ;;  %v10985_v34 = vld [vmem:[#allocation2 + $0x54c] sm:$0xf] }
 0x2d4   :  { %v2264_v15 = vadd.f32 %v2263_v57, %v2214_v48  ;;  %3420 = vmatpush.bf16.msrb.mxu1 %v12664_v51 }
 0x2d5   :  { %v12877_v4 = vadd.f32 %v2359_v60, %v2311_v9  ;;  %3469 = vmatpush.bf16.msrb.mxu2 %v12672_v1  ;;  %3518 = vmatpush.bf16.msrb.mxu3 %v12678_v2  ;;  %v9041_v1 = vor.u32 %v10982_v25, %v9040_v42  ;;  %v9045_v2 = vor.u32 %v10980_v62, %v9042_v52  ;;  %v9066_v60 = vld [vmem:[#allocation2 + $0x558] sm:$0xf0] }
 0x2d6   :  { %v9069_v42 = vor.u32 %v10985_v34, %v9066_v60  ;;  %v9088_v34 = vld [vmem:[#allocation2 + $0x580] sm:$0xf]  ;;  %v10994_v60 = vld [vmem:[#allocation2 + $0x58c] sm:$0xf0] }
 0x2d7   :  { %3372 = vmatpush.bf16.msrb.mxu0 %v12684_v22 }
 0x2d8   :  { %3421 = vmatpush.bf16.msrb.mxu1 %v12690_v30 }
 0x2d9   :  { %3470 = vmatpush.bf16.msrb.mxu2 %v12696_v12  ;;  %3519 = vmatpush.bf16.msrb.mxu3 %v12702_v13 }
 0x2da   :  { %v2312_v27 = vpop.f32.mrf.mxu2 }
 0x2db   :  { %v2361_v51 = vpop.f32.mrf.mxu3  ;;  %v2313_v19 = vadd.f32 %v2312_v27, %v2264_v15  ;;  %v2217_v10 = vpop.f32.mrf.mxu0  ;;  %3373 = vmatpush.bf16.msrb.mxu0 %v12708_v36  ;;  %v9065_v15 = vor.u32 %v10987_v7, %v9064_v3  ;;  %v10991_v27 = vld [vmem:[#allocation2 + $0x574] sm:$0xf0] }
 0x2dc   :  { %v2266_v11 = vpop.f32.mrf.mxu1  ;;  %3422 = vmatpush.bf16.msrb.mxu1 %v12714_v26 }
 0x2dd   :  { %v2267_v37 = vadd.f32 %v2266_v11, %v2217_v10  ;;  %v12887_v22 = vadd.f32 %v2361_v51, %v2313_v19  ;;  %3471 = vmatpush.bf16.msrb.mxu2 %v12722_v45  ;;  %3520 = vmatpush.bf16.msrb.mxu3 %v12728_v58  ;;  %v10989_v51 = vld [vmem:[#allocation2 + $0x56c] sm:$0xf]  ;;  %v9073_v10 = vor.u32 %v10990_v31, %v9072_v0 }
 0x2de   :  { %2605 = vmatmul.bf16.gmra.mxu0 %v9041_v1  ;;  %2654 = vmatmul.bf16.gmra.mxu1 %v9045_v2  ;;  %v9082_v1 = vld [vmem:[#allocation2 + $0x578] sm:$0xf0] }
 0x2df   :  { %2703 = vmatmul.bf16.gmra.mxu2 %v9049_v24  ;;  %3374 = vmatpush.bf16.msrb.mxu0 %v12736_v56  ;;  %v9056_v56 = vld [vmem:[#allocation2 + $0x540] sm:$0xf] }
 0x2e0   :  { %2752 = vmatmul.bf16.gmra.mxu3 %v9053_v43  ;;  %3423 = vmatpush.bf16.msrb.mxu1 %v12742_v16  ;;  %v10986_v16 = vld [vmem:[#allocation2 + $0x54c] sm:$0xf0] }
 0x2e1   :  { %3472 = vmatpush.bf16.msrb.mxu2 %v12748_v20  ;;  %3521 = vmatpush.bf16.msrb.mxu3 %v12754_v41  ;;  %v10984_v20 = vld [vmem:[#allocation2 + $0x544] sm:$0xf]  ;;  %v9058_v41 = vld [vmem:[#allocation2 + $0x550] sm:$0xf0] }
 0x2e2   :  { %v2315_v26 = vpop.f32.mrf.mxu2 }
 0x2e3   :  { %v2364_v36 = vpop.f32.mrf.mxu3  ;;  %v2316_v12 = vadd.f32 %v2315_v26, %v2267_v37  ;;  %v2219_v13 = vpop.f32.mrf.mxu0  ;;  %3375 = vmatpush.bf16.msrb.mxu0 %v12760_v14 }
 0x2e4   :  { %v2268_v45 = vpop.f32.mrf.mxu1  ;;  %3424 = vmatpush.bf16.msrb.mxu1 %v12766_v39 }
 0x2e5   :  { %v2269_v58 = vadd.f32 %v2268_v45, %v2219_v13  ;;  %v12899_v40 = vadd.f32 %v2364_v36, %v2316_v12  ;;  %3473 = vmatpush.bf16.msrb.mxu2 %v12774_v33  ;;  %3522 = vmatpush.bf16.msrb.mxu3 %v12780_v5  ;;  %v9057_v33 = vor.u32 %v10986_v16, %v9056_v56 }
 0x2e6   :  { %v9061_v5 = vor.u32 %v10984_v20, %v9058_v41  ;;  %v9085_v36 = vor.u32 %v10989_v51, %v9082_v1 }
 0x2e7   :  { %3376 = vmatpush.bf16.msrb.mxu0 %v12786_v18 }
 0x2e8   :  { %3425 = vmatpush.bf16.msrb.mxu1 %v12792_v6 }
 0x2e9   :  { %3474 = vmatpush.bf16.msrb.mxu2 %v12798_v49  ;;  %3523 = vmatpush.bf16.msrb.mxu3 %v12804_v29 }
 0x2ea   :  { %v2317_v14 = vpop.f32.mrf.mxu2 }
 0x2eb   :  { %v2366_v39 = vpop.f32.mrf.mxu3  ;;  %v2318_v9 = vadd.f32 %v2317_v14, %v2269_v58  ;;  %v2222_v48 = vpop.f32.mrf.mxu0  ;;  %3377 = vmatpush.bf16.msrb.mxu0 %v12810_v35  ;;  %v10992_v14 = vld [vmem:[#allocation2 + $0x584] sm:$0xf] }
 0x2ec   :  { %v2271_v57 = vpop.f32.mrf.mxu1  ;;  %3426 = vmatpush.bf16.msrb.mxu1 %v12816_v59 }
 0x2ed   :  { %v2272_v25 = vadd.f32 %v2271_v57, %v2222_v48  ;;  %v12909_v18 = vadd.f32 %v2366_v39, %v2318_v9  ;;  %3475 = vmatpush.bf16.msrb.mxu2 %v12824_v47  ;;  %3524 = vmatpush.bf16.msrb.mxu3 %v12830_v50  ;;  %v10988_v47 = vld [vmem:[#allocation2 + $0x564] sm:$0xf]  ;;  %v9080_v50 = vld [vmem:[#allocation2 + $0x568] sm:$0xf]  ;;  %v9090_v39 = vld [vmem:[#allocation2 + $0x590] sm:$0xf0] }
 0x2ee   :  { %2610 = vmatmul.bf16.gmra.mxu0 %v9057_v33  ;;  %2659 = vmatmul.bf16.gmra.mxu1 %v9061_v5  ;;  %v9077_v11 = vor.u32 %v10988_v47, %v9074_v44  ;;  %v9081_v26 = vor.u32 %v10991_v27, %v9080_v50  ;;  %v9096_v33 = vld [vmem:[#allocation2 + $0x588] sm:$0xf]  ;;  %v10995_v5 = vld [vmem:[#allocation2 + $0x594] sm:$0xf0]  ;;  %v10993_v9 = vld [vmem:[#allocation2 + $0x58c] sm:$0xf] }
 0x2ef   :  { %2708 = vmatmul.bf16.gmra.mxu2 %v9065_v15  ;;  %v9098_v48 = vld [vmem:[#allocation2 + $0x598] sm:$0xf0] }
 0x2f0   :  { %2757 = vmatmul.bf16.gmra.mxu3 %v9069_v42  ;;  %v9089_v42 = vor.u32 %v10994_v60, %v9088_v34 }
 0x2f2   :  { %v2320_v6 = vpop.f32.mrf.mxu2 }
 0x2f3   :  { %v2369_v49 = vpop.f32.mrf.mxu3  ;;  %v2321_v62 = vadd.f32 %v2320_v6, %v2272_v25  ;;  %v2224_v52 = vpop.f32.mrf.mxu0  ;;  %v9093_v25 = vor.u32 %v10992_v14, %v9090_v39 }
 0x2f4   :  { %v2273_v35 = vpop.f32.mrf.mxu1 }
 0x2f5   :  { %v2274_v21 = vadd.f32 %v2273_v35, %v2224_v52  ;;  %v12915_v59 = vadd.f32 %v2369_v49, %v2321_v62  ;;  %v9097_v52 = vor.u32 %v10995_v5, %v9096_v33  ;;  %v9101_v35 = vor.u32 %v10993_v9, %v9098_v48 }
 0x2fa   :  { %v2322_v2 = vpop.f32.mrf.mxu2 }
 0x2fb   :  { %v2371_v19 = vpop.f32.mrf.mxu3  ;;  %v2323_v24 = vadd.f32 %v2322_v2, %v2274_v21  ;;  %v2227_v43 = vpop.f32.mrf.mxu0 }
 0x2fc   :  { %v2276_v37 = vpop.f32.mrf.mxu1 }
 0x2fd   :  { %v2277_v12 = vadd.f32 %v2276_v37, %v2227_v43  ;;  %v12917_v13 = vadd.f32 %v2371_v19, %v2323_v24  ;;  %v9104_v19 = vld [vmem:[#allocation2 + $0x5a0] sm:$0xf]  ;;  %v9106_v24 = vld [vmem:[#allocation2 + $0x5b0] sm:$0xf0]  ;;  %v9112_v43 = vld [vmem:[#allocation2 + $0x5a8] sm:$0xf] }
 0x2fe   :  { %2615 = vmatmul.bf16.gmra.mxu0 %v9073_v10  ;;  %2664 = vmatmul.bf16.gmra.mxu1 %v9077_v11  ;;  %v10998_v10 = vld [vmem:[#allocation2 + $0x5ac] sm:$0xf0]  ;;  %v10996_v11 = vld [vmem:[#allocation2 + $0x5a4] sm:$0xf]  ;;  %v10999_v37 = vld [vmem:[#allocation2 + $0x5b4] sm:$0xf0] }
 0x2ff   :  { %2713 = vmatmul.bf16.gmra.mxu2 %v9081_v26  ;;  %v10997_v26 = vld [vmem:[#allocation2 + $0x5ac] sm:$0xf]  ;;  %v9113_v34 = vor.u32 %v10999_v37, %v9112_v43 }
 0x300   :  { %2762 = vmatmul.bf16.gmra.mxu3 %v9085_v36  ;;  %v9114_v36 = vld [vmem:[#allocation2 + $0x5b8] sm:$0xf0] }
 0x301   :  { %v9117_v60 = vor.u32 %v10997_v26, %v9114_v36 }
 0x302   :  { %v2325_v58 = vpop.f32.mrf.mxu2 }
 0x303   :  { %v2374_v56 = vpop.f32.mrf.mxu3  ;;  %v2326_v16 = vadd.f32 %v2325_v58, %v2277_v12  ;;  %v2229_v20 = vpop.f32.mrf.mxu0 }
 0x304   :  { %v2278_v41 = vpop.f32.mrf.mxu1 }
 0x305   :  { %v2279_v3 = vadd.f32 %v2278_v41, %v2229_v20  ;;  %v12921_v7 = vadd.f32 %v2374_v56, %v2326_v16  ;;  %v9105_v56 = vor.u32 %v10998_v10, %v9104_v19  ;;  %v9109_v16 = vor.u32 %v10996_v11, %v9106_v24 }
 0x307   :  { %14035 = vst [vmem:[#allocation80_spill] sm:$0xff] %v12921_v7  ;;  %v11132_v7 = vld [vmem:[#allocation5 + $0xe0] sm:$0xff] }
 0x30a   :  { %v2327_v57 = vpop.f32.mrf.mxu2 }
 0x30b   :  { %v2376_v15 = vpop.f32.mrf.mxu3  ;;  %v2328_v6 = vadd.f32 %v2327_v57, %v2279_v3  ;;  %v2232_v49 = vpop.f32.mrf.mxu0 }
 0x30c   :  { %v2281_v62 = vpop.f32.mrf.mxu1 }
 0x30d   :  { %v2282_v21 = vadd.f32 %v2281_v62, %v2232_v49  ;;  %v12923_v0 = vadd.f32 %v2376_v15, %v2328_v6  ;;  %v9120_v6 = vld [vmem:[#allocation2 + $0x5c0] sm:$0xf]  ;;  %v11002_v49 = vld [vmem:[#allocation2 + $0x5cc] sm:$0xf0]  ;;  %v11000_v62 = vld [vmem:[#allocation2 + $0x5c4] sm:$0xf] }
 0x30e   :  { %2620 = vmatmul.bf16.gmra.mxu0 %v9089_v42  ;;  %2669 = vmatmul.bf16.gmra.mxu1 %v9093_v25 }
 0x30f   :  { %14036 = vst [vmem:[#allocation81_spill] sm:$0xff] %v12923_v0  ;;  %2718 = vmatmul.bf16.gmra.mxu2 %v9097_v52  ;;  %v9122_v52 = vld [vmem:[#allocation2 + $0x5d0] sm:$0xf0] }
 0x310   :  { %2767 = vmatmul.bf16.gmra.mxu3 %v9101_v35  ;;  %v9128_v35 = vld [vmem:[#allocation2 + $0x5c8] sm:$0xf] }
 0x312   :  { %v2330_v47 = vpop.f32.mrf.mxu2 }
 0x313   :  { %v2379_v44 = vpop.f32.mrf.mxu3  ;;  %v2331_v50 = vadd.f32 %v2330_v47, %v2282_v21  ;;  %v2234_v27 = vpop.f32.mrf.mxu0  ;;  %v11003_v21 = vld [vmem:[#allocation2 + $0x5d4] sm:$0xf0]  ;;  %v11001_v47 = vld [vmem:[#allocation2 + $0x5cc] sm:$0xf] }
 0x314   :  { %v2283_v51 = vpop.f32.mrf.mxu1  ;;  %v9129_v24 = vor.u32 %v11003_v21, %v9128_v35 }
 0x315   :  { %v2284_v1 = vadd.f32 %v2283_v51, %v2234_v27  ;;  %v12927_v2 = vadd.f32 %v2379_v44, %v2331_v50  ;;  %v9130_v44 = vld [vmem:[#allocation2 + $0x5d8] sm:$0xf0]  ;;  %v9121_v51 = vor.u32 %v11002_v49, %v9120_v6 }
 0x316   :  { %v9133_v43 = vor.u32 %v11001_v47, %v9130_v44 }
 0x317   :  { %14037 = vst [vmem:[#allocation82_spill] sm:$0xff] %v12927_v2 }
 0x31a   :  { %v2332_v12 = vpop.f32.mrf.mxu2 }
 0x31b   :  { %v2381_v58 = vpop.f32.mrf.mxu3  ;;  %v2333_v20 = vadd.f32 %v2332_v12, %v2284_v1  ;;  %v2237_v41 = vpop.f32.mrf.mxu0  ;;  %v9125_v1 = vor.u32 %v11000_v62, %v9122_v52 }
 0x31c   :  { %v2286_v3 = vpop.f32.mrf.mxu1 }
 0x31d   :  { %v2287_v14 = vadd.f32 %v2286_v3, %v2237_v41  ;;  %v12929_v39 = vadd.f32 %v2381_v58, %v2333_v20 }
 0x31e   :  { %2625 = vmatmul.bf16.gmra.mxu0 %v9105_v56  ;;  %2674 = vmatmul.bf16.gmra.mxu1 %v9109_v16 }
 0x31f   :  { %14038 = vst [vmem:[#allocation83_spill] sm:$0xff] %v12929_v39  ;;  %2723 = vmatmul.bf16.gmra.mxu2 %v9113_v34  ;;  %v9136_v34 = vld [vmem:[#allocation2 + $0x5e0] sm:$0xf] }
 0x320   :  { %2772 = vmatmul.bf16.gmra.mxu3 %v9117_v60  ;;  %v11006_v60 = vld [vmem:[#allocation2 + $0x5ec] sm:$0xf0] }
 0x321   :  { %v9137_v49 = vor.u32 %v11006_v60, %v9136_v34  ;;  %v11009_v34 = vld [vmem:[#allocation2 + $0x60c] sm:$0xf]  ;;  %v9162_v60 = vld [vmem:[#allocation2 + $0x618] sm:$0xf0] }
 0x322   :  { %v2335_v5 = vpop.f32.mrf.mxu2 }
 0x323   :  { %v2384_v9 = vpop.f32.mrf.mxu3  ;;  %v2336_v48 = vadd.f32 %v2335_v5, %v2287_v14  ;;  %v2239_v57 = vpop.f32.mrf.mxu0  ;;  %v11004_v14 = vld [vmem:[#allocation2 + $0x5e4] sm:$0xf]  ;;  %v9138_v5 = vld [vmem:[#allocation2 + $0x5f0] sm:$0xf0] }
 0x324   :  { %v2288_v15 = vpop.f32.mrf.mxu1  ;;  %v9141_v62 = vor.u32 %v11004_v14, %v9138_v5 }
 0x325   :  { %v2289_v42 = vadd.f32 %v2288_v15, %v2239_v57  ;;  %v12933_v25 = vadd.f32 %v2384_v9, %v2336_v48  ;;  %v9144_v9 = vld [vmem:[#allocation2 + $0x5e8] sm:$0xf]  ;;  %v11007_v48 = vld [vmem:[#allocation2 + $0x5f4] sm:$0xf0]  ;;  %v11005_v57 = vld [vmem:[#allocation2 + $0x5ec] sm:$0xf] }
 0x326   :  { %v9146_v15 = vld [vmem:[#allocation2 + $0x5f8] sm:$0xf0]  ;;  %v9145_v47 = vor.u32 %v11007_v48, %v9144_v9 }
 0x327   :  { %14039 = vst [vmem:[#allocation84_spill] sm:$0xff] %v12933_v25  ;;  %v9149_v44 = vor.u32 %v11005_v57, %v9146_v15 }
 0x32a   :  { %v2337_v50 = vpop.f32.mrf.mxu2 }
 0x32b   :  { %v2386_v27 = vpop.f32.mrf.mxu3  ;;  %v2338_v19 = vadd.f32 %v2337_v50, %v2289_v42  ;;  %v2242_v10 = vpop.f32.mrf.mxu0 }
 0x32c   :  { %v2291_v11 = vpop.f32.mrf.mxu1 }
 0x32d   :  { %v2292_v37 = vadd.f32 %v2291_v11, %v2242_v10  ;;  %v12935_v26 = vadd.f32 %v2386_v27, %v2338_v19 }
 0x32e   :  { %2630 = vmatmul.bf16.gmra.mxu0 %v9121_v51  ;;  %2679 = vmatmul.bf16.gmra.mxu1 %v9125_v1 }
 0x32f   :  { %14040 = vst [vmem:[#allocation85_spill] sm:$0xff] %v12935_v26  ;;  %2728 = vmatmul.bf16.gmra.mxu2 %v9129_v24 }
 0x330   :  { %2777 = vmatmul.bf16.gmra.mxu3 %v9133_v43 }
 0x332   :  { %v2340_v12 = vpop.f32.mrf.mxu2 }
 0x333   :  { %v2389_v58 = vpop.f32.mrf.mxu3  ;;  %v2341_v56 = vadd.f32 %v2340_v12, %v2292_v37  ;;  %v2244_v16 = vpop.f32.mrf.mxu0  ;;  %v9152_v12 = vld [vmem:[#allocation2 + $0x600] sm:$0xf] }
 0x334   :  { %v2293_v20 = vpop.f32.mrf.mxu1 }
 0x335   :  { %v2294_v41 = vadd.f32 %v2293_v20, %v2244_v16  ;;  %v12939_v3 = vadd.f32 %v2389_v58, %v2341_v56  ;;  %v11010_v58 = vld [vmem:[#allocation2 + $0x60c] sm:$0xf0]  ;;  %v11008_v56 = vld [vmem:[#allocation2 + $0x604] sm:$0xf]  ;;  %v9154_v16 = vld [vmem:[#allocation2 + $0x610] sm:$0xf0] }
 0x336   :  { %v9160_v20 = vld [vmem:[#allocation2 + $0x608] sm:$0xf]  ;;  %v9153_v9 = vor.u32 %v11010_v58, %v9152_v12  ;;  %v9157_v48 = vor.u32 %v11008_v56, %v9154_v16  ;;  %v11526_v12 = vld [vmem:[%s13882_s0 + $0x30] sm:$0xff] }
 0x337   :  { %14041 = vst [vmem:[#allocation86_spill] sm:$0xff] %v12939_v3  ;;  %v11527_v58 = vld [vmem:[%s13882_s0 + $0x70] sm:$0xff] }
 0x338   :  { %v11528_v16 = vld [vmem:[%s13882_s0 + $0xb0] sm:$0xff] }
 0x33a   :  { %v2342_v42 = vpop.f32.mrf.mxu2 }
 0x33b   :  { %v2391_v6 = vpop.f32.mrf.mxu3  ;;  %v2343_v52 = vadd.f32 %v2342_v42, %v2294_v41  ;;  %v2247_v35 = vpop.f32.mrf.mxu0  ;;  %v11011_v41 = vld [vmem:[#allocation2 + $0x614] sm:$0xf0] }
 0x33c   :  { %v2296_v21 = vpop.f32.mrf.mxu1 }
 0x33d   :  { %v2297_v50 = vadd.f32 %v2296_v21, %v2247_v35  ;;  %v12941_v27 = vadd.f32 %v2391_v6, %v2343_v52  ;;  %v9161_v6 = vor.u32 %v11011_v41, %v9160_v20  ;;  %v11522_v21 = vld [vmem:[%s13882_s0 + $0x38] sm:$0xff]  ;;  %v11529_v20 = vld [vmem:[%s13882_s0 + $0xf0] sm:$0xff]  ;;  %v9168_v41 = vld [vmem:[#allocation2 + $0x620] sm:$0xf] }
 0x33e   :  { %2635 = vmatmul.bf16.gmra.mxu0 %v9137_v49  ;;  %2684 = vmatmul.bf16.gmra.mxu1 %v9141_v62  ;;  %v9165_v49 = vor.u32 %v11009_v34, %v9162_v60  ;;  %v11014_v34 = vld [vmem:[#allocation2 + $0x62c] sm:$0xf0]  ;;  %v11012_v60 = vld [vmem:[#allocation2 + $0x624] sm:$0xf] }
 0x33f   :  { %14042 = vst [vmem:[#allocation87_spill] sm:$0xff] %v12941_v27  ;;  %2733 = vmatmul.bf16.gmra.mxu2 %v9145_v47  ;;  %v11523_v47 = vld [vmem:[%s13882_s0 + $0x78] sm:$0xff] }
 0x340   :  { %2782 = vmatmul.bf16.gmra.mxu3 %v9149_v44  ;;  %v11524_v44 = vld [vmem:[%s13882_s0 + $0xb8] sm:$0xff] }
 0x342   :  { %v2345_v1 = vpop.f32.mrf.mxu2 }
 0x343   :  { %v2394_v19 = vpop.f32.mrf.mxu3  ;;  %v2346_v10 = vadd.f32 %v2345_v1, %v2297_v50  ;;  %v2249_v11 = vpop.f32.mrf.mxu0  ;;  %v11525_v50 = vld [vmem:[%s13882_s0 + $0xf8] sm:$0xff] }
 0x344   :  { %v2298_v24 = vpop.f32.mrf.mxu1 }
 0x345   :  { %v2299_v43 = vadd.f32 %v2298_v24, %v2249_v11  ;;  %v12945_v37 = vadd.f32 %v2394_v19, %v2346_v10 }
 0x347   :  { %14043 = vst [vmem:[#allocation88_spill] sm:$0xff] %v12945_v37 }
 0x34a   :  { %v2347_v14 = vpop.f32.mrf.mxu2 }
 0x34b   :  { %v2396_v5 = vpop.f32.mrf.mxu3  ;;  %v2348_v57 = vadd.f32 %v2347_v14, %v2299_v43  ;;  %v2601_v15 = vpop.f32.mrf.mxu0  ;;  %v9170_v14 = vld [vmem:[#allocation2 + $0x630] sm:$0xf0] }
 0x34c   :  { %v2650_v42 = vpop.f32.mrf.mxu1 }
 0x34d   :  { %v2651_v62 = vadd.f32 %v2650_v42, %v2601_v15  ;;  %v12947_v52 = vadd.f32 %v2396_v5, %v2348_v57  ;;  %v9176_v5 = vld [vmem:[#allocation2 + $0x628] sm:$0xf]  ;;  %v9178_v57 = vld [vmem:[#allocation2 + $0x638] sm:$0xf0] }
 0x34e   :  { %2989 = vmatmul.bf16.vlgmr.msra.gmra.mxu0 %v9153_v9  ;;  %3038 = vmatmul.bf16.vlgmr.msra.gmra.mxu1 %v9157_v48  ;;  %v11015_v9 = vld [vmem:[#allocation2 + $0x634] sm:$0xf0]  ;;  %v11013_v48 = vld [vmem:[#allocation2 + $0x62c] sm:$0xf] }
 0x34f   :  { %14044 = vst [vmem:[#allocation89_spill] sm:$0xff] %v12947_v52  ;;  %3087 = vmatmul.bf16.vlgmr.msra.gmra.mxu2 %v9161_v6  ;;  %3759 = vmatpush.bf16.msra.mxu0 %v11522_v21  ;;  %v11530_v15 = vld [vmem:[%s13882_s0 + $0x28] sm:$0xff] }
 0x350   :  { %3136 = vmatmul.bf16.vlgmr.msra.gmra.mxu3 %v9165_v49  ;;  %3808 = vmatpush.bf16.msra.mxu1 %v11523_v47  ;;  %v11531_v42 = vld [vmem:[%s13882_s0 + $0x68] sm:$0xff]  ;;  %v9169_v47 = vor.u32 %v11014_v34, %v9168_v41  ;;  %v11538_v34 = vld [vmem:[%s13882_s0 + $0x18] sm:$0xff] }
 0x351   :  { %3857 = vmatpush.bf16.msra.mxu2 %v11524_v44  ;;  %3906 = vmatpush.bf16.msra.mxu3 %v11525_v50  ;;  %v11532_v6 = vld [vmem:[%s13882_s0 + $0xa8] sm:$0xff]  ;;  %v9173_v44 = vor.u32 %v11012_v60, %v9170_v14  ;;  %v11539_v60 = vld [vmem:[%s13882_s0 + $0x58] sm:$0xff] }
 0x352   :  { %v2699_v1 = vpop.f32.mrf.mxu2  ;;  %v11533_v49 = vld [vmem:[%s13882_s0 + $0xe8] sm:$0xff]  ;;  %v11540_v14 = vld [vmem:[%s13882_s0 + $0x98] sm:$0xff] }
 0x353   :  { %v2748_v19 = vpop.f32.mrf.mxu3  ;;  %v2700_v10 = vadd.f32 %v2699_v1, %v2651_v62  ;;  %v2603_v11 = vpop.f32.mrf.mxu0  ;;  %3760 = vmatpush.bf16.msra.mxu0 %v11526_v12  ;;  %v11534_v12 = vld [vmem:[%s13882_s0 + $0x20] sm:$0xff] }
 0x354   :  { %v2652_v24 = vpop.f32.mrf.mxu1  ;;  %3809 = vmatpush.bf16.msra.mxu1 %v11527_v58  ;;  %v11535_v58 = vld [vmem:[%s13882_s0 + $0x60] sm:$0xff] }
 0x355   :  { %v2653_v43 = vadd.f32 %v2652_v24, %v2603_v11  ;;  %v12969_v56 = vadd.f32 %v2748_v19, %v2700_v10  ;;  %3858 = vmatpush.bf16.msra.mxu2 %v11528_v16  ;;  %3907 = vmatpush.bf16.msra.mxu3 %v11529_v20  ;;  %v9177_v10 = vor.u32 %v11015_v9, %v9176_v5  ;;  %v11537_v20 = vld [vmem:[%s13882_s0 + $0xe0] sm:$0xff]  ;;  %v11541_v5 = vld [vmem:[%s13882_s0 + $0xd8] sm:$0xff] }
 0x356   :  { %v9181_v11 = vor.u32 %v11013_v48, %v9178_v57 }
 0x357   :  { %3761 = vmatpush.bf16.msra.mxu0 %v11530_v15 }
 0x358   :  { %3810 = vmatpush.bf16.msra.mxu1 %v11531_v42 }
 0x359   :  { %3859 = vmatpush.bf16.msra.mxu2 %v11532_v6  ;;  %3908 = vmatpush.bf16.msra.mxu3 %v11533_v49  ;;  %v11542_v49 = vld [vmem:[%s13882_s0 + $0x10] sm:$0xff] }
 0x35a   :  { %v2701_v62 = vpop.f32.mrf.mxu2 }
 0x35b   :  { %v2750_v21 = vpop.f32.mrf.mxu3  ;;  %v2702_v50 = vadd.f32 %v2701_v62, %v2653_v43  ;;  %v2606_v1 = vpop.f32.mrf.mxu0  ;;  %3762 = vmatpush.bf16.msra.mxu0 %v11534_v12  ;;  %v11536_v43 = vld [vmem:[%s13882_s0 + $0xa0] sm:$0xff]  ;;  %v11543_v62 = vld [vmem:[%s13882_s0 + $0x50] sm:$0xff]  ;;  %v11017_v12 = vld [vmem:[#allocation2 + $0x64c] sm:$0xf] }
 0x35c   :  { %v2655_v19 = vpop.f32.mrf.mxu1  ;;  %3811 = vmatpush.bf16.msra.mxu1 %v11535_v58  ;;  %v9194_v58 = vld [vmem:[#allocation2 + $0x658] sm:$0xf0] }
 0x35d   :  { %v2656_v24 = vadd.f32 %v2655_v19, %v2606_v1  ;;  %v12995_v16 = vadd.f32 %v2750_v21, %v2702_v50  ;;  %3860 = vmatpush.bf16.msra.mxu2 %v11536_v43  ;;  %3909 = vmatpush.bf16.msra.mxu3 %v11537_v20  ;;  %v9184_v50 = vld [vmem:[#allocation2 + $0x640] sm:$0xf]  ;;  %v11018_v1 = vld [vmem:[#allocation2 + $0x64c] sm:$0xf0]  ;;  %v11016_v19 = vld [vmem:[#allocation2 + $0x644] sm:$0xf] }
 0x35e   :  { %2994 = vmatmul.bf16.gmra.mxu0 %v9169_v47  ;;  %3043 = vmatmul.bf16.gmra.mxu1 %v9173_v44  ;;  %v11544_v47 = vld [vmem:[%s13882_s0 + $0x90] sm:$0xff]  ;;  %v11546_v43 = vld [vmem:[%s13882_s0 + $0x8] sm:$0xff] }
 0x35f   :  { %3092 = vmatmul.bf16.gmra.mxu2 %v9177_v10  ;;  %3763 = vmatpush.bf16.msra.mxu0 %v11538_v34  ;;  %v11545_v44 = vld [vmem:[%s13882_s0 + $0xd0] sm:$0xff]  ;;  %v11547_v20 = vld [vmem:[%s13882_s0 + $0x48] sm:$0xff] }
 0x360   :  { %3141 = vmatmul.bf16.gmra.mxu3 %v9181_v11  ;;  %3812 = vmatpush.bf16.msra.mxu1 %v11539_v60  ;;  %v9186_v10 = vld [vmem:[#allocation2 + $0x650] sm:$0xf0]  ;;  %v9192_v11 = vld [vmem:[#allocation2 + $0x648] sm:$0xf] }
 0x361   :  { %3861 = vmatpush.bf16.msra.mxu2 %v11540_v14  ;;  %3910 = vmatpush.bf16.msra.mxu3 %v11541_v5  ;;  %v11548_v34 = vld [vmem:[%s13882_s0 + $0x88] sm:$0xff] }
 0x362   :  { %v2704_v9 = vpop.f32.mrf.mxu2  ;;  %v11549_v60 = vld [vmem:[%s13882_s0 + $0xc8] sm:$0xff] }
 0x363   :  { %v2753_v48 = vpop.f32.mrf.mxu3  ;;  %v2705_v57 = vadd.f32 %v2704_v9, %v2656_v24  ;;  %v2608_v15 = vpop.f32.mrf.mxu0  ;;  %3764 = vmatpush.bf16.msra.mxu0 %v11542_v49  ;;  %v11019_v24 = vld [vmem:[#allocation2 + $0x654] sm:$0xf0]  ;;  %v9185_v9 = vor.u32 %v11018_v1, %v9184_v50  ;;  %v11553_v50 = vld [vmem:[%s13882_s0 + $0xc0] sm:$0xff] }
 0x364   :  { %v2657_v42 = vpop.f32.mrf.mxu1  ;;  %3813 = vmatpush.bf16.msra.mxu1 %v11543_v62  ;;  %v9193_v49 = vor.u32 %v11019_v24, %v9192_v11  ;;  %v9197_v62 = vor.u32 %v11017_v12, %v9194_v58 }
 0x365   :  { %v2658_v6 = vadd.f32 %v2657_v42, %v2608_v15  ;;  %v13023_v21 = vadd.f32 %v2753_v48, %v2705_v57  ;;  %3862 = vmatpush.bf16.msra.mxu2 %v11544_v47  ;;  %3911 = vmatpush.bf16.msra.mxu3 %v11545_v44  ;;  %v9189_v48 = vor.u32 %v11016_v19, %v9186_v10  ;;  %v11550_v44 = vld [vmem:[%s13882_s0] sm:$0xff] }
 0x367   :  { %3765 = vmatpush.bf16.msra.mxu0 %v11546_v43  ;;  %v11551_v43 = vld [vmem:[%s13882_s0 + $0x40] sm:$0xff] }
 0x368   :  { %3814 = vmatpush.bf16.msra.mxu1 %v11547_v20 }
 0x369   :  { %3863 = vmatpush.bf16.msra.mxu2 %v11548_v34  ;;  %3912 = vmatpush.bf16.msra.mxu3 %v11549_v60  ;;  %v9200_v60 = vld [vmem:[#allocation2 + $0x660] sm:$0xf] }
 0x36a   :  { %v2706_v14 = vpop.f32.mrf.mxu2 }
 0x36b   :  { %v2755_v5 = vpop.f32.mrf.mxu3  ;;  %v2707_v57 = vadd.f32 %v2706_v14, %v2658_v6  ;;  %v2611_v15 = vpop.f32.mrf.mxu0  ;;  %3766 = vmatpush.bf16.msra.mxu0 %v11550_v44  ;;  %v11552_v6 = vld [vmem:[%s13882_s0 + $0x80] sm:$0xff]  ;;  %v11022_v14 = vld [vmem:[#allocation2 + $0x66c] sm:$0xf0] }
 0x36c   :  { %v2660_v42 = vpop.f32.mrf.mxu1  ;;  %3815 = vmatpush.bf16.msra.mxu1 %v11551_v43 }
 0x36d   :  { %v2661_v47 = vadd.f32 %v2660_v42, %v2611_v15  ;;  %v13049_v20 = vadd.f32 %v2755_v5, %v2707_v57  ;;  %3864 = vmatpush.bf16.msra.mxu2 %v11552_v6  ;;  %3913 = vmatpush.bf16.msra.mxu3 %v11553_v50  ;;  %v11020_v5 = vld [vmem:[#allocation2 + $0x664] sm:$0xf]  ;;  %v9202_v57 = vld [vmem:[#allocation2 + $0x670] sm:$0xf0]  ;;  %v9208_v15 = vld [vmem:[#allocation2 + $0x668] sm:$0xf] }
 0x36e   :  { %2999 = vmatmul.bf16.gmra.mxu0 %v9185_v9  ;;  %3048 = vmatmul.bf16.gmra.mxu1 %v9189_v48  ;;  %v11023_v9 = vld [vmem:[#allocation2 + $0x674] sm:$0xf0]  ;;  %v11021_v48 = vld [vmem:[#allocation2 + $0x66c] sm:$0xf]  ;;  %v9210_v42 = vld [vmem:[#allocation2 + $0x678] sm:$0xf0] }
 0x36f   :  { %3097 = vmatmul.bf16.gmra.mxu2 %v9193_v49  ;;  %v9201_v49 = vor.u32 %v11022_v14, %v9200_v60  ;;  %v9213_v35 = vor.u32 %v11021_v48, %v9210_v42  ;;  %v9218_v48 = vld [vmem:[#allocation2 + $0x690] sm:$0xf0]  ;;  %v9224_v42 = vld [vmem:[#allocation2 + $0x688] sm:$0xf] }
 0x370   :  { %3146 = vmatmul.bf16.gmra.mxu3 %v9197_v62  ;;  %v9205_v62 = vor.u32 %v11020_v5, %v9202_v57  ;;  %v9216_v57 = vld [vmem:[#allocation2 + $0x680] sm:$0xf] }
 0x372   :  { %v2709_v19 = vpop.f32.mrf.mxu2 }
 0x373   :  { %v2758_v10 = vpop.f32.mrf.mxu3  ;;  %v2710_v11 = vadd.f32 %v2709_v19, %v2661_v47  ;;  %v2613_v24 = vpop.f32.mrf.mxu0  ;;  %v9209_v19 = vor.u32 %v11023_v9, %v9208_v15  ;;  %v11026_v15 = vld [vmem:[#allocation2 + $0x68c] sm:$0xf0]  ;;  %v11024_v9 = vld [vmem:[#allocation2 + $0x684] sm:$0xf] }
 0x374   :  { %v2662_v12 = vpop.f32.mrf.mxu1 }
 0x375   :  { %v2663_v58 = vadd.f32 %v2662_v12, %v2613_v24  ;;  %v13059_v34 = vadd.f32 %v2758_v10, %v2710_v11 }
 0x37a   :  { %v2711_v44 = vpop.f32.mrf.mxu2 }
 0x37b   :  { %v2760_v43 = vpop.f32.mrf.mxu3  ;;  %v2712_v6 = vadd.f32 %v2711_v44, %v2663_v58  ;;  %v2616_v50 = vpop.f32.mrf.mxu0  ;;  %v11027_v44 = vld [vmem:[#allocation2 + $0x694] sm:$0xf0] }
 0x37c   :  { %v2665_v47 = vpop.f32.mrf.mxu1 }
 0x37d   :  { %v2666_v24 = vadd.f32 %v2665_v47, %v2616_v50  ;;  %v13061_v10 = vadd.f32 %v2760_v43, %v2712_v6  ;;  %v11025_v43 = vld [vmem:[#allocation2 + $0x68c] sm:$0xf]  ;;  %v9217_v50 = vor.u32 %v11026_v15, %v9216_v57 }
 0x37e   :  { %3004 = vmatmul.bf16.gmra.mxu0 %v9201_v49  ;;  %3053 = vmatmul.bf16.gmra.mxu1 %v9205_v62  ;;  %v9226_v49 = vld [vmem:[#allocation2 + $0x698] sm:$0xf0] }
 0x37f   :  { %3102 = vmatmul.bf16.gmra.mxu2 %v9209_v19  ;;  %v9229_v33 = vor.u32 %v11025_v43, %v9226_v49  ;;  %v9234_v43 = vld [vmem:[#allocation2 + $0x6b0] sm:$0xf0]  ;;  %v9240_v49 = vld [vmem:[#allocation2 + $0x6a8] sm:$0xf] }
 0x380   :  { %3151 = vmatmul.bf16.gmra.mxu3 %v9213_v35  ;;  %v9221_v35 = vor.u32 %v11024_v9, %v9218_v48  ;;  %v9232_v48 = vld [vmem:[#allocation2 + $0x6a0] sm:$0xf] }
 0x382   :  { %v2714_v12 = vpop.f32.mrf.mxu2 }
 0x383   :  { %v2763_v51 = vpop.f32.mrf.mxu3  ;;  %v2715_v36 = vadd.f32 %v2714_v12, %v2666_v24  ;;  %v2618_v60 = vpop.f32.mrf.mxu0  ;;  %v9225_v12 = vor.u32 %v11027_v44, %v9224_v42  ;;  %v11030_v42 = vld [vmem:[#allocation2 + $0x6ac] sm:$0xf0]  ;;  %v11028_v44 = vld [vmem:[#allocation2 + $0x6a4] sm:$0xf] }
 0x384   :  { %v2667_v14 = vpop.f32.mrf.mxu1 }
 0x385   :  { %v2668_v58 = vadd.f32 %v2667_v14, %v2618_v60  ;;  %v13065_v5 = vadd.f32 %v2763_v51, %v2715_v36 }
 0x387   :  { %14045 = vst [vmem:[#allocation90_spill] sm:$0xff] %v13065_v5 }
 0x38a   :  { %v2716_v62 = vpop.f32.mrf.mxu2 }
 0x38b   :  { %v2765_v6 = vpop.f32.mrf.mxu3  ;;  %v2717_v47 = vadd.f32 %v2716_v62, %v2668_v58  ;;  %v2621_v19 = vpop.f32.mrf.mxu0  ;;  %v11031_v62 = vld [vmem:[#allocation2 + $0x6b4] sm:$0xf0] }
 0x38c   :  { %v2670_v24 = vpop.f32.mrf.mxu1 }
 0x38d   :  { %v2671_v60 = vadd.f32 %v2670_v24, %v2621_v19  ;;  %v13067_v36 = vadd.f32 %v2765_v6, %v2717_v47  ;;  %v11029_v6 = vld [vmem:[#allocation2 + $0x6ac] sm:$0xf]  ;;  %v9233_v19 = vor.u32 %v11030_v42, %v9232_v48 }
 0x38e   :  { %3009 = vmatmul.bf16.gmra.mxu0 %v9217_v50  ;;  %3058 = vmatmul.bf16.gmra.mxu1 %v9221_v35  ;;  %v9242_v50 = vld [vmem:[#allocation2 + $0x6b8] sm:$0xf0] }
 0x38f   :  { %14046 = vst [vmem:[#allocation91_spill] sm:$0xff] %v13067_v36  ;;  %3107 = vmatmul.bf16.gmra.mxu2 %v9225_v12  ;;  %v9245_v51 = vor.u32 %v11029_v6, %v9242_v50  ;;  %v9250_v6 = vld [vmem:[#allocation2 + $0x6d0] sm:$0xf0]  ;;  %v9256_v50 = vld [vmem:[#allocation2 + $0x6c8] sm:$0xf] }
 0x390   :  { %3156 = vmatmul.bf16.gmra.mxu3 %v9229_v33  ;;  %v9237_v33 = vor.u32 %v11028_v44, %v9234_v43  ;;  %v9248_v43 = vld [vmem:[#allocation2 + $0x6c0] sm:$0xf] }
 0x392   :  { %v2719_v14 = vpop.f32.mrf.mxu2 }
 0x393   :  { %v2768_v31 = vpop.f32.mrf.mxu3  ;;  %v2720_v11 = vadd.f32 %v2719_v14, %v2671_v60  ;;  %v2623_v57 = vpop.f32.mrf.mxu0  ;;  %v9241_v14 = vor.u32 %v11031_v62, %v9240_v49  ;;  %v11034_v49 = vld [vmem:[#allocation2 + $0x6cc] sm:$0xf0]  ;;  %v11032_v62 = vld [vmem:[#allocation2 + $0x6c4] sm:$0xf] }
 0x394   :  { %v2672_v15 = vpop.f32.mrf.mxu1 }
 0x395   :  { %v2673_v58 = vadd.f32 %v2672_v15, %v2623_v57  ;;  %v13071_v9 = vadd.f32 %v2768_v31, %v2720_v11 }
 0x397   :  { %14047 = vst [vmem:[#allocation92_spill] sm:$0xff] %v13071_v9 }
 0x39a   :  { %v2721_v35 = vpop.f32.mrf.mxu2 }
 0x39b   :  { %v2770_v47 = vpop.f32.mrf.mxu3  ;;  %v2722_v24 = vadd.f32 %v2721_v35, %v2673_v58  ;;  %v2626_v12 = vpop.f32.mrf.mxu0  ;;  %v11035_v35 = vld [vmem:[#allocation2 + $0x6d4] sm:$0xf0] }
 0x39c   :  { %v2675_v60 = vpop.f32.mrf.mxu1 }
 0x39d   :  { %v2676_v57 = vadd.f32 %v2675_v60, %v2626_v12  ;;  %v13073_v31 = vadd.f32 %v2770_v47, %v2722_v24  ;;  %v11033_v47 = vld [vmem:[#allocation2 + $0x6cc] sm:$0xf]  ;;  %v9249_v12 = vor.u32 %v11034_v49, %v9248_v43 }
 0x39e   :  { %3014 = vmatmul.bf16.gmra.mxu0 %v9233_v19  ;;  %3063 = vmatmul.bf16.gmra.mxu1 %v9237_v33  ;;  %v9258_v19 = vld [vmem:[#allocation2 + $0x6d8] sm:$0xf0] }
 0x39f   :  { %14048 = vst [vmem:[#allocation93_spill] sm:$0xff] %v13073_v31  ;;  %3112 = vmatmul.bf16.gmra.mxu2 %v9241_v14  ;;  %v9261_v11 = vor.u32 %v11033_v47, %v9258_v19  ;;  %v9266_v47 = vld [vmem:[#allocation2 + $0x6f0] sm:$0xf0]  ;;  %v9272_v19 = vld [vmem:[#allocation2 + $0x6e8] sm:$0xf] }
 0x3a0   :  { %3161 = vmatmul.bf16.gmra.mxu3 %v9245_v51  ;;  %v9253_v51 = vor.u32 %v11032_v62, %v9250_v6  ;;  %v9264_v6 = vld [vmem:[#allocation2 + $0x6e0] sm:$0xf] }
 0x3a2   :  { %v2724_v15 = vpop.f32.mrf.mxu2 }
 0x3a3   :  { %v2773_v45 = vpop.f32.mrf.mxu3  ;;  %v2725_v1 = vadd.f32 %v2724_v15, %v2676_v57  ;;  %v2628_v48 = vpop.f32.mrf.mxu0  ;;  %v9257_v15 = vor.u32 %v11035_v35, %v9256_v50  ;;  %v11038_v50 = vld [vmem:[#allocation2 + $0x6ec] sm:$0xf0]  ;;  %v11036_v35 = vld [vmem:[#allocation2 + $0x6e4] sm:$0xf] }
 0x3a4   :  { %v2677_v42 = vpop.f32.mrf.mxu1 }
 0x3a5   :  { %v2678_v58 = vadd.f32 %v2677_v42, %v2628_v48  ;;  %v13077_v44 = vadd.f32 %v2773_v45, %v2725_v1 }
 0x3a7   :  { %14049 = vst [vmem:[#allocation94_spill] sm:$0xff] %v13077_v44 }
 0x3aa   :  { %v2726_v33 = vpop.f32.mrf.mxu2 }
 0x3ab   :  { %v2775_v24 = vpop.f32.mrf.mxu3  ;;  %v2727_v60 = vadd.f32 %v2726_v33, %v2678_v58  ;;  %v2631_v14 = vpop.f32.mrf.mxu0  ;;  %v11039_v33 = vld [vmem:[#allocation2 + $0x6f4] sm:$0xf0] }
 0x3ac   :  { %v2680_v57 = vpop.f32.mrf.mxu1 }
 0x3ad   :  { %v2681_v48 = vadd.f32 %v2680_v57, %v2631_v14  ;;  %v13079_v45 = vadd.f32 %v2775_v24, %v2727_v60  ;;  %v11037_v24 = vld [vmem:[#allocation2 + $0x6ec] sm:$0xf]  ;;  %v9265_v14 = vor.u32 %v11038_v50, %v9264_v6 }
 0x3ae   :  { %3019 = vmatmul.bf16.gmra.mxu0 %v9249_v12  ;;  %3068 = vmatmul.bf16.gmra.mxu1 %v9253_v51  ;;  %v9274_v12 = vld [vmem:[#allocation2 + $0x6f8] sm:$0xf0] }
 0x3af   :  { %14050 = vst [vmem:[#allocation95_spill] sm:$0xff] %v13079_v45  ;;  %3117 = vmatmul.bf16.gmra.mxu2 %v9257_v15  ;;  %v9277_v1 = vor.u32 %v11037_v24, %v9274_v12  ;;  %v9282_v24 = vld [vmem:[#allocation2 + $0x710] sm:$0xf0]  ;;  %v9288_v12 = vld [vmem:[#allocation2 + $0x708] sm:$0xf] }
 0x3b0   :  { %3166 = vmatmul.bf16.gmra.mxu3 %v9261_v11  ;;  %v9269_v11 = vor.u32 %v11036_v35, %v9266_v47  ;;  %v9280_v47 = vld [vmem:[#allocation2 + $0x700] sm:$0xf] }
 0x3b2   :  { %v2729_v42 = vpop.f32.mrf.mxu2 }
 0x3b3   :  { %v2778_v29 = vpop.f32.mrf.mxu3  ;;  %v2730_v41 = vadd.f32 %v2729_v42, %v2681_v48  ;;  %v2633_v43 = vpop.f32.mrf.mxu0  ;;  %v9273_v42 = vor.u32 %v11039_v33, %v9272_v19  ;;  %v11042_v19 = vld [vmem:[#allocation2 + $0x70c] sm:$0xf0]  ;;  %v11040_v33 = vld [vmem:[#allocation2 + $0x704] sm:$0xf] }
 0x3b4   :  { %v2682_v49 = vpop.f32.mrf.mxu1 }
 0x3b5   :  { %v2683_v58 = vadd.f32 %v2682_v49, %v2633_v43  ;;  %v13083_v62 = vadd.f32 %v2778_v29, %v2730_v41 }
 0x3b7   :  { %14051 = vst [vmem:[#allocation96_spill] sm:$0xff] %v13083_v62 }
 0x3ba   :  { %v2731_v51 = vpop.f32.mrf.mxu2 }
 0x3bb   :  { %v2780_v60 = vpop.f32.mrf.mxu3  ;;  %v2732_v57 = vadd.f32 %v2731_v51, %v2683_v58  ;;  %v2636_v15 = vpop.f32.mrf.mxu0  ;;  %v11043_v51 = vld [vmem:[#allocation2 + $0x714] sm:$0xf0] }
 0x3bc   :  { %v2685_v48 = vpop.f32.mrf.mxu1 }
 0x3bd   :  { %v2686_v43 = vadd.f32 %v2685_v48, %v2636_v15  ;;  %v13085_v29 = vadd.f32 %v2780_v60, %v2732_v57  ;;  %v11041_v60 = vld [vmem:[#allocation2 + $0x70c] sm:$0xf]  ;;  %v9281_v15 = vor.u32 %v11042_v19, %v9280_v47 }
 0x3be   :  { %3024 = vmatmul.bf16.gmra.mxu0 %v9265_v14  ;;  %3073 = vmatmul.bf16.gmra.mxu1 %v9269_v11  ;;  %v9290_v14 = vld [vmem:[#allocation2 + $0x718] sm:$0xf0] }
 0x3bf   :  { %14052 = vst [vmem:[#allocation97_spill] sm:$0xff] %v13085_v29  ;;  %3122 = vmatmul.bf16.gmra.mxu2 %v9273_v42  ;;  %v9293_v41 = vor.u32 %v11041_v60, %v9290_v14  ;;  %v9298_v60 = vld [vmem:[#allocation2 + $0x730] sm:$0xf0]  ;;  %v9304_v14 = vld [vmem:[#allocation2 + $0x728] sm:$0xf] }
 0x3c0   :  { %3171 = vmatmul.bf16.gmra.mxu3 %v9277_v1  ;;  %v9285_v1 = vor.u32 %v11040_v33, %v9282_v24  ;;  %v9296_v24 = vld [vmem:[#allocation2 + $0x720] sm:$0xf] }
 0x3c2   :  { %v2734_v49 = vpop.f32.mrf.mxu2 }
 0x3c3   :  { %v2783_v30 = vpop.f32.mrf.mxu3  ;;  %v2735_v54 = vadd.f32 %v2734_v49, %v2686_v43  ;;  %v2638_v6 = vpop.f32.mrf.mxu0  ;;  %v9289_v49 = vor.u32 %v11043_v51, %v9288_v12  ;;  %v11046_v12 = vld [vmem:[#allocation2 + $0x72c] sm:$0xf0]  ;;  %v11044_v51 = vld [vmem:[#allocation2 + $0x724] sm:$0xf] }
 0x3c4   :  { %v2687_v50 = vpop.f32.mrf.mxu1 }
 0x3c5   :  { %v2688_v58 = vadd.f32 %v2687_v50, %v2638_v6  ;;  %v13089_v35 = vadd.f32 %v2783_v30, %v2735_v54 }
 0x3c7   :  { %14053 = vst [vmem:[#allocation98_spill] sm:$0xff] %v13089_v35 }
 0x3ca   :  { %v2736_v11 = vpop.f32.mrf.mxu2 }
 0x3cb   :  { %v2785_v57 = vpop.f32.mrf.mxu3  ;;  %v2737_v48 = vadd.f32 %v2736_v11, %v2688_v58  ;;  %v2990_v42 = vpop.f32.mrf.mxu0  ;;  %v11047_v11 = vld [vmem:[#allocation2 + $0x734] sm:$0xf0] }
 0x3cc   :  { %v3039_v43 = vpop.f32.mrf.mxu1 }
 0x3cd   :  { %v3040_v6 = vadd.f32 %v3039_v43, %v2990_v42  ;;  %v13091_v54 = vadd.f32 %v2785_v57, %v2737_v48  ;;  %v11045_v57 = vld [vmem:[#allocation2 + $0x72c] sm:$0xf]  ;;  %v9297_v42 = vor.u32 %v11046_v12, %v9296_v24 }
 0x3ce   :  { %3378 = vmatmul.bf16.vlgmr.msrb.gmra.mxu0 %v9281_v15  ;;  %3427 = vmatmul.bf16.vlgmr.msrb.gmra.mxu1 %v9285_v1  ;;  %v9306_v15 = vld [vmem:[#allocation2 + $0x738] sm:$0xf0] }
 0x3cf   :  { %14054 = vst [vmem:[#allocation99_spill] sm:$0xff] %v13091_v54  ;;  %3476 = vmatmul.bf16.vlgmr.msrb.gmra.mxu2 %v9289_v49  ;;  %v9309_v30 = vor.u32 %v11045_v57, %v9306_v15  ;;  %v9314_v57 = vld [vmem:[#allocation2 + $0x750] sm:$0xf0]  ;;  %v9320_v15 = vld [vmem:[#allocation2 + $0x748] sm:$0xf] }
 0x3d0   :  { %3525 = vmatmul.bf16.vlgmr.msrb.gmra.mxu3 %v9293_v41  ;;  %v9301_v41 = vor.u32 %v11044_v51, %v9298_v60  ;;  %v9312_v60 = vld [vmem:[#allocation2 + $0x740] sm:$0xf] }
 0x3d2   :  { %v3088_v50 = vpop.f32.mrf.mxu2 }
 0x3d3   :  { %v3137_v37 = vpop.f32.mrf.mxu3  ;;  %v3089_v52 = vadd.f32 %v3088_v50, %v3040_v6  ;;  %v2992_v47 = vpop.f32.mrf.mxu0  ;;  %v9305_v50 = vor.u32 %v11047_v11, %v9304_v14  ;;  %v11050_v14 = vld [vmem:[#allocation2 + $0x74c] sm:$0xf0]  ;;  %v11048_v11 = vld [vmem:[#allocation2 + $0x744] sm:$0xf] }
 0x3d4   :  { %v3041_v19 = vpop.f32.mrf.mxu1 }
 0x3d5   :  { %v3042_v58 = vadd.f32 %v3041_v19, %v2992_v47  ;;  %v13095_v33 = vadd.f32 %v3137_v37, %v3089_v52 }
 0x3da   :  { %v3090_v1 = vpop.f32.mrf.mxu2 }
 0x3db   :  { %v3139_v48 = vpop.f32.mrf.mxu3  ;;  %v3091_v43 = vadd.f32 %v3090_v1, %v3042_v58  ;;  %v2995_v49 = vpop.f32.mrf.mxu0  ;;  %v11051_v1 = vld [vmem:[#allocation2 + $0x754] sm:$0xf0] }
 0x3dc   :  { %v3044_v6 = vpop.f32.mrf.mxu1 }
 0x3dd   :  { %v3045_v47 = vadd.f32 %v3044_v6, %v2995_v49  ;;  %v13097_v37 = vadd.f32 %v3139_v48, %v3091_v43  ;;  %v11049_v48 = vld [vmem:[#allocation2 + $0x74c] sm:$0xf]  ;;  %v9313_v49 = vor.u32 %v11050_v14, %v9312_v60 }
 0x3de   :  { %3383 = vmatmul.bf16.gmra.mxu0 %v9297_v42  ;;  %3432 = vmatmul.bf16.gmra.mxu1 %v9301_v41  ;;  %v9322_v42 = vld [vmem:[#allocation2 + $0x758] sm:$0xf0] }
 0x3df   :  { %3481 = vmatmul.bf16.gmra.mxu2 %v9305_v50  ;;  %v9325_v52 = vor.u32 %v11049_v48, %v9322_v42  ;;  %v9330_v48 = vld [vmem:[#allocation2 + $0x770] sm:$0xf0]  ;;  %v9336_v42 = vld [vmem:[#allocation2 + $0x768] sm:$0xf] }
 0x3e0   :  { %3530 = vmatmul.bf16.gmra.mxu3 %v9309_v30  ;;  %v9317_v30 = vor.u32 %v11048_v11, %v9314_v57  ;;  %v9328_v57 = vld [vmem:[#allocation2 + $0x760] sm:$0xf] }
 0x3e2   :  { %v3093_v19 = vpop.f32.mrf.mxu2 }
 0x3e3   :  { %v3142_v35 = vpop.f32.mrf.mxu3  ;;  %v3094_v54 = vadd.f32 %v3093_v19, %v3045_v47  ;;  %v2997_v24 = vpop.f32.mrf.mxu0  ;;  %v9321_v19 = vor.u32 %v11051_v1, %v9320_v15  ;;  %v11054_v15 = vld [vmem:[#allocation2 + $0x76c] sm:$0xf0]  ;;  %v11052_v1 = vld [vmem:[#allocation2 + $0x764] sm:$0xf] }
 0x3e4   :  { %v3046_v12 = vpop.f32.mrf.mxu1 }
 0x3e5   :  { %v3047_v58 = vadd.f32 %v3046_v12, %v2997_v24  ;;  %v13101_v51 = vadd.f32 %v3142_v35, %v3094_v54 }
 0x3ea   :  { %v3095_v41 = vpop.f32.mrf.mxu2 }
 0x3eb   :  { %v3144_v43 = vpop.f32.mrf.mxu3  ;;  %v3096_v6 = vadd.f32 %v3095_v41, %v3047_v58  ;;  %v3000_v50 = vpop.f32.mrf.mxu0  ;;  %v11055_v41 = vld [vmem:[#allocation2 + $0x774] sm:$0xf0] }
 0x3ec   :  { %v3049_v47 = vpop.f32.mrf.mxu1 }
 0x3ed   :  { %v3050_v24 = vadd.f32 %v3049_v47, %v3000_v50  ;;  %v13103_v35 = vadd.f32 %v3144_v43, %v3096_v6  ;;  %v11053_v43 = vld [vmem:[#allocation2 + $0x76c] sm:$0xf]  ;;  %v9329_v50 = vor.u32 %v11054_v15, %v9328_v57 }
 0x3ee   :  { %3388 = vmatmul.bf16.gmra.mxu0 %v9313_v49  ;;  %3437 = vmatmul.bf16.gmra.mxu1 %v9317_v30  ;;  %v9338_v49 = vld [vmem:[#allocation2 + $0x778] sm:$0xf0] }
 0x3ef   :  { %3486 = vmatmul.bf16.gmra.mxu2 %v9321_v19  ;;  %v9341_v54 = vor.u32 %v11053_v43, %v9338_v49  ;;  %v9346_v43 = vld [vmem:[#allocation2 + $0x790] sm:$0xf0]  ;;  %v9352_v49 = vld [vmem:[#allocation2 + $0x788] sm:$0xf] }
 0x3f0   :  { %3535 = vmatmul.bf16.gmra.mxu3 %v9325_v52  ;;  %v9333_v52 = vor.u32 %v11052_v1, %v9330_v48  ;;  %v9344_v48 = vld [vmem:[#allocation2 + $0x780] sm:$0xf] }
 0x3f2   :  { %v3098_v12 = vpop.f32.mrf.mxu2 }
 0x3f3   :  { %v3147_v62 = vpop.f32.mrf.mxu3  ;;  %v3099_v29 = vadd.f32 %v3098_v12, %v3050_v24  ;;  %v3002_v60 = vpop.f32.mrf.mxu0  ;;  %v9337_v12 = vor.u32 %v11055_v41, %v9336_v42  ;;  %v11058_v42 = vld [vmem:[#allocation2 + $0x78c] sm:$0xf0]  ;;  %v11056_v41 = vld [vmem:[#allocation2 + $0x784] sm:$0xf] }
 0x3f4   :  { %v3051_v14 = vpop.f32.mrf.mxu1 }
 0x3f5   :  { %v3052_v58 = vadd.f32 %v3051_v14, %v3002_v60  ;;  %v13107_v11 = vadd.f32 %v3147_v62, %v3099_v29 }
 0x3fa   :  { %v3100_v30 = vpop.f32.mrf.mxu2 }
 0x3fb   :  { %v3149_v6 = vpop.f32.mrf.mxu3  ;;  %v3101_v47 = vadd.f32 %v3100_v30, %v3052_v58  ;;  %v3005_v19 = vpop.f32.mrf.mxu0  ;;  %v11059_v30 = vld [vmem:[#allocation2 + $0x794] sm:$0xf0] }
 0x3fc   :  { %v3054_v24 = vpop.f32.mrf.mxu1 }
 0x3fd   :  { %v3055_v60 = vadd.f32 %v3054_v24, %v3005_v19  ;;  %v13109_v62 = vadd.f32 %v3149_v6, %v3101_v47  ;;  %v11057_v6 = vld [vmem:[#allocation2 + $0x78c] sm:$0xf]  ;;  %v9345_v19 = vor.u32 %v11058_v42, %v9344_v48 }
 0x3fe   :  { %3393 = vmatmul.bf16.gmra.mxu0 %v9329_v50  ;;  %3442 = vmatmul.bf16.gmra.mxu1 %v9333_v52  ;;  %v9354_v50 = vld [vmem:[#allocation2 + $0x798] sm:$0xf0] }
 0x3ff   :  { %3491 = vmatmul.bf16.gmra.mxu2 %v9337_v12  ;;  %v9357_v29 = vor.u32 %v11057_v6, %v9354_v50  ;;  %v9362_v6 = vld [vmem:[#allocation2 + $0x7b0] sm:$0xf0]  ;;  %v9368_v50 = vld [vmem:[#allocation2 + $0x7a8] sm:$0xf] }
 0x400   :  { %3540 = vmatmul.bf16.gmra.mxu3 %v9341_v54  ;;  %v9349_v54 = vor.u32 %v11056_v41, %v9346_v43  ;;  %v9360_v43 = vld [vmem:[#allocation2 + $0x7a0] sm:$0xf] }
 0x402   :  { %v3103_v14 = vpop.f32.mrf.mxu2 }
 0x403   :  { %v3152_v3 = vpop.f32.mrf.mxu3  ;;  %v3104_v27 = vadd.f32 %v3103_v14, %v3055_v60  ;;  %v3007_v57 = vpop.f32.mrf.mxu0  ;;  %v9353_v14 = vor.u32 %v11059_v30, %v9352_v49  ;;  %v11062_v49 = vld [vmem:[#allocation2 + $0x7ac] sm:$0xf0]  ;;  %v11060_v30 = vld [vmem:[#allocation2 + $0x7a4] sm:$0xf] }
 0x404   :  { %v3056_v15 = vpop.f32.mrf.mxu1 }
 0x405   :  { %v3057_v58 = vadd.f32 %v3056_v15, %v3007_v57  ;;  %v13113_v1 = vadd.f32 %v3152_v3, %v3104_v27 }
 0x407   :  { %14055 = vst [vmem:[#allocation100_spill] sm:$0xff] %v13113_v1  ;;  %v11119_v1 = vld [vmem:[#allocation5 + $0x78] sm:$0xff] }
 0x408   :  { %4656 = vmatpush.bf16.msrb.mxu1 %v11119_v1  ;;  %v11125_v1 = vld [vmem:[#allocation5 + $0xa8] sm:$0xff] }
 0x40a   :  { %v3105_v52 = vpop.f32.mrf.mxu2 }
 0x40b   :  { %v3154_v47 = vpop.f32.mrf.mxu3  ;;  %v3106_v24 = vadd.f32 %v3105_v52, %v3057_v58  ;;  %v3010_v12 = vpop.f32.mrf.mxu0  ;;  %v11063_v52 = vld [vmem:[#allocation2 + $0x7b4] sm:$0xf0] }
 0x40c   :  { %v3059_v60 = vpop.f32.mrf.mxu1 }
 0x40d   :  { %v3060_v57 = vadd.f32 %v3059_v60, %v3010_v12  ;;  %v13115_v3 = vadd.f32 %v3154_v47, %v3106_v24  ;;  %v11061_v47 = vld [vmem:[#allocation2 + $0x7ac] sm:$0xf]  ;;  %v9361_v12 = vor.u32 %v11062_v49, %v9360_v43 }
 0x40e   :  { %3398 = vmatmul.bf16.gmra.mxu0 %v9345_v19  ;;  %3447 = vmatmul.bf16.gmra.mxu1 %v9349_v54  ;;  %v9370_v19 = vld [vmem:[#allocation2 + $0x7b8] sm:$0xf0] }
 0x40f   :  { %14056 = vst [vmem:[#allocation101_spill] sm:$0xff] %v13115_v3  ;;  %3496 = vmatmul.bf16.gmra.mxu2 %v9353_v14  ;;  %v9373_v27 = vor.u32 %v11061_v47, %v9370_v19  ;;  %v9378_v47 = vld [vmem:[#allocation2 + $0x7d0] sm:$0xf0]  ;;  %v9384_v19 = vld [vmem:[#allocation2 + $0x7c8] sm:$0xf]  ;;  %v11127_v3 = vld [vmem:[#allocation5 + $0xb8] sm:$0xff] }
 0x410   :  { %3545 = vmatmul.bf16.gmra.mxu3 %v9357_v29  ;;  %v9365_v29 = vor.u32 %v11060_v30, %v9362_v6  ;;  %v9376_v6 = vld [vmem:[#allocation2 + $0x7c0] sm:$0xf]  ;;  %4705 = vmatpush.bf16.msrb.mxu2 %v11127_v3 }
 0x411   :  { %v9488_v3 = vld [vmem:[#allocation2 + $0x8a0] sm:$0xf] }
 0x412   :  { %v3108_v15 = vpop.f32.mrf.mxu2 }
 0x413   :  { %v3157_v44 = vpop.f32.mrf.mxu3  ;;  %v3109_v45 = vadd.f32 %v3108_v15, %v3060_v57  ;;  %v3012_v48 = vpop.f32.mrf.mxu0  ;;  %v9369_v15 = vor.u32 %v11063_v52, %v9368_v50  ;;  %v11066_v50 = vld [vmem:[#allocation2 + $0x7cc] sm:$0xf0]  ;;  %v11064_v52 = vld [vmem:[#allocation2 + $0x7c4] sm:$0xf] }
 0x414   :  { %v3061_v42 = vpop.f32.mrf.mxu1 }
 0x415   :  { %v3062_v58 = vadd.f32 %v3061_v42, %v3012_v48  ;;  %v13119_v41 = vadd.f32 %v3157_v44, %v3109_v45 }
 0x417   :  { %14057 = vst [vmem:[#allocation102_spill] sm:$0xff] %v13119_v41 }
 0x41a   :  { %v3110_v54 = vpop.f32.mrf.mxu2 }
 0x41b   :  { %v3159_v24 = vpop.f32.mrf.mxu3  ;;  %v3111_v60 = vadd.f32 %v3110_v54, %v3062_v58  ;;  %v3015_v14 = vpop.f32.mrf.mxu0  ;;  %v11067_v54 = vld [vmem:[#allocation2 + $0x7d4] sm:$0xf0] }
 0x41c   :  { %v3064_v57 = vpop.f32.mrf.mxu1 }
 0x41d   :  { %v3065_v48 = vadd.f32 %v3064_v57, %v3015_v14  ;;  %v13121_v44 = vadd.f32 %v3159_v24, %v3111_v60  ;;  %v11065_v24 = vld [vmem:[#allocation2 + $0x7cc] sm:$0xf]  ;;  %v9377_v14 = vor.u32 %v11066_v50, %v9376_v6 }
 0x41e   :  { %3403 = vmatmul.bf16.gmra.mxu0 %v9361_v12  ;;  %3452 = vmatmul.bf16.gmra.mxu1 %v9365_v29  ;;  %v9386_v12 = vld [vmem:[#allocation2 + $0x7d8] sm:$0xf0] }
 0x41f   :  { %14058 = vst [vmem:[#allocation103_spill] sm:$0xff] %v13121_v44  ;;  %3501 = vmatmul.bf16.gmra.mxu2 %v9369_v15  ;;  %v9389_v45 = vor.u32 %v11065_v24, %v9386_v12  ;;  %v9394_v24 = vld [vmem:[#allocation2 + $0x7f0] sm:$0xf0]  ;;  %v9400_v12 = vld [vmem:[#allocation2 + $0x7e8] sm:$0xf] }
 0x420   :  { %3550 = vmatmul.bf16.gmra.mxu3 %v9373_v27  ;;  %v9381_v27 = vor.u32 %v11064_v52, %v9378_v47  ;;  %v9392_v47 = vld [vmem:[#allocation2 + $0x7e0] sm:$0xf] }
 0x422   :  { %v3113_v42 = vpop.f32.mrf.mxu2 }
 0x423   :  { %v3162_v25 = vpop.f32.mrf.mxu3  ;;  %v3114_v26 = vadd.f32 %v3113_v42, %v3065_v48  ;;  %v3017_v43 = vpop.f32.mrf.mxu0  ;;  %v9385_v42 = vor.u32 %v11067_v54, %v9384_v19  ;;  %v11070_v19 = vld [vmem:[#allocation2 + $0x7ec] sm:$0xf0]  ;;  %v11068_v54 = vld [vmem:[#allocation2 + $0x7e4] sm:$0xf] }
 0x424   :  { %v3066_v49 = vpop.f32.mrf.mxu1 }
 0x425   :  { %v3067_v58 = vadd.f32 %v3066_v49, %v3017_v43  ;;  %v13125_v30 = vadd.f32 %v3162_v25, %v3114_v26 }
 0x427   :  { %14059 = vst [vmem:[#allocation104_spill] sm:$0xff] %v13125_v30 }
 0x42a   :  { %v3115_v29 = vpop.f32.mrf.mxu2 }
 0x42b   :  { %v3164_v60 = vpop.f32.mrf.mxu3  ;;  %v3116_v57 = vadd.f32 %v3115_v29, %v3067_v58  ;;  %v3020_v15 = vpop.f32.mrf.mxu0  ;;  %v11071_v29 = vld [vmem:[#allocation2 + $0x7f4] sm:$0xf0] }
 0x42c   :  { %v3069_v48 = vpop.f32.mrf.mxu1 }
 0x42d   :  { %v3070_v43 = vadd.f32 %v3069_v48, %v3020_v15  ;;  %v13127_v25 = vadd.f32 %v3164_v60, %v3116_v57  ;;  %v11069_v60 = vld [vmem:[#allocation2 + $0x7ec] sm:$0xf]  ;;  %v9393_v15 = vor.u32 %v11070_v19, %v9392_v47 }
 0x42e   :  { %3408 = vmatmul.bf16.gmra.mxu0 %v9377_v14  ;;  %3457 = vmatmul.bf16.gmra.mxu1 %v9381_v27  ;;  %v9402_v14 = vld [vmem:[#allocation2 + $0x7f8] sm:$0xf0] }
 0x42f   :  { %14060 = vst [vmem:[#allocation105_spill] sm:$0xff] %v13127_v25  ;;  %3506 = vmatmul.bf16.gmra.mxu2 %v9385_v42  ;;  %v9405_v26 = vor.u32 %v11069_v60, %v9402_v14  ;;  %v9410_v60 = vld [vmem:[#allocation2 + $0x810] sm:$0xf0]  ;;  %v9416_v14 = vld [vmem:[#allocation2 + $0x808] sm:$0xf] }
 0x430   :  { %3555 = vmatmul.bf16.gmra.mxu3 %v9389_v45  ;;  %v9397_v45 = vor.u32 %v11068_v54, %v9394_v24  ;;  %v9408_v24 = vld [vmem:[#allocation2 + $0x800] sm:$0xf] }
 0x432   :  { %v3118_v49 = vpop.f32.mrf.mxu2 }
 0x433   :  { %v3167_v41 = vpop.f32.mrf.mxu3  ;;  %v3119_v44 = vadd.f32 %v3118_v49, %v3070_v43  ;;  %v3022_v6 = vpop.f32.mrf.mxu0  ;;  %v9401_v49 = vor.u32 %v11071_v29, %v9400_v12  ;;  %v11074_v12 = vld [vmem:[#allocation2 + $0x80c] sm:$0xf0]  ;;  %v11072_v29 = vld [vmem:[#allocation2 + $0x804] sm:$0xf] }
 0x434   :  { %v3071_v50 = vpop.f32.mrf.mxu1 }
 0x435   :  { %v3072_v58 = vadd.f32 %v3071_v50, %v3022_v6  ;;  %v13131_v52 = vadd.f32 %v3167_v41, %v3119_v44 }
 0x437   :  { %14061 = vst [vmem:[#allocation106_spill] sm:$0xff] %v13131_v52 }
 0x43a   :  { %v3120_v27 = vpop.f32.mrf.mxu2 }
 0x43b   :  { %v3169_v57 = vpop.f32.mrf.mxu3  ;;  %v3121_v48 = vadd.f32 %v3120_v27, %v3072_v58  ;;  %v3025_v42 = vpop.f32.mrf.mxu0  ;;  %v11075_v27 = vld [vmem:[#allocation2 + $0x814] sm:$0xf0] }
 0x43c   :  { %v3074_v43 = vpop.f32.mrf.mxu1 }
 0x43d   :  { %v3075_v6 = vadd.f32 %v3074_v43, %v3025_v42  ;;  %v13133_v41 = vadd.f32 %v3169_v57, %v3121_v48  ;;  %v11073_v57 = vld [vmem:[#allocation2 + $0x80c] sm:$0xf]  ;;  %v9409_v42 = vor.u32 %v11074_v12, %v9408_v24 }
 0x43e   :  { %3413 = vmatmul.bf16.gmra.mxu0 %v9393_v15  ;;  %3462 = vmatmul.bf16.gmra.mxu1 %v9397_v45  ;;  %v9418_v15 = vld [vmem:[#allocation2 + $0x818] sm:$0xf0] }
 0x43f   :  { %14062 = vst [vmem:[#allocation107_spill] sm:$0xff] %v13133_v41  ;;  %3511 = vmatmul.bf16.gmra.mxu2 %v9401_v49  ;;  %v9421_v44 = vor.u32 %v11073_v57, %v9418_v15  ;;  %v9426_v57 = vld [vmem:[#allocation2 + $0x830] sm:$0xf0]  ;;  %v9432_v15 = vld [vmem:[#allocation2 + $0x828] sm:$0xf] }
 0x440   :  { %3560 = vmatmul.bf16.gmra.mxu3 %v9405_v26  ;;  %v9413_v26 = vor.u32 %v11072_v29, %v9410_v60  ;;  %v9424_v60 = vld [vmem:[#allocation2 + $0x820] sm:$0xf] }
 0x442   :  { %v3123_v50 = vpop.f32.mrf.mxu2 }
 0x443   :  { %v3172_v30 = vpop.f32.mrf.mxu3  ;;  %v3124_v25 = vadd.f32 %v3123_v50, %v3075_v6  ;;  %v3027_v47 = vpop.f32.mrf.mxu0  ;;  %v9417_v50 = vor.u32 %v11075_v27, %v9416_v14  ;;  %v11078_v14 = vld [vmem:[#allocation2 + $0x82c] sm:$0xf0]  ;;  %v11076_v27 = vld [vmem:[#allocation2 + $0x824] sm:$0xf] }
 0x444   :  { %v3076_v19 = vpop.f32.mrf.mxu1 }
 0x445   :  { %v3077_v58 = vadd.f32 %v3076_v19, %v3027_v47  ;;  %v13137_v54 = vadd.f32 %v3172_v30, %v3124_v25 }
 0x447   :  { %14063 = vst [vmem:[#allocation108_spill] sm:$0xff] %v13137_v54 }
 0x44a   :  { %v3125_v45 = vpop.f32.mrf.mxu2 }
 0x44b   :  { %v3174_v48 = vpop.f32.mrf.mxu3  ;;  %v3126_v43 = vadd.f32 %v3125_v45, %v3077_v58  ;;  %v3379_v49 = vpop.f32.mrf.mxu0  ;;  %v11079_v45 = vld [vmem:[#allocation2 + $0x834] sm:$0xf0] }
 0x44c   :  { %v3428_v6 = vpop.f32.mrf.mxu1 }
 0x44d   :  { %v3429_v47 = vadd.f32 %v3428_v6, %v3379_v49  ;;  %v13139_v30 = vadd.f32 %v3174_v48, %v3126_v43  ;;  %v11077_v48 = vld [vmem:[#allocation2 + $0x82c] sm:$0xf]  ;;  %v9425_v49 = vor.u32 %v11078_v14, %v9424_v60 }
 0x44e   :  { %3767 = vmatmul.bf16.vlgmr.msra.gmra.mxu0 %v9409_v42  ;;  %3816 = vmatmul.bf16.vlgmr.msra.gmra.mxu1 %v9413_v26  ;;  %v9434_v42 = vld [vmem:[#allocation2 + $0x838] sm:$0xf0] }
 0x44f   :  { %14064 = vst [vmem:[#allocation109_spill] sm:$0xff] %v13139_v30  ;;  %3865 = vmatmul.bf16.vlgmr.msra.gmra.mxu2 %v9417_v50  ;;  %v9437_v25 = vor.u32 %v11077_v48, %v9434_v42  ;;  %v9442_v48 = vld [vmem:[#allocation2 + $0x850] sm:$0xf0]  ;;  %v9448_v42 = vld [vmem:[#allocation2 + $0x848] sm:$0xf] }
 0x450   :  { %3914 = vmatmul.bf16.vlgmr.msra.gmra.mxu3 %v9421_v44  ;;  %v9429_v44 = vor.u32 %v11076_v27, %v9426_v57  ;;  %v9440_v57 = vld [vmem:[#allocation2 + $0x840] sm:$0xf] }
 0x452   :  { %v3477_v19 = vpop.f32.mrf.mxu2 }
 0x453   :  { %v3526_v52 = vpop.f32.mrf.mxu3  ;;  %v3478_v41 = vadd.f32 %v3477_v19, %v3429_v47  ;;  %v3381_v24 = vpop.f32.mrf.mxu0  ;;  %v9433_v19 = vor.u32 %v11079_v45, %v9432_v15  ;;  %v11082_v15 = vld [vmem:[#allocation2 + $0x84c] sm:$0xf0]  ;;  %v11080_v45 = vld [vmem:[#allocation2 + $0x844] sm:$0xf] }
 0x454   :  { %v3430_v12 = vpop.f32.mrf.mxu1 }
 0x455   :  { %v3431_v58 = vadd.f32 %v3430_v12, %v3381_v24  ;;  %v13143_v29 = vadd.f32 %v3526_v52, %v3478_v41 }
 0x45a   :  { %v3479_v26 = vpop.f32.mrf.mxu2 }
 0x45b   :  { %v3528_v43 = vpop.f32.mrf.mxu3  ;;  %v3480_v6 = vadd.f32 %v3479_v26, %v3431_v58  ;;  %v3384_v50 = vpop.f32.mrf.mxu0  ;;  %v11083_v26 = vld [vmem:[#allocation2 + $0x854] sm:$0xf0] }
 0x45c   :  { %v3433_v47 = vpop.f32.mrf.mxu1 }
 0x45d   :  { %v3434_v24 = vadd.f32 %v3433_v47, %v3384_v50  ;;  %v13145_v52 = vadd.f32 %v3528_v43, %v3480_v6  ;;  %v11081_v43 = vld [vmem:[#allocation2 + $0x84c] sm:$0xf]  ;;  %v9441_v50 = vor.u32 %v11082_v15, %v9440_v57 }
 0x45e   :  { %3772 = vmatmul.bf16.gmra.mxu0 %v9425_v49  ;;  %3821 = vmatmul.bf16.gmra.mxu1 %v9429_v44  ;;  %v9450_v49 = vld [vmem:[#allocation2 + $0x858] sm:$0xf0] }
 0x45f   :  { %3870 = vmatmul.bf16.gmra.mxu2 %v9433_v19  ;;  %v9453_v41 = vor.u32 %v11081_v43, %v9450_v49  ;;  %v9458_v43 = vld [vmem:[#allocation2 + $0x870] sm:$0xf0]  ;;  %v9464_v49 = vld [vmem:[#allocation2 + $0x868] sm:$0xf] }
 0x460   :  { %3919 = vmatmul.bf16.gmra.mxu3 %v9437_v25  ;;  %v9445_v25 = vor.u32 %v11080_v45, %v9442_v48  ;;  %v9456_v48 = vld [vmem:[#allocation2 + $0x860] sm:$0xf] }
 0x462   :  { %v3482_v12 = vpop.f32.mrf.mxu2 }
 0x463   :  { %v3531_v54 = vpop.f32.mrf.mxu3  ;;  %v3483_v30 = vadd.f32 %v3482_v12, %v3434_v24  ;;  %v3386_v60 = vpop.f32.mrf.mxu0  ;;  %v9449_v12 = vor.u32 %v11083_v26, %v9448_v42  ;;  %v11086_v42 = vld [vmem:[#allocation2 + $0x86c] sm:$0xf0]  ;;  %v11084_v26 = vld [vmem:[#allocation2 + $0x864] sm:$0xf] }
 0x464   :  { %v3435_v14 = vpop.f32.mrf.mxu1 }
 0x465   :  { %v3436_v58 = vadd.f32 %v3435_v14, %v3386_v60  ;;  %v13149_v27 = vadd.f32 %v3531_v54, %v3483_v30 }
 0x46a   :  { %v3484_v44 = vpop.f32.mrf.mxu2 }
 0x46b   :  { %v3533_v6 = vpop.f32.mrf.mxu3  ;;  %v3485_v47 = vadd.f32 %v3484_v44, %v3436_v58  ;;  %v3389_v19 = vpop.f32.mrf.mxu0  ;;  %v11087_v44 = vld [vmem:[#allocation2 + $0x874] sm:$0xf0] }
 0x46c   :  { %v3438_v24 = vpop.f32.mrf.mxu1 }
 0x46d   :  { %v3439_v60 = vadd.f32 %v3438_v24, %v3389_v19  ;;  %v13151_v54 = vadd.f32 %v3533_v6, %v3485_v47  ;;  %v11085_v6 = vld [vmem:[#allocation2 + $0x86c] sm:$0xf]  ;;  %v9457_v19 = vor.u32 %v11086_v42, %v9456_v48 }
 0x46e   :  { %3777 = vmatmul.bf16.gmra.mxu0 %v9441_v50  ;;  %3826 = vmatmul.bf16.gmra.mxu1 %v9445_v25  ;;  %v9466_v50 = vld [vmem:[#allocation2 + $0x878] sm:$0xf0] }
 0x46f   :  { %3875 = vmatmul.bf16.gmra.mxu2 %v9449_v12  ;;  %v9469_v30 = vor.u32 %v11085_v6, %v9466_v50  ;;  %v9474_v6 = vld [vmem:[#allocation2 + $0x890] sm:$0xf0]  ;;  %v9480_v50 = vld [vmem:[#allocation2 + $0x888] sm:$0xf] }
 0x470   :  { %3924 = vmatmul.bf16.gmra.mxu3 %v9453_v41  ;;  %v9461_v41 = vor.u32 %v11084_v26, %v9458_v43  ;;  %v9472_v43 = vld [vmem:[#allocation2 + $0x880] sm:$0xf] }
 0x472   :  { %v3487_v14 = vpop.f32.mrf.mxu2 }
 0x473   :  { %v3536_v9 = vpop.f32.mrf.mxu3  ;;  %v3488_v31 = vadd.f32 %v3487_v14, %v3439_v60  ;;  %v3391_v57 = vpop.f32.mrf.mxu0  ;;  %v9465_v14 = vor.u32 %v11087_v44, %v9464_v49  ;;  %v11090_v49 = vld [vmem:[#allocation2 + $0x88c] sm:$0xf0]  ;;  %v11088_v44 = vld [vmem:[#allocation2 + $0x884] sm:$0xf] }
 0x474   :  { %v3440_v15 = vpop.f32.mrf.mxu1 }
 0x475   :  { %v3441_v58 = vadd.f32 %v3440_v15, %v3391_v57  ;;  %v13155_v45 = vadd.f32 %v3536_v9, %v3488_v31 }
 0x47a   :  { %v3489_v25 = vpop.f32.mrf.mxu2 }
 0x47b   :  { %v3538_v47 = vpop.f32.mrf.mxu3  ;;  %v3490_v24 = vadd.f32 %v3489_v25, %v3441_v58  ;;  %v3394_v12 = vpop.f32.mrf.mxu0  ;;  %v11091_v25 = vld [vmem:[#allocation2 + $0x894] sm:$0xf0] }
 0x47c   :  { %v3443_v60 = vpop.f32.mrf.mxu1 }
 0x47d   :  { %v3444_v57 = vadd.f32 %v3443_v60, %v3394_v12  ;;  %v13157_v9 = vadd.f32 %v3538_v47, %v3490_v24  ;;  %v11089_v47 = vld [vmem:[#allocation2 + $0x88c] sm:$0xf]  ;;  %v9473_v12 = vor.u32 %v11090_v49, %v9472_v43  ;;  %v11135_v43 = vld [vmem:[#allocation5 + $0xf8] sm:$0xff] }
 0x47e   :  { %3782 = vmatmul.bf16.gmra.mxu0 %v9457_v19  ;;  %3831 = vmatmul.bf16.gmra.mxu1 %v9461_v41  ;;  %v9482_v19 = vld [vmem:[#allocation2 + $0x898] sm:$0xf0] }
 0x47f   :  { %3880 = vmatmul.bf16.gmra.mxu2 %v9465_v14  ;;  %v9485_v31 = vor.u32 %v11089_v47, %v9482_v19  ;;  %4754 = vmatpush.bf16.msrb.mxu3 %v11135_v43  ;;  %v11093_v43 = vld [vmem:[#allocation2 + $0x8ac] sm:$0xf] }
 0x480   :  { %3929 = vmatmul.bf16.gmra.mxu3 %v9469_v30  ;;  %v9477_v30 = vor.u32 %v11088_v44, %v9474_v6  ;;  %v11110_v44 = vld [vmem:[#allocation5 + $0x30] sm:$0xff] }
 0x481   :  { %v11118_v6 = vld [vmem:[#allocation5 + $0x70] sm:$0xff] }
 0x482   :  { %v3492_v15 = vpop.f32.mrf.mxu2  ;;  %4657 = vmatpush.bf16.msrb.mxu1 %v11118_v6 }
 0x483   :  { %v3541_v2 = vpop.f32.mrf.mxu3  ;;  %v3493_v39 = vadd.f32 %v3492_v15, %v3444_v57  ;;  %v3396_v48 = vpop.f32.mrf.mxu0  ;;  %v9481_v15 = vor.u32 %v11091_v25, %v9480_v50  ;;  %v11126_v50 = vld [vmem:[#allocation5 + $0xb0] sm:$0xff] }
 0x484   :  { %v3445_v42 = vpop.f32.mrf.mxu1  ;;  %4706 = vmatpush.bf16.msrb.mxu2 %v11126_v50 }
 0x485   :  { %v3446_v58 = vadd.f32 %v3445_v42, %v3396_v48  ;;  %v13161_v26 = vadd.f32 %v3541_v2, %v3493_v39  ;;  %v11111_v39 = vld [vmem:[#allocation5 + $0x38] sm:$0xff] }
 0x486   :  { %4607 = vmatpush.bf16.msrb.mxu0 %v11111_v39  ;;  %v9496_v39 = vld [vmem:[#allocation2 + $0x8a8] sm:$0xf] }
 0x487   :  { %14065 = vst [vmem:[#allocation110_spill] sm:$0xff] %v13161_v26 }
 0x488   :  { %4707 = vmatpush.bf16.msrb.mxu2 %v11125_v1  ;;  %v11123_v1 = vld [vmem:[#allocation5 + $0x98] sm:$0xff] }
 0x48a   :  { %v3494_v41 = vpop.f32.mrf.mxu2  ;;  %4608 = vmatpush.bf16.msrb.mxu0 %v11110_v44 }
 0x48b   :  { %v3543_v24 = vpop.f32.mrf.mxu3  ;;  %v3495_v60 = vadd.f32 %v3494_v41, %v3446_v58  ;;  %v3399_v14 = vpop.f32.mrf.mxu0  ;;  %v11134_v41 = vld [vmem:[#allocation5 + $0xf0] sm:$0xff] }
 0x48c   :  { %v3448_v57 = vpop.f32.mrf.mxu1  ;;  %4755 = vmatpush.bf16.msrb.mxu3 %v11134_v41 }
 0x48d   :  { %v3449_v48 = vadd.f32 %v3448_v57, %v3399_v14  ;;  %v13163_v2 = vadd.f32 %v3543_v24, %v3495_v60  ;;  %v11094_v60 = vld [vmem:[#allocation2 + $0x8ac] sm:$0xf0]  ;;  %v11133_v14 = vld [vmem:[#allocation5 + $0xe8] sm:$0xff]  ;;  %v11092_v57 = vld [vmem:[#allocation2 + $0x8a4] sm:$0xf] }
 0x48e   :  { %3787 = vmatmul.bf16.gmra.mxu0 %v9473_v12  ;;  %3836 = vmatmul.bf16.gmra.mxu1 %v9477_v30  ;;  %v11117_v30 = vld [vmem:[#allocation5 + $0x68] sm:$0xff]  ;;  %v9489_v6 = vor.u32 %v11094_v60, %v9488_v3  ;;  %v11131_v3 = vld [vmem:[#allocation5 + $0xd8] sm:$0xff]  ;;  %v11106_v60 = vld [vmem:[#allocation5 + $0x10] sm:$0xff] }
 0x48f   :  { %14066 = vst [vmem:[#allocation111_spill] sm:$0xff] %v13163_v2  ;;  %3885 = vmatmul.bf16.gmra.mxu2 %v9481_v15  ;;  %v9490_v15 = vld [vmem:[#allocation2 + $0x8b0] sm:$0xf0]  ;;  %4658 = vmatpush.bf16.msrb.mxu1 %v11117_v30 }
 0x490   :  { %3934 = vmatmul.bf16.gmra.mxu3 %v9485_v31  ;;  %v11109_v31 = vld [vmem:[#allocation5 + $0x28] sm:$0xff]  ;;  %v9493_v50 = vor.u32 %v11092_v57, %v9490_v15  ;;  %v11122_v57 = vld [vmem:[#allocation5 + $0x90] sm:$0xff] }
 0x491   :  { %4609 = vmatpush.bf16.msrb.mxu0 %v11109_v31  ;;  %4756 = vmatpush.bf16.msrb.mxu3 %v11133_v14  ;;  %v11107_v31 = vld [vmem:[#allocation5 + $0x18] sm:$0xff]  ;;  %v11114_v14 = vld [vmem:[#allocation5 + $0x50] sm:$0xff] }
 0x492   :  { %v3497_v58 = vpop.f32.mrf.mxu2 }
 0x493   :  { %v3546_v49 = vpop.f32.mrf.mxu3  ;;  %v3498_v25 = vadd.f32 %v3497_v58, %v3449_v48  ;;  %v3401_v47 = vpop.f32.mrf.mxu0  ;;  %v11095_v48 = vld [vmem:[#allocation2 + $0x8b4] sm:$0xf0]  ;;  %v9498_v58 = vld [vmem:[#allocation2 + $0x8b8] sm:$0xf0] }
 0x494   :  { %v3450_v19 = vpop.f32.mrf.mxu1  ;;  %v9497_v2 = vor.u32 %v11095_v48, %v9496_v39  ;;  %v9501_v5 = vor.u32 %v11093_v43, %v9498_v58  ;;  %v11113_v58 = vld [vmem:[#allocation5 + $0x48] sm:$0xff] }
 0x495   :  { %v3451_v24 = vadd.f32 %v3450_v19, %v3401_v47  ;;  %v13167_v12 = vadd.f32 %v3546_v49, %v3498_v25  ;;  %v11108_v25 = vld [vmem:[#allocation5 + $0x20] sm:$0xff]  ;;  %4757 = vmatpush.bf16.msrb.mxu3 %v11132_v7  ;;  %v11105_v7 = vld [vmem:[#allocation5 + $0x8] sm:$0xff] }
 0x496   :  { %v11116_v47 = vld [vmem:[#allocation5 + $0x60] sm:$0xff]  ;;  %4610 = vmatpush.bf16.msrb.mxu0 %v11108_v25  ;;  %v9506_v25 = vld [vmem:[#allocation2 + $0x8d0] sm:$0xf0] }
 0x497   :  { %14067 = vst [vmem:[#allocation112_spill] sm:$0xff] %v13167_v12  ;;  %v11124_v19 = vld [vmem:[#allocation5 + $0xa0] sm:$0xff]  ;;  %4659 = vmatpush.bf16.msrb.mxu1 %v11116_v47  ;;  %v9512_v47 = vld [vmem:[#allocation2 + $0x8c8] sm:$0xf] }
 0x498   :  { %4708 = vmatpush.bf16.msrb.mxu2 %v11124_v19  ;;  %v11099_v19 = vld [vmem:[#allocation2 + $0x8d4] sm:$0xf0] }
 0x499   :  { %4758 = vmatpush.bf16.msrb.mxu3 %v11131_v3 }
 0x49a   :  { %v3499_v49 = vpop.f32.mrf.mxu2  ;;  %4611 = vmatpush.bf16.msrb.mxu0 %v11107_v31  ;;  %v11129_v31 = vld [vmem:[#allocation5 + $0xc8] sm:$0xff] }
 0x49b   :  { %v3548_v44 = vpop.f32.mrf.mxu3  ;;  %v3500_v42 = vadd.f32 %v3499_v49, %v3451_v24  ;;  %v3404_v41 = vpop.f32.mrf.mxu0  ;;  %v11115_v24 = vld [vmem:[#allocation5 + $0x58] sm:$0xff]  ;;  %v11121_v49 = vld [vmem:[#allocation5 + $0x88] sm:$0xff] }
 0x49c   :  { %v3453_v26 = vpop.f32.mrf.mxu1  ;;  %4660 = vmatpush.bf16.msrb.mxu1 %v11115_v24  ;;  %4709 = vmatpush.bf16.msrb.mxu2 %v11123_v1 }
 0x49d   :  { %v3454_v36 = vadd.f32 %v3453_v26, %v3404_v41  ;;  %v13169_v0 = vadd.f32 %v3548_v44, %v3500_v42  ;;  %v9504_v44 = vld [vmem:[#allocation2 + $0x8c0] sm:$0xf]  ;;  %v9514_v41 = vld [vmem:[#allocation2 + $0x8d8] sm:$0xf0] }
 0x49e   :  { %3792 = vmatmul.bf16.gmra.mxu0 %v9489_v6  ;;  %3841 = vmatmul.bf16.gmra.mxu1 %v9493_v50  ;;  %v11098_v6 = vld [vmem:[#allocation2 + $0x8cc] sm:$0xf0]  ;;  %v11096_v50 = vld [vmem:[#allocation2 + $0x8c4] sm:$0xf] }
 0x49f   :  { %3890 = vmatmul.bf16.gmra.mxu2 %v9497_v2  ;;  %4612 = vmatpush.bf16.msrb.mxu0 %v11106_v60  ;;  %v11130_v2 = vld [vmem:[#allocation5 + $0xd0] sm:$0xff]  ;;  %v9505_v3 = vor.u32 %v11098_v6, %v9504_v44  ;;  %v11112_v60 = vld [vmem:[#allocation5 + $0x40] sm:$0xff] }
 0x4a0   :  { %3939 = vmatmul.bf16.gmra.mxu3 %v9501_v5  ;;  %4661 = vmatpush.bf16.msrb.mxu1 %v11114_v14  ;;  %v11120_v14 = vld [vmem:[#allocation5 + $0x80] sm:$0xff] }
 0x4a1   :  { %4710 = vmatpush.bf16.msrb.mxu2 %v11122_v57  ;;  %4759 = vmatpush.bf16.msrb.mxu3 %v11130_v2  ;;  %v11128_v2 = vld [vmem:[#allocation5 + $0xc0] sm:$0xff] }
 0x4a2   :  { %v3502_v26 = vpop.f32.mrf.mxu2 }
 0x4a3   :  { %v3551_v42 = vpop.f32.mrf.mxu3  ;;  %v3503_v15 = vadd.f32 %v3502_v26, %v3454_v36  ;;  %v3406_v39 = vpop.f32.mrf.mxu0  ;;  %v11097_v36 = vld [vmem:[#allocation2 + $0x8cc] sm:$0xf]  ;;  %4613 = vmatpush.bf16.msrb.mxu0 %v11105_v7  ;;  %v9509_v26 = vor.u32 %v11096_v50, %v9506_v25 }
 0x4a4   :  { %v3455_v48 = vpop.f32.mrf.mxu1  ;;  %4662 = vmatpush.bf16.msrb.mxu1 %v11113_v58  ;;  %v9517_v30 = vor.u32 %v11097_v36, %v9514_v41  ;;  %v11102_v36 = vld [vmem:[#allocation2 + $0x8ec] sm:$0xf0]  ;;  %v11100_v41 = vld [vmem:[#allocation2 + $0x8e4] sm:$0xf] }
 0x4a5   :  { %v3456_v43 = vadd.f32 %v3455_v48, %v3406_v39  ;;  %v13173_v5 = vadd.f32 %v3551_v42, %v3503_v15  ;;  %4711 = vmatpush.bf16.msrb.mxu2 %v11121_v49  ;;  %v11104_v42 = vld [vmem:[#allocation5] sm:$0xff]  ;;  %v9513_v48 = vor.u32 %v11099_v19, %v9512_v47  ;;  %4760 = vmatpush.bf16.msrb.mxu3 %v11129_v31  ;;  %v9522_v31 = vld [vmem:[#allocation2 + $0x8f0] sm:$0xf0] }
 0x4a6   :  { %v9520_v19 = vld [vmem:[#allocation2 + $0x8e0] sm:$0xf] }
 0x4a7   :  { %4614 = vmatpush.bf16.msrb.mxu0 %v11104_v42 }
 0x4a8   :  { %4663 = vmatpush.bf16.msrb.mxu1 %v11112_v60 }
 0x4a9   :  { %4712 = vmatpush.bf16.msrb.mxu2 %v11120_v14  ;;  %4761 = vmatpush.bf16.msrb.mxu3 %v11128_v2  ;;  %v9525_v14 = vor.u32 %v11100_v41, %v9522_v31 }
 0x4aa   :  { %v3504_v24 = vpop.f32.mrf.mxu2 }
 0x4ab   :  { %v3553_v1 = vpop.f32.mrf.mxu3  ;;  %v3505_v57 = vadd.f32 %v3504_v24, %v3456_v43  ;;  %v3409_v15 = vpop.f32.mrf.mxu0  ;;  %v9528_v24 = vld [vmem:[#allocation2 + $0x8e8] sm:$0xf] }
 0x4ac   :  { %v3458_v39 = vpop.f32.mrf.mxu1 }
 0x4ad   :  { %v3459_v12 = vadd.f32 %v3458_v39, %v3409_v15  ;;  %v13175_v7 = vadd.f32 %v3553_v1, %v3505_v57  ;;  %v11103_v1 = vld [vmem:[#allocation2 + $0x8f4] sm:$0xf0] }
 0x4ae   :  { %3797 = vmatmul.bf16.gmra.mxu0 %v9505_v3  ;;  %3846 = vmatmul.bf16.gmra.mxu1 %v9509_v26  ;;  %v11101_v3 = vld [vmem:[#allocation2 + $0x8ec] sm:$0xf]  ;;  %v9530_v26 = vld [vmem:[#allocation2 + $0x8f8] sm:$0xf0]  ;;  %v9529_v39 = vor.u32 %v11103_v1, %v9528_v24 }
 0x4af   :  { %3895 = vmatmul.bf16.gmra.mxu2 %v9513_v48  ;;  %v9533_v48 = vor.u32 %v11101_v3, %v9530_v26 }
 0x4b0   :  { %3944 = vmatmul.bf16.gmra.mxu3 %v9517_v30  ;;  %v9521_v30 = vor.u32 %v11102_v36, %v9520_v19 }
 0x4b2   :  { %v3507_v43 = vpop.f32.mrf.mxu2 }
 0x4b3   :  { %v3556_v49 = vpop.f32.mrf.mxu3  ;;  %v3508_v44 = vadd.f32 %v3507_v43, %v3459_v12  ;;  %v3411_v6 = vpop.f32.mrf.mxu0 }
 0x4b4   :  { %v3460_v50 = vpop.f32.mrf.mxu1 }
 0x4b5   :  { %v3461_v25 = vadd.f32 %v3460_v50, %v3411_v6  ;;  %v13179_v47 = vadd.f32 %v3556_v49, %v3508_v44  ;;  %v11166_v49 = vld [vmem:[#allocation5 + $0x1f0] sm:$0xff] }
 0x4ba   :  { %v3509_v42 = vpop.f32.mrf.mxu2 }
 0x4bb   :  { %v3558_v60 = vpop.f32.mrf.mxu3  ;;  %v3510_v57 = vadd.f32 %v3509_v42, %v3461_v25  ;;  %v3414_v15 = vpop.f32.mrf.mxu0 }
 0x4bc   :  { %v3463_v12 = vpop.f32.mrf.mxu1 }
 0x4bd   :  { %v3464_v2 = vadd.f32 %v3463_v12, %v3414_v15  ;;  %v13181_v43 = vadd.f32 %v3558_v60, %v3510_v57  ;;  %v14070_v15 = vpack.c.bf16 %v12567_v17, %v12557_v23  ;;  %v14071_v12 = vld [vmem:[#allocation69_spill] sm:$0xff]  ;;  %v14073_v17 = vld [vmem:[#allocation28_spill] sm:$0xff] }
 0x4be   :  { %3802 = vmatmul.bf16.gmra.mxu0 %v9521_v30  ;;  %3851 = vmatmul.bf16.gmra.mxu1 %v9525_v14  ;;  %v14068_v30 = vpack.c.bf16 %v12247_v8, %v12237_v53  ;;  %v14069_v14 = vpack.c.bf16 %v12397_v28, %v12347_v55 }
 0x4bf   :  { %3900 = vmatmul.bf16.gmra.mxu2 %v9529_v39  ;;  %v14072_v39 = vpack.c.bf16 %v12717_v63, %v14071_v12  ;;  %v14082_v12 = vld [vmem:[#allocation71_spill] sm:$0xff] }
 0x4c0   :  { %3949 = vmatmul.bf16.gmra.mxu3 %v9533_v48 }
 0x4c2   :  { %v3512_v44 = vpop.f32.mrf.mxu2 }
 0x4c3   :  { %v3561_v6 = vpop.f32.mrf.mxu3  ;;  %v3513_v50 = vadd.f32 %v3512_v44, %v3464_v2  ;;  %v3416_v19 = vpop.f32.mrf.mxu0 }
 0x4c4   :  { %v3465_v36 = vpop.f32.mrf.mxu1 }
 0x4c5   :  { %v3466_v25 = vadd.f32 %v3465_v36, %v3416_v19  ;;  %v13185_v41 = vadd.f32 %v3561_v6, %v3513_v50 }
 0x4ca   :  { %v3514_v31 = vpop.f32.mrf.mxu2 }
 0x4cb   :  { %v3563_v24 = vpop.f32.mrf.mxu3  ;;  %v3515_v1 = vadd.f32 %v3514_v31, %v3466_v25  ;;  %v3768_v3 = vpop.f32.mrf.mxu0 }
 0x4cc   :  { %v3817_v26 = vpop.f32.mrf.mxu1 }
 0x4cd   :  { %v3818_v42 = vadd.f32 %v3817_v26, %v3768_v3  ;;  %v13187_v60 = vadd.f32 %v3563_v24, %v3515_v1  ;;  %v14074_v24 = vld [vmem:[#allocation27_spill] sm:$0xff]  ;;  %v14076_v1 = vld [vmem:[#allocation42_spill] sm:$0xff]  ;;  %v14077_v3 = vld [vmem:[#allocation41_spill] sm:$0xff] }
 0x4ce   :  { %4615 = vmatmul.bf16.vlgmr.msrb.gmra.mxu0 %v14068_v30  ;;  %4664 = vmatmul.bf16.vlgmr.msrb.gmra.mxu1 %v14069_v14  ;;  %v14075_v63 = vpack.c.bf16 %v14073_v17, %v14074_v24  ;;  %v14078_v26 = vpack.c.bf16 %v14076_v1, %v14077_v3  ;;  %v14079_v30 = vld [vmem:[#allocation56_spill] sm:$0xff]  ;;  %v14080_v14 = vld [vmem:[#allocation55_spill] sm:$0xff]  ;;  %v14085_v3 = vld [vmem:[#allocation30_spill] sm:$0xff] }
 0x4cf   :  { %4713 = vmatmul.bf16.vlgmr.msrb.gmra.mxu2 %v14070_v15  ;;  %v14081_v15 = vpack.c.bf16 %v14079_v30, %v14080_v14  ;;  %v14088_v14 = vld [vmem:[#allocation44_spill] sm:$0xff] }
 0x4d0   :  { %4762 = vmatmul.bf16.vlgmr.msrb.gmra.mxu3 %v14072_v39  ;;  %v14083_v39 = vld [vmem:[#allocation70_spill] sm:$0xff] }
 0x4d2   :  { %v3866_v48 = vpop.f32.mrf.mxu2 }
 0x4d3   :  { %v3915_v2 = vpop.f32.mrf.mxu3  ;;  %v3867_v44 = vadd.f32 %v3866_v48, %v3818_v42  ;;  %v3770_v53 = vpop.f32.mrf.mxu0  ;;  %v14084_v48 = vpack.c.bf16 %v14082_v12, %v14083_v39  ;;  %v14091_v39 = vld [vmem:[#allocation58_spill] sm:$0xff] }
 0x4d4   :  { %v3819_v8 = vpop.f32.mrf.mxu1 }
 0x4d5   :  { %v3820_v6 = vadd.f32 %v3819_v8, %v3770_v53  ;;  %v13203_v50 = vadd.f32 %v3915_v2, %v3867_v44 }
 0x4da   :  { %v3868_v55 = vpop.f32.mrf.mxu2 }
 0x4db   :  { %v3917_v28 = vpop.f32.mrf.mxu3  ;;  %v3869_v19 = vadd.f32 %v3868_v55, %v3820_v6  ;;  %v3773_v36 = vpop.f32.mrf.mxu0 }
 0x4dc   :  { %v3822_v25 = vpop.f32.mrf.mxu1 }
 0x4dd   :  { %v3823_v31 = vadd.f32 %v3822_v25, %v3773_v36  ;;  %v13205_v23 = vadd.f32 %v3917_v28, %v3869_v19 }
 0x4de   :  { %4620 = vmatmul.bf16.gmra.mxu0 %v14075_v63  ;;  %4669 = vmatmul.bf16.gmra.mxu1 %v14078_v26  ;;  %v14086_v26 = vld [vmem:[#allocation29_spill] sm:$0xff] }
 0x4df   :  { %4718 = vmatmul.bf16.gmra.mxu2 %v14081_v15  ;;  %v14087_v30 = vpack.c.bf16 %v14085_v3, %v14086_v26  ;;  %v14089_v15 = vld [vmem:[#allocation43_spill] sm:$0xff] }
 0x4e0   :  { %4767 = vmatmul.bf16.gmra.mxu3 %v14084_v48  ;;  %v14092_v48 = vld [vmem:[#allocation57_spill] sm:$0xff] }
 0x4e2   :  { %v3871_v2 = vpop.f32.mrf.mxu2 }
 0x4e3   :  { %v3920_v44 = vpop.f32.mrf.mxu3  ;;  %v3872_v53 = vadd.f32 %v3871_v2, %v3823_v31  ;;  %v3775_v8 = vpop.f32.mrf.mxu0  ;;  %v14090_v31 = vpack.c.bf16 %v14088_v14, %v14089_v15  ;;  %v14093_v2 = vpack.c.bf16 %v14091_v39, %v14092_v48  ;;  %v14097_v48 = vld [vmem:[#allocation32_spill] sm:$0xff] }
 0x4e4   :  { %v3824_v6 = vpop.f32.mrf.mxu1 }
 0x4e5   :  { %v3825_v55 = vadd.f32 %v3824_v6, %v3775_v8  ;;  %v13221_v28 = vadd.f32 %v3920_v44, %v3872_v53  ;;  %v14094_v44 = vld [vmem:[#allocation73_spill] sm:$0xff]  ;;  %v14095_v53 = vld [vmem:[#allocation72_spill] sm:$0xff] }
 0x4e6   :  { %v14096_v8 = vpack.c.bf16 %v14094_v44, %v14095_v53  ;;  %v14100_v53 = vld [vmem:[#allocation46_spill] sm:$0xff] }
 0x4ea   :  { %v3873_v19 = vpop.f32.mrf.mxu2 }
 0x4eb   :  { %v3922_v36 = vpop.f32.mrf.mxu3  ;;  %v3874_v25 = vadd.f32 %v3873_v19, %v3825_v55  ;;  %v3778_v17 = vpop.f32.mrf.mxu0 }
 0x4ec   :  { %v3827_v24 = vpop.f32.mrf.mxu1 }
 0x4ed   :  { %v3828_v63 = vadd.f32 %v3827_v24, %v3778_v17  ;;  %v13223_v1 = vadd.f32 %v3922_v36, %v3874_v25 }
 0x4ee   :  { %4625 = vmatmul.bf16.gmra.mxu0 %v14087_v30  ;;  %4674 = vmatmul.bf16.gmra.mxu1 %v14090_v31 }
 0x4ef   :  { %4723 = vmatmul.bf16.gmra.mxu2 %v14093_v2  ;;  %v14098_v2 = vld [vmem:[#allocation31_spill] sm:$0xff] }
 0x4f0   :  { %4772 = vmatmul.bf16.gmra.mxu3 %v14096_v8  ;;  %v14099_v44 = vpack.c.bf16 %v14097_v48, %v14098_v2  ;;  %v14101_v8 = vld [vmem:[#allocation45_spill] sm:$0xff] }
 0x4f2   :  { %v3876_v6 = vpop.f32.mrf.mxu2 }
 0x4f3   :  { %v3925_v55 = vpop.f32.mrf.mxu3  ;;  %v3877_v19 = vadd.f32 %v3876_v6, %v3828_v63  ;;  %v3780_v36 = vpop.f32.mrf.mxu0  ;;  %v14102_v63 = vpack.c.bf16 %v14100_v53, %v14101_v8 }
 0x4f4   :  { %v3829_v25 = vpop.f32.mrf.mxu1 }
 0x4f5   :  { %v3830_v17 = vadd.f32 %v3829_v25, %v3780_v36  ;;  %v13239_v24 = vadd.f32 %v3925_v55, %v3877_v19  ;;  %v14103_v55 = vld [vmem:[#allocation60_spill] sm:$0xff]  ;;  %v14104_v19 = vld [vmem:[#allocation59_spill] sm:$0xff] }
 0x4f6   :  { %v14105_v36 = vpack.c.bf16 %v14103_v55, %v14104_v19  ;;  %v14106_v25 = vld [vmem:[#allocation75_spill] sm:$0xff]  ;;  %v14109_v19 = vld [vmem:[#allocation34_spill] sm:$0xff] }
 0x4fa   :  { %v3878_v3 = vpop.f32.mrf.mxu2 }
 0x4fb   :  { %v3927_v26 = vpop.f32.mrf.mxu3  ;;  %v3879_v30 = vadd.f32 %v3878_v3, %v3830_v17  ;;  %v3783_v14 = vpop.f32.mrf.mxu0  ;;  %v14107_v17 = vld [vmem:[#allocation74_spill] sm:$0xff] }
 0x4fc   :  { %v3832_v15 = vpop.f32.mrf.mxu1  ;;  %v14108_v3 = vpack.c.bf16 %v14106_v25, %v14107_v17  ;;  %v14112_v17 = vld [vmem:[#allocation48_spill] sm:$0xff] }
 0x4fd   :  { %v3833_v31 = vadd.f32 %v3832_v15, %v3783_v14  ;;  %v13241_v39 = vadd.f32 %v3927_v26, %v3879_v30 }
 0x4fe   :  { %4630 = vmatmul.bf16.gmra.mxu0 %v14099_v44  ;;  %4679 = vmatmul.bf16.gmra.mxu1 %v14102_v63 }
 0x4ff   :  { %4728 = vmatmul.bf16.gmra.mxu2 %v14105_v36  ;;  %v14110_v36 = vld [vmem:[#allocation33_spill] sm:$0xff] }
 0x500   :  { %4777 = vmatmul.bf16.gmra.mxu3 %v14108_v3  ;;  %v14111_v25 = vpack.c.bf16 %v14109_v19, %v14110_v36  ;;  %v14113_v3 = vld [vmem:[#allocation47_spill] sm:$0xff] }
 0x502   :  { %v3881_v26 = vpop.f32.mrf.mxu2 }
 0x503   :  { %v3930_v30 = vpop.f32.mrf.mxu3  ;;  %v3882_v14 = vadd.f32 %v3881_v26, %v3833_v31  ;;  %v3785_v15 = vpop.f32.mrf.mxu0  ;;  %v14114_v31 = vpack.c.bf16 %v14112_v17, %v14113_v3  ;;  %v11143_v26 = vld [vmem:[#allocation5 + $0x138] sm:$0xff]  ;;  %v11150_v17 = vld [vmem:[#allocation5 + $0x170] sm:$0xff] }
 0x504   :  { %v3834_v48 = vpop.f32.mrf.mxu1  ;;  %4803 = vmatpush.bf16.msra.mxu0 %v11143_v26  ;;  %v11158_v3 = vld [vmem:[#allocation5 + $0x1b0] sm:$0xff]  ;;  %v11141_v26 = vld [vmem:[#allocation5 + $0x128] sm:$0xff] }
 0x505   :  { %v3835_v2 = vadd.f32 %v3834_v48, %v3785_v15  ;;  %v13257_v44 = vadd.f32 %v3930_v30, %v3882_v14  ;;  %v11151_v15 = vld [vmem:[#allocation5 + $0x178] sm:$0xff] }
 0x506   :  { %v11159_v30 = vld [vmem:[#allocation5 + $0x1b8] sm:$0xff]  ;;  %4852 = vmatpush.bf16.msra.mxu1 %v11151_v15  ;;  %v11149_v15 = vld [vmem:[#allocation5 + $0x168] sm:$0xff] }
 0x507   :  { %v14115_v48 = vld [vmem:[#allocation62_spill] sm:$0xff]  ;;  %4901 = vmatpush.bf16.msra.mxu2 %v11159_v30  ;;  %v11157_v30 = vld [vmem:[#allocation5 + $0x1a8] sm:$0xff] }
 0x50a   :  { %v3883_v53 = vpop.f32.mrf.mxu2  ;;  %4853 = vmatpush.bf16.msra.mxu1 %v11150_v17  ;;  %v14122_v17 = vld [vmem:[#allocation36_spill] sm:$0xff] }
 0x50b   :  { %v3932_v8 = vpop.f32.mrf.mxu3  ;;  %v3884_v63 = vadd.f32 %v3883_v53, %v3835_v2  ;;  %v3788_v6 = vpop.f32.mrf.mxu0  ;;  %v14116_v2 = vld [vmem:[#allocation61_spill] sm:$0xff]  ;;  %4902 = vmatpush.bf16.msra.mxu2 %v11158_v3  ;;  %v14123_v3 = vld [vmem:[#allocation35_spill] sm:$0xff] }
 0x50c   :  { %v3837_v12 = vpop.f32.mrf.mxu1  ;;  %v14117_v53 = vpack.c.bf16 %v14115_v48, %v14116_v2 }
 0x50d   :  { %v3838_v42 = vadd.f32 %v3837_v12, %v3788_v6  ;;  %v13259_v55 = vadd.f32 %v3932_v8, %v3884_v63  ;;  %v14118_v12 = vld [vmem:[#allocation77_spill] sm:$0xff]  ;;  %v14119_v6 = vld [vmem:[#allocation76_spill] sm:$0xff] }
 0x50e   :  { %4635 = vmatmul.bf16.gmra.mxu0 %v14111_v25  ;;  %4684 = vmatmul.bf16.gmra.mxu1 %v14114_v31  ;;  %v14120_v8 = vpack.c.bf16 %v14118_v12, %v14119_v6  ;;  %v11167_v63 = vld [vmem:[#allocation5 + $0x1f8] sm:$0xff]  ;;  %v11142_v25 = vld [vmem:[#allocation5 + $0x130] sm:$0xff]  ;;  %v11140_v6 = vld [vmem:[#allocation5 + $0x120] sm:$0xff] }
 0x50f   :  { %4733 = vmatmul.bf16.gmra.mxu2 %v14117_v53  ;;  %4950 = vmatpush.bf16.msra.mxu3 %v11167_v63  ;;  %v11165_v53 = vld [vmem:[#allocation5 + $0x1e8] sm:$0xff]  ;;  %v11156_v63 = vld [vmem:[#allocation5 + $0x1a0] sm:$0xff] }
 0x510   :  { %4782 = vmatmul.bf16.gmra.mxu3 %v14120_v8  ;;  %4804 = vmatpush.bf16.msra.mxu0 %v11142_v25  ;;  %v11148_v8 = vld [vmem:[#allocation5 + $0x160] sm:$0xff] }
 0x511   :  { %4854 = vmatpush.bf16.msra.mxu1 %v11149_v15  ;;  %4903 = vmatpush.bf16.msra.mxu2 %v11157_v30  ;;  %v14126_v15 = vld [vmem:[#allocation49_spill] sm:$0xff] }
 0x512   :  { %v3886_v19 = vpop.f32.mrf.mxu2 }
 0x513   :  { %v3935_v36 = vpop.f32.mrf.mxu3  ;;  %v3887_v31 = vadd.f32 %v3886_v19, %v3838_v42  ;;  %v3790_v14 = vpop.f32.mrf.mxu0  ;;  %4951 = vmatpush.bf16.msra.mxu3 %v11166_v49 }
 0x514   :  { %v3839_v57 = vpop.f32.mrf.mxu1  ;;  %4805 = vmatpush.bf16.msra.mxu0 %v11141_v26  ;;  %v14125_v26 = vld [vmem:[#allocation50_spill] sm:$0xff] }
 0x515   :  { %v3840_v48 = vadd.f32 %v3839_v57, %v3790_v14  ;;  %v13275_v2 = vadd.f32 %v3935_v36, %v3887_v31  ;;  %v11164_v36 = vld [vmem:[#allocation5 + $0x1e0] sm:$0xff]  ;;  %4855 = vmatpush.bf16.msra.mxu1 %v11148_v8  ;;  %4904 = vmatpush.bf16.msra.mxu2 %v11156_v63  ;;  %v14124_v31 = vpack.c.bf16 %v14122_v17, %v14123_v3 }
 0x516   :  { %v14127_v30 = vpack.c.bf16 %v14125_v26, %v14126_v15  ;;  %v14129_v8 = vld [vmem:[#allocation63_spill] sm:$0xff]  ;;  %v11146_v26 = vld [vmem:[#allocation5 + $0x150] sm:$0xff] }
 0x517   :  { %14121 = vst [vmem:[#allocation69_spill] sm:$0xff] %v13275_v2  ;;  %4952 = vmatpush.bf16.msra.mxu3 %v11165_v53  ;;  %v11139_v53 = vld [vmem:[#allocation5 + $0x118] sm:$0xff]  ;;  %v14131_v63 = vld [vmem:[#allocation79_spill] sm:$0xff]  ;;  %v11154_v15 = vld [vmem:[#allocation5 + $0x190] sm:$0xff] }
 0x518   :  { %4806 = vmatpush.bf16.msra.mxu0 %v11140_v6  ;;  %v14128_v6 = vld [vmem:[#allocation64_spill] sm:$0xff] }
 0x519   :  { %v11162_v2 = vld [vmem:[#allocation5 + $0x1d0] sm:$0xff] }
 0x51a   :  { %v3888_v12 = vpop.f32.mrf.mxu2 }
 0x51b   :  { %v3937_v42 = vpop.f32.mrf.mxu3  ;;  %v3889_v57 = vadd.f32 %v3888_v12, %v3840_v48  ;;  %v3793_v14 = vpop.f32.mrf.mxu0  ;;  %4953 = vmatpush.bf16.msra.mxu3 %v11164_v36  ;;  %v11147_v48 = vld [vmem:[#allocation5 + $0x158] sm:$0xff] }
 0x51c   :  { %v3842_v19 = vpop.f32.mrf.mxu1  ;;  %v11155_v12 = vld [vmem:[#allocation5 + $0x198] sm:$0xff]  ;;  %4807 = vmatpush.bf16.msra.mxu0 %v11139_v53  ;;  %4856 = vmatpush.bf16.msra.mxu1 %v11147_v48  ;;  %v11137_v53 = vld [vmem:[#allocation5 + $0x108] sm:$0xff] }
 0x51d   :  { %v3843_v25 = vadd.f32 %v3842_v19, %v3793_v14  ;;  %v13277_v49 = vadd.f32 %v3937_v42, %v3889_v57  ;;  %v14130_v42 = vpack.c.bf16 %v14128_v6, %v14129_v8  ;;  %v14132_v57 = vld [vmem:[#allocation78_spill] sm:$0xff]  ;;  %4905 = vmatpush.bf16.msra.mxu2 %v11155_v12  ;;  %v11145_v48 = vld [vmem:[#allocation5 + $0x148] sm:$0xff] }
 0x51e   :  { %4640 = vmatmul.bf16.gmra.mxu0 %v14124_v31  ;;  %4689 = vmatmul.bf16.gmra.mxu1 %v14127_v30  ;;  %v14133_v19 = vpack.c.bf16 %v14131_v63, %v14132_v57  ;;  %v11163_v36 = vld [vmem:[#allocation5 + $0x1d8] sm:$0xff]  ;;  %v11138_v31 = vld [vmem:[#allocation5 + $0x110] sm:$0xff]  ;;  %v11153_v12 = vld [vmem:[#allocation5 + $0x188] sm:$0xff] }
 0x51f   :  { %4738 = vmatmul.bf16.gmra.mxu2 %v14130_v42  ;;  %4954 = vmatpush.bf16.msra.mxu3 %v11163_v36  ;;  %v11161_v42 = vld [vmem:[#allocation5 + $0x1c8] sm:$0xff]  ;;  %v11136_v57 = vld [vmem:[#allocation5 + $0x100] sm:$0xff] }
 0x520   :  { %4787 = vmatmul.bf16.gmra.mxu3 %v14133_v19  ;;  %4808 = vmatpush.bf16.msra.mxu0 %v11138_v31  ;;  %v11144_v19 = vld [vmem:[#allocation5 + $0x140] sm:$0xff] }
 0x521   :  { %4857 = vmatpush.bf16.msra.mxu1 %v11146_v26  ;;  %4906 = vmatpush.bf16.msra.mxu2 %v11154_v15  ;;  %v11152_v36 = vld [vmem:[#allocation5 + $0x180] sm:$0xff]  ;;  %v14135_v15 = vld [vmem:[#allocation37_spill] sm:$0xff] }
 0x522   :  { %v3891_v17 = vpop.f32.mrf.mxu2  ;;  %v14134_v26 = vld [vmem:[#allocation38_spill] sm:$0xff] }
 0x523   :  { %v3940_v3 = vpop.f32.mrf.mxu3  ;;  %v3892_v30 = vadd.f32 %v3891_v17, %v3843_v25  ;;  %v3795_v14 = vpop.f32.mrf.mxu0  ;;  %4955 = vmatpush.bf16.msra.mxu3 %v11162_v2 }
 0x524   :  { %v3844_v58 = vpop.f32.mrf.mxu1  ;;  %4809 = vmatpush.bf16.msra.mxu0 %v11137_v53  ;;  %v14137_v53 = vld [vmem:[#allocation52_spill] sm:$0xff] }
 0x525   :  { %v3845_v6 = vadd.f32 %v3844_v58, %v3795_v14  ;;  %v13293_v8 = vadd.f32 %v3940_v3, %v3892_v30  ;;  %4858 = vmatpush.bf16.msra.mxu1 %v11145_v48  ;;  %4907 = vmatpush.bf16.msra.mxu2 %v11153_v12  ;;  %v11160_v3 = vld [vmem:[#allocation5 + $0x1c0] sm:$0xff]  ;;  %v14136_v30 = vpack.c.bf16 %v14134_v26, %v14135_v15 }
 0x526   :  { %v14138_v48 = vld [vmem:[#allocation51_spill] sm:$0xff] }
 0x527   :  { %4956 = vmatpush.bf16.msra.mxu3 %v11161_v42  ;;  %v14139_v12 = vpack.c.bf16 %v14137_v53, %v14138_v48  ;;  %v14140_v42 = vld [vmem:[#allocation66_spill] sm:$0xff] }
 0x528   :  { %4810 = vmatpush.bf16.msra.mxu0 %v11136_v57 }
 0x529   :  { %4859 = vmatpush.bf16.msra.mxu1 %v11144_v19  ;;  %4908 = vmatpush.bf16.msra.mxu2 %v11152_v36 }
 0x52a   :  { %v3893_v63 = vpop.f32.mrf.mxu2 }
 0x52b   :  { %v3942_v25 = vpop.f32.mrf.mxu3  ;;  %v3894_v58 = vadd.f32 %v3893_v63, %v3845_v6  ;;  %v3798_v14 = vpop.f32.mrf.mxu0  ;;  %4957 = vmatpush.bf16.msra.mxu3 %v11160_v3  ;;  %v14141_v63 = vld [vmem:[#allocation65_spill] sm:$0xff] }
 0x52c   :  { %v3847_v17 = vpop.f32.mrf.mxu1 }
 0x52d   :  { %v3848_v31 = vadd.f32 %v3847_v17, %v3798_v14  ;;  %v13295_v2 = vadd.f32 %v3942_v25, %v3894_v58  ;;  %v14142_v14 = vpack.c.bf16 %v14140_v42, %v14141_v63  ;;  %v14143_v25 = vpack.c.bf16 %v12861_v61, %v12859_v38  ;;  %v14144_v63 = vld [vmem:[#allocation40_spill] sm:$0xff]  ;;  %v14147_v61 = vld [vmem:[#allocation54_spill] sm:$0xff] }
 0x52e   :  { %4645 = vmatmul.bf16.gmra.mxu0 %v14136_v30  ;;  %4694 = vmatmul.bf16.gmra.mxu1 %v14139_v12 }
 0x52f   :  { %4743 = vmatmul.bf16.gmra.mxu2 %v14142_v14  ;;  %v14145_v14 = vld [vmem:[#allocation39_spill] sm:$0xff] }
 0x530   :  { %4792 = vmatmul.bf16.gmra.mxu3 %v14143_v25  ;;  %v14146_v38 = vpack.c.bf16 %v14144_v63, %v14145_v14  ;;  %v14148_v25 = vld [vmem:[#allocation53_spill] sm:$0xff] }
 0x531   :  { %v13331_v14 = vld [vmem:[#allocation14] ss:$0 sm:$0xff] }
 0x532   :  { %v3896_v57 = vpop.f32.mrf.mxu2 }
 0x533   :  { %v3945_v19 = vpop.f32.mrf.mxu3  ;;  %v3897_v36 = vadd.f32 %v3896_v57, %v3848_v31  ;;  %v3800_v58 = vpop.f32.mrf.mxu0  ;;  %v14149_v31 = vpack.c.bf16 %v14147_v61, %v14148_v25 }
 0x534   :  { %v3849_v17 = vpop.f32.mrf.mxu1 }
 0x535   :  { %v3850_v3 = vadd.f32 %v3849_v17, %v3800_v58  ;;  %v13311_v26 = vadd.f32 %v3945_v19, %v3897_v36  ;;  %v14150_v19 = vld [vmem:[#allocation68_spill] sm:$0xff]  ;;  %v14151_v36 = vld [vmem:[#allocation67_spill] sm:$0xff]  ;;  %v14153_v17 = vpack.c.bf16 %v12867_v46, %v12865_v32  ;;  %v14154_v46 = vpack.c.bf16 %v12887_v22, %v12877_v4 }
 0x536   :  { %v14152_v58 = vpack.c.bf16 %v14150_v19, %v14151_v36 }
 0x53a   :  { %v3898_v15 = vpop.f32.mrf.mxu2 }
 0x53b   :  { %v3947_v30 = vpop.f32.mrf.mxu3  ;;  %v3899_v53 = vadd.f32 %v3898_v15, %v3850_v3  ;;  %v3803_v48 = vpop.f32.mrf.mxu0 }
 0x53c   :  { %v3852_v12 = vpop.f32.mrf.mxu1 }
 0x53d   :  { %v3853_v6 = vadd.f32 %v3852_v12, %v3803_v48  ;;  %v13313_v42 = vadd.f32 %v3947_v30, %v3899_v53 }
 0x53e   :  { %4650 = vmatmul.bf16.gmra.mxu0 %v14146_v38  ;;  %4699 = vmatmul.bf16.gmra.mxu1 %v14149_v31 }
 0x53f   :  { %v4017_v57 = vpack.c.bf16 %v13313_v42, %v13311_v26  ;;  %4748 = vmatmul.bf16.gmra.mxu2 %v14152_v58 }
 0x540   :  { %4797 = vmatmul.bf16.gmra.mxu3 %v14153_v17 }
 0x542   :  { %v3901_v3 = vpop.f32.mrf.mxu2 }
 0x543   :  { %v3950_v15 = vpop.f32.mrf.mxu3  ;;  %v3902_v30 = vadd.f32 %v3901_v3, %v3853_v6  ;;  %v3805_v53 = vpop.f32.mrf.mxu0  ;;  %v14155_v6 = vpack.c.bf16 %v12995_v16, %v12969_v56  ;;  %v14156_v3 = vpack.c.bf16 %v13097_v37, %v13095_v33 }
 0x544   :  { %v3854_v48 = vpop.f32.mrf.mxu1 }
 0x545   :  { %v3855_v12 = vadd.f32 %v3854_v48, %v3805_v53  ;;  %v13329_v63 = vadd.f32 %v3950_v15, %v3902_v30  ;;  %v14157_v15 = vpack.c.bf16 %v13145_v52, %v13143_v29  ;;  %v14158_v52 = vpack.c.bf16 %v12909_v18, %v12899_v40 }
 0x54a   :  { %v3903_v38 = vpop.f32.mrf.mxu2 }
 0x54b   :  { %v3952_v61 = vpop.f32.mrf.mxu3  ;;  %v3904_v25 = vadd.f32 %v3903_v38, %v3855_v12  ;;  %v4616_v31 = vpop.f32.mrf.mxu0 }
 0x54c   :  { %v4665_v19 = vpop.f32.mrf.mxu1  ;;  %v4617_v36 = vadd.f32 %v13331_v14, %v4616_v31 }
 0x54d   :  { %v13334_v58 = vadd.f32 %v3952_v61, %v3904_v25 }
 0x54e   :  { %v4666_v32 = vadd.f32 %v4665_v19, %v4617_v36  ;;  %4811 = vmatmul.bf16.vlgmr.msra.gmra.mxu0 %v14154_v46  ;;  %4860 = vmatmul.bf16.vlgmr.msra.gmra.mxu1 %v14155_v6  ;;  %v14159_v36 = vpack.c.bf16 %v13049_v20, %v13023_v21  ;;  %v14161_v46 = vpack.c.bf16 %v13151_v54, %v13149_v27 }
 0x54f   :  { %v4026_v17 = vpack.c.bf16 %v13334_v58, %v13329_v63  ;;  %4909 = vmatmul.bf16.vlgmr.msra.gmra.mxu2 %v14156_v3  ;;  %v14162_v54 = vpack.c.bf16 %v12917_v13, %v12915_v59 }
 0x550   :  { %4958 = vmatmul.bf16.vlgmr.msra.gmra.mxu3 %v14157_v15 }
 0x552   :  { %v4714_v30 = vpop.f32.mrf.mxu2 }
 0x553   :  { %v4763_v53 = vpop.f32.mrf.mxu3  ;;  %v4715_v48 = vadd.f32 %v4714_v30, %v4666_v32  ;;  %v4618_v4 = vpop.f32.mrf.mxu0  ;;  %v14160_v32 = vpack.c.bf16 %v13103_v35, %v13101_v51 }
 0x554   :  { %v4667_v22 = vpop.f32.mrf.mxu1  ;;  %v4619_v12 = vadd.f32 %v13331_v14, %v4618_v4 }
 0x555   :  { %v13351_v56 = vadd.f32 %v4763_v53, %v4715_v48 }
 0x556   :  { %v4668_v16 = vadd.f32 %v4667_v22, %v4619_v12 }
 0x55a   :  { %v4716_v38 = vpop.f32.mrf.mxu2 }
 0x55b   :  { %v4765_v61 = vpop.f32.mrf.mxu3  ;;  %v4717_v25 = vadd.f32 %v4716_v38, %v4668_v16  ;;  %v4621_v31 = vpop.f32.mrf.mxu0  ;;  %v14163_v16 = vpack.c.bf16 %v13061_v10, %v13059_v34  ;;  %v14164_v38 = vpack.c.bf16 %v13109_v62, %v13107_v11 }
 0x55c   :  { %v4670_v33 = vpop.f32.mrf.mxu1  ;;  %v4622_v37 = vadd.f32 %v13331_v14, %v4621_v31 }
 0x55d   :  { %v13354_v19 = vadd.f32 %v4765_v61, %v4717_v25  ;;  %v14165_v61 = vpack.c.bf16 %v13157_v9, %v13155_v45  ;;  %v14166_v9 = vld [vmem:[#allocation81_spill] sm:$0xff] }
 0x55e   :  { %v4671_v29 = vadd.f32 %v4670_v33, %v4622_v37  ;;  %4816 = vmatmul.bf16.gmra.mxu0 %v14158_v52  ;;  %4865 = vmatmul.bf16.gmra.mxu1 %v14159_v36 }
 0x55f   :  { %4914 = vmatmul.bf16.gmra.mxu2 %v14160_v32 }
 0x560   :  { %4963 = vmatmul.bf16.gmra.mxu3 %v14161_v46 }
 0x562   :  { %v4719_v6 = vpop.f32.mrf.mxu2 }
 0x563   :  { %v4768_v3 = vpop.f32.mrf.mxu3  ;;  %v4720_v15 = vadd.f32 %v4719_v6, %v4671_v29  ;;  %v4623_v30 = vpop.f32.mrf.mxu0  ;;  %v14167_v6 = vld [vmem:[#allocation80_spill] sm:$0xff] }
 0x564   :  { %v4672_v53 = vpop.f32.mrf.mxu1  ;;  %v4624_v40 = vadd.f32 %v13331_v14, %v4623_v30  ;;  %v14170_v30 = vld [vmem:[#allocation90_spill] sm:$0xff] }
 0x565   :  { %v13369_v18 = vadd.f32 %v4768_v3, %v4720_v15  ;;  %v14168_v3 = vpack.c.bf16 %v14166_v9, %v14167_v6  ;;  %v14169_v15 = vld [vmem:[#allocation91_spill] sm:$0xff]  ;;  %v11175_v6 = vld [vmem:[#allocation5 + $0x238] sm:$0xff] }
 0x566   :  { %v4673_v48 = vadd.f32 %v4672_v53, %v4624_v40  ;;  %v14171_v53 = vpack.c.bf16 %v14169_v15, %v14170_v30  ;;  %v14172_v40 = vld [vmem:[#allocation101_spill] sm:$0xff]  ;;  %v14185_v15 = vld [vmem:[#allocation102_spill] sm:$0xff]  ;;  %4999 = vmatpush.bf16.msrb.mxu0 %v11175_v6 }
 0x56a   :  { %v4721_v21 = vpop.f32.mrf.mxu2 }
 0x56b   :  { %v4770_v20 = vpop.f32.mrf.mxu3  ;;  %v4722_v4 = vadd.f32 %v4721_v21, %v4673_v48  ;;  %v4626_v22 = vpop.f32.mrf.mxu0  ;;  %v14173_v48 = vld [vmem:[#allocation100_spill] sm:$0xff] }
 0x56c   :  { %v4675_v51 = vpop.f32.mrf.mxu1  ;;  %v4627_v35 = vadd.f32 %v13331_v14, %v4626_v22  ;;  %v14174_v21 = vpack.c.bf16 %v14172_v40, %v14173_v48 }
 0x56d   :  { %v13372_v12 = vadd.f32 %v4770_v20, %v4722_v4  ;;  %v14175_v20 = vld [vmem:[#allocation111_spill] sm:$0xff]  ;;  %v14176_v4 = vld [vmem:[#allocation110_spill] sm:$0xff] }
 0x56e   :  { %v4676_v27 = vadd.f32 %v4675_v51, %v4627_v35  ;;  %4821 = vmatmul.bf16.gmra.mxu0 %v14162_v54  ;;  %4870 = vmatmul.bf16.gmra.mxu1 %v14163_v16  ;;  %v14177_v22 = vpack.c.bf16 %v14175_v20, %v14176_v4  ;;  %v11174_v20 = vld [vmem:[#allocation5 + $0x230] sm:$0xff] }
 0x56f   :  { %4919 = vmatmul.bf16.gmra.mxu2 %v14164_v38  ;;  %5000 = vmatpush.bf16.msrb.mxu0 %v11174_v20 }
 0x570   :  { %4968 = vmatmul.bf16.gmra.mxu3 %v14165_v61 }
 0x572   :  { %v4724_v25 = vpop.f32.mrf.mxu2 }
 0x573   :  { %v4773_v31 = vpop.f32.mrf.mxu3  ;;  %v4725_v33 = vadd.f32 %v4724_v25, %v4676_v27  ;;  %v4628_v37 = vpop.f32.mrf.mxu0 }
 0x574   :  { %v4677_v29 = vpop.f32.mrf.mxu1  ;;  %v4629_v59 = vadd.f32 %v13331_v14, %v4628_v37 }
 0x575   :  { %v13387_v13 = vadd.f32 %v4773_v31, %v4725_v33 }
 0x576   :  { %v4678_v52 = vadd.f32 %v4677_v29, %v4629_v59 }
 0x57a   :  { %v4726_v34 = vpop.f32.mrf.mxu2 }
 0x57b   :  { %v4775_v10 = vpop.f32.mrf.mxu3  ;;  %v4727_v36 = vadd.f32 %v4726_v34, %v4678_v52  ;;  %v4631_v32 = vpop.f32.mrf.mxu0 }
 0x57c   :  { %v4680_v11 = vpop.f32.mrf.mxu1  ;;  %v4632_v62 = vadd.f32 %v13331_v14, %v4631_v32  ;;  %v14179_v32 = vld [vmem:[#allocation82_spill] sm:$0xff] }
 0x57d   :  { %v13390_v46 = vadd.f32 %v4775_v10, %v4727_v36  ;;  %v14178_v36 = vld [vmem:[#allocation83_spill] sm:$0xff] }
 0x57e   :  { %v4681_v45 = vadd.f32 %v4680_v11, %v4632_v62  ;;  %4826 = vmatmul.bf16.gmra.mxu0 %v14168_v3  ;;  %4875 = vmatmul.bf16.gmra.mxu1 %v14171_v53  ;;  %v14180_v11 = vpack.c.bf16 %v14178_v36, %v14179_v32  ;;  %v14181_v62 = vld [vmem:[#allocation93_spill] sm:$0xff]  ;;  %v14184_v3 = vld [vmem:[#allocation103_spill] sm:$0xff]  ;;  %v14187_v53 = vld [vmem:[#allocation112_spill] sm:$0xff] }
 0x57f   :  { %4924 = vmatmul.bf16.gmra.mxu2 %v14174_v21  ;;  %v14186_v30 = vpack.c.bf16 %v14184_v3, %v14185_v15  ;;  %v14188_v40 = vpack.c.bf16 %v13169_v0, %v14187_v53  ;;  %v11172_v0 = vld [vmem:[#allocation5 + $0x220] sm:$0xff]  ;;  %v11171_v32 = vld [vmem:[#allocation5 + $0x218] sm:$0xff]  ;;  %v11170_v15 = vld [vmem:[#allocation5 + $0x210] sm:$0xff] }
 0x580   :  { %4973 = vmatmul.bf16.gmra.mxu3 %v14177_v22 }
 0x582   :  { %v4729_v51 = vpop.f32.mrf.mxu2 }
 0x583   :  { %v4778_v35 = vpop.f32.mrf.mxu3  ;;  %v4730_v27 = vadd.f32 %v4729_v51, %v4681_v45  ;;  %v4633_v54 = vpop.f32.mrf.mxu0  ;;  %v14182_v45 = vld [vmem:[#allocation92_spill] sm:$0xff] }
 0x584   :  { %v4682_v16 = vpop.f32.mrf.mxu1  ;;  %v4634_v38 = vadd.f32 %v13331_v14, %v4633_v54  ;;  %v14183_v9 = vpack.c.bf16 %v14181_v62, %v14182_v45  ;;  %v14196_v62 = vld [vmem:[#allocation104_spill] sm:$0xff] }
 0x585   :  { %v13405_v61 = vadd.f32 %v4778_v35, %v4730_v27  ;;  %v11173_v27 = vld [vmem:[#allocation5 + $0x228] sm:$0xff] }
 0x586   :  { %v4683_v25 = vadd.f32 %v4682_v16, %v4634_v38  ;;  %5001 = vmatpush.bf16.msrb.mxu0 %v11173_v27 }
 0x58a   :  { %v4731_v31 = vpop.f32.mrf.mxu2  ;;  %5002 = vmatpush.bf16.msrb.mxu0 %v11172_v0 }
 0x58b   :  { %v4780_v33 = vpop.f32.mrf.mxu3  ;;  %v4732_v37 = vadd.f32 %v4731_v31, %v4683_v25  ;;  %v4636_v29 = vpop.f32.mrf.mxu0 }
 0x58c   :  { %v4685_v59 = vpop.f32.mrf.mxu1  ;;  %v4637_v52 = vadd.f32 %v13331_v14, %v4636_v29  ;;  %v14190_v29 = vld [vmem:[#allocation84_spill] sm:$0xff] }
 0x58d   :  { %v13408_v34 = vadd.f32 %v4780_v33, %v4732_v37  ;;  %v14189_v37 = vld [vmem:[#allocation85_spill] sm:$0xff] }
 0x58e   :  { %v4686_v10 = vadd.f32 %v4685_v59, %v4637_v52  ;;  %4831 = vmatmul.bf16.gmra.mxu0 %v14180_v11  ;;  %4880 = vmatmul.bf16.gmra.mxu1 %v14183_v9  ;;  %v14191_v59 = vpack.c.bf16 %v14189_v37, %v14190_v29  ;;  %v14192_v52 = vld [vmem:[#allocation95_spill] sm:$0xff]  ;;  %v14195_v11 = vld [vmem:[#allocation105_spill] sm:$0xff]  ;;  %v14198_v9 = vpack.c.bf16 %v13175_v7, %v13173_v5  ;;  %v14203_v29 = vld [vmem:[#allocation96_spill] sm:$0xff] }
 0x58f   :  { %4929 = vmatmul.bf16.gmra.mxu2 %v14186_v30  ;;  %v14197_v45 = vpack.c.bf16 %v14195_v11, %v14196_v62  ;;  %5003 = vmatpush.bf16.msrb.mxu0 %v11171_v32  ;;  %v11168_v5 = vld [vmem:[#allocation5 + $0x200] sm:$0xff]  ;;  %v14202_v37 = vld [vmem:[#allocation97_spill] sm:$0xff]  ;;  %v14208_v32 = vpack.c.bf16 %v13181_v43, %v13179_v47  ;;  %v14210_v43 = vld [vmem:[#allocation88_spill] sm:$0xff] }
 0x590   :  { %4978 = vmatmul.bf16.gmra.mxu3 %v14188_v40  ;;  %v14209_v47 = vld [vmem:[#allocation89_spill] sm:$0xff] }
 0x592   :  { %v4734_v48 = vpop.f32.mrf.mxu2 }
 0x593   :  { %v4783_v21 = vpop.f32.mrf.mxu3  ;;  %v4735_v4 = vadd.f32 %v4734_v48, %v4686_v10  ;;  %v13422_v22 = vpop.f32.mrf.mxu0  ;;  %v14193_v10 = vld [vmem:[#allocation94_spill] sm:$0xff]  ;;  %5004 = vmatpush.bf16.msrb.mxu0 %v11170_v15 }
 0x594   :  { %v13424_v51 = vpop.f32.mrf.mxu1  ;;  %v14194_v36 = vpack.c.bf16 %v14192_v52, %v14193_v10  ;;  %v14205_v52 = vld [vmem:[#allocation107_spill] sm:$0xff]  ;;  %v14206_v10 = vld [vmem:[#allocation106_spill] sm:$0xff] }
 0x595   :  { %v13426_v35 = vadd.f32 %v4783_v21, %v4735_v4  ;;  %v11169_v21 = vld [vmem:[#allocation5 + $0x208] sm:$0xff] }
 0x597   :  { %5005 = vmatpush.bf16.msrb.mxu0 %v11169_v21 }
 0x59a   :  { %v13428_v54 = vpop.f32.mrf.mxu2 }
 0x59b   :  { %v13430_v16 = vpop.f32.mrf.mxu3  ;;  %v4641_v38 = vpop.f32.mrf.mxu0  ;;  %5006 = vmatpush.bf16.msrb.mxu0 %v11168_v5 }
 0x59c   :  { %v4690_v25 = vpop.f32.mrf.mxu1  ;;  %v4642_v31 = vadd.f32 %v13331_v14, %v4641_v38 }
 0x59e   :  { %v4691_v33 = vadd.f32 %v4690_v25, %v4642_v31  ;;  %4836 = vmatmul.bf16.gmra.mxu0 %v14191_v59  ;;  %4885 = vmatmul.bf16.gmra.mxu1 %v14194_v36  ;;  %v14199_v25 = vld [vmem:[#allocation87_spill] sm:$0xff]  ;;  %v14200_v31 = vld [vmem:[#allocation86_spill] sm:$0xff]  ;;  %v14204_v59 = vpack.c.bf16 %v14202_v37, %v14203_v29  ;;  %v14207_v36 = vpack.c.bf16 %v14205_v52, %v14206_v10  ;;  %v14216_v37 = vld [vmem:[#allocation108_spill] sm:$0xff] }
 0x59f   :  { %4934 = vmatmul.bf16.gmra.mxu2 %v14197_v45 }
 0x5a0   :  { %4983 = vmatmul.bf16.gmra.mxu3 %v14198_v9 }
 0x5a2   :  { %v4739_v6 = vpop.f32.mrf.mxu2 }
 0x5a3   :  { %v4788_v3 = vpop.f32.mrf.mxu3  ;;  %v4740_v30 = vadd.f32 %v4739_v6, %v4691_v33  ;;  %v13445_v53 = vpop.f32.mrf.mxu0  ;;  %v14201_v33 = vpack.c.bf16 %v14199_v25, %v14200_v31  ;;  %v14213_v25 = vld [vmem:[#allocation98_spill] sm:$0xff] }
 0x5a4   :  { %v13447_v40 = vpop.f32.mrf.mxu1 }
 0x5a5   :  { %v13449_v48 = vadd.f32 %v4788_v3, %v4740_v30 }
 0x5aa   :  { %v13451_v20 = vpop.f32.mrf.mxu2 }
 0x5ab   :  { %v13453_v4 = vpop.f32.mrf.mxu3  ;;  %v4646_v7 = vpop.f32.mrf.mxu0 }
 0x5ac   :  { %v4695_v27 = vpop.f32.mrf.mxu1  ;;  %v4647_v0 = vadd.f32 %v13331_v14, %v4646_v7 }
 0x5ae   :  { %v4696_v38 = vadd.f32 %v4695_v27, %v4647_v0  ;;  %4841 = vmatmul.bf16.gmra.mxu0 %v14201_v33  ;;  %4890 = vmatmul.bf16.gmra.mxu1 %v14204_v59  ;;  %v14211_v0 = vpack.c.bf16 %v14209_v47, %v14210_v43  ;;  %v14215_v33 = vld [vmem:[#allocation109_spill] sm:$0xff]  ;;  %v14218_v59 = vpack.c.bf16 %v13187_v60, %v13185_v41 }
 0x5af   :  { %4939 = vmatmul.bf16.gmra.mxu2 %v14207_v36  ;;  %v14217_v29 = vpack.c.bf16 %v14215_v33, %v14216_v37  ;;  %v14219_v41 = vpack.c.bf16 %v13205_v23, %v13203_v50 }
 0x5b0   :  { %4988 = vmatmul.bf16.gmra.mxu3 %v14208_v32 }
 0x5b2   :  { %v4744_v11 = vpop.f32.mrf.mxu2 }
 0x5b3   :  { %v4793_v62 = vpop.f32.mrf.mxu3  ;;  %v4745_v45 = vadd.f32 %v4744_v11, %v4696_v38  ;;  %v13468_v9 = vpop.f32.mrf.mxu0  ;;  %v14212_v38 = vld [vmem:[#allocation99_spill] sm:$0xff] }
 0x5b4   :  { %v13470_v6 = vpop.f32.mrf.mxu1  ;;  %v14214_v31 = vpack.c.bf16 %v14212_v38, %v14213_v25 }
 0x5b5   :  { %v13472_v3 = vadd.f32 %v4793_v62, %v4745_v45 }
 0x5ba   :  { %v13474_v15 = vpop.f32.mrf.mxu2 }
 0x5bb   :  { %v13476_v30 = vpop.f32.mrf.mxu3  ;;  %v4651_v21 = vpop.f32.mrf.mxu0 }
 0x5bc   :  { %v4700_v5 = vpop.f32.mrf.mxu1  ;;  %v4652_v7 = vadd.f32 %v13331_v14, %v4651_v21 }
 0x5be   :  { %v4701_v27 = vadd.f32 %v4700_v5, %v4652_v7  ;;  %4846 = vmatmul.bf16.gmra.mxu0 %v14211_v0  ;;  %4895 = vmatmul.bf16.gmra.mxu1 %v14214_v31 }
 0x5bf   :  { %4944 = vmatmul.bf16.gmra.mxu2 %v14217_v29 }
 0x5c0   :  { %4993 = vmatmul.bf16.gmra.mxu3 %v14218_v59 }
 0x5c2   :  { %v4749_v52 = vpop.f32.mrf.mxu2 }
 0x5c3   :  { %v4798_v10 = vpop.f32.mrf.mxu3  ;;  %v4750_v36 = vadd.f32 %v4749_v52, %v4701_v27  ;;  %v13491_v32 = vpop.f32.mrf.mxu0 }
 0x5c4   :  { %v13493_v11 = vpop.f32.mrf.mxu1 }
 0x5c5   :  { %v4799_v62 = vadd.f32 %v4798_v10, %v4750_v36  ;;  %v14220_v36 = vpack.c.bf16 %v13223_v1, %v13221_v28 }
 0x5ca   :  { %v13495_v45 = vpop.f32.mrf.mxu2 }
 0x5cb   :  { %v13497_v21 = vpop.f32.mrf.mxu3  ;;  %v4812_v5 = vpop.f32.mrf.mxu0 }
 0x5cc   :  { %v4861_v7 = vpop.f32.mrf.mxu1  ;;  %v4813_v47 = vadd.f32 %v4812_v5, %v13351_v56 }
 0x5ce   :  { %v4862_v43 = vadd.f32 %v4861_v7, %v4813_v47  ;;  %5007 = vmatmul.bf16.vlgmr.msrb.gmra.mxu0 %v14219_v41 }
 0x5d2   :  { %v4910_v60 = vpop.f32.mrf.mxu2 }
 0x5d3   :  { %v4959_v27 = vpop.f32.mrf.mxu3  ;;  %v4911_v0 = vadd.f32 %v4910_v60, %v4862_v43  ;;  %v4814_v38 = vpop.f32.mrf.mxu0 }
 0x5d4   :  { %v4863_v25 = vpop.f32.mrf.mxu1  ;;  %v4815_v31 = vadd.f32 %v4814_v38, %v13354_v19 }
 0x5d5   :  { %v4960_v33 = vadd.f32 %v4959_v27, %v4911_v0 }
 0x5da   :  { %v4912_v37 = vpop.f32.mrf.mxu2 }
 0x5db   :  { %v4961_v29 = vpop.f32.mrf.mxu3  ;;  %v4817_v59 = vpop.f32.mrf.mxu0 }
 0x5dc   :  { %v4866_v52 = vpop.f32.mrf.mxu1  ;;  %v4818_v10 = vadd.f32 %v4817_v59, %v13369_v18  ;;  %v14221_v59 = vpack.c.bf16 %v13241_v39, %v13239_v24 }
 0x5de   :  { %v4867_v56 = vadd.f32 %v4866_v52, %v4818_v10  ;;  %5012 = vmatmul.bf16.gmra.mxu0 %v14220_v36 }
 0x5e2   :  { %v4915_v50 = vpop.f32.mrf.mxu2 }
 0x5e3   :  { %v4964_v23 = vpop.f32.mrf.mxu3  ;;  %v4916_v5 = vadd.f32 %v4915_v50, %v4867_v56  ;;  %v4819_v7 = vpop.f32.mrf.mxu0 }
 0x5e4   :  { %v4868_v47 = vpop.f32.mrf.mxu1  ;;  %v4820_v43 = vadd.f32 %v4819_v7, %v13372_v12  ;;  %v14223_v7 = vld [vmem:[#allocation69_spill] sm:$0xff] }
 0x5e5   :  { %v4965_v19 = vadd.f32 %v4964_v23, %v4916_v5  ;;  %v14222_v23 = vpack.c.bf16 %v13259_v55, %v13257_v44  ;;  %v14225_v44 = vpack.c.bf16 %v13295_v2, %v13293_v8 }
 0x5ea   :  { %v4917_v41 = vpop.f32.mrf.mxu2 }
 0x5eb   :  { %v4966_v60 = vpop.f32.mrf.mxu3  ;;  %v4822_v27 = vpop.f32.mrf.mxu0 }
 0x5ec   :  { %v4823_v0 = vadd.f32 %v4822_v27, %v13387_v13  ;;  %v4871_v38 = vpop.f32.mrf.mxu1  ;;  %v14224_v27 = vpack.c.bf16 %v13277_v49, %v14223_v7 }
 0x5ee   :  { %v4872_v18 = vadd.f32 %v4871_v38, %v4823_v0  ;;  %5017 = vmatmul.bf16.gmra.mxu0 %v14221_v59 }
 0x5f2   :  { %v4920_v28 = vpop.f32.mrf.mxu2 }
 0x5f3   :  { %v4921_v1 = vadd.f32 %v4920_v28, %v4872_v18  ;;  %v4824_v52 = vpop.f32.mrf.mxu0  ;;  %v4969_v10 = vpop.f32.mrf.mxu3 }
 0x5f4   :  { %v4825_v56 = vadd.f32 %v4824_v52, %v13390_v46  ;;  %v4873_v42 = vpop.f32.mrf.mxu1 }
 0x5f5   :  { %v4970_v36 = vadd.f32 %v4969_v10, %v4921_v1 }
 0x5fa   :  { %v4922_v52 = vpop.f32.mrf.mxu2 }
 0x5fb   :  { %v4827_v12 = vpop.f32.mrf.mxu0 }
 0x5fc   :  { %v4828_v50 = vadd.f32 %v4827_v12, %v13405_v61 }
 0x5fe   :  { %5022 = vmatmul.bf16.gmra.mxu0 %v14222_v23 }
 0x602   :  { %v4925_v12 = vpop.f32.mrf.mxu2 }
 0x603   :  { %v4829_v13 = vpop.f32.mrf.mxu0 }
 0x604   :  { %v13519_v5 = vadd.f32 %v4829_v13, %v13408_v34 }
 0x60b   :  { %v4832_v24 = vpop.f32.mrf.mxu0 }
 0x60c   :  { %v13522_v39 = vadd.f32 %v4832_v24, %v13426_v35 }
 0x60e   :  { %5027 = vmatmul.bf16.gmra.mxu0 %v14224_v27 }
 0x613   :  { %v13527_v46 = vpop.f32.mrf.mxu0 }
 0x61b   :  { %v4837_v0 = vpop.f32.mrf.mxu0 }
 0x61c   :  { %v13530_v61 = vadd.f32 %v4837_v0, %v13449_v48  ;;  %v4864_v48 = vadd.f32 %v4863_v25, %v4815_v31  ;;  %v4971_v31 = vpop.f32.mrf.mxu3  ;;  %v4874_v0 = vadd.f32 %v4873_v42, %v4825_v56 }
 0x61e   :  { %5032 = vmatmul.bf16.gmra.mxu0 %v14225_v44 }
 0x623   :  { %v13535_v55 = vpop.f32.mrf.mxu0 }
 0x624   :  { %v4974_v27 = vpop.f32.mrf.mxu3 }
 0x62b   :  { %v4842_v34 = vpop.f32.mrf.mxu0 }
 0x62c   :  { %v13538_v35 = vadd.f32 %v4842_v34, %v13472_v3  ;;  %v4913_v3 = vadd.f32 %v4912_v37, %v4864_v48  ;;  %v4923_v34 = vadd.f32 %v4922_v52, %v4874_v0 }
 0x62e   :  { %5037 = vmatmul.bf16.gmra.mxu0 %v4017_v57  ;;  %v4962_v28 = vadd.f32 %v4961_v29, %v4913_v3  ;;  %v4876_v29 = vpop.f32.mrf.mxu1  ;;  %v4972_v48 = vadd.f32 %v4971_v31, %v4923_v34 }
 0x633   :  { %v13543_v49 = vpop.f32.mrf.mxu0 }
 0x63b   :  { %v4847_v38 = vpop.f32.mrf.mxu0 }
 0x63c   :  { %v13545_v18 = vadd.f32 %v4847_v38, %v4799_v62 }
 0x63e   :  { %5042 = vmatmul.bf16.gmra.mxu0 %v4026_v17  ;;  %v4869_v17 = vadd.f32 %v4868_v47, %v4820_v43  ;;  %v4878_v43 = vpop.f32.mrf.mxu1 }
 0x63f   :  { %v4879_v31 = vadd.f32 %v4878_v43, %v13519_v5 }
 0x643   :  { %v13550_v8 = vpop.f32.mrf.mxu0 }
 0x64b   :  { %v5008_v2 = vpop.f32.mrf.mxu0 }
 0x64c   :  { %v13552_v59 = vadd.f32 %v5008_v2, %v4960_v33  ;;  %v4918_v33 = vadd.f32 %v4917_v41, %v4869_v17  ;;  %v4976_v2 = vpop.f32.mrf.mxu3 }
 0x64e   :  { %v5048_v57 = vmax.f32 %v13552_v59, 0.0  ;;  %v4967_v23 = vadd.f32 %v4966_v60, %v4918_v33 }
 0x653   :  { %v5010_v1 = vpop.f32.mrf.mxu0 }
 0x654   :  { %v13554_v26 = vadd.f32 %v5010_v1, %v4962_v28  ;;  %v4877_v28 = vadd.f32 %v4876_v29, %v4828_v50  ;;  %v4881_v1 = vpop.f32.mrf.mxu1  ;;  %v4979_v42 = vpop.f32.mrf.mxu3 }
 0x656   :  { %v5049_v62 = vmax.f32 %v13554_v26, 0.0  ;;  %v4926_v17 = vadd.f32 %v4925_v12, %v4877_v28 }
 0x658   :  { %v5064_v63 = vadd.f32 %v5049_v62, %v5048_v57 }
 0x65b   :  { %v5013_v58 = vpop.f32.mrf.mxu0 }
 0x65c   :  { %v13562_v25 = vadd.f32 %v5013_v58, %v4965_v19  ;;  %v4927_v19 = vpop.f32.mrf.mxu2  ;;  %v4883_v29 = vpop.f32.mrf.mxu1 }
 0x65d   :  { %v4928_v50 = vadd.f32 %v4927_v19, %v4879_v31  ;;  %v4981_v5 = vpop.f32.mrf.mxu3 }
 0x65e   :  { %v5050_v37 = vmax.f32 %v13562_v25, 0.0 }
 0x65f   :  { %v4977_v0 = vadd.f32 %v4976_v2, %v4928_v50 }
 0x660   :  { %v5065_v10 = vadd.f32 %v5064_v63, %v5050_v37 }
 0x663   :  { %v5015_v13 = vpop.f32.mrf.mxu0 }
 0x664   :  { %v13567_v24 = vadd.f32 %v5015_v13, %v4967_v23  ;;  %v4930_v58 = vpop.f32.mrf.mxu2 }
 0x666   :  { %v5051_v7 = vmax.f32 %v13567_v24, 0.0 }
 0x668   :  { %v5066_v47 = vadd.f32 %v5065_v10, %v5051_v7  ;;  %v4639_v10 = vadd.f32 %v13331_v14, %v13422_v22  ;;  %v4882_v22 = vadd.f32 %v4881_v1, %v13522_v39  ;;  %v4644_v39 = vadd.f32 %v13331_v14, %v13445_v53 }
 0x66a   :  { %v4931_v19 = vadd.f32 %v4930_v58, %v4882_v22  ;;  %v4984_v58 = vpop.f32.mrf.mxu3 }
 0x66b   :  { %v5018_v41 = vpop.f32.mrf.mxu0 }
 0x66c   :  { %v13572_v44 = vadd.f32 %v5018_v41, %v4970_v36  ;;  %v4975_v36 = vadd.f32 %v4974_v27, %v4926_v17  ;;  %v4932_v12 = vpop.f32.mrf.mxu2 }
 0x66e   :  { %v5052_v38 = vmax.f32 %v13572_v44, 0.0 }
 0x670   :  { %v5067_v60 = vadd.f32 %v5066_v47, %v5052_v38  ;;  %v4688_v47 = vadd.f32 %v13424_v51, %v4639_v10  ;;  %v4886_v51 = vpop.f32.mrf.mxu1 }
 0x671   :  { %v4887_v53 = vadd.f32 %v4886_v51, %v13530_v61 }
 0x672   :  { %v4737_v27 = vadd.f32 %v13428_v54, %v4688_v47  ;;  %v4980_v54 = vadd.f32 %v4979_v42, %v4931_v19 }
 0x673   :  { %v5020_v3 = vpop.f32.mrf.mxu0 }
 0x674   :  { %v13577_v63 = vadd.f32 %v5020_v3, %v4972_v48  ;;  %v4786_v43 = vadd.f32 %v13430_v16, %v4737_v27  ;;  %v4935_v17 = vpop.f32.mrf.mxu2 }
 0x676   :  { %v5053_v33 = vmax.f32 %v13577_v63, 0.0  ;;  %v4835_v3 = vadd.f32 %v13527_v46, %v4786_v43 }
 0x678   :  { %v5068_v56 = vadd.f32 %v5067_v60, %v5053_v33  ;;  %v4884_v1 = vadd.f32 %v4883_v29, %v4835_v3  ;;  %v4888_v42 = vpop.f32.mrf.mxu1 }
 0x67b   :  { %v5023_v52 = vpop.f32.mrf.mxu0 }
 0x67c   :  { %v13585_v23 = vadd.f32 %v5023_v52, %v4975_v36  ;;  %v4933_v36 = vadd.f32 %v4932_v12, %v4884_v1  ;;  %v4693_v52 = vadd.f32 %v13447_v40, %v4644_v39  ;;  %v4937_v50 = vpop.f32.mrf.mxu2 }
 0x67e   :  { %v5054_v13 = vmax.f32 %v13585_v23, 0.0  ;;  %v4742_v10 = vadd.f32 %v13451_v20, %v4693_v52  ;;  %v4982_v31 = vadd.f32 %v4981_v5, %v4933_v36  ;;  %v4649_v5 = vadd.f32 %v13331_v14, %v13468_v9 }
 0x680   :  { %v5069_v41 = vadd.f32 %v5068_v56, %v5054_v13  ;;  %v4791_v12 = vadd.f32 %v13453_v4, %v4742_v10  ;;  %v4891_v61 = vpop.f32.mrf.mxu1 }
 0x681   :  { %v4892_v9 = vadd.f32 %v4891_v61, %v13538_v35 }
 0x682   :  { %v4840_v40 = vadd.f32 %v13535_v55, %v4791_v12 }
 0x683   :  { %v5025_v34 = vpop.f32.mrf.mxu0 }
 0x684   :  { %v13593_v60 = vadd.f32 %v5025_v34, %v4977_v0  ;;  %v4986_v34 = vpop.f32.mrf.mxu3  ;;  %v4889_v43 = vadd.f32 %v4888_v42, %v4840_v40  ;;  %v4940_v3 = vpop.f32.mrf.mxu2 }
 0x686   :  { %v5055_v48 = vmax.f32 %v13593_v60, 0.0  ;;  %v4938_v4 = vadd.f32 %v4937_v50, %v4889_v43  ;;  %v4654_v50 = vadd.f32 %v13331_v14, %v13491_v32 }
 0x688   :  { %v5070_v28 = vadd.f32 %v5069_v41, %v5055_v48  ;;  %v4936_v41 = vadd.f32 %v4935_v17, %v4887_v53  ;;  %v4893_v52 = vpop.f32.mrf.mxu1 }
 0x68a   :  { %v4985_v20 = vadd.f32 %v4984_v58, %v4936_v41  ;;  %v4941_v58 = vadd.f32 %v4940_v3, %v4892_v9  ;;  %v4703_v41 = vadd.f32 %v13493_v11, %v4654_v50 }
 0x68b   :  { %v5028_v2 = vpop.f32.mrf.mxu0 }
 0x68c   :  { %v13602_v56 = vadd.f32 %v5028_v2, %v4980_v54  ;;  %v4987_v54 = vadd.f32 %v4986_v34, %v4938_v4  ;;  %v4989_v2 = vpop.f32.mrf.mxu3  ;;  %v4942_v10 = vpop.f32.mrf.mxu2  ;;  %v4752_v34 = vadd.f32 %v13495_v45, %v4703_v41 }
 0x68e   :  { %v5056_v16 = vmax.f32 %v13602_v56, 0.0  ;;  %v4801_v14 = vadd.f32 %v13497_v21, %v4752_v34 }
 0x690   :  { %v5071_v46 = vadd.f32 %v5070_v28, %v5056_v16  ;;  %v4698_v28 = vadd.f32 %v13470_v6, %v4649_v5  ;;  %v4896_v40 = vpop.f32.mrf.mxu1  ;;  %v4850_v4 = vadd.f32 %v13550_v8, %v4801_v14 }
 0x691   :  { %v4897_v5 = vadd.f32 %v4896_v40, %v13545_v18 }
 0x692   :  { %v4747_v17 = vadd.f32 %v13474_v15, %v4698_v28  ;;  %v4990_v15 = vadd.f32 %v4989_v2, %v4941_v58 }
 0x693   :  { %v5030_v47 = vpop.f32.mrf.mxu0 }
 0x694   :  { %v13610_v29 = vadd.f32 %v5030_v47, %v4982_v31  ;;  %v4796_v36 = vadd.f32 %v13476_v30, %v4747_v17  ;;  %v4991_v53 = vpop.f32.mrf.mxu3  ;;  %v11847_v17 = vmov 128.0  }
 0x695   :  { %11442 = vrcp.f32 %v11847_v17 }
 0x696   :  { %v5057_v27 = vmax.f32 %v13610_v29, 0.0  ;;  %v4845_v6 = vadd.f32 %v13543_v49, %v4796_v36  ;;  %v4945_v49 = vpop.f32.mrf.mxu2 }
 0x697   :  { %v4946_v32 = vadd.f32 %v4945_v49, %v4897_v5 }
 0x698   :  { %v5072_v0 = vadd.f32 %v5071_v46, %v5057_v27  ;;  %v4894_v35 = vadd.f32 %v4893_v52, %v4845_v6  ;;  %v4898_v11 = vpop.f32.mrf.mxu1 }
 0x699   :  { %v4899_v45 = vadd.f32 %v4898_v11, %v4850_v4 }
 0x69a   :  { %v4943_v30 = vadd.f32 %v4942_v10, %v4894_v35 }
 0x69b   :  { %v5033_v22 = vpop.f32.mrf.mxu0  ;;  %v11443_v18 = vpop.eup %11442 }
 0x69c   :  { %v13619_v19 = vadd.f32 %v5033_v22, %v4985_v20  ;;  %v4992_v20 = vadd.f32 %v4991_v53, %v4943_v30  ;;  %v4994_v3 = vpop.f32.mrf.mxu3  ;;  %v5086_v6 = vmul.f32 128.0, %v11443_v18  ;;  %vm5090_vm0 = vweird.f32 %v11443_v18 }
 0x69e   :  { %v5058_v51 = vmax.f32 %v13619_v19, 0.0  ;;  %v5087_v8 = vsub.f32 1.0, %v5086_v6 }
 0x6a0   :  { %v5073_v55 = vadd.f32 %v5072_v0, %v5058_v51  ;;  %v5088_v35 = vmul.f32 %v11443_v18, %v5087_v8 }
 0x6a2   :  { %v5089_v30 = vadd.f32 %v11443_v18, %v5088_v35 }
 0x6a3   :  { %v5035_v39 = vpop.f32.mrf.mxu0 }
 0x6a4   :  { %v13627_v1 = vadd.f32 %v5035_v39, %v4987_v54  ;;  %v4947_v54 = vpop.f32.mrf.mxu2  ;;  %v4996_v52 = vpop.f32.mrf.mxu3 }
 0x6a5   :  { %v4948_v9 = vadd.f32 %v4947_v54, %v4899_v45 }
 0x6a6   :  { %v5059_v46 = vmax.f32 %v13627_v1, 0.0 }
 0x6a7   :  { %v4997_v21 = vadd.f32 %v4996_v52, %v4948_v9 }
 0x6a8   :  { %v5074_v31 = vadd.f32 %v5073_v55, %v5059_v46  ;;  %v4995_v55 = vadd.f32 %v4994_v3, %v4946_v32 }
 0x6ab   :  { %v5038_v42 = vpop.f32.mrf.mxu0 }
 0x6ac   :  { %v13636_v47 = vadd.f32 %v5038_v42, %v4990_v15 }
 0x6ae   :  { %v5060_v12 = vmax.f32 %v13636_v47, 0.0 }
 0x6b0   :  { %v5075_v0 = vadd.f32 %v5074_v31, %v5060_v12 }
 0x6b3   :  { %v5040_v22 = vpop.f32.mrf.mxu0 }
 0x6b4   :  { %v5041_v43 = vadd.f32 %v5040_v22, %v4992_v20 }
 0x6b6   :  { %v5061_v61 = vmax.f32 %v5041_v43, 0.0 }
 0x6b8   :  { %v5076_v28 = vadd.f32 %v5075_v0, %v5061_v61  ;;  %v5091_v0 = vsel %vm5090_vm0, %v11443_v18, %v5089_v30 }
 0x6bb   :  { %v5043_v2 = vpop.f32.mrf.mxu0 }
 0x6bc   :  { %v5044_v39 = vadd.f32 %v5043_v2, %v4995_v55 }
 0x6be   :  { %v5062_v36 = vmax.f32 %v5044_v39, 0.0 }
 0x6c0   :  { %v5077_v58 = vadd.f32 %v5076_v28, %v5062_v36 }
 0x6c3   :  { %v5045_v10 = vpop.f32.mrf.mxu0 }
 0x6c4   :  { %v5046_v31 = vadd.f32 %v5045_v10, %v4997_v21 }
 0x6c6   :  { %v5063_v15 = vmax.f32 %v5046_v31, 0.0 }
 0x6c8   :  { %v5078_v42 = vadd.f32 %v5077_v58, %v5063_v15 }
 0x6ca   :  { %v5079_v50 = vrot.slane %v5078_v42, 4 }
 0x6cc   :  { %v5080_v47 = vadd.f32 %v5079_v50, %v5078_v42 }
 0x6ce   :  { %v5081_v53 = vrot.slane %v5080_v47, 2 }
 0x6d0   :  { %v5082_v41 = vadd.f32 %v5081_v53, %v5080_v47 }
 0x6d2   :  { %v5083_v40 = vrot.slane %v5082_v41, 1 }
 0x6d4   :  { %v5084_v49 = vadd.f32 %v5083_v40, %v5082_v41 }
 0x6d6   :  { %v5092_v34 = vmul.f32 %v5091_v0, %v5084_v49 }
 0x6d8   :  { %v13646_v20 = vsub.f32 %v5048_v57, %v5092_v34  ;;  %v13650_v22 = vsub.f32 %v5049_v62, %v5092_v34  ;;  %v13654_v5 = vsub.f32 %v5050_v37, %v5092_v34  ;;  %v13658_v43 = vsub.f32 %v5051_v7, %v5092_v34 }
 0x6d9   :  { %v13662_v14 = vsub.f32 %v5052_v38, %v5092_v34  ;;  %v13666_v59 = vsub.f32 %v5053_v33, %v5092_v34  ;;  %v13670_v26 = vsub.f32 %v5054_v13, %v5092_v34  ;;  %v13674_v57 = vsub.f32 %v5055_v48, %v5092_v34 }
 0x6da   :  { %v5101_v62 = vsub.f32 %v5056_v16, %v5092_v34  ;;  %v5102_v25 = vsub.f32 %v5057_v27, %v5092_v34  ;;  %v5103_v37 = vsub.f32 %v5058_v51, %v5092_v34  ;;  %v5104_v24 = vsub.f32 %v5059_v46, %v5092_v34 }
 0x6db   :  { %v5105_v7 = vsub.f32 %v5060_v12, %v5092_v34  ;;  %v5106_v44 = vsub.f32 %v5061_v61, %v5092_v34  ;;  %v5107_v38 = vsub.f32 %v5062_v36, %v5092_v34  ;;  %v5108_v63 = vsub.f32 %v5063_v15, %v5092_v34  ;;  %v13700_v34 = vld [vmem:[#allocation16] ss:$0 sm:$0xff] }
 0x6dc   :  { %v5109_v33 = vmul.f32 %v13646_v20, %v13646_v20  ;;  %v5110_v23 = vmul.f32 %v13650_v22, %v13650_v22  ;;  %v5111_v13 = vmul.f32 %v13654_v5, %v13654_v5  ;;  %v5112_v48 = vmul.f32 %v13658_v43, %v13658_v43 }
 0x6dd   :  { %v5113_v16 = vmul.f32 %v13662_v14, %v13662_v14  ;;  %v5114_v27 = vmul.f32 %v13666_v59, %v13666_v59  ;;  %v5115_v51 = vmul.f32 %v13670_v26, %v13670_v26  ;;  %v5116_v46 = vmul.f32 %v13674_v57, %v13674_v57 }
 0x6de   :  { %v5125_v60 = vadd.f32 %v5110_v23, %v5109_v33  ;;  %v5117_v32 = vmul.f32 %v5101_v62, %v5101_v62  ;;  %v5118_v3 = vmul.f32 %v5102_v25, %v5102_v25  ;;  %v5119_v28 = vmul.f32 %v5103_v37, %v5103_v37 }
 0x6df   :  { %v5120_v11 = vmul.f32 %v5104_v24, %v5104_v24  ;;  %v5121_v54 = vmul.f32 %v5105_v7, %v5105_v7  ;;  %v5122_v45 = vmul.f32 %v5106_v44, %v5106_v44  ;;  %v5123_v9 = vmul.f32 %v5107_v38, %v5107_v38 }
 0x6e0   :  { %v5126_v56 = vadd.f32 %v5125_v60, %v5111_v13  ;;  %v5124_v18 = vmul.f32 %v5108_v63, %v5108_v63 }
 0x6e2   :  { %v5127_v29 = vadd.f32 %v5126_v56, %v5112_v48 }
 0x6e4   :  { %v5128_v19 = vadd.f32 %v5127_v29, %v5113_v16  ;;  %v13702_v29 = vld [vmem:[#allocation17] ss:$0 sm:$0xff] }
 0x6e6   :  { %v5129_v1 = vadd.f32 %v5128_v19, %v5114_v27 }
 0x6e8   :  { %v5130_v12 = vadd.f32 %v5129_v1, %v5115_v51 }
 0x6ea   :  { %v5131_v61 = vadd.f32 %v5130_v12, %v5116_v46 }
 0x6ec   :  { %v5132_v4 = vadd.f32 %v5131_v61, %v5117_v32 }
 0x6ee   :  { %v5133_v55 = vadd.f32 %v5132_v4, %v5118_v3 }
 0x6f0   :  { %v5134_v17 = vadd.f32 %v5133_v55, %v5119_v28 }
 0x6f2   :  { %v5135_v2 = vadd.f32 %v5134_v17, %v5120_v11 }
 0x6f4   :  { %v5136_v39 = vadd.f32 %v5135_v2, %v5121_v54 }
 0x6f6   :  { %v5137_v36 = vadd.f32 %v5136_v39, %v5122_v45 }
 0x6f8   :  { %v5138_v58 = vadd.f32 %v5137_v36, %v5123_v9 }
 0x6fa   :  { %v5139_v52 = vadd.f32 %v5138_v58, %v5124_v18 }
 0x6fc   :  { %v5140_v21 = vrot.slane %v5139_v52, 4 }
 0x6fe   :  { %v5141_v10 = vadd.f32 %v5140_v21, %v5139_v52 }
 0x700   :  { %v5142_v6 = vrot.slane %v5141_v10, 2 }
 0x702   :  { %v5143_v31 = vadd.f32 %v5142_v6, %v5141_v10 }
 0x704   :  { %v5144_v15 = vrot.slane %v5143_v31, 1 }
 0x706   :  { %v5145_v8 = vadd.f32 %v5144_v15, %v5143_v31 }
 0x708   :  { %v5146_v42 = vmul.f32 %v5145_v8, %v5091_v0 }
 0x70a   :  { %v5147_v50 = vadd.f32 1e-05, %v5146_v42 }
 0x70c   :  { %11444 = vrsqrt.f32 %v5147_v50  ;;  %vm5154_vm2 = vweird.f32 %v5147_v50 }
 0x712   :  { %v11445_v35 = vpop.eup %11444 }
 0x713   :  { %v5149_v47 = vmul.f32 %v11445_v35, %v5147_v50  ;;  %vm5155_vm1 = vweird.f32 %v11445_v35 }
 0x714   :  { %vm5156_vm3 = vmor %vm5154_vm2, %vm5155_vm1 }
 0x715   :  { %v5150_v53 = vmul.f32 %v11445_v35, %v5149_v47  ;;  %v11176_v47 = vld [vmem:[#allocation7] sm:$0xff] }
 0x717   :  { %v5151_v30 = vmul.f32 0.5, %v5150_v53  ;;  %v11178_v53 = vld [vmem:[#allocation7 + $0x10] sm:$0xff] }
 0x719   :  { %v5152_v41 = vsub.f32 1.5, %v5151_v30  ;;  %v11180_v30 = vld [vmem:[#allocation7 + $0x20] sm:$0xff] }
 0x71b   :  { %v5153_v40 = vmul.f32 %v11445_v35, %v5152_v41  ;;  %v11177_v41 = vld [vmem:[#allocation7 + $0x8] sm:$0xff] }
 0x71d   :  { %v5157_v49 = vsel %vm5156_vm3, %v11445_v35, %v5153_v40  ;;  %v11179_v40 = vld [vmem:[#allocation7 + $0x18] sm:$0xff] }
 0x71e   :  { %v5166_v33 = vmul.f32 %v5157_v49, %v5101_v62  ;;  %v5167_v23 = vmul.f32 %v5157_v49, %v5102_v25  ;;  %v5168_v13 = vmul.f32 %v5157_v49, %v5103_v37  ;;  %v5169_v60 = vmul.f32 %v5157_v49, %v5104_v24 }
 0x71f   :  { %v5170_v48 = vmul.f32 %v5157_v49, %v5105_v7  ;;  %v5171_v0 = vmul.f32 %v5157_v49, %v5106_v44  ;;  %v5172_v56 = vmul.f32 %v5157_v49, %v5107_v38  ;;  %v5173_v16 = vmul.f32 %v5157_v49, %v5108_v63 }
 0x720   :  { %v5186_v27 = vmul.f32 %v13700_v34, %v5166_v33  ;;  %v5187_v19 = vmul.f32 %v13700_v34, %v5167_v23  ;;  %v5188_v51 = vmul.f32 %v13700_v34, %v5168_v13  ;;  %v5189_v1 = vmul.f32 %v13700_v34, %v5169_v60  ;;  %v11184_v33 = vld [vmem:[#allocation7 + $0x40] sm:$0xff]  ;;  %v11186_v23 = vld [vmem:[#allocation7 + $0x50] sm:$0xff]  ;;  %v11183_v13 = vld [vmem:[#allocation7 + $0x38] sm:$0xff] }
 0x721   :  { %v5190_v46 = vmul.f32 %v13700_v34, %v5170_v48  ;;  %v5191_v62 = vmul.f32 %v13700_v34, %v5171_v0  ;;  %v5192_v25 = vmul.f32 %v13700_v34, %v5172_v56  ;;  %v5193_v37 = vmul.f32 %v13700_v34, %v5173_v16  ;;  %v11185_v60 = vld [vmem:[#allocation7 + $0x48] sm:$0xff]  ;;  %v11187_v48 = vld [vmem:[#allocation7 + $0x58] sm:$0xff]  ;;  %v11200_v56 = vld [vmem:[#allocation8 + $0x30] sm:$0xff] }
 0x722   :  { %v5206_v24 = vadd.f32 %v13702_v29, %v5186_v27  ;;  %v5207_v7 = vadd.f32 %v13702_v29, %v5187_v19  ;;  %v5208_v44 = vadd.f32 %v13702_v29, %v5188_v51  ;;  %v5209_v38 = vadd.f32 %v13702_v29, %v5189_v1  ;;  %v11201_v0 = vld [vmem:[#allocation8 + $0x38] sm:$0xff]  ;;  %v11188_v16 = vld [vmem:[#allocation7 + $0x60] sm:$0xff]  ;;  %v11199_v19 = vld [vmem:[#allocation8 + $0x28] sm:$0xff] }
 0x723   :  { %v5210_v63 = vadd.f32 %v13702_v29, %v5190_v46  ;;  %v5211_v12 = vadd.f32 %v13702_v29, %v5191_v62  ;;  %v5212_v32 = vadd.f32 %v13702_v29, %v5192_v25  ;;  %v5213_v61 = vadd.f32 %v13702_v29, %v5193_v37  ;;  %v11192_v27 = vld [vmem:[#allocation7 + $0x80] sm:$0xff]  ;;  %v11189_v51 = vld [vmem:[#allocation7 + $0x68] sm:$0xff]  ;;  %v11191_v1 = vld [vmem:[#allocation7 + $0x78] sm:$0xff] }
 0x724   :  { %v13720_v3 = vpack.c.bf16 %v5207_v7, %v5206_v24  ;;  %v13722_v4 = vpack.c.bf16 %v5209_v38, %v5208_v44  ;;  %v5164_v11 = vmul.f32 %v5157_v49, %v13670_v26  ;;  %v5165_v17 = vmul.f32 %v5157_v49, %v13674_v57  ;;  %v11193_v46 = vld [vmem:[#allocation7 + $0x88] sm:$0xff]  ;;  %v11208_v37 = vld [vmem:[#allocation8 + $0x70] sm:$0xff]  ;;  %v11198_v7 = vld [vmem:[#allocation8 + $0x20] sm:$0xff] }
 0x725   :  { %v13724_v28 = vpack.c.bf16 %v5211_v12, %v5210_v63  ;;  %v13726_v55 = vpack.c.bf16 %v5213_v61, %v5212_v32  ;;  %v5162_v54 = vmul.f32 %v5157_v49, %v13662_v14  ;;  %v5163_v2 = vmul.f32 %v5157_v49, %v13666_v59  ;;  %v11209_v62 = vld [vmem:[#allocation8 + $0x78] sm:$0xff]  ;;  %v11216_v24 = vld [vmem:[#allocation8 + $0xb0] sm:$0xff]  ;;  %v11207_v44 = vld [vmem:[#allocation8 + $0x68] sm:$0xff] }
 0x726   :  { %v5184_v45 = vmul.f32 %v13700_v34, %v5164_v11  ;;  %v5185_v39 = vmul.f32 %v13700_v34, %v5165_v17  ;;  %v5160_v14 = vmul.f32 %v5157_v49, %v13654_v5  ;;  %v5161_v59 = vmul.f32 %v5157_v49, %v13658_v43  ;;  %v11217_v25 = vld [vmem:[#allocation8 + $0xb8] sm:$0xff]  ;;  %v11215_v38 = vld [vmem:[#allocation8 + $0xa8] sm:$0xff]  ;;  %v11206_v12 = vld [vmem:[#allocation8 + $0x60] sm:$0xff] }
 0x727   :  { %5238 = vmatpush.bf16.msrb.mxu1 %v13726_v55  ;;  %5274 = vmatpush.bf16.msrb.mxu2 %v13726_v55  ;;  %v5182_v26 = vmul.f32 %v13700_v34, %v5162_v54  ;;  %v5183_v57 = vmul.f32 %v13700_v34, %v5163_v2  ;;  %v5158_v18 = vmul.f32 %v5157_v49, %v13646_v20  ;;  %v11197_v63 = vld [vmem:[#allocation8 + $0x18] sm:$0xff]  ;;  %v11214_v32 = vld [vmem:[#allocation8 + $0xa0] sm:$0xff]  ;;  %v11196_v61 = vld [vmem:[#allocation8 + $0x10] sm:$0xff] }
 0x728   :  { %5310 = vmatpush.bf16.msrb.mxu3 %v13726_v55  ;;  %v5204_v9 = vadd.f32 %v13702_v29, %v5184_v45  ;;  %v5205_v36 = vadd.f32 %v13702_v29, %v5185_v39  ;;  %v5159_v5 = vmul.f32 %v5157_v49, %v13650_v22  ;;  %v5180_v43 = vmul.f32 %v13700_v34, %v5160_v14  ;;  %v11181_v49 = vld [vmem:[#allocation7 + $0x28] sm:$0xff]  ;;  %v11212_v11 = vld [vmem:[#allocation8 + $0x90] sm:$0xff]  ;;  %v11194_v17 = vld [vmem:[#allocation8] sm:$0xff] }
 0x729   :  { %v5202_v58 = vadd.f32 %v13702_v29, %v5182_v26  ;;  %v5203_v52 = vadd.f32 %v13702_v29, %v5183_v57  ;;  %v5181_v21 = vmul.f32 %v13700_v34, %v5161_v59  ;;  %v5178_v22 = vmul.f32 %v13700_v34, %v5158_v18  ;;  %v11203_v54 = vld [vmem:[#allocation8 + $0x48] sm:$0xff]  ;;  %v11225_v45 = vld [vmem:[#allocation8 + $0xf8] sm:$0xff]  ;;  %v11202_v26 = vld [vmem:[#allocation8 + $0x40] sm:$0xff] }
 0x72a   :  { %v13758_v10 = vpack.c.bf16 %v5205_v36, %v5204_v9  ;;  %v5200_v6 = vadd.f32 %v13702_v29, %v5180_v43  ;;  %v5179_v15 = vmul.f32 %v13700_v34, %v5159_v5  ;;  %v11182_v34 = vld [vmem:[#allocation7 + $0x30] sm:$0xff]  ;;  %v11211_v2 = vld [vmem:[#allocation8 + $0x88] sm:$0xff]  ;;  %6201 = vmatpush.bf16.msra.mxu0 %v11225_v45  ;;  %v11233_v39 = vld [vmem:[#allocation8 + $0x138] sm:$0xff] }
 0x72b   :  { %5239 = vmatpush.bf16.msrb.mxu1 %v13724_v28  ;;  %5275 = vmatpush.bf16.msrb.mxu2 %v13724_v28  ;;  %v13763_v20 = vpack.c.bf16 %v5203_v52, %v5202_v58  ;;  %v5201_v31 = vadd.f32 %v13702_v29, %v5181_v21  ;;  %v5198_v42 = vadd.f32 %v13702_v29, %v5178_v22  ;;  %v11210_v57 = vld [vmem:[#allocation8 + $0x80] sm:$0xff]  ;;  %v11224_v14 = vld [vmem:[#allocation8 + $0xf0] sm:$0xff]  ;;  %v11241_v59 = vld [vmem:[#allocation8 + $0x178] sm:$0xff] }
 0x72c   :  { %5311 = vmatpush.bf16.msrb.mxu3 %v13724_v28  ;;  %v5199_v50 = vadd.f32 %v13702_v29, %v5179_v15  ;;  %v11190_v29 = vld [vmem:[#allocation7 + $0x70] sm:$0xff]  ;;  %v11223_v9 = vld [vmem:[#allocation8 + $0xe8] sm:$0xff]  ;;  %v11232_v36 = vld [vmem:[#allocation8 + $0x130] sm:$0xff] }
 0x72d   :  { %v13772_v8 = vpack.c.bf16 %v5201_v31, %v5200_v6  ;;  %v11240_v18 = vld [vmem:[#allocation8 + $0x170] sm:$0xff]  ;;  %v11231_v58 = vld [vmem:[#allocation8 + $0x128] sm:$0xff]  ;;  %v11222_v52 = vld [vmem:[#allocation8 + $0xe0] sm:$0xff] }
 0x72e   :  { %v13779_v35 = vpack.c.bf16 %v5199_v50, %v5198_v42  ;;  %6202 = vmatpush.bf16.msra.mxu0 %v11224_v14  ;;  %v11239_v5 = vld [vmem:[#allocation8 + $0x168] sm:$0xff]  ;;  %v11221_v43 = vld [vmem:[#allocation8 + $0xd8] sm:$0xff]  ;;  %v11220_v31 = vld [vmem:[#allocation8 + $0xd0] sm:$0xff] }
 0x72f   :  { %5240 = vmatpush.bf16.msrb.mxu1 %v13722_v4  ;;  %5276 = vmatpush.bf16.msrb.mxu2 %v13722_v4  ;;  %v11229_v6 = vld [vmem:[#allocation8 + $0x118] sm:$0xff]  ;;  %v11252_v45 = vld [vmem:[#allocation8 + $0x1d0] sm:$0xff]  ;;  %v11242_v14 = vld [vmem:[#allocation8 + $0x180] sm:$0xff] }
 0x730   :  { %5312 = vmatpush.bf16.msrb.mxu3 %v13722_v4  ;;  %v11237_v22 = vld [vmem:[#allocation8 + $0x158] sm:$0xff] }
 0x732   :  { %6203 = vmatpush.bf16.msra.mxu0 %v11223_v9  ;;  %v11259_v9 = vld [vmem:[#allocation8 + $0x208] sm:$0xff] }
 0x733   :  { %5241 = vmatpush.bf16.msrb.mxu1 %v13720_v3  ;;  %5277 = vmatpush.bf16.msrb.mxu2 %v13720_v3 }
 0x734   :  { %5313 = vmatpush.bf16.msrb.mxu3 %v13720_v3 }
 0x736   :  { %6204 = vmatpush.bf16.msra.mxu0 %v11222_v52  ;;  %v11258_v52 = vld [vmem:[#allocation8 + $0x200] sm:$0xff] }
 0x737   :  { %5242 = vmatpush.bf16.msrb.mxu1 %v13758_v10  ;;  %5278 = vmatpush.bf16.msrb.mxu2 %v13758_v10 }
 0x738   :  { %5314 = vmatpush.bf16.msrb.mxu3 %v13758_v10 }
 0x73a   :  { %6205 = vmatpush.bf16.msra.mxu0 %v11221_v43 }
 0x73b   :  { %5243 = vmatpush.bf16.msrb.mxu1 %v13763_v20  ;;  %5279 = vmatpush.bf16.msrb.mxu2 %v13763_v20 }
 0x73c   :  { %5315 = vmatpush.bf16.msrb.mxu3 %v13763_v20 }
 0x73e   :  { %6206 = vmatpush.bf16.msra.mxu0 %v11220_v31 }
 0x73f   :  { %5244 = vmatpush.bf16.msrb.mxu1 %v13772_v8  ;;  %5280 = vmatpush.bf16.msrb.mxu2 %v13772_v8 }
 0x740   :  { %5316 = vmatpush.bf16.msrb.mxu3 %v13772_v8 }
 0x743   :  { %5245 = vmatpush.bf16.msrb.mxu1 %v13779_v35  ;;  %5281 = vmatpush.bf16.msrb.mxu2 %v13779_v35 }
 0x744   :  { %5317 = vmatpush.bf16.msrb.mxu3 %v13779_v35 }
 0x746   :  { %5246 = vmatmul.bf16.vlgmr.msrb.gmra.mxu1 %v11176_v47  ;;  %5282 = vmatmul.bf16.vlgmr.msrb.gmra.mxu2 %v11178_v53  ;;  %v11236_v47 = vld [vmem:[#allocation8 + $0x150] sm:$0xff] }
 0x747   :  { %5346 = vmatpush.bf16.msra.mxu1 %v13726_v55  ;;  %5382 = vmatpush.bf16.msra.mxu2 %v13726_v55 }
 0x748   :  { %5418 = vmatpush.bf16.msra.mxu3 %v13726_v55 }
 0x749   :  { %5318 = vmatmul.bf16.vlgmr.msrb.gmra.mxu3 %v11180_v30  ;;  %v11249_v30 = vld [vmem:[#allocation8 + $0x1b8] sm:$0xff] }
 0x74b   :  { %5347 = vmatpush.bf16.msra.mxu1 %v13724_v28  ;;  %5383 = vmatpush.bf16.msra.mxu2 %v13724_v28 }
 0x74c   :  { %5419 = vmatpush.bf16.msra.mxu3 %v13724_v28 }
 0x74f   :  { %5348 = vmatpush.bf16.msra.mxu1 %v13722_v4  ;;  %5384 = vmatpush.bf16.msra.mxu2 %v13722_v4 }
 0x750   :  { %5420 = vmatpush.bf16.msra.mxu3 %v13722_v4 }
 0x753   :  { %5349 = vmatpush.bf16.msra.mxu1 %v13720_v3  ;;  %5385 = vmatpush.bf16.msra.mxu2 %v13720_v3 }
 0x754   :  { %5421 = vmatpush.bf16.msra.mxu3 %v13720_v3 }
 0x756   :  { %5251 = vmatmul.bf16.gmra.mxu1 %v11177_v41  ;;  %5287 = vmatmul.bf16.gmra.mxu2 %v11179_v40  ;;  %v11227_v41 = vld [vmem:[#allocation8 + $0x108] sm:$0xff]  ;;  %v11218_v40 = vld [vmem:[#allocation8 + $0xc0] sm:$0xff] }
 0x757   :  { %5350 = vmatpush.bf16.msra.mxu1 %v13758_v10  ;;  %5386 = vmatpush.bf16.msra.mxu2 %v13758_v10 }
 0x758   :  { %5422 = vmatpush.bf16.msra.mxu3 %v13758_v10 }
 0x759   :  { %5323 = vmatmul.bf16.gmra.mxu3 %v11181_v49  ;;  %v11235_v49 = vld [vmem:[#allocation8 + $0x148] sm:$0xff] }
 0x75b   :  { %5351 = vmatpush.bf16.msra.mxu1 %v13763_v20  ;;  %5387 = vmatpush.bf16.msra.mxu2 %v13763_v20 }
 0x75c   :  { %5423 = vmatpush.bf16.msra.mxu3 %v13763_v20 }
 0x75f   :  { %5352 = vmatpush.bf16.msra.mxu1 %v13772_v8  ;;  %5388 = vmatpush.bf16.msra.mxu2 %v13772_v8 }
 0x760   :  { %5424 = vmatpush.bf16.msra.mxu3 %v13772_v8 }
 0x763   :  { %5353 = vmatpush.bf16.msra.mxu1 %v13779_v35  ;;  %5389 = vmatpush.bf16.msra.mxu2 %v13779_v35 }
 0x764   :  { %5425 = vmatpush.bf16.msra.mxu3 %v13779_v35 }
 0x766   :  { %5354 = vmatmul.bf16.vlgmr.msra.gmra.mxu1 %v11182_v34  ;;  %5390 = vmatmul.bf16.vlgmr.msra.gmra.mxu2 %v11184_v33 }
 0x767   :  { %5454 = vmatpush.bf16.msrb.mxu1 %v13726_v55  ;;  %5490 = vmatpush.bf16.msrb.mxu2 %v13726_v55 }
 0x768   :  { %5526 = vmatpush.bf16.msrb.mxu3 %v13726_v55  ;;  %v11204_v55 = vld [vmem:[#allocation8 + $0x50] sm:$0xff] }
 0x769   :  { %5426 = vmatmul.bf16.vlgmr.msra.gmra.mxu3 %v11186_v23 }
 0x76b   :  { %5455 = vmatpush.bf16.msrb.mxu1 %v13724_v28  ;;  %5491 = vmatpush.bf16.msrb.mxu2 %v13724_v28 }
 0x76c   :  { %5527 = vmatpush.bf16.msrb.mxu3 %v13724_v28  ;;  %v11195_v28 = vld [vmem:[#allocation8 + $0x8] sm:$0xff] }
 0x76f   :  { %5456 = vmatpush.bf16.msrb.mxu1 %v13722_v4  ;;  %5492 = vmatpush.bf16.msrb.mxu2 %v13722_v4 }
 0x770   :  { %5528 = vmatpush.bf16.msrb.mxu3 %v13722_v4  ;;  %v11213_v4 = vld [vmem:[#allocation8 + $0x98] sm:$0xff] }
 0x773   :  { %5457 = vmatpush.bf16.msrb.mxu1 %v13720_v3  ;;  %5493 = vmatpush.bf16.msrb.mxu2 %v13720_v3 }
 0x774   :  { %5529 = vmatpush.bf16.msrb.mxu3 %v13720_v3  ;;  %v11205_v3 = vld [vmem:[#allocation8 + $0x58] sm:$0xff] }
 0x776   :  { %5359 = vmatmul.bf16.gmra.mxu1 %v11183_v13  ;;  %5395 = vmatmul.bf16.gmra.mxu2 %v11185_v60 }
 0x777   :  { %5458 = vmatpush.bf16.msrb.mxu1 %v13758_v10  ;;  %5494 = vmatpush.bf16.msrb.mxu2 %v13758_v10 }
 0x778   :  { %5530 = vmatpush.bf16.msrb.mxu3 %v13758_v10  ;;  %v11230_v10 = vld [vmem:[#allocation8 + $0x120] sm:$0xff] }
 0x779   :  { %5431 = vmatmul.bf16.gmra.mxu3 %v11187_v48  ;;  %v11226_v48 = vld [vmem:[#allocation8 + $0x100] sm:$0xff] }
 0x77b   :  { %5459 = vmatpush.bf16.msrb.mxu1 %v13763_v20  ;;  %5495 = vmatpush.bf16.msrb.mxu2 %v13763_v20 }
 0x77c   :  { %5531 = vmatpush.bf16.msrb.mxu3 %v13763_v20  ;;  %v11238_v20 = vld [vmem:[#allocation8 + $0x160] sm:$0xff] }
 0x77f   :  { %5460 = vmatpush.bf16.msrb.mxu1 %v13772_v8  ;;  %5496 = vmatpush.bf16.msrb.mxu2 %v13772_v8 }
 0x780   :  { %5532 = vmatpush.bf16.msrb.mxu3 %v13772_v8  ;;  %v11219_v8 = vld [vmem:[#allocation8 + $0xc8] sm:$0xff] }
 0x781   :  { %6207 = vmatpush.bf16.msra.mxu0 %v11219_v8 }
 0x783   :  { %5461 = vmatpush.bf16.msrb.mxu1 %v13779_v35  ;;  %5497 = vmatpush.bf16.msrb.mxu2 %v13779_v35 }
 0x784   :  { %5533 = vmatpush.bf16.msrb.mxu3 %v13779_v35  ;;  %v11228_v35 = vld [vmem:[#allocation8 + $0x110] sm:$0xff] }
 0x785   :  { %6208 = vmatpush.bf16.msra.mxu0 %v11218_v40 }
 0x786   :  { %5462 = vmatmul.bf16.vlgmr.msrb.gmra.mxu1 %v11188_v16  ;;  %5498 = vmatmul.bf16.vlgmr.msrb.gmra.mxu2 %v11190_v29  ;;  %v11257_v16 = vld [vmem:[#allocation8 + $0x1f8] sm:$0xff]  ;;  %v11247_v29 = vld [vmem:[#allocation8 + $0x1a8] sm:$0xff] }
 0x787   :  { %6144 = vmatpush.bf16.msra.mxu1 %v11201_v0  ;;  %6163 = vmatpush.bf16.msra.mxu2 %v11209_v62  ;;  %v11234_v0 = vld [vmem:[#allocation8 + $0x140] sm:$0xff]  ;;  %v11264_v62 = vld [vmem:[#allocation8 + $0x230] sm:$0xff] }
 0x788   :  { %6182 = vmatpush.bf16.msra.mxu3 %v11217_v25 }
 0x789   :  { %5534 = vmatmul.bf16.vlgmr.msrb.gmra.mxu3 %v11192_v27  ;;  %6277 = vmatpush.bf16.msrb.mxu0 %v11257_v16  ;;  %v11265_v27 = vld [vmem:[#allocation8 + $0x238] sm:$0xff] }
 0x78b   :  { %6145 = vmatpush.bf16.msra.mxu1 %v11200_v56  ;;  %6164 = vmatpush.bf16.msra.mxu2 %v11208_v37  ;;  %v11248_v56 = vld [vmem:[#allocation8 + $0x1b0] sm:$0xff]  ;;  %v11246_v37 = vld [vmem:[#allocation8 + $0x1a0] sm:$0xff] }
 0x78c   :  { %6183 = vmatpush.bf16.msra.mxu3 %v11216_v24  ;;  %v11255_v24 = vld [vmem:[#allocation8 + $0x1e8] sm:$0xff] }
 0x78f   :  { %6146 = vmatpush.bf16.msra.mxu1 %v11199_v19  ;;  %6165 = vmatpush.bf16.msra.mxu2 %v11207_v44  ;;  %v11245_v44 = vld [vmem:[#allocation8 + $0x198] sm:$0xff] }
 0x790   :  { %6184 = vmatpush.bf16.msra.mxu3 %v11215_v38 }
 0x793   :  { %6147 = vmatpush.bf16.msra.mxu1 %v11198_v7  ;;  %6166 = vmatpush.bf16.msra.mxu2 %v11206_v12  ;;  %v11263_v7 = vld [vmem:[#allocation8 + $0x228] sm:$0xff] }
 0x794   :  { %6185 = vmatpush.bf16.msra.mxu3 %v11214_v32 }
 0x796   :  { %5467 = vmatmul.bf16.gmra.mxu1 %v11189_v51  ;;  %5503 = vmatmul.bf16.gmra.mxu2 %v11191_v1 }
 0x797   :  { %6148 = vmatpush.bf16.msra.mxu1 %v11197_v63  ;;  %6167 = vmatpush.bf16.msra.mxu2 %v11205_v3  ;;  %v11262_v3 = vld [vmem:[#allocation8 + $0x220] sm:$0xff] }
 0x798   :  { %6186 = vmatpush.bf16.msra.mxu3 %v11213_v4 }
 0x799   :  { %5539 = vmatmul.bf16.gmra.mxu3 %v11193_v46  ;;  %v11256_v46 = vld [vmem:[#allocation8 + $0x1f0] sm:$0xff] }
 0x79a   :  { %6278 = vmatpush.bf16.msrb.mxu0 %v11256_v46 }
 0x79b   :  { %6149 = vmatpush.bf16.msra.mxu1 %v11196_v61  ;;  %6168 = vmatpush.bf16.msra.mxu2 %v11204_v55  ;;  %v11254_v61 = vld [vmem:[#allocation8 + $0x1e0] sm:$0xff]  ;;  %v11253_v55 = vld [vmem:[#allocation8 + $0x1d8] sm:$0xff] }
 0x79c   :  { %6187 = vmatpush.bf16.msra.mxu3 %v11212_v11  ;;  %v11261_v11 = vld [vmem:[#allocation8 + $0x218] sm:$0xff] }
 0x79e   :  { %6279 = vmatpush.bf16.msrb.mxu0 %v11255_v24 }
 0x79f   :  { %6150 = vmatpush.bf16.msra.mxu1 %v11195_v28  ;;  %6169 = vmatpush.bf16.msra.mxu2 %v11203_v54  ;;  %v11244_v28 = vld [vmem:[#allocation8 + $0x190] sm:$0xff] }
 0x7a0   :  { %6188 = vmatpush.bf16.msra.mxu3 %v11211_v2 }
 0x7a2   :  { %6280 = vmatpush.bf16.msrb.mxu0 %v11254_v61 }
 0x7a3   :  { %6151 = vmatpush.bf16.msra.mxu1 %v11194_v17  ;;  %6170 = vmatpush.bf16.msra.mxu2 %v11202_v26  ;;  %v11243_v17 = vld [vmem:[#allocation8 + $0x188] sm:$0xff] }
 0x7a4   :  { %6189 = vmatpush.bf16.msra.mxu3 %v11210_v57 }
 0x7a6   :  { %6281 = vmatpush.bf16.msrb.mxu0 %v11253_v55 }
 0x7a7   :  { %6220 = vmatpush.bf16.msrb.mxu1 %v11233_v39  ;;  %6239 = vmatpush.bf16.msrb.mxu2 %v11241_v59  ;;  %v11260_v39 = vld [vmem:[#allocation8 + $0x210] sm:$0xff]  ;;  %v11251_v59 = vld [vmem:[#allocation8 + $0x1c8] sm:$0xff] }
 0x7a8   :  { %6258 = vmatpush.bf16.msrb.mxu3 %v11249_v30 }
 0x7aa   :  { %6282 = vmatpush.bf16.msrb.mxu0 %v11252_v45 }
 0x7ab   :  { %6221 = vmatpush.bf16.msrb.mxu1 %v11232_v36  ;;  %6240 = vmatpush.bf16.msrb.mxu2 %v11240_v18 }
 0x7ac   :  { %6259 = vmatpush.bf16.msrb.mxu3 %v11248_v56 }
 0x7ae   :  { %6283 = vmatpush.bf16.msrb.mxu0 %v11251_v59 }
 0x7af   :  { %6222 = vmatpush.bf16.msrb.mxu1 %v11231_v58  ;;  %6241 = vmatpush.bf16.msrb.mxu2 %v11239_v5  ;;  %v11250_v58 = vld [vmem:[#allocation8 + $0x1c0] sm:$0xff] }
 0x7b0   :  { %6260 = vmatpush.bf16.msrb.mxu3 %v11247_v29 }
 0x7b2   :  { %6284 = vmatpush.bf16.msrb.mxu0 %v11250_v58 }
 0x7b3   :  { %6223 = vmatpush.bf16.msrb.mxu1 %v11230_v10  ;;  %6242 = vmatpush.bf16.msrb.mxu2 %v11238_v20 }
 0x7b4   :  { %6261 = vmatpush.bf16.msrb.mxu3 %v11246_v37 }
 0x7b7   :  { %6224 = vmatpush.bf16.msrb.mxu1 %v11229_v6  ;;  %6243 = vmatpush.bf16.msrb.mxu2 %v11237_v22 }
 0x7b8   :  { %6262 = vmatpush.bf16.msrb.mxu3 %v11245_v44 }
 0x7bb   :  { %6225 = vmatpush.bf16.msrb.mxu1 %v11228_v35  ;;  %6244 = vmatpush.bf16.msrb.mxu2 %v11236_v47 }
 0x7bc   :  { %6263 = vmatpush.bf16.msrb.mxu3 %v11244_v28 }
 0x7bf   :  { %6226 = vmatpush.bf16.msrb.mxu1 %v11227_v41  ;;  %6245 = vmatpush.bf16.msrb.mxu2 %v11235_v49 }
 0x7c0   :  { %6264 = vmatpush.bf16.msrb.mxu3 %v11243_v17  ;;  %v11433_v17 = vld [vmem:[#allocation14 + $0x1] ss:$0 sm:$0xff] }
 0x7c3   :  { %v5247_v21 = vpop.f32.mrf.mxu1  ;;  %6227 = vmatpush.bf16.msrb.mxu1 %v11226_v48  ;;  %6246 = vmatpush.bf16.msrb.mxu2 %v11234_v0 }
 0x7c4   :  { %6265 = vmatpush.bf16.msrb.mxu3 %v11242_v14 }
 0x7c9   :  { %v5283_v15 = vpop.f32.mrf.mxu2 }
 0x7cb   :  { %v5249_v50 = vpop.f32.mrf.mxu1 }
 0x7cc   :  { %v5319_v42 = vpop.f32.mrf.mxu3  ;;  %v5545_v53 = vpack.c.bf16 %v5249_v50, %v5247_v21 }
 0x7ce   :  { %6152 = vmatmul.bf16.vlgmr.msra.gmra.mxu1 %v5545_v53 }
 0x7cf   :  { %6296 = vmatpush.bf16.msra.mxu1 %v11265_v27 }
 0x7d1   :  { %v5285_v34 = vpop.f32.mrf.mxu2 }
 0x7d2   :  { %v5546_v33 = vpack.c.bf16 %v5285_v34, %v5283_v15 }
 0x7d3   :  { %v5252_v13 = vpop.f32.mrf.mxu1  ;;  %6297 = vmatpush.bf16.msra.mxu1 %v11264_v62 }
 0x7d4   :  { %v5321_v23 = vpop.f32.mrf.mxu3  ;;  %6171 = vmatmul.bf16.vlgmr.msra.gmra.mxu2 %v5546_v33 }
 0x7d5   :  { %v5547_v60 = vpack.c.bf16 %v5321_v23, %v5319_v42 }
 0x7d7   :  { %6190 = vmatmul.bf16.vlgmr.msra.gmra.mxu3 %v5547_v60  ;;  %6298 = vmatpush.bf16.msra.mxu1 %v11263_v7 }
 0x7d9   :  { %v5288_v19 = vpop.f32.mrf.mxu2 }
 0x7db   :  { %v5254_v1 = vpop.f32.mrf.mxu1  ;;  %6299 = vmatpush.bf16.msra.mxu1 %v11262_v3 }
 0x7dc   :  { %v5324_v51 = vpop.f32.mrf.mxu3  ;;  %v5554_v25 = vpack.c.bf16 %v5254_v1, %v5252_v13 }
 0x7de   :  { %6157 = vmatmul.bf16.gmra.mxu1 %v5554_v25 }
 0x7df   :  { %6300 = vmatpush.bf16.msra.mxu1 %v11261_v11 }
 0x7e1   :  { %v5290_v38 = vpop.f32.mrf.mxu2 }
 0x7e2   :  { %v5555_v63 = vpack.c.bf16 %v5290_v38, %v5288_v19 }
 0x7e3   :  { %v5355_v4 = vpop.f32.mrf.mxu1  ;;  %6301 = vmatpush.bf16.msra.mxu1 %v11260_v39 }
 0x7e4   :  { %v5326_v12 = vpop.f32.mrf.mxu3  ;;  %6176 = vmatmul.bf16.gmra.mxu2 %v5555_v63 }
 0x7e5   :  { %v5556_v32 = vpack.c.bf16 %v5326_v12, %v5324_v51 }
 0x7e7   :  { %6195 = vmatmul.bf16.gmra.mxu3 %v5556_v32  ;;  %6302 = vmatpush.bf16.msra.mxu1 %v11259_v9 }
 0x7e9   :  { %v5391_v54 = vpop.f32.mrf.mxu2 }
 0x7eb   :  { %v5357_v26 = vpop.f32.mrf.mxu1  ;;  %6303 = vmatpush.bf16.msra.mxu1 %v11258_v52 }
 0x7ec   :  { %v5427_v2 = vpop.f32.mrf.mxu3  ;;  %v5548_v57 = vpack.c.bf16 %v5357_v26, %v5355_v4 }
 0x7ee   :  { %6209 = vmatmul.bf16.vlgmr.msra.gmra.mxu0 %v5548_v57 }
 0x7f1   :  { %v5393_v36 = vpop.f32.mrf.mxu2 }
 0x7f2   :  { %v5549_v43 = vpack.c.bf16 %v5393_v36, %v5391_v54 }
 0x7f3   :  { %v5360_v5 = vpop.f32.mrf.mxu1 }
 0x7f4   :  { %v5429_v18 = vpop.f32.mrf.mxu3  ;;  %6228 = vmatmul.bf16.vlgmr.msrb.gmra.mxu1 %v5549_v43 }
 0x7f5   :  { %v5550_v21 = vpack.c.bf16 %v5429_v18, %v5427_v2 }
 0x7f7   :  { %6247 = vmatmul.bf16.vlgmr.msrb.gmra.mxu2 %v5550_v21 }
 0x7f9   :  { %v5396_v10 = vpop.f32.mrf.mxu2 }
 0x7fb   :  { %v5362_v6 = vpop.f32.mrf.mxu1 }
 0x7fc   :  { %v5432_v20 = vpop.f32.mrf.mxu3  ;;  %v5557_v31 = vpack.c.bf16 %v5362_v6, %v5360_v5 }
 0x7fe   :  { %6214 = vmatmul.bf16.gmra.mxu0 %v5557_v31 }
 0x801   :  { %v5398_v22 = vpop.f32.mrf.mxu2 }
 0x802   :  { %v5558_v8 = vpack.c.bf16 %v5398_v22, %v5396_v10 }
 0x803   :  { %v5463_v42 = vpop.f32.mrf.mxu1 }
 0x804   :  { %v5434_v15 = vpop.f32.mrf.mxu3  ;;  %6233 = vmatmul.bf16.gmra.mxu1 %v5558_v8 }
 0x805   :  { %v5559_v50 = vpack.c.bf16 %v5434_v15, %v5432_v20 }
 0x807   :  { %6252 = vmatmul.bf16.gmra.mxu2 %v5559_v50 }
 0x809   :  { %v5499_v35 = vpop.f32.mrf.mxu2 }
 0x80b   :  { %v5465_v53 = vpop.f32.mrf.mxu1 }
 0x80c   :  { %v5535_v47 = vpop.f32.mrf.mxu3  ;;  %v5551_v30 = vpack.c.bf16 %v5465_v53, %v5463_v42 }
 0x80e   :  { %6266 = vmatmul.bf16.vlgmr.msrb.gmra.mxu3 %v5551_v30 }
 0x811   :  { %v5501_v41 = vpop.f32.mrf.mxu2 }
 0x812   :  { %v5552_v34 = vpack.c.bf16 %v5501_v41, %v5499_v35 }
 0x813   :  { %v5468_v49 = vpop.f32.mrf.mxu1 }
 0x814   :  { %v5537_v40 = vpop.f32.mrf.mxu3  ;;  %6285 = vmatmul.bf16.vlgmr.msrb.gmra.mxu0 %v5552_v34 }
 0x815   :  { %v5553_v33 = vpack.c.bf16 %v5537_v40, %v5535_v47 }
 0x817   :  { %6304 = vmatmul.bf16.vlgmr.msra.gmra.mxu1 %v5553_v33 }
 0x819   :  { %v5504_v23 = vpop.f32.mrf.mxu2 }
 0x81b   :  { %v5470_v60 = vpop.f32.mrf.mxu1 }
 0x81c   :  { %v5540_v13 = vpop.f32.mrf.mxu3  ;;  %v5560_v48 = vpack.c.bf16 %v5470_v60, %v5468_v49 }
 0x81e   :  { %6271 = vmatmul.bf16.gmra.mxu3 %v5560_v48 }
 0x821   :  { %v5506_v0 = vpop.f32.mrf.mxu2 }
 0x822   :  { %v5561_v16 = vpack.c.bf16 %v5506_v0, %v5504_v23 }
 0x824   :  { %v5542_v56 = vpop.f32.mrf.mxu3  ;;  %6290 = vmatmul.bf16.gmra.mxu0 %v5561_v16 }
 0x825   :  { %v5562_v29 = vpack.c.bf16 %v5542_v56, %v5540_v13  ;;  %v11848_v56 = vmov 32.0  }
 0x826   :  { %11446 = vrcp.f32 %v11848_v56  ;;  %v11435_v56 = vld [vmem:[#allocation17 + $0x1] ss:$0 sm:$0xff] }
 0x827   :  { %6309 = vmatmul.bf16.gmra.mxu1 %v5562_v29 }
 0x84b   :  { %v6153_v27 = vpop.f32.mrf.mxu1 }
 0x84c   :  { %v6154_v39 = vadd.f32 %v11433_v17, %v6153_v27 }
 0x853   :  { %v6155_v19 = vpop.f32.mrf.mxu1 }
 0x854   :  { %v6156_v54 = vadd.f32 %v11433_v17, %v6155_v19 }
 0x857   :  { %v6172_v51 = vpop.f32.mrf.mxu2 }
 0x858   :  { %v6173_v9 = vadd.f32 %v6172_v51, %v6154_v39 }
 0x85a   :  { %v6191_v25 = vpop.f32.mrf.mxu3 }
 0x85b   :  { %v6158_v1 = vpop.f32.mrf.mxu1  ;;  %v6192_v58 = vadd.f32 %v6191_v25, %v6173_v9 }
 0x85c   :  { %v6159_v59 = vadd.f32 %v11433_v17, %v6158_v1 }
 0x85f   :  { %v6174_v46 = vpop.f32.mrf.mxu2 }
 0x860   :  { %v6175_v26 = vadd.f32 %v6174_v46, %v6156_v54 }
 0x862   :  { %v6193_v44 = vpop.f32.mrf.mxu3 }
 0x863   :  { %v6160_v62 = vpop.f32.mrf.mxu1  ;;  %v6194_v36 = vadd.f32 %v6193_v44, %v6175_v26 }
 0x864   :  { %v6161_v22 = vadd.f32 %v11433_v17, %v6160_v62  ;;  %v11447_v62 = vpop.eup %11446 }
 0x865   :  { %vm6333_vm4 = vweird.f32 %v11447_v62 }
 0x867   :  { %v6177_v7 = vpop.f32.mrf.mxu2 }
 0x868   :  { %v6178_v18 = vadd.f32 %v6177_v7, %v6159_v59 }
 0x86a   :  { %v6196_v32 = vpop.f32.mrf.mxu3 }
 0x86b   :  { %v6210_v37 = vpop.f32.mrf.mxu0  ;;  %v6197_v10 = vadd.f32 %v6196_v32, %v6178_v18 }
 0x86c   :  { %v6211_v43 = vadd.f32 %v6210_v37, %v6192_v58 }
 0x86f   :  { %v6179_v12 = vpop.f32.mrf.mxu2 }
 0x870   :  { %v6180_v50 = vadd.f32 %v6179_v12, %v6161_v22  ;;  %v6329_v12 = vmul.f32 32.0, %v11447_v62 }
 0x871   :  { %v6229_v24 = vpop.f32.mrf.mxu1 }
 0x872   :  { %v6198_v28 = vpop.f32.mrf.mxu3  ;;  %v6230_v15 = vadd.f32 %v6229_v24, %v6211_v43 }
 0x873   :  { %v6212_v38 = vpop.f32.mrf.mxu0  ;;  %v6199_v49 = vadd.f32 %v6198_v28, %v6180_v50  ;;  %v6330_v28 = vsub.f32 1.0, %v6329_v12  ;;  %v11272_v12 = vld [vmem:[#allocation11 + $0x30] sm:$0xff] }
 0x874   :  { %v6213_v52 = vadd.f32 %v6212_v38, %v6194_v36 }
 0x875   :  { %v6331_v17 = vmul.f32 %v11447_v62, %v6330_v28  ;;  %v6426_v28 = vld [vmem:[#allocation10 + $0x8] sm:$0xf] }
 0x879   :  { %v6231_v63 = vpop.f32.mrf.mxu1 }
 0x87a   :  { %v6248_v4 = vpop.f32.mrf.mxu2  ;;  %v6232_v21 = vadd.f32 %v6231_v63, %v6213_v52 }
 0x87b   :  { %v6215_v61 = vpop.f32.mrf.mxu0  ;;  %v6249_v47 = vadd.f32 %v6248_v4, %v6230_v15 }
 0x87c   :  { %v6216_v8 = vadd.f32 %v6215_v61, %v6197_v10 }
 0x881   :  { %v6234_v3 = vpop.f32.mrf.mxu1 }
 0x882   :  { %v6250_v45 = vpop.f32.mrf.mxu2  ;;  %v6235_v35 = vadd.f32 %v6234_v3, %v6216_v8 }
 0x883   :  { %v6217_v55 = vpop.f32.mrf.mxu0  ;;  %v6251_v42 = vadd.f32 %v6250_v45, %v6232_v21  ;;  %v6332_v45 = vadd.f32 %v11447_v62, %v6331_v17  ;;  %v11270_v17 = vld [vmem:[#allocation11 + $0x20] sm:$0xff] }
 0x884   :  { %v6218_v60 = vadd.f32 %v6217_v55, %v6199_v49 }
 0x889   :  { %v6236_v11 = vpop.f32.mrf.mxu1 }
 0x88a   :  { %v6253_v31 = vpop.f32.mrf.mxu2  ;;  %v6237_v29 = vadd.f32 %v6236_v11, %v6218_v60 }
 0x88b   :  { %v6254_v41 = vadd.f32 %v6253_v31, %v6235_v35 }
 0x891   :  { %v6267_v2 = vpop.f32.mrf.mxu3  ;;  %v6286_v57 = vpop.f32.mrf.mxu0 }
 0x892   :  { %v6268_v30 = vadd.f32 %v6267_v2, %v6249_v47  ;;  %v6255_v16 = vpop.f32.mrf.mxu2 }
 0x893   :  { %v6256_v51 = vadd.f32 %v6255_v16, %v6237_v29 }
 0x894   :  { %v6305_v14 = vpop.f32.mrf.mxu1  ;;  %v6287_v48 = vadd.f32 %v6286_v57, %v6268_v30  ;;  %v6334_v57 = vsel %vm6333_vm4, %v11447_v62, %v6332_v45  ;;  %v11294_v45 = vld [vmem:[#allocation11 + $0xe0] sm:$0xff] }
 0x896   :  { %v6306_v19 = vadd.f32 %v6305_v14, %v6287_v48 }
 0x898   :  { %v6315_v7 = vmax.f32 %v6306_v19, 0.0 }
 0x899   :  { %v6269_v5 = vpop.f32.mrf.mxu3  ;;  %v6288_v20 = vpop.f32.mrf.mxu0 }
 0x89a   :  { %v6270_v53 = vadd.f32 %v6269_v5, %v6251_v42 }
 0x89c   :  { %v6307_v6 = vpop.f32.mrf.mxu1  ;;  %v6289_v34 = vadd.f32 %v6288_v20, %v6270_v53 }
 0x89e   :  { %v6308_v27 = vadd.f32 %v6307_v6, %v6289_v34 }
 0x8a0   :  { %v6316_v25 = vmax.f32 %v6308_v27, 0.0 }
 0x8a1   :  { %v6272_v40 = vpop.f32.mrf.mxu3  ;;  %v6291_v23 = vpop.f32.mrf.mxu0 }
 0x8a2   :  { %v6273_v33 = vadd.f32 %v6272_v40, %v6254_v41  ;;  %v6319_v32 = vadd.f32 %v6316_v25, %v6315_v7 }
 0x8a4   :  { %v6310_v13 = vpop.f32.mrf.mxu1  ;;  %v6292_v0 = vadd.f32 %v6291_v23, %v6273_v33  ;;  %v11434_v33 = vld [vmem:[#allocation16 + $0x1] ss:$0 sm:$0xff] }
 0x8a6   :  { %v6311_v1 = vadd.f32 %v6310_v13, %v6292_v0 }
 0x8a8   :  { %v6317_v44 = vmax.f32 %v6311_v1, 0.0 }
 0x8a9   :  { %v6274_v46 = vpop.f32.mrf.mxu3  ;;  %v6293_v24 = vpop.f32.mrf.mxu0 }
 0x8aa   :  { %v6275_v37 = vadd.f32 %v6274_v46, %v6256_v51  ;;  %v6320_v3 = vadd.f32 %v6319_v32, %v6317_v44  ;;  %v11297_v32 = vld [vmem:[#allocation11 + $0xf8] sm:$0xff] }
 0x8ac   :  { %v6294_v38 = vadd.f32 %v6293_v24, %v6275_v37  ;;  %v6312_v63 = vpop.f32.mrf.mxu1  ;;  %v6389_v24 = vld [vmem:[#allocation10] sm:$0xf] }
 0x8ae   :  { %v6313_v61 = vadd.f32 %v6312_v63, %v6294_v38  ;;  %v6534_v38 = vld [vmem:[#allocation10 + $0x20] sm:$0xf] }
 0x8af   :  { %v11273_v63 = vld [vmem:[#allocation11 + $0x38] sm:$0xff] }
 0x8b0   :  { %v6318_v4 = vmax.f32 %v6313_v61, 0.0  ;;  %v11296_v61 = vld [vmem:[#allocation11 + $0xf0] sm:$0xff] }
 0x8b2   :  { %v6321_v55 = vadd.f32 %v6320_v3, %v6318_v4  ;;  %v11271_v3 = vld [vmem:[#allocation11 + $0x28] sm:$0xff] }
 0x8b4   :  { %v6322_v11 = vrot.slane %v6321_v55, 4 }
 0x8b6   :  { %v6323_v54 = vadd.f32 %v6322_v11, %v6321_v55  ;;  %v6444_v55 = vld [vmem:[#allocation10 + $0xc] sm:$0xf]  ;;  %v6480_v11 = vld [vmem:[#allocation10 + $0x14] sm:$0xf] }
 0x8b8   :  { %v6324_v2 = vrot.slane %v6323_v54, 2 }
 0x8ba   :  { %v6325_v39 = vadd.f32 %v6324_v2, %v6323_v54  ;;  %v11281_v54 = vld [vmem:[#allocation11 + $0x78] sm:$0xff] }
 0x8bb   :  { %v11289_v2 = vld [vmem:[#allocation11 + $0xb8] sm:$0xff] }
 0x8bc   :  { %v6326_v26 = vrot.slane %v6325_v39, 1 }
 0x8be   :  { %v6327_v14 = vadd.f32 %v6326_v26, %v6325_v39  ;;  %v11269_v39 = vld [vmem:[#allocation11 + $0x18] sm:$0xff]  ;;  %v11280_v26 = vld [vmem:[#allocation11 + $0x70] sm:$0xff] }
 0x8c0   :  { %v6335_v59 = vmul.f32 %v6334_v57, %v6327_v14  ;;  %v11293_v14 = vld [vmem:[#allocation11 + $0xd8] sm:$0xff] }
 0x8c2   :  { %v6336_v9 = vsub.f32 %v6315_v7, %v6335_v59  ;;  %v6337_v36 = vsub.f32 %v6316_v25, %v6335_v59  ;;  %v6338_v18 = vsub.f32 %v6317_v44, %v6335_v59  ;;  %v6339_v58 = vsub.f32 %v6318_v4, %v6335_v59  ;;  %v6408_v7 = vld [vmem:[#allocation10 + $0x4] sm:$0xf]  ;;  %v6462_v44 = vld [vmem:[#allocation10 + $0x10] sm:$0xf]  ;;  %v11268_v59 = vld [vmem:[#allocation11 + $0x10] sm:$0xff] }
 0x8c3   :  { %v11295_v4 = vld [vmem:[#allocation11 + $0xe8] sm:$0xff] }
 0x8c4   :  { %v6340_v52 = vmul.f32 %v6336_v9, %v6336_v9  ;;  %v6341_v5 = vmul.f32 %v6337_v36, %v6337_v36  ;;  %v6342_v43 = vmul.f32 %v6338_v18, %v6338_v18  ;;  %v6343_v10 = vmul.f32 %v6339_v58, %v6339_v58 }
 0x8c6   :  { %v6344_v21 = vadd.f32 %v6341_v5, %v6340_v52  ;;  %v11286_v52 = vld [vmem:[#allocation11 + $0xa0] sm:$0xff]  ;;  %v6498_v5 = vld [vmem:[#allocation10 + $0x18] sm:$0xf] }
 0x8c8   :  { %v6345_v20 = vadd.f32 %v6344_v21, %v6342_v43  ;;  %v6516_v43 = vld [vmem:[#allocation10 + $0x1c] sm:$0xf]  ;;  %v11266_v21 = vld [vmem:[#allocation11] sm:$0xff] }
 0x8ca   :  { %v6346_v6 = vadd.f32 %v6345_v20, %v6343_v10  ;;  %v11277_v10 = vld [vmem:[#allocation11 + $0x58] sm:$0xff] }
 0x8cb   :  { %v11305_v20 = vld [vmem:[#allocation11 + $0x138] sm:$0xff] }
 0x8cc   :  { %v6347_v31 = vrot.slane %v6346_v6, 4 }
 0x8ce   :  { %v6348_v22 = vadd.f32 %v6347_v31, %v6346_v6  ;;  %v11285_v6 = vld [vmem:[#allocation11 + $0x98] sm:$0xff]  ;;  %v11276_v31 = vld [vmem:[#allocation11 + $0x50] sm:$0xff] }
 0x8d0   :  { %v6349_v15 = vrot.slane %v6348_v22, 2 }
 0x8d2   :  { %v6350_v8 = vadd.f32 %v6349_v15, %v6348_v22  ;;  %v11304_v22 = vld [vmem:[#allocation11 + $0x130] sm:$0xff] }
 0x8d3   :  { %v11284_v15 = vld [vmem:[#allocation11 + $0x90] sm:$0xff] }
 0x8d4   :  { %v6351_v42 = vrot.slane %v6350_v8, 1 }
 0x8d6   :  { %v6352_v50 = vadd.f32 %v6351_v42, %v6350_v8  ;;  %v11275_v8 = vld [vmem:[#allocation11 + $0x48] sm:$0xff] }
 0x8d7   :  { %v11303_v42 = vld [vmem:[#allocation11 + $0x128] sm:$0xff] }
 0x8d8   :  { %v6353_v35 = vmul.f32 %v6352_v50, %v6334_v57  ;;  %v11288_v57 = vld [vmem:[#allocation11 + $0xb0] sm:$0xff]  ;;  %v11283_v50 = vld [vmem:[#allocation11 + $0x88] sm:$0xff] }
 0x8da   :  { %v6354_v47 = vadd.f32 1e-05, %v6353_v35  ;;  %v11302_v35 = vld [vmem:[#allocation11 + $0x120] sm:$0xff] }
 0x8dc   :  { %11448 = vrsqrt.f32 %v6354_v47  ;;  %vm6361_vm6 = vweird.f32 %v6354_v47 }
 0x8e2   :  { %v11449_v53 = vpop.eup %11448 }
 0x8e3   :  { %v6356_v30 = vmul.f32 %v11449_v53, %v6354_v47  ;;  %vm6362_vm5 = vweird.f32 %v11449_v53  ;;  %v11274_v47 = vld [vmem:[#allocation11 + $0x40] sm:$0xff] }
 0x8e4   :  { %vm6363_vm7 = vmor %vm6361_vm6, %vm6362_vm5 }
 0x8e5   :  { %v6357_v41 = vmul.f32 %v11449_v53, %v6356_v30  ;;  %v11313_v30 = vld [vmem:[#allocation11 + $0x178] sm:$0xff] }
 0x8e7   :  { %v6358_v40 = vmul.f32 0.5, %v6357_v41  ;;  %v11292_v41 = vld [vmem:[#allocation11 + $0xd0] sm:$0xff] }
 0x8e9   :  { %v6359_v49 = vsub.f32 1.5, %v6358_v40  ;;  %v11300_v40 = vld [vmem:[#allocation11 + $0x110] sm:$0xff] }
 0x8eb   :  { %v6360_v34 = vmul.f32 %v11449_v53, %v6359_v49  ;;  %v11312_v49 = vld [vmem:[#allocation11 + $0x170] sm:$0xff] }
 0x8ed   :  { %v6364_v23 = vsel %vm6363_vm7, %v11449_v53, %v6360_v34  ;;  %v11301_v53 = vld [vmem:[#allocation11 + $0x118] sm:$0xff]  ;;  %v11291_v34 = vld [vmem:[#allocation11 + $0xc8] sm:$0xff] }
 0x8ee   :  { %v6365_v13 = vmul.f32 %v6364_v23, %v6336_v9  ;;  %v6366_v60 = vmul.f32 %v6364_v23, %v6337_v36  ;;  %v6367_v48 = vmul.f32 %v6364_v23, %v6338_v18  ;;  %v6368_v0 = vmul.f32 %v6364_v23, %v6339_v58  ;;  %v11279_v9 = vld [vmem:[#allocation11 + $0x68] sm:$0xff]  ;;  %v11278_v58 = vld [vmem:[#allocation11 + $0x60] sm:$0xff]  ;;  %v11321_v23 = vld [vmem:[#allocation11 + $0x1b8] sm:$0xff] }
 0x8ef   :  { %v11287_v36 = vld [vmem:[#allocation11 + $0xa8] sm:$0xff] }
 0x8f0   :  { %v6374_v16 = vmul.f32 %v11434_v33, %v6365_v13  ;;  %v6375_v29 = vmul.f32 %v11434_v33, %v6366_v60  ;;  %v6376_v27 = vmul.f32 %v11434_v33, %v6367_v48  ;;  %v6377_v19 = vmul.f32 %v11434_v33, %v6368_v0  ;;  %v11267_v18 = vld [vmem:[#allocation11 + $0x8] sm:$0xff]  ;;  %v11282_v33 = vld [vmem:[#allocation11 + $0x80] sm:$0xff]  ;;  %v11329_v0 = vld [vmem:[#allocation11 + $0x1f8] sm:$0xff] }
 0x8f1   :  { %v11299_v13 = vld [vmem:[#allocation11 + $0x108] sm:$0xff]  ;;  %v11290_v48 = vld [vmem:[#allocation11 + $0xc0] sm:$0xff] }
 0x8f2   :  { %v6385_v51 = vadd.f32 %v11435_v56, %v6376_v27  ;;  %v6386_v1 = vadd.f32 %v11435_v56, %v6377_v19  ;;  %v6383_v46 = vadd.f32 %v11435_v56, %v6374_v16  ;;  %v6384_v62 = vadd.f32 %v11435_v56, %v6375_v29  ;;  %v11311_v60 = vld [vmem:[#allocation11 + $0x168] sm:$0xff]  ;;  %v11298_v56 = vld [vmem:[#allocation11 + $0x100] sm:$0xff]  ;;  %v11320_v29 = vld [vmem:[#allocation11 + $0x1b0] sm:$0xff] }
 0x8f3   :  { %v11310_v16 = vld [vmem:[#allocation11 + $0x160] sm:$0xff]  ;;  %v11328_v27 = vld [vmem:[#allocation11 + $0x1f0] sm:$0xff]  ;;  %v11319_v19 = vld [vmem:[#allocation11 + $0x1a8] sm:$0xff] }
 0x8f4   :  { %v6388_v25 = vpack.c.bf16 %v6386_v1, %v6385_v51  ;;  %v6387_v37 = vpack.c.bf16 %v6384_v62, %v6383_v46  ;;  %v11309_v51 = vld [vmem:[#allocation11 + $0x158] sm:$0xff]  ;;  %v11327_v1 = vld [vmem:[#allocation11 + $0x1e8] sm:$0xff]  ;;  %v11308_v46 = vld [vmem:[#allocation11 + $0x150] sm:$0xff] }
 0x8f5   :  { %v11318_v62 = vld [vmem:[#allocation11 + $0x1a0] sm:$0xff] }
 0x8f6   :  { %6400 = vmatpush.bf16.msra.mxu2 %v6388_v25  ;;  %6418 = vmatpush.bf16.msra.mxu3 %v6388_v25 }
 0x8f7   :  { %6472 = vmatpush.bf16.msrb.mxu1 %v6388_v25  ;;  %6544 = vmatpush.bf16.msra.mxu0 %v6388_v25 }
 0x8fa   :  { %6401 = vmatpush.bf16.msra.mxu2 %v6387_v37  ;;  %6419 = vmatpush.bf16.msra.mxu3 %v6387_v37 }
 0x8fb   :  { %6473 = vmatpush.bf16.msrb.mxu1 %v6387_v37  ;;  %6545 = vmatpush.bf16.msra.mxu0 %v6387_v37 }
 0x8fd   :  { %10182 = vmatmul.msk.bf16.vlgmr.msra.gmra.mxu2 %vm6390_vm8, %v6389_v24  ;;  %10183 = vmatmul.msk.bf16.vlgmr.msra.gmra.mxu3 %vm6390_vm8, %v6408_v7  ;;  %v11307_v24 = vld [vmem:[#allocation11 + $0x148] sm:$0xff]  ;;  %v11325_v7 = vld [vmem:[#allocation11 + $0x1d8] sm:$0xff] }
 0x8fe   :  { %6436 = vmatpush.bf16.msrb.mxu2 %v6388_v25  ;;  %6454 = vmatpush.bf16.msrb.mxu3 %v6388_v25 }
 0x8ff   :  { %6490 = vmatpush.bf16.msra.mxu1 %v6388_v25  ;;  %10190 = vmatmul.msk.bf16.vlgmr.msra.gmra.mxu0 %vm6390_vm8, %v6534_v38  ;;  %v11316_v38 = vld [vmem:[#allocation11 + $0x190] sm:$0xff] }
 0x900   :  { %10186 = vmatmul.msk.bf16.vlgmr.msrb.gmra.mxu1 %vm6390_vm8, %v6462_v44  ;;  %7180 = vmatpush.bf16.msrb.mxu0 %v11297_v32  ;;  %v11306_v44 = vld [vmem:[#allocation11 + $0x140] sm:$0xff]  ;;  %v11315_v32 = vld [vmem:[#allocation11 + $0x188] sm:$0xff] }
 0x902   :  { %6437 = vmatpush.bf16.msrb.mxu2 %v6387_v37  ;;  %6455 = vmatpush.bf16.msrb.mxu3 %v6387_v37 }
 0x903   :  { %6491 = vmatpush.bf16.msra.mxu1 %v6387_v37 }
 0x904   :  { %7181 = vmatpush.bf16.msrb.mxu0 %v11296_v61  ;;  %v11323_v61 = vld [vmem:[#allocation11 + $0x1c8] sm:$0xff] }
 0x906   :  { %6508 = vmatpush.bf16.msra.mxu2 %v6388_v25  ;;  %6526 = vmatpush.bf16.msra.mxu3 %v6388_v25  ;;  %v11326_v25 = vld [vmem:[#allocation11 + $0x1e0] sm:$0xff] }
 0x907   :  { %7141 = vmatpush.bf16.msrb.mxu1 %v11273_v63  ;;  %v11324_v63 = vld [vmem:[#allocation11 + $0x1d0] sm:$0xff] }
 0x908   :  { %7182 = vmatpush.bf16.msrb.mxu0 %v11295_v4  ;;  %v11337_v4 = vld [vmem:[#allocation11 + $0x238] sm:$0xff] }
 0x90a   :  { %6509 = vmatpush.bf16.msra.mxu2 %v6387_v37  ;;  %6527 = vmatpush.bf16.msra.mxu3 %v6387_v37  ;;  %v11317_v37 = vld [vmem:[#allocation11 + $0x198] sm:$0xff] }
 0x90b   :  { %7142 = vmatpush.bf16.msrb.mxu1 %v11272_v12 }
 0x90c   :  { %7183 = vmatpush.bf16.msrb.mxu0 %v11294_v45 }
 0x90d   :  { %10184 = vmatmul.msk.bf16.vlgmr.msrb.gmra.mxu2 %vm6390_vm8, %v6426_v28  ;;  %10185 = vmatmul.msk.bf16.vlgmr.msrb.gmra.mxu3 %vm6390_vm8, %v6444_v55 }
 0x90e   :  { %7154 = vmatpush.bf16.msrb.mxu2 %v11281_v54  ;;  %7167 = vmatpush.bf16.msrb.mxu3 %v11289_v2 }
 0x90f   :  { %7143 = vmatpush.bf16.msrb.mxu1 %v11271_v3 }
 0x910   :  { %10187 = vmatmul.msk.bf16.vlgmr.msra.gmra.mxu1 %vm6390_vm8, %v6480_v11  ;;  %7184 = vmatpush.bf16.msrb.mxu0 %v11293_v14  ;;  %v11314_v11 = vld [vmem:[#allocation11 + $0x180] sm:$0xff] }
 0x912   :  { %7155 = vmatpush.bf16.msrb.mxu2 %v11280_v26  ;;  %7168 = vmatpush.bf16.msrb.mxu3 %v11288_v57  ;;  %v11335_v57 = vld [vmem:[#allocation11 + $0x228] sm:$0xff] }
 0x913   :  { %7144 = vmatpush.bf16.msrb.mxu1 %v11270_v17  ;;  %v11322_v17 = vld [vmem:[#allocation11 + $0x1c0] sm:$0xff] }
 0x914   :  { %7185 = vmatpush.bf16.msrb.mxu0 %v11292_v41 }
 0x916   :  { %7156 = vmatpush.bf16.msrb.mxu2 %v11279_v9  ;;  %7169 = vmatpush.bf16.msrb.mxu3 %v11287_v36  ;;  %v11334_v36 = vld [vmem:[#allocation11 + $0x220] sm:$0xff] }
 0x917   :  { %7145 = vmatpush.bf16.msrb.mxu1 %v11269_v39  ;;  %v11336_v39 = vld [vmem:[#allocation11 + $0x230] sm:$0xff] }
 0x918   :  { %7186 = vmatpush.bf16.msrb.mxu0 %v11291_v34 }
 0x91a   :  { %7157 = vmatpush.bf16.msrb.mxu2 %v11278_v58  ;;  %7170 = vmatpush.bf16.msrb.mxu3 %v11286_v52  ;;  %v11333_v58 = vld [vmem:[#allocation11 + $0x218] sm:$0xff] }
 0x91b   :  { %7146 = vmatpush.bf16.msrb.mxu1 %v11268_v59 }
 0x91c   :  { %7187 = vmatpush.bf16.msrb.mxu0 %v11290_v48 }
 0x91d   :  { %10188 = vmatmul.msk.bf16.vlgmr.msra.gmra.mxu2 %vm6390_vm8, %v6498_v5  ;;  %10189 = vmatmul.msk.bf16.vlgmr.msra.gmra.mxu3 %vm6390_vm8, %v6516_v43 }
 0x91e   :  { %7158 = vmatpush.bf16.msrb.mxu2 %v11277_v10  ;;  %7171 = vmatpush.bf16.msrb.mxu3 %v11285_v6  ;;  %v11332_v6 = vld [vmem:[#allocation11 + $0x210] sm:$0xff] }
 0x91f   :  { %7147 = vmatpush.bf16.msrb.mxu1 %v11267_v18 }
 0x920   :  { %7232 = vmatpush.bf16.msra.mxu0 %v11329_v0 }
 0x922   :  { %7159 = vmatpush.bf16.msrb.mxu2 %v11276_v31  ;;  %7172 = vmatpush.bf16.msrb.mxu3 %v11284_v15 }
 0x923   :  { %7148 = vmatpush.bf16.msrb.mxu1 %v11266_v21 }
 0x924   :  { %7233 = vmatpush.bf16.msra.mxu0 %v11328_v27 }
 0x926   :  { %7160 = vmatpush.bf16.msrb.mxu2 %v11275_v8  ;;  %7173 = vmatpush.bf16.msrb.mxu3 %v11283_v50  ;;  %v11330_v8 = vld [vmem:[#allocation11 + $0x200] sm:$0xff] }
 0x927   :  { %7193 = vmatpush.bf16.msra.mxu1 %v11305_v20 }
 0x928   :  { %7234 = vmatpush.bf16.msra.mxu0 %v11327_v1 }
 0x92a   :  { %7161 = vmatpush.bf16.msrb.mxu2 %v11274_v47  ;;  %7174 = vmatpush.bf16.msrb.mxu3 %v11282_v33 }
 0x92b   :  { %7194 = vmatpush.bf16.msra.mxu1 %v11304_v22  ;;  %v11331_v22 = vld [vmem:[#allocation11 + $0x208] sm:$0xff] }
 0x92c   :  { %7235 = vmatpush.bf16.msra.mxu0 %v11326_v25 }
 0x92e   :  { %7206 = vmatpush.bf16.msra.mxu2 %v11313_v30  ;;  %7219 = vmatpush.bf16.msra.mxu3 %v11321_v23 }
 0x92f   :  { %7195 = vmatpush.bf16.msra.mxu1 %v11303_v42 }
 0x930   :  { %7236 = vmatpush.bf16.msra.mxu0 %v11325_v7 }
 0x932   :  { %7207 = vmatpush.bf16.msra.mxu2 %v11312_v49  ;;  %7220 = vmatpush.bf16.msra.mxu3 %v11320_v29 }
 0x933   :  { %7196 = vmatpush.bf16.msra.mxu1 %v11302_v35 }
 0x934   :  { %7237 = vmatpush.bf16.msra.mxu0 %v11324_v63 }
 0x936   :  { %7208 = vmatpush.bf16.msra.mxu2 %v11311_v60  ;;  %7221 = vmatpush.bf16.msra.mxu3 %v11319_v19 }
 0x937   :  { %7197 = vmatpush.bf16.msra.mxu1 %v11301_v53 }
 0x938   :  { %7238 = vmatpush.bf16.msra.mxu0 %v11323_v61 }
 0x93a   :  { %7209 = vmatpush.bf16.msra.mxu2 %v11310_v16  ;;  %7222 = vmatpush.bf16.msra.mxu3 %v11318_v62 }
 0x93b   :  { %7198 = vmatpush.bf16.msra.mxu1 %v11300_v40 }
 0x93c   :  { %7239 = vmatpush.bf16.msra.mxu0 %v11322_v17 }
 0x93e   :  { %7210 = vmatpush.bf16.msra.mxu2 %v11309_v51  ;;  %7223 = vmatpush.bf16.msra.mxu3 %v11317_v37 }
 0x93f   :  { %7199 = vmatpush.bf16.msra.mxu1 %v11299_v13  ;;  %v11436_v13 = vld [vmem:[#allocation14 + $0x2] ss:$0 sm:$0xff] }
 0x942   :  { %7211 = vmatpush.bf16.msra.mxu2 %v11308_v46  ;;  %7224 = vmatpush.bf16.msra.mxu3 %v11316_v38  ;;  %v11849_v46 = vmov 8.0  }
 0x943   :  { %7200 = vmatpush.bf16.msra.mxu1 %v11298_v56  ;;  %11450 = vrcp.f32 %v11849_v46  ;;  %v11361_v46 = vld [vmem:[#allocation13 + $0xb8] sm:$0xff] }
 0x946   :  { %7212 = vmatpush.bf16.msra.mxu2 %v11307_v24  ;;  %7225 = vmatpush.bf16.msra.mxu3 %v11315_v32 }
 0x949   :  { %v11451_v7 = vpop.eup %11450 }
 0x94a   :  { %7213 = vmatpush.bf16.msra.mxu2 %v11306_v44  ;;  %7226 = vmatpush.bf16.msra.mxu3 %v11314_v11  ;;  %vm7270_vm9 = vweird.f32 %v11451_v7 }
 0x97c   :  { %v6547_v45 = vpop.f32.mrf.mxu0 }
 0x97d   :  { %v6475_v12 = vpop.f32.mrf.mxu1  ;;  %v6559_v42 = vpack.c.bf16 %v6547_v45, %v6547_v45 }
 0x97e   :  { %v6555_v52 = vpack.c.bf16 %v6475_v12, %v6475_v12  ;;  %v7266_v12 = vmul.f32 8.0, %v11451_v7 }
 0x980   :  { %v6403_v3 = vpop.f32.mrf.mxu2  ;;  %v6421_v55 = vpop.f32.mrf.mxu3 }
 0x981   :  { %v6551_v28 = vpack.c.bf16 %v6403_v3, %v6403_v3  ;;  %v6552_v54 = vpack.c.bf16 %v6421_v55, %v6421_v55 }
 0x983   :  { %7149 = vmatmul.bf16.vlgmr.msrb.gmra.mxu1 %v6551_v28  ;;  %7162 = vmatmul.bf16.vlgmr.msrb.gmra.mxu2 %v6552_v54  ;;  %v7267_v28 = vsub.f32 1.0, %v7266_v12  ;;  %v11359_v12 = vld [vmem:[#allocation13 + $0xa8] sm:$0xff] }
 0x984   :  { %7245 = vmatpush.bf16.msrb.mxu1 %v11337_v4  ;;  %v6549_v9 = vpop.f32.mrf.mxu0 }
 0x985   :  { %v6477_v2 = vpop.f32.mrf.mxu1  ;;  %v7268_v54 = vmul.f32 %v11451_v7, %v7267_v28  ;;  %v11366_v28 = vld [vmem:[#allocation13 + $0xe0] sm:$0xff] }
 0x988   :  { %v6405_v26 = vpop.f32.mrf.mxu2  ;;  %7246 = vmatpush.bf16.msrb.mxu1 %v11336_v39  ;;  %v6423_v14 = vpop.f32.mrf.mxu3  ;;  %v7269_v39 = vadd.f32 %v11451_v7, %v7268_v54  ;;  %v11377_v54 = vld [vmem:[#allocation13 + $0x138] sm:$0xff] }
 0x98a   :  { %v7271_v14 = vsel %vm7270_vm9, %v11451_v7, %v7269_v39  ;;  %v11360_v7 = vld [vmem:[#allocation13 + $0xb0] sm:$0xff] }
 0x98b   :  { %v11376_v39 = vld [vmem:[#allocation13 + $0x130] sm:$0xff] }
 0x98c   :  { %7247 = vmatpush.bf16.msrb.mxu1 %v11335_v57 }
 0x98d   :  { %v6493_v59 = vpop.f32.mrf.mxu1 }
 0x98e   :  { %v6556_v21 = vpack.c.bf16 %v6493_v59, %v6493_v59 }
 0x990   :  { %v6439_v18 = vpop.f32.mrf.mxu2  ;;  %7248 = vmatpush.bf16.msrb.mxu1 %v11334_v36  ;;  %v6457_v43 = vpop.f32.mrf.mxu3 }
 0x991   :  { %v6553_v5 = vpack.c.bf16 %v6439_v18, %v6439_v18  ;;  %v6554_v10 = vpack.c.bf16 %v6457_v43, %v6457_v43 }
 0x993   :  { %7175 = vmatmul.bf16.vlgmr.msrb.gmra.mxu3 %v6553_v5  ;;  %7201 = vmatmul.bf16.vlgmr.msra.gmra.mxu1 %v6555_v52 }
 0x994   :  { %7188 = vmatmul.bf16.vlgmr.msrb.gmra.mxu0 %v6554_v10  ;;  %7249 = vmatpush.bf16.msrb.mxu1 %v11333_v58 }
 0x995   :  { %v6495_v20 = vpop.f32.mrf.mxu1  ;;  %7214 = vmatmul.bf16.vlgmr.msra.gmra.mxu2 %v6556_v21 }
 0x998   :  { %v6441_v31 = vpop.f32.mrf.mxu2  ;;  %7250 = vmatpush.bf16.msrb.mxu1 %v11332_v6  ;;  %v6459_v15 = vpop.f32.mrf.mxu3 }
 0x99c   :  { %7251 = vmatpush.bf16.msrb.mxu1 %v11331_v22 }
 0x9a0   :  { %v6511_v50 = vpop.f32.mrf.mxu2  ;;  %7252 = vmatpush.bf16.msrb.mxu1 %v11330_v8  ;;  %v6529_v47 = vpop.f32.mrf.mxu3 }
 0x9a1   :  { %v6557_v35 = vpack.c.bf16 %v6511_v50, %v6511_v50  ;;  %v6558_v53 = vpack.c.bf16 %v6529_v47, %v6529_v47 }
 0x9a3   :  { %7227 = vmatmul.bf16.vlgmr.msra.gmra.mxu3 %v6557_v35  ;;  %7253 = vmatmul.bf16.vlgmr.msrb.gmra.mxu1 %v6559_v42  ;;  %v11437_v35 = vld [vmem:[#allocation16 + $0x2] ss:$0 sm:$0xff] }
 0x9a4   :  { %7240 = vmatmul.bf16.vlgmr.msra.gmra.mxu0 %v6558_v53 }
 0x9a8   :  { %v6513_v30 = vpop.f32.mrf.mxu2  ;;  %v6531_v41 = vpop.f32.mrf.mxu3 }
 0x9a9   :  { %v11438_v30 = vld [vmem:[#allocation17 + $0x2] ss:$0 sm:$0xff] }
 0xa00   :  { %v7150_v40 = vpop.f32.mrf.mxu1 }
 0xa01   :  { %v7151_v48 = vadd.f32 %v11436_v13, %v7150_v40  ;;  %v10482_v13 = vld [vmem:[%s13889_s7 + $0x2] sm:$0x1] }
 0xa06   :  { %v7163_v49 = vpop.f32.mrf.mxu2 }
 0xa07   :  { %v7164_v56 = vadd.f32 %v7163_v49, %v7151_v48  ;;  %v10490_v48 = vld [vmem:[%s13889_s7 + $0x6] sm:$0x1] }
 0xa08   :  { %v7152_v34 = vpop.f32.mrf.mxu1 }
 0xa0e   :  { %v7165_v33 = vpop.f32.mrf.mxu2 }
 0xa0f   :  { %v7307_v33 = vld [vmem:[%s13889_s7] sm:$0x1] }
 0xa10   :  { %v7202_v23 = vpop.f32.mrf.mxu1 }
 0xa11   :  { %v7189_v60 = vpop.f32.mrf.mxu0 }
 0xa16   :  { %v7176_v0 = vpop.f32.mrf.mxu3 }
 0xa17   :  { %v7177_v27 = vadd.f32 %v7176_v0, %v7164_v56  ;;  %v11344_v0 = vld [vmem:[#allocation13 + $0x30] sm:$0xff]  ;;  %v11353_v56 = vld [vmem:[#allocation13 + $0x78] sm:$0xff] }
 0xa18   :  { %v7204_v16 = vpop.f32.mrf.mxu1  ;;  %v7215_v29 = vpop.f32.mrf.mxu2 }
 0xa19   :  { %v7191_v19 = vpop.f32.mrf.mxu0  ;;  %v7190_v51 = vadd.f32 %v7189_v60, %v7177_v27  ;;  %v11345_v60 = vld [vmem:[#allocation13 + $0x38] sm:$0xff]  ;;  %v11352_v16 = vld [vmem:[#allocation13 + $0x70] sm:$0xff]  ;;  %v11351_v27 = vld [vmem:[#allocation13 + $0x68] sm:$0xff] }
 0xa1a   :  { %v11342_v19 = vld [vmem:[#allocation13 + $0x20] sm:$0xff] }
 0xa1b   :  { %v7203_v37 = vadd.f32 %v7202_v23, %v7190_v51  ;;  %v10480_v23 = vld [vmem:[%s13889_s7 + $0x1] sm:$0x1]  ;;  %v10484_v51 = vld [vmem:[%s13889_s7 + $0x3] sm:$0x1] }
 0xa1d   :  { %v7216_v44 = vadd.f32 %v7215_v29, %v7203_v37  ;;  %v11343_v29 = vld [vmem:[#allocation13 + $0x28] sm:$0xff]  ;;  %v10488_v37 = vld [vmem:[%s13889_s7 + $0x5] sm:$0x1] }
 0xa1e   :  { %v7178_v1 = vpop.f32.mrf.mxu3 }
 0xa1f   :  { %v10486_v1 = vld [vmem:[%s13889_s7 + $0x4] sm:$0x1] }
 0xa20   :  { %v7254_v62 = vpop.f32.mrf.mxu1  ;;  %v7217_v25 = vpop.f32.mrf.mxu2 }
 0xa21   :  { %v7241_v24 = vpop.f32.mrf.mxu0  ;;  %v11350_v25 = vld [vmem:[#allocation13 + $0x60] sm:$0xff] }
 0xa26   :  { %v7228_v38 = vpop.f32.mrf.mxu3 }
 0xa27   :  { %v7229_v63 = vadd.f32 %v7228_v38, %v7216_v44  ;;  %v11368_v44 = vld [vmem:[#allocation13 + $0xf0] sm:$0xff]  ;;  %v11349_v38 = vld [vmem:[#allocation13 + $0x58] sm:$0xff] }
 0xa28   :  { %v7256_v32 = vpop.f32.mrf.mxu1 }
 0xa29   :  { %v7242_v61 = vadd.f32 %v7241_v24, %v7229_v63  ;;  %v7243_v3 = vpop.f32.mrf.mxu0  ;;  %v11341_v24 = vld [vmem:[#allocation13 + $0x18] sm:$0xff]  ;;  %v11340_v63 = vld [vmem:[#allocation13 + $0x10] sm:$0xff]  ;;  %v11367_v32 = vld [vmem:[#allocation13 + $0xe8] sm:$0xff] }
 0xa2a   :  { %v11339_v3 = vld [vmem:[#allocation13 + $0x8] sm:$0xff] }
 0xa2b   :  { %v7255_v4 = vadd.f32 %v7254_v62, %v7242_v61  ;;  %v11369_v62 = vld [vmem:[#allocation13 + $0xf8] sm:$0xff]  ;;  %v11348_v61 = vld [vmem:[#allocation13 + $0x50] sm:$0xff] }
 0xa2d   :  { %v7258_v55 = vmax.f32 %v7255_v4, 0.0  ;;  %v11358_v4 = vld [vmem:[#allocation13 + $0xa0] sm:$0xff] }
 0xa2e   :  { %v7230_v11 = vpop.f32.mrf.mxu3 }
 0xa2f   :  { %v7259_v17 = vrot.slane %v7258_v55, 4  ;;  %v10492_v11 = vld [vmem:[%s13889_s7 + $0x7] sm:$0x1] }
 0xa31   :  { %v7260_v2 = vadd.f32 %v7259_v17, %v7258_v55  ;;  %v10494_v17 = vld [vmem:[%s13889_s7 + $0x8] sm:$0x1]  ;;  %s11851_s7 = smov [#allocation19]  }
 0xa32   :  { %s8237_s9 = sshll.u32 %s11851_s7, 4  ;;  %s8238_s9 = int_to_ptr.vmem [resolvable:$true] %s8237_s9 }
 0xa33   :  { %v7261_v45 = vrot.slane %v7260_v2, 2 }
 0xa35   :  { %v7262_v26 = vadd.f32 %v7261_v45, %v7260_v2  ;;  %v11357_v2 = vld [vmem:[#allocation13 + $0x98] sm:$0xff] }
 0xa36   :  { %v11365_v45 = vld [vmem:[#allocation13 + $0xd8] sm:$0xff] }
 0xa37   :  { %v7263_v57 = vrot.slane %v7262_v26, 1 }
 0xa39   :  { %v7264_v59 = vadd.f32 %v7263_v57, %v7262_v26  ;;  %v11356_v26 = vld [vmem:[#allocation13 + $0x90] sm:$0xff] }
 0xa3a   :  { %v11364_v57 = vld [vmem:[#allocation13 + $0xd0] sm:$0xff] }
 0xa3b   :  { %v7272_v9 = vmul.f32 %v7271_v14, %v7264_v59  ;;  %v11355_v59 = vld [vmem:[#allocation13 + $0x88] sm:$0xff] }
 0xa3d   :  { %v7273_v36 = vsub.f32 %v7258_v55, %v7272_v9  ;;  %v11338_v55 = vld [vmem:[#allocation13] sm:$0xff]  ;;  %v11363_v9 = vld [vmem:[#allocation13 + $0xc8] sm:$0xff] }
 0xa3f   :  { %v7274_v18 = vmul.f32 %v7273_v36, %v7273_v36 }
 0xa41   :  { %v7275_v58 = vrot.slane %v7274_v18, 4 }
 0xa43   :  { %v7276_v52 = vadd.f32 %v7275_v58, %v7274_v18  ;;  %v11373_v18 = vld [vmem:[#allocation13 + $0x118] sm:$0xff]  ;;  %v11347_v58 = vld [vmem:[#allocation13 + $0x48] sm:$0xff] }
 0xa45   :  { %v7277_v5 = vrot.slane %v7276_v52, 2 }
 0xa47   :  { %v7278_v43 = vadd.f32 %v7277_v5, %v7276_v52  ;;  %v11354_v52 = vld [vmem:[#allocation13 + $0x80] sm:$0xff]  ;;  %v11393_v5 = vld [vmem:[#allocation13 + $0x1b8] sm:$0xff] }
 0xa49   :  { %v7279_v21 = vrot.slane %v7278_v43, 1 }
 0xa4b   :  { %v7280_v10 = vadd.f32 %v7279_v21, %v7278_v43  ;;  %v11372_v43 = vld [vmem:[#allocation13 + $0x110] sm:$0xff]  ;;  %v11346_v21 = vld [vmem:[#allocation13 + $0x40] sm:$0xff] }
 0xa4d   :  { %v7281_v20 = vmul.f32 %v7280_v10, %v7271_v14  ;;  %v11375_v14 = vld [vmem:[#allocation13 + $0x128] sm:$0xff]  ;;  %v11385_v10 = vld [vmem:[#allocation13 + $0x178] sm:$0xff] }
 0xa4f   :  { %v7282_v6 = vadd.f32 1e-05, %v7281_v20  ;;  %v11392_v20 = vld [vmem:[#allocation13 + $0x1b0] sm:$0xff] }
 0xa51   :  { %11452 = vrsqrt.f32 %v7282_v6  ;;  %vm7289_vm11 = vweird.f32 %v7282_v6 }
 0xa57   :  { %v11453_v31 = vpop.eup %11452 }
 0xa58   :  { %v7284_v22 = vmul.f32 %v11453_v31, %v7282_v6  ;;  %vm7290_vm10 = vweird.f32 %v11453_v31  ;;  %v11362_v6 = vld [vmem:[#allocation13 + $0xc0] sm:$0xff] }
 0xa59   :  { %vm7291_vm12 = vmor %vm7289_vm11, %vm7290_vm10 }
 0xa5a   :  { %v7285_v15 = vmul.f32 %v11453_v31, %v7284_v22  ;;  %v11371_v22 = vld [vmem:[#allocation13 + $0x108] sm:$0xff] }
 0xa5c   :  { %v7286_v8 = vmul.f32 0.5, %v7285_v15  ;;  %v11384_v15 = vld [vmem:[#allocation13 + $0x170] sm:$0xff] }
 0xa5e   :  { %v7287_v42 = vsub.f32 1.5, %v7286_v8  ;;  %v11391_v8 = vld [vmem:[#allocation13 + $0x1a8] sm:$0xff] }
 0xa60   :  { %v7288_v50 = vmul.f32 %v11453_v31, %v7287_v42  ;;  %v11370_v42 = vld [vmem:[#allocation13 + $0x100] sm:$0xff] }
 0xa62   :  { %v7292_v47 = vsel %vm7291_vm12, %v11453_v31, %v7288_v50  ;;  %v11401_v31 = vld [vmem:[#allocation13 + $0x1f8] sm:$0xff]  ;;  %v11400_v50 = vld [vmem:[#allocation13 + $0x1f0] sm:$0xff] }
 0xa63   :  { %v7293_v53 = vmul.f32 %v7292_v47, %v7273_v36  ;;  %v11374_v36 = vld [vmem:[#allocation13 + $0x120] sm:$0xff] }
 0xa64   :  { %v11390_v47 = vld [vmem:[#allocation13 + $0x1a0] sm:$0xff] }
 0xa65   :  { %v7299_v41 = vmul.f32 %v11437_v35, %v7293_v53  ;;  %v11383_v35 = vld [vmem:[#allocation13 + $0x168] sm:$0xff] }
 0xa66   :  { %v11399_v53 = vld [vmem:[#allocation13 + $0x1e8] sm:$0xff] }
 0xa67   :  { %v7305_v40 = vadd.f32 %v11438_v30, %v7299_v41  ;;  %v11382_v30 = vld [vmem:[#allocation13 + $0x160] sm:$0xff]  ;;  %v11389_v41 = vld [vmem:[#allocation13 + $0x198] sm:$0xff] }
 0xa69   :  { %v7306_v49 = vpack.c.bf16 %v7305_v40, %v7305_v40  ;;  %v11381_v40 = vld [vmem:[#allocation13 + $0x158] sm:$0xff] }
 0xa6b   :  { %v7314_v34 = vsel %vm7312_vm13, %v7306_v49, 0  ;;  %v11388_v49 = vld [vmem:[#allocation13 + $0x190] sm:$0xff] }
 0xa6c   :  { %7323 = vmatpush.bf16.msrb.mxu2 %v7314_v34  ;;  %7341 = vmatpush.bf16.msrb.mxu3 %v7314_v34 }
 0xa6d   :  { %7359 = vmatpush.bf16.msrb.mxu0 %v7314_v34  ;;  %7431 = vmatpush.bf16.msra.mxu1 %v7314_v34 }
 0xa6f   :  { %10479 = vmatmul.msk.bf16.vlgmr.msrb.gmra.mxu2 %vm7308_vm14, %v7307_v33  ;;  %10481 = vmatmul.msk.bf16.vlgmr.msrb.gmra.mxu3 %vm7308_vm14, %v10480_v23  ;;  %v11397_v33 = vld [vmem:[#allocation13 + $0x1d8] sm:$0xff]  ;;  %v11380_v23 = vld [vmem:[#allocation13 + $0x150] sm:$0xff] }
 0xa70   :  { %7377 = vmatpush.bf16.msra.mxu2 %v7314_v34  ;;  %7395 = vmatpush.bf16.msra.mxu3 %v7314_v34 }
 0xa71   :  { %7413 = vmatpush.bf16.msra.mxu0 %v7314_v34  ;;  %10491 = vmatmul.msk.bf16.vlgmr.msra.gmra.mxu1 %vm7308_vm14, %v10490_v48  ;;  %v11379_v48 = vld [vmem:[#allocation13 + $0x148] sm:$0xff] }
 0xa72   :  { %10483 = vmatmul.msk.bf16.vlgmr.msrb.gmra.mxu0 %vm7308_vm14, %v10482_v13  ;;  %8076 = vmatpush.bf16.msrb.mxu1 %v11353_v56  ;;  %v11387_v13 = vld [vmem:[#allocation13 + $0x188] sm:$0xff] }
 0xa73   :  { %v11395_v56 = vld [vmem:[#allocation13 + $0x1c8] sm:$0xff] }
 0xa74   :  { %7449 = vmatpush.bf16.msrb.mxu2 %v7314_v34  ;;  %7467 = vmatpush.bf16.msrb.mxu3 %v7314_v34  ;;  %v11398_v34 = vld [vmem:[#allocation13 + $0x1e0] sm:$0xff] }
 0xa75   :  { %8063 = vmatpush.bf16.msrb.mxu0 %v11345_v60  ;;  %v11396_v60 = vld [vmem:[#allocation13 + $0x1d0] sm:$0xff] }
 0xa76   :  { %8077 = vmatpush.bf16.msrb.mxu1 %v11352_v16 }
 0xa79   :  { %8064 = vmatpush.bf16.msrb.mxu0 %v11344_v0  ;;  %v11386_v0 = vld [vmem:[#allocation13 + $0x180] sm:$0xff] }
 0xa7a   :  { %8078 = vmatpush.bf16.msrb.mxu1 %v11351_v27 }
 0xa7d   :  { %8065 = vmatpush.bf16.msrb.mxu0 %v11343_v29  ;;  %v11378_v29 = vld [vmem:[#allocation13 + $0x140] sm:$0xff] }
 0xa7e   :  { %8079 = vmatpush.bf16.msrb.mxu1 %v11350_v25 }
 0xa7f   :  { %10485 = vmatmul.msk.bf16.vlgmr.msra.gmra.mxu2 %vm7308_vm14, %v10484_v51  ;;  %10487 = vmatmul.msk.bf16.vlgmr.msra.gmra.mxu3 %vm7308_vm14, %v10486_v1 }
 0xa80   :  { %8089 = vmatpush.bf16.msra.mxu2 %v11361_v46  ;;  %8102 = vmatpush.bf16.msra.mxu3 %v11369_v62  ;;  %v11409_v46 = vld [vmem:[#allocation13 + $0x238] sm:$0xff] }
 0xa81   :  { %8066 = vmatpush.bf16.msrb.mxu0 %v11342_v19 }
 0xa82   :  { %10489 = vmatmul.msk.bf16.vlgmr.msra.gmra.mxu0 %vm7308_vm14, %v10488_v37  ;;  %8080 = vmatpush.bf16.msrb.mxu1 %v11349_v38  ;;  %v11394_v37 = vld [vmem:[#allocation13 + $0x1c0] sm:$0xff] }
 0xa84   :  { %8090 = vmatpush.bf16.msra.mxu2 %v11360_v7  ;;  %8103 = vmatpush.bf16.msra.mxu3 %v11368_v44 }
 0xa85   :  { %8067 = vmatpush.bf16.msrb.mxu0 %v11341_v24  ;;  %v11408_v24 = vld [vmem:[#allocation13 + $0x230] sm:$0xff] }
 0xa86   :  { %8081 = vmatpush.bf16.msrb.mxu1 %v11348_v61  ;;  %v11406_v61 = vld [vmem:[#allocation13 + $0x220] sm:$0xff] }
 0xa88   :  { %8091 = vmatpush.bf16.msra.mxu2 %v11359_v12  ;;  %8104 = vmatpush.bf16.msra.mxu3 %v11367_v32  ;;  %v11407_v12 = vld [vmem:[#allocation13 + $0x228] sm:$0xff] }
 0xa89   :  { %8068 = vmatpush.bf16.msrb.mxu0 %v11340_v63 }
 0xa8a   :  { %8082 = vmatpush.bf16.msrb.mxu1 %v11347_v58 }
 0xa8c   :  { %8092 = vmatpush.bf16.msra.mxu2 %v11358_v4  ;;  %8105 = vmatpush.bf16.msra.mxu3 %v11366_v28 }
 0xa8d   :  { %8069 = vmatpush.bf16.msrb.mxu0 %v11339_v3 }
 0xa8e   :  { %8083 = vmatpush.bf16.msrb.mxu1 %v11346_v21 }
 0xa8f   :  { %10493 = vmatmul.msk.bf16.vlgmr.msrb.gmra.mxu2 %vm7308_vm14, %v10492_v11  ;;  %10495 = vmatmul.msk.bf16.vlgmr.msrb.gmra.mxu3 %vm7308_vm14, %v10494_v17 }
 0xa90   :  { %8093 = vmatpush.bf16.msra.mxu2 %v11357_v2  ;;  %8106 = vmatpush.bf16.msra.mxu3 %v11365_v45  ;;  %v11404_v2 = vld [vmem:[#allocation13 + $0x210] sm:$0xff] }
 0xa91   :  { %8070 = vmatpush.bf16.msrb.mxu0 %v11338_v55  ;;  %v11405_v55 = vld [vmem:[#allocation13 + $0x218] sm:$0xff] }
 0xa92   :  { %8128 = vmatpush.bf16.msra.mxu1 %v11385_v10 }
 0xa94   :  { %8094 = vmatpush.bf16.msra.mxu2 %v11356_v26  ;;  %8107 = vmatpush.bf16.msra.mxu3 %v11364_v57  ;;  %v11403_v57 = vld [vmem:[#allocation13 + $0x208] sm:$0xff] }
 0xa95   :  { %8115 = vmatpush.bf16.msra.mxu0 %v11377_v54 }
 0xa96   :  { %8129 = vmatpush.bf16.msra.mxu1 %v11384_v15 }
 0xa98   :  { %8095 = vmatpush.bf16.msra.mxu2 %v11355_v59  ;;  %8108 = vmatpush.bf16.msra.mxu3 %v11363_v9 }
 0xa99   :  { %8116 = vmatpush.bf16.msra.mxu0 %v11376_v39 }
 0xa9a   :  { %8130 = vmatpush.bf16.msra.mxu1 %v11383_v35 }
 0xa9c   :  { %8096 = vmatpush.bf16.msra.mxu2 %v11354_v52  ;;  %8109 = vmatpush.bf16.msra.mxu3 %v11362_v6 }
 0xa9d   :  { %8117 = vmatpush.bf16.msra.mxu0 %v11375_v14  ;;  %v11402_v14 = vld [vmem:[#allocation13 + $0x200] sm:$0xff] }
 0xa9e   :  { %8131 = vmatpush.bf16.msra.mxu1 %v11382_v30 }
 0xaa0   :  { %8141 = vmatpush.bf16.msrb.mxu2 %v11393_v5  ;;  %8154 = vmatpush.bf16.msrb.mxu3 %v11401_v31  ;;  %v11439_v31 = vld [vmem:[#allocation14 + $0x3] ss:$0 sm:$0xff] }
 0xaa1   :  { %8118 = vmatpush.bf16.msra.mxu0 %v11374_v36 }
 0xaa2   :  { %8132 = vmatpush.bf16.msra.mxu1 %v11381_v40 }
 0xaa4   :  { %8142 = vmatpush.bf16.msrb.mxu2 %v11392_v20  ;;  %8155 = vmatpush.bf16.msrb.mxu3 %v11400_v50 }
 0xaa5   :  { %8119 = vmatpush.bf16.msra.mxu0 %v11373_v18 }
 0xaa6   :  { %8133 = vmatpush.bf16.msra.mxu1 %v11380_v23 }
 0xaa8   :  { %8143 = vmatpush.bf16.msrb.mxu2 %v11391_v8  ;;  %8156 = vmatpush.bf16.msrb.mxu3 %v11399_v53 }
 0xaa9   :  { %8120 = vmatpush.bf16.msra.mxu0 %v11372_v43 }
 0xaaa   :  { %8134 = vmatpush.bf16.msra.mxu1 %v11379_v48 }
 0xaac   :  { %8144 = vmatpush.bf16.msrb.mxu2 %v11390_v47  ;;  %8157 = vmatpush.bf16.msrb.mxu3 %v11398_v34 }
 0xaad   :  { %8121 = vmatpush.bf16.msra.mxu0 %v11371_v22 }
 0xaae   :  { %8135 = vmatpush.bf16.msra.mxu1 %v11378_v29 }
 0xab0   :  { %8145 = vmatpush.bf16.msrb.mxu2 %v11389_v41  ;;  %8158 = vmatpush.bf16.msrb.mxu3 %v11397_v33  ;;  %v11850_v33 = vmov 2.0  }
 0xab1   :  { %8122 = vmatpush.bf16.msra.mxu0 %v11370_v42  ;;  %11454 = vrcp.f32 %v11850_v33 }
 0xab4   :  { %8146 = vmatpush.bf16.msrb.mxu2 %v11388_v49  ;;  %8159 = vmatpush.bf16.msrb.mxu3 %v11396_v60 }
 0xab7   :  { %v11455_v60 = vpop.eup %11454 }
 0xab8   :  { %8147 = vmatpush.bf16.msrb.mxu2 %v11387_v13  ;;  %8160 = vmatpush.bf16.msrb.mxu3 %v11395_v56  ;;  %vm8194_vm0 = vweird.f32 %v11455_v60 }
 0xabc   :  { %8148 = vmatpush.bf16.msrb.mxu2 %v11386_v0  ;;  %8161 = vmatpush.bf16.msrb.mxu3 %v11394_v37 }
 0xaee   :  { %v7433_v19 = vpop.f32.mrf.mxu1 }
 0xaef   :  { %v7361_v16 = vpop.f32.mrf.mxu0  ;;  %v7479_v32 = vpack.c.bf16 %v7433_v19, %v7433_v19 }
 0xaf0   :  { %v7475_v27 = vpack.c.bf16 %v7361_v16, %v7361_v16  ;;  %v8190_v16 = vmul.f32 2.0, %v11455_v60 }
 0xaf2   :  { %8097 = vmatmul.bf16.vlgmr.msra.gmra.mxu2 %v7475_v27  ;;  %v7325_v51 = vpop.f32.mrf.mxu2  ;;  %v7343_v1 = vpop.f32.mrf.mxu3 }
 0xaf3   :  { %v7473_v62 = vpack.c.bf16 %v7325_v51, %v7325_v51  ;;  %v7474_v25 = vpack.c.bf16 %v7343_v1, %v7343_v1  ;;  %v8191_v51 = vsub.f32 1.0, %v8190_v16 }
 0xaf5   :  { %8071 = vmatmul.bf16.vlgmr.msrb.gmra.mxu0 %v7473_v62  ;;  %8084 = vmatmul.bf16.vlgmr.msrb.gmra.mxu1 %v7474_v25  ;;  %v8192_v25 = vmul.f32 %v11455_v60, %v8191_v51 }
 0xaf6   :  { %8167 = vmatpush.bf16.msrb.mxu0 %v11409_v46  ;;  %v7435_v44 = vpop.f32.mrf.mxu1 }
 0xaf7   :  { %v7363_v7 = vpop.f32.mrf.mxu0 }
 0xaf8   :  { %v8193_v7 = vadd.f32 %v11455_v60, %v8192_v25 }
 0xafa   :  { %v7327_v38 = vpop.f32.mrf.mxu2  ;;  %v7345_v63 = vpop.f32.mrf.mxu3  ;;  %8168 = vmatpush.bf16.msrb.mxu0 %v11408_v24 }
 0xafb   :  { %v8195_v63 = vsel %vm8194_vm0, %v11455_v60, %v8193_v7 }
 0xafe   :  { %8169 = vmatpush.bf16.msrb.mxu0 %v11407_v12 }
 0xaff   :  { %v7415_v3 = vpop.f32.mrf.mxu0 }
 0xb00   :  { %v7478_v11 = vpack.c.bf16 %v7415_v3, %v7415_v3 }
 0xb02   :  { %8149 = vmatmul.bf16.vlgmr.msrb.gmra.mxu2 %v7479_v32  ;;  %v7379_v4 = vpop.f32.mrf.mxu2  ;;  %v7397_v28 = vpop.f32.mrf.mxu3  ;;  %8170 = vmatpush.bf16.msrb.mxu0 %v11406_v61 }
 0xb03   :  { %v7476_v17 = vpack.c.bf16 %v7379_v4, %v7379_v4  ;;  %v7477_v54 = vpack.c.bf16 %v7397_v28, %v7397_v28 }
 0xb05   :  { %8110 = vmatmul.bf16.vlgmr.msra.gmra.mxu3 %v7476_v17  ;;  %8123 = vmatmul.bf16.vlgmr.msra.gmra.mxu0 %v7477_v54 }
 0xb06   :  { %8171 = vmatpush.bf16.msrb.mxu0 %v11405_v55  ;;  %8136 = vmatmul.bf16.vlgmr.msra.gmra.mxu1 %v7478_v11 }
 0xb07   :  { %v7417_v45 = vpop.f32.mrf.mxu0 }
 0xb0a   :  { %v7381_v39 = vpop.f32.mrf.mxu2  ;;  %v7399_v26 = vpop.f32.mrf.mxu3  ;;  %8172 = vmatpush.bf16.msrb.mxu0 %v11404_v2 }
 0xb0e   :  { %8173 = vmatpush.bf16.msrb.mxu0 %v11403_v57 }
 0xb12   :  { %v7451_v59 = vpop.f32.mrf.mxu2  ;;  %v7469_v9 = vpop.f32.mrf.mxu3  ;;  %8174 = vmatpush.bf16.msrb.mxu0 %v11402_v14 }
 0xb13   :  { %v7480_v36 = vpack.c.bf16 %v7451_v59, %v7451_v59  ;;  %v7481_v18 = vpack.c.bf16 %v7469_v9, %v7469_v9 }
 0xb15   :  { %8162 = vmatmul.bf16.vlgmr.msrb.gmra.mxu3 %v7480_v36  ;;  %8175 = vmatmul.bf16.vlgmr.msrb.gmra.mxu0 %v7481_v18  ;;  %v11440_v18 = vld [vmem:[#allocation16 + $0x3] ss:$0 sm:$0xff] }
 0xb1a   :  { %v7453_v58 = vpop.f32.mrf.mxu2  ;;  %v7471_v52 = vpop.f32.mrf.mxu3 }
 0xb72   :  { %v8072_v5 = vpop.f32.mrf.mxu0  ;;  %v8085_v43 = vpop.f32.mrf.mxu1 }
 0xb73   :  { %v8073_v22 = vadd.f32 %v11439_v31, %v8072_v5  ;;  %v11441_v5 = vld [vmem:[#allocation17 + $0x3] ss:$0 sm:$0xff] }
 0xb75   :  { %v8098_v21 = vpop.f32.mrf.mxu2  ;;  %v8086_v50 = vadd.f32 %v8085_v43, %v8073_v22 }
 0xb77   :  { %v8099_v47 = vadd.f32 %v8098_v21, %v8086_v50 }
 0xb7a   :  { %v8074_v10 = vpop.f32.mrf.mxu0  ;;  %v8087_v20 = vpop.f32.mrf.mxu1 }
 0xb7d   :  { %v8100_v6 = vpop.f32.mrf.mxu2 }
 0xb82   :  { %v8124_v15 = vpop.f32.mrf.mxu0 }
 0xb83   :  { %v8137_v8 = vpop.f32.mrf.mxu1 }
 0xb85   :  { %v8150_v42 = vpop.f32.mrf.mxu2 }
 0xb88   :  { %v8111_v35 = vpop.f32.mrf.mxu3 }
 0xb89   :  { %v8112_v30 = vadd.f32 %v8111_v35, %v8099_v47 }
 0xb8a   :  { %v8126_v53 = vpop.f32.mrf.mxu0 }
 0xb8b   :  { %v8139_v41 = vpop.f32.mrf.mxu1  ;;  %v8125_v49 = vadd.f32 %v8124_v15, %v8112_v30 }
 0xb8d   :  { %v8152_v40 = vpop.f32.mrf.mxu2  ;;  %v8138_v13 = vadd.f32 %v8137_v8, %v8125_v49 }
 0xb8f   :  { %v8151_v48 = vadd.f32 %v8150_v42, %v8138_v13 }
 0xb90   :  { %v8113_v34 = vpop.f32.mrf.mxu3 }
 0xb92   :  { %v8176_v23 = vpop.f32.mrf.mxu0 }
 0xb98   :  { %v8163_v0 = vpop.f32.mrf.mxu3 }
 0xb99   :  { %v8164_v56 = vadd.f32 %v8163_v0, %v8151_v48 }
 0xb9a   :  { %v8178_v29 = vpop.f32.mrf.mxu0 }
 0xb9b   :  { %v8177_v27 = vadd.f32 %v8176_v23, %v8164_v56 }
 0xb9d   :  { %v8180_v19 = vmax.f32 %v8177_v27, 0.0 }
 0xb9f   :  { %v8182_v1 = vsel %vm8181_vm15, %v8180_v19, 0.0 }
 0xba0   :  { %v8183_v46 = vrot.slane %v8182_v1, 4  ;;  %v8165_v62 = vpop.f32.mrf.mxu3 }
 0xba2   :  { %v8184_v37 = vadd.f32 %v8183_v46, %v8182_v1 }
 0xba4   :  { %v8185_v24 = vrot.slane %v8184_v37, 2 }
 0xba6   :  { %v8186_v44 = vadd.f32 %v8185_v24, %v8184_v37 }
 0xba8   :  { %v8187_v38 = vrot.slane %v8186_v44, 1 }
 0xbaa   :  { %v8188_v12 = vadd.f32 %v8187_v38, %v8186_v44 }
 0xbac   :  { %v8196_v32 = vmul.f32 %v8195_v63, %v8188_v12 }
 0xbae   :  { %v8197_v61 = vsub.f32 %v8180_v19, %v8196_v32 }
 0xbb0   :  { %v8198_v3 = vmul.f32 %v8197_v61, %v8197_v61 }
 0xbb2   :  { %v8199_v4 = vsel %vm8181_vm15, %v8198_v3, 0.0 }
 0xbb3   :  { %v8200_v28 = vrot.slane %v8199_v4, 4 }
 0xbb5   :  { %v8201_v55 = vadd.f32 %v8200_v28, %v8199_v4 }
 0xbb7   :  { %v8202_v11 = vrot.slane %v8201_v55, 2 }
 0xbb9   :  { %v8203_v17 = vadd.f32 %v8202_v11, %v8201_v55 }
 0xbbb   :  { %v8204_v54 = vrot.slane %v8203_v17, 1 }
 0xbbd   :  { %v8205_v2 = vadd.f32 %v8204_v54, %v8203_v17 }
 0xbbf   :  { %v8206_v45 = vmul.f32 %v8205_v2, %v8195_v63 }
 0xbc1   :  { %v8207_v39 = vadd.f32 1e-05, %v8206_v45 }
 0xbc3   :  { %11456 = vrsqrt.f32 %v8207_v39  ;;  %vm8214_vm2 = vweird.f32 %v8207_v39 }
 0xbc9   :  { %v11457_v26 = vpop.eup %11456 }
 0xbca   :  { %v8209_v57 = vmul.f32 %v11457_v26, %v8207_v39  ;;  %vm8215_vm1 = vweird.f32 %v11457_v26 }
 0xbcb   :  { %vm8216_vm3 = vmor %vm8214_vm2, %vm8215_vm1 }
 0xbcc   :  { %v8210_v14 = vmul.f32 %v11457_v26, %v8209_v57 }
 0xbce   :  { %v8211_v59 = vmul.f32 0.5, %v8210_v14 }
 0xbd0   :  { %v8212_v9 = vsub.f32 1.5, %v8211_v59 }
 0xbd2   :  { %v8213_v36 = vmul.f32 %v11457_v26, %v8212_v9 }
 0xbd4   :  { %v8217_v58 = vsel %vm8216_vm3, %v11457_v26, %v8213_v36 }
 0xbd5   :  { %v8218_v52 = vmul.f32 %v8217_v58, %v8197_v61 }
 0xbd7   :  { %v8224_v43 = vmul.f32 %v11440_v18, %v8218_v52 }
 0xbd9   :  { %v8230_v21 = vadd.f32 %v11441_v5, %v8224_v43 }
 0xbdb   :  { %8231 = vst [vmem:[#allocation19] sm:$0x3] %v8230_v21 }
 0xbdc   :  { %8242 = dma.vmem_to_hbm [thread:$0]  %s8238_s9, 32, %s8240_s28, [#allocation4]  }
 0xbdd   :  { %11830 = dma.done.wait [#allocation4], 32  }
 0xbde   :  { %11831 = vsyncadd [#allocation4], 4294967264 }
 0xbdf   :  { %8247 = vsyncpa [#allocation3], 1 }
 0xbe0   :  { %8248 = vsyncpa [#allocation6], 1 }
 0xbe1   :  { %8249 = vsyncpa [#allocation9], 1 }
 0xbe2   :  { %8250 = vsyncpa [#allocation12], 1 }
 0xbe3   :  { %8251 = vsyncpa [#allocation15], 1 }
 0xbe4   :  { %8252 = vsyncpa [#allocation18], 1 }
 0xbe5   :  { %8253 = vsyncpa [#allocation4], 1 }

</bundles_post_ra>
